<compile_context>
chip_gen: v7x
topology: tpu7x:2x2x1
jax: 0.10.0
libtpu: 0.0.40
codegen_flags: <defaults>
</compile_context>

<pallas_src>
import numpy as np

import jax
import jax.numpy as jnp
from jax.experimental import pallas as pl
from jax.experimental.pallas import tpu as pltpu  # noqa: F401  (TPU backend)

KH = KW = 4  # every conv in the module is 4x4


def _out_hw(h, w, k, stride, pad):
    return (h + 2 * pad - k) // stride + 1, (w + 2 * pad - k) // stride + 1


def _make_tap_selectors(h, w, k, stride, pad):
    """0/1 selector matrices S[t] of shape (h*w, ho*wo).

    S[t][m_in, m_out] = 1 iff flattened input spatial position m_in is tap
    t = i*k + j of the conv window producing output position m_out (columns of
    out-of-bounds / padded taps are all-zero).  This turns the in-kernel
    im2col of a lane-dense (C, h*w) activation into plain MXU matmuls."""
    ho, wo = _out_hw(h, w, k, stride, pad)
    sel = np.zeros((k * k, h * w, ho * wo), np.float32)
    for i in range(k):
        for j in range(k):
            t = i * k + j
            for oy in range(ho):
                iy = stride * oy + i - pad
                if iy < 0 or iy >= h:
                    continue
                for ox in range(wo):
                    ix = stride * ox + j - pad
                    if ix < 0 or ix >= w:
                        continue
                    sel[t, iy * w + ix, oy * wo + ox] = 1.0
    return jnp.asarray(sel, jnp.bfloat16)   # exact 0/1 in bf16


def _im2col_input(x, k, stride, pad):
    """im2col of the raw NCHW input only, emitted directly in the kernel's
    (N, Cin*k*k, Ho*Wo) lane-dense orientation (no NCHW<->NHWC transposes)."""
    n, c, h, w = x.shape
    ho, wo = _out_hw(h, w, k, stride, pad)
    xp = jnp.pad(x, ((0, 0), (0, 0), (pad, pad), (pad, pad)))
    taps = []
    for i in range(k):
        for j in range(k):
            taps.append(xp[:, :, i:i + stride * (ho - 1) + 1:stride,
                           j:j + stride * (wo - 1) + 1:stride])
    col = jnp.stack(taps, axis=2)                  # (N, C, k*k, Ho, Wo)
    return col.reshape(n, c * k * k, ho * wo)      # K order = (c, i, j) = OIHW flatten


def _discriminator_kernel(cols1_ref, w1_ref, b1_ref,
                          p2_ref, w2_ref, b2_ref,
                          p3_ref, w3_ref, b3_ref,
                          wl_ref, bl_ref, o_ref):
    n_batch = cols1_ref.shape[0]
    n_taps2 = p2_ref.shape[0]
    n_taps3 = p3_ref.shape[0]
    c2 = w2_ref.shape[1]
    c3 = w3_ref.shape[1]
    m2 = p2_ref.shape[2]
    m3 = p3_ref.shape[2]

    acc = jnp.zeros((1, 1), jnp.float32)
    for n in range(n_batch):
        # ---- conv1: (O1,K1)@(K1,M1) + bias + ReLU, lane-dense (O1, M1) -----
        a1 = jnp.dot(w1_ref[...], cols1_ref[n],
                     preferred_element_type=jnp.float32)
        a1 = jnp.maximum(a1 + b1_ref[...], 0.0)            # f32 (C1, 256)
        a1b = a1.astype(jnp.bfloat16)

        # ---- conv2 (k4, s2, p1): per-tap selector-gather + weight matmul ---
        h2 = jnp.zeros((c2, m2), jnp.float32)
        for t in range(n_taps2):
            tap = jnp.dot(a1b, p2_ref[t],                  # (C1, 64) gather
                          preferred_element_type=jnp.float32)
            h2 = h2 + jnp.dot(w2_ref[t], tap.astype(jnp.bfloat16),
                              preferred_element_type=jnp.float32)
        a2 = jnp.maximum(h2 + b2_ref[...], 0.0)            # f32 (C2, 64)
        a2b = a2.astype(jnp.bfloat16)

        # ---- conv3 (k4, s1, p0) --------------------------------------------
        h3 = jnp.zeros((c3, m3), jnp.float32)
        for t in range(n_taps3):
            tap = jnp.dot(a2b, p3_ref[t],                  # (C2, 25) gather
                          preferred_element_type=jnp.float32)
            h3 = h3 + jnp.dot(w3_ref[t], tap.astype(jnp.bfloat16),
                              preferred_element_type=jnp.float32)
        a3 = jnp.maximum(h3 + b3_ref[...], 0.0)            # f32 (1, 25)

        # ---- final Linear partial sum: VPU elementwise + reduction ---------
        acc = acc + jnp.sum(wl_ref[n] * a3, keepdims=True)

    z = acc + bl_ref[...]
    # sigmoid = 1 / (1 + exp(-z)): exp on EUP, approx reciprocal on EUP
    o_ref[...] = pl.reciprocal(1.0 + jnp.exp(-z), approx=True)


def _full_block(shape):
    idx_maps = {2: lambda i: (0, 0), 3: lambda i: (0, 0, 0)}
    return pl.BlockSpec(shape, idx_maps[len(shape)])


@jax.jit
def discriminator_forward(x, packed):
    cols1 = _im2col_input(x, KH, stride=2, pad=1).astype(jnp.bfloat16)
    args = (cols1, packed["w1"], packed["b1"],
            packed["p2"], packed["w2"], packed["b2"],
            packed["p3"], packed["w3"], packed["b3"],
            packed["wl"], packed["bl"])
    y = pl.pallas_call(
        _discriminator_kernel,
        out_shape=jax.ShapeDtypeStruct((1, 1), jnp.float32),
        grid=(1,),
        in_specs=[_full_block(a.shape) for a in args],
        out_specs=_full_block((1, 1)),
    )(*args)
    return y.reshape(-1)                                   # shape (1,), as in PyTorch


def init_params(key, channel_img, feature_d, linear_in):
    ks = jax.random.split(key, 8)
    s = 0.05
    # TODO(synk): the reference module declares conv3 with in_channels=feature_d*4,
    # but the data flow from conv2 only provides feature_d*2 channels (the PyTorch
    # code would error at runtime); we use the data-flow-consistent feature_d*2.
    # TODO(synk): the reference module hardcodes nn.Linear(4096, 1); for the small
    # example shapes we size it to the actual flattened length implied by forward().
    return {
        "w1": jax.random.normal(ks[0], (feature_d, channel_img, KH, KW), jnp.float32) * s,
        "b1": jax.random.normal(ks[1], (feature_d,), jnp.float32) * s,
        "w2": jax.random.normal(ks[2], (feature_d * 2, feature_d, KH, KW), jnp.float32) * s,
        "b2": jax.random.normal(ks[3], (feature_d * 2,), jnp.float32) * s,
        "w3": jax.random.normal(ks[4], (1, feature_d * 2, KH, KW), jnp.float32) * s,
        "b3": jax.random.normal(ks[5], (1,), jnp.float32) * s,
        "wl": jax.random.normal(ks[6], (1, linear_in), jnp.float32) * s,
        "bl": jax.random.normal(ks[7], (1,), jnp.float32) * s,
    }


def pack_params(params, input_hw, batch):
    """Repack PyTorch-layout params into the fused kernel's layout:
    bf16 weight matrices in (tap, Cout, Cin) order, f32 (Cout, 1) biases,
    and the bf16 0/1 tap-selector matrices for conv2 / conv3."""
    h, w = input_hw
    fd = params["w1"].shape[0]
    fd2 = params["w2"].shape[0]
    oh1, ow1 = _out_hw(h, w, KH, 2, 1)
    oh2, ow2 = _out_hw(oh1, ow1, KH, 2, 1)
    oh3, ow3 = _out_hw(oh2, ow2, KH, 1, 0)
    return {
        "w1": params["w1"].reshape(fd, -1).astype(jnp.bfloat16),
        "b1": params["b1"].reshape(fd, 1).astype(jnp.float32),
        "p2": _make_tap_selectors(oh1, ow1, KH, 2, 1),
        "w2": params["w2"].transpose(2, 3, 0, 1).reshape(KH * KW, fd2, fd).astype(jnp.bfloat16),
        "b2": params["b2"].reshape(fd2, 1).astype(jnp.float32),
        "p3": _make_tap_selectors(oh2, ow2, KH, 1, 0),
        "w3": params["w3"].transpose(2, 3, 0, 1).reshape(KH * KW, 1, fd2).astype(jnp.bfloat16),
        "b3": params["b3"].reshape(1, 1).astype(jnp.float32),
        "wl": params["wl"].reshape(batch, 1, oh3 * ow3).astype(jnp.float32),
        "bl": params["bl"].reshape(1, 1).astype(jnp.float32),
    }


if __name__ == "__main__":
    channel_img, feature_d = 3, 8
    N, H, W = 2, 32, 32

    key = jax.random.PRNGKey(0)
    kx, kp = jax.random.split(key)
    x = jax.random.normal(kx, (N, channel_img, H, W), jnp.float32)

    # Flattened length implied by forward() for these shapes:
    oh1, ow1 = _out_hw(H, W, KH, 2, 1)      # 16 x 16
    oh2, ow2 = _out_hw(oh1, ow1, KH, 2, 1)  # 8 x 8
    oh3, ow3 = _out_hw(oh2, ow2, KH, 1, 0)  # 5 x 5
    linear_in = N * 1 * oh3 * ow3           # 50

    params = init_params(kp, channel_img, feature_d, linear_in)
    packed = pack_params(params, (H, W), N)

    out = discriminator_forward(x, packed)
    out = jax.block_until_ready(out)
    assert out.shape == (1,)
    assert bool(jnp.all((out >= 0.0) & (out <= 1.0)))
    print("KERNEL_OK")
</pallas_src>

<mosaic_0001>
module attributes {stable_mosaic.version = 11 : i64} {
  func.func @_discriminator_kernel(%arg0: i32, %arg1: memref<2x48x256xbf16, #tpu.memory_space<vmem>>, %arg2: memref<8x48xbf16, #tpu.memory_space<vmem>>, %arg3: memref<8x1xf32, #tpu.memory_space<vmem>>, %arg4: memref<16x256x64xbf16, #tpu.memory_space<vmem>>, %arg5: memref<16x16x8xbf16, #tpu.memory_space<vmem>>, %arg6: memref<16x1xf32, #tpu.memory_space<vmem>>, %arg7: memref<16x64x25xbf16, #tpu.memory_space<vmem>>, %arg8: memref<16x1x16xbf16, #tpu.memory_space<vmem>>, %arg9: memref<1x1xf32, #tpu.memory_space<vmem>>, %arg10: memref<2x1x25xf32, #tpu.memory_space<vmem>>, %arg11: memref<1x1xf32, #tpu.memory_space<vmem>>, %arg12: memref<1x1xf32, #tpu.memory_space<vmem>>) attributes {dimension_semantics = [#tpu.dimension_semantics<arbitrary>], iteration_bounds = array<i64: 1>, scalar_prefetch = 0 : i64, scratch_operands = 0 : i64, tpu.core_type = #tpu.core_type<tc>, window_params = [{pipeline_mode = #tpu.pipeline_mode<synchronous>, transform_indices = @transform_0, window_bounds = array<i64: 2, 48, 256>}, {pipeline_mode = #tpu.pipeline_mode<synchronous>, transform_indices = @transform_1, window_bounds = array<i64: 8, 48>}, {pipeline_mode = #tpu.pipeline_mode<synchronous>, transform_indices = @transform_2, window_bounds = array<i64: 8, 1>}, {pipeline_mode = #tpu.pipeline_mode<synchronous>, transform_indices = @transform_3, window_bounds = array<i64: 16, 256, 64>}, {pipeline_mode = #tpu.pipeline_mode<synchronous>, transform_indices = @transform_4, window_bounds = array<i64: 16, 16, 8>}, {pipeline_mode = #tpu.pipeline_mode<synchronous>, transform_indices = @transform_5, window_bounds = array<i64: 16, 1>}, {pipeline_mode = #tpu.pipeline_mode<synchronous>, transform_indices = @transform_6, window_bounds = array<i64: 16, 64, 25>}, {pipeline_mode = #tpu.pipeline_mode<synchronous>, transform_indices = @transform_7, window_bounds = array<i64: 16, 1, 16>}, {pipeline_mode = #tpu.pipeline_mode<synchronous>, transform_indices = @transform_8, window_bounds = array<i64: 1, 1>}, {pipeline_mode = #tpu.pipeline_mode<synchronous>, transform_indices = @transform_9, window_bounds = array<i64: 2, 1, 25>}, {pipeline_mode = #tpu.pipeline_mode<synchronous>, transform_indices = @transform_10, window_bounds = array<i64: 1, 1>}, {pipeline_mode = #tpu.pipeline_mode<synchronous>, transform_indices = @transform_11, window_bounds = array<i64: 1, 1>}]} {
    %cst = arith.constant 0.000000e+00 : f32
    %0 = vector.broadcast %cst : f32 to vector<1x1xf32>
    %c0 = arith.constant 0 : index
    %c0_0 = arith.constant 0 : index
    %1 = vector.load %arg2[%c0, %c0_0] : memref<8x48xbf16, #tpu.memory_space<vmem>>, vector<8x48xbf16>
    %c0_1 = arith.constant 0 : index
    %c0_2 = arith.constant 0 : index
    %c0_3 = arith.constant 0 : index
    %2 = vector.load %arg1[%c0_1, %c0_2, %c0_3] : memref<2x48x256xbf16, #tpu.memory_space<vmem>>, vector<1x48x256xbf16>
    %3 = vector.shape_cast %2 : vector<1x48x256xbf16> to vector<48x256xbf16>
    %cst_4 = arith.constant dense<0.000000e+00> : vector<8x256xf32>
    %4 = tpu.matmul %1, %3, %cst_4 {dimension_numbers = #tpu.dot_dimension_numbers<[1], [0], [0], [1], [0, 0, 1, 1], [], []>} : vector<8x48xbf16>, vector<48x256xbf16>, vector<8x256xf32> -> vector<8x256xf32>
    %c0_5 = arith.constant 0 : index
    %c0_6 = arith.constant 0 : index
    %5 = vector.load %arg3[%c0_5, %c0_6] : memref<8x1xf32, #tpu.memory_space<vmem>>, vector<8x1xf32>
    %6 = vector.broadcast %5 : vector<8x1xf32> to vector<8x256xf32>
    %7 = arith.addf %4, %6 : vector<8x256xf32>
    %cst_7 = arith.constant 0.000000e+00 : f32
    %8 = vector.broadcast %cst_7 : f32 to vector<8x256xf32>
    %9 = arith.maximumf %7, %8 : vector<8x256xf32>
    %10 = arith.truncf %9 : vector<8x256xf32> to vector<8x256xbf16>
    %cst_8 = arith.constant 0.000000e+00 : f32
    %11 = vector.broadcast %cst_8 : f32 to vector<16x64xf32>
    %c0_9 = arith.constant 0 : index
    %c0_10 = arith.constant 0 : index
    %c0_11 = arith.constant 0 : index
    %12 = vector.load %arg4[%c0_9, %c0_10, %c0_11] : memref<16x256x64xbf16, #tpu.memory_space<vmem>>, vector<1x256x64xbf16>
    %13 = vector.shape_cast %12 : vector<1x256x64xbf16> to vector<256x64xbf16>
    %cst_12 = arith.constant dense<0.000000e+00> : vector<8x64xf32>
    %14 = tpu.matmul %10, %13, %cst_12 {dimension_numbers = #tpu.dot_dimension_numbers<[1], [0], [0], [1], [0, 0, 1, 1], [], []>} : vector<8x256xbf16>, vector<256x64xbf16>, vector<8x64xf32> -> vector<8x64xf32>
    %c0_13 = arith.constant 0 : index
    %c0_14 = arith.constant 0 : index
    %c0_15 = arith.constant 0 : index
    %15 = vector.load %arg5[%c0_13, %c0_14, %c0_15] : memref<16x16x8xbf16, #tpu.memory_space<vmem>>, vector<1x16x8xbf16>
    %16 = vector.shape_cast %15 : vector<1x16x8xbf16> to vector<16x8xbf16>
    %17 = arith.truncf %14 : vector<8x64xf32> to vector<8x64xbf16>
    %cst_16 = arith.constant dense<0.000000e+00> : vector<16x64xf32>
    %18 = tpu.matmul %16, %17, %cst_16 {dimension_numbers = #tpu.dot_dimension_numbers<[1], [0], [0], [1], [0, 0, 1, 1], [], []>} : vector<16x8xbf16>, vector<8x64xbf16>, vector<16x64xf32> -> vector<16x64xf32>
    %19 = arith.addf %11, %18 : vector<16x64xf32>
    %c1 = arith.constant 1 : index
    %c0_17 = arith.constant 0 : index
    %c0_18 = arith.constant 0 : index
    %20 = vector.load %arg4[%c1, %c0_17, %c0_18] : memref<16x256x64xbf16, #tpu.memory_space<vmem>>, vector<1x256x64xbf16>
    %21 = vector.shape_cast %20 : vector<1x256x64xbf16> to vector<256x64xbf16>
    %cst_19 = arith.constant dense<0.000000e+00> : vector<8x64xf32>
    %22 = tpu.matmul %10, %21, %cst_19 {dimension_numbers = #tpu.dot_dimension_numbers<[1], [0], [0], [1], [0, 0, 1, 1], [], []>} : vector<8x256xbf16>, vector<256x64xbf16>, vector<8x64xf32> -> vector<8x64xf32>
    %c1_20 = arith.constant 1 : index
    %c0_21 = arith.constant 0 : index
    %c0_22 = arith.constant 0 : index
    %23 = vector.load %arg5[%c1_20, %c0_21, %c0_22] : memref<16x16x8xbf16, #tpu.memory_space<vmem>>, vector<1x16x8xbf16>
    %24 = vector.shape_cast %23 : vector<1x16x8xbf16> to vector<16x8xbf16>
    %25 = arith.truncf %22 : vector<8x64xf32> to vector<8x64xbf16>
    %cst_23 = arith.constant dense<0.000000e+00> : vector<16x64xf32>
    %26 = tpu.matmul %24, %25, %cst_23 {dimension_numbers = #tpu.dot_dimension_numbers<[1], [0], [0], [1], [0, 0, 1, 1], [], []>} : vector<16x8xbf16>, vector<8x64xbf16>, vector<16x64xf32> -> vector<16x64xf32>
    %27 = arith.addf %19, %26 : vector<16x64xf32>
    %c2 = arith.constant 2 : index
    %c0_24 = arith.constant 0 : index
    %c0_25 = arith.constant 0 : index
    %28 = vector.load %arg4[%c2, %c0_24, %c0_25] : memref<16x256x64xbf16, #tpu.memory_space<vmem>>, vector<1x256x64xbf16>
    %29 = vector.shape_cast %28 : vector<1x256x64xbf16> to vector<256x64xbf16>
    %cst_26 = arith.constant dense<0.000000e+00> : vector<8x64xf32>
    %30 = tpu.matmul %10, %29, %cst_26 {dimension_numbers = #tpu.dot_dimension_numbers<[1], [0], [0], [1], [0, 0, 1, 1], [], []>} : vector<8x256xbf16>, vector<256x64xbf16>, vector<8x64xf32> -> vector<8x64xf32>
    %c2_27 = arith.constant 2 : index
    %c0_28 = arith.constant 0 : index
    %c0_29 = arith.constant 0 : index
    %31 = vector.load %arg5[%c2_27, %c0_28, %c0_29] : memref<16x16x8xbf16, #tpu.memory_space<vmem>>, vector<1x16x8xbf16>
    %32 = vector.shape_cast %31 : vector<1x16x8xbf16> to vector<16x8xbf16>
    %33 = arith.truncf %30 : vector<8x64xf32> to vector<8x64xbf16>
    %cst_30 = arith.constant dense<0.000000e+00> : vector<16x64xf32>
    %34 = tpu.matmul %32, %33, %cst_30 {dimension_numbers = #tpu.dot_dimension_numbers<[1], [0], [0], [1], [0, 0, 1, 1], [], []>} : vector<16x8xbf16>, vector<8x64xbf16>, vector<16x64xf32> -> vector<16x64xf32>
    %35 = arith.addf %27, %34 : vector<16x64xf32>
    %c3 = arith.constant 3 : index
    %c0_31 = arith.constant 0 : index
    %c0_32 = arith.constant 0 : index
    %36 = vector.load %arg4[%c3, %c0_31, %c0_32] : memref<16x256x64xbf16, #tpu.memory_space<vmem>>, vector<1x256x64xbf16>
    %37 = vector.shape_cast %36 : vector<1x256x64xbf16> to vector<256x64xbf16>
    %cst_33 = arith.constant dense<0.000000e+00> : vector<8x64xf32>
    %38 = tpu.matmul %10, %37, %cst_33 {dimension_numbers = #tpu.dot_dimension_numbers<[1], [0], [0], [1], [0, 0, 1, 1], [], []>} : vector<8x256xbf16>, vector<256x64xbf16>, vector<8x64xf32> -> vector<8x64xf32>
    %c3_34 = arith.constant 3 : index
    %c0_35 = arith.constant 0 : index
    %c0_36 = arith.constant 0 : index
    %39 = vector.load %arg5[%c3_34, %c0_35, %c0_36] : memref<16x16x8xbf16, #tpu.memory_space<vmem>>, vector<1x16x8xbf16>
    %40 = vector.shape_cast %39 : vector<1x16x8xbf16> to vector<16x8xbf16>
    %41 = arith.truncf %38 : vector<8x64xf32> to vector<8x64xbf16>
    %cst_37 = arith.constant dense<0.000000e+00> : vector<16x64xf32>
    %42 = tpu.matmul %40, %41, %cst_37 {dimension_numbers = #tpu.dot_dimension_numbers<[1], [0], [0], [1], [0, 0, 1, 1], [], []>} : vector<16x8xbf16>, vector<8x64xbf16>, vector<16x64xf32> -> vector<16x64xf32>
    %43 = arith.addf %35, %42 : vector<16x64xf32>
    %c4 = arith.constant 4 : index
    %c0_38 = arith.constant 0 : index
    %c0_39 = arith.constant 0 : index
    %44 = vector.load %arg4[%c4, %c0_38, %c0_39] : memref<16x256x64xbf16, #tpu.memory_space<vmem>>, vector<1x256x64xbf16>
    %45 = vector.shape_cast %44 : vector<1x256x64xbf16> to vector<256x64xbf16>
    %cst_40 = arith.constant dense<0.000000e+00> : vector<8x64xf32>
    %46 = tpu.matmul %10, %45, %cst_40 {dimension_numbers = #tpu.dot_dimension_numbers<[1], [0], [0], [1], [0, 0, 1, 1], [], []>} : vector<8x256xbf16>, vector<256x64xbf16>, vector<8x64xf32> -> vector<8x64xf32>
    %c4_41 = arith.constant 4 : index
    %c0_42 = arith.constant 0 : index
    %c0_43 = arith.constant 0 : index
    %47 = vector.load %arg5[%c4_41, %c0_42, %c0_43] : memref<16x16x8xbf16, #tpu.memory_space<vmem>>, vector<1x16x8xbf16>
    %48 = vector.shape_cast %47 : vector<1x16x8xbf16> to vector<16x8xbf16>
    %49 = arith.truncf %46 : vector<8x64xf32> to vector<8x64xbf16>
    %cst_44 = arith.constant dense<0.000000e+00> : vector<16x64xf32>
    %50 = tpu.matmul %48, %49, %cst_44 {dimension_numbers = #tpu.dot_dimension_numbers<[1], [0], [0], [1], [0, 0, 1, 1], [], []>} : vector<16x8xbf16>, vector<8x64xbf16>, vector<16x64xf32> -> vector<16x64xf32>
    %51 = arith.addf %43, %50 : vector<16x64xf32>
    %c5 = arith.constant 5 : index
    %c0_45 = arith.constant 0 : index
    %c0_46 = arith.constant 0 : index
    %52 = vector.load %arg4[%c5, %c0_45, %c0_46] : memref<16x256x64xbf16, #tpu.memory_space<vmem>>, vector<1x256x64xbf16>
    %53 = vector.shape_cast %52 : vector<1x256x64xbf16> to vector<256x64xbf16>
    %cst_47 = arith.constant dense<0.000000e+00> : vector<8x64xf32>
    %54 = tpu.matmul %10, %53, %cst_47 {dimension_numbers = #tpu.dot_dimension_numbers<[1], [0], [0], [1], [0, 0, 1, 1], [], []>} : vector<8x256xbf16>, vector<256x64xbf16>, vector<8x64xf32> -> vector<8x64xf32>
    %c5_48 = arith.constant 5 : index
    %c0_49 = arith.constant 0 : index
    %c0_50 = arith.constant 0 : index
    %55 = vector.load %arg5[%c5_48, %c0_49, %c0_50] : memref<16x16x8xbf16, #tpu.memory_space<vmem>>, vector<1x16x8xbf16>
    %56 = vector.shape_cast %55 : vector<1x16x8xbf16> to vector<16x8xbf16>
    %57 = arith.truncf %54 : vector<8x64xf32> to vector<8x64xbf16>
    %cst_51 = arith.constant dense<0.000000e+00> : vector<16x64xf32>
    %58 = tpu.matmul %56, %57, %cst_51 {dimension_numbers = #tpu.dot_dimension_numbers<[1], [0], [0], [1], [0, 0, 1, 1], [], []>} : vector<16x8xbf16>, vector<8x64xbf16>, vector<16x64xf32> -> vector<16x64xf32>
    %59 = arith.addf %51, %58 : vector<16x64xf32>
    %c6 = arith.constant 6 : index
    %c0_52 = arith.constant 0 : index
    %c0_53 = arith.constant 0 : index
    %60 = vector.load %arg4[%c6, %c0_52, %c0_53] : memref<16x256x64xbf16, #tpu.memory_space<vmem>>, vector<1x256x64xbf16>
    %61 = vector.shape_cast %60 : vector<1x256x64xbf16> to vector<256x64xbf16>
    %cst_54 = arith.constant dense<0.000000e+00> : vector<8x64xf32>
    %62 = tpu.matmul %10, %61, %cst_54 {dimension_numbers = #tpu.dot_dimension_numbers<[1], [0], [0], [1], [0, 0, 1, 1], [], []>} : vector<8x256xbf16>, vector<256x64xbf16>, vector<8x64xf32> -> vector<8x64xf32>
    %c6_55 = arith.constant 6 : index
    %c0_56 = arith.constant 0 : index
    %c0_57 = arith.constant 0 : index
    %63 = vector.load %arg5[%c6_55, %c0_56, %c0_57] : memref<16x16x8xbf16, #tpu.memory_space<vmem>>, vector<1x16x8xbf16>
    %64 = vector.shape_cast %63 : vector<1x16x8xbf16> to vector<16x8xbf16>
    %65 = arith.truncf %62 : vector<8x64xf32> to vector<8x64xbf16>
    %cst_58 = arith.constant dense<0.000000e+00> : vector<16x64xf32>
    %66 = tpu.matmul %64, %65, %cst_58 {dimension_numbers = #tpu.dot_dimension_numbers<[1], [0], [0], [1], [0, 0, 1, 1], [], []>} : vector<16x8xbf16>, vector<8x64xbf16>, vector<16x64xf32> -> vector<16x64xf32>
    %67 = arith.addf %59, %66 : vector<16x64xf32>
    %c7 = arith.constant 7 : index
    %c0_59 = arith.constant 0 : index
    %c0_60 = arith.constant 0 : index
    %68 = vector.load %arg4[%c7, %c0_59, %c0_60] : memref<16x256x64xbf16, #tpu.memory_space<vmem>>, vector<1x256x64xbf16>
    %69 = vector.shape_cast %68 : vector<1x256x64xbf16> to vector<256x64xbf16>
    %cst_61 = arith.constant dense<0.000000e+00> : vector<8x64xf32>
    %70 = tpu.matmul %10, %69, %cst_61 {dimension_numbers = #tpu.dot_dimension_numbers<[1], [0], [0], [1], [0, 0, 1, 1], [], []>} : vector<8x256xbf16>, vector<256x64xbf16>, vector<8x64xf32> -> vector<8x64xf32>
    %c7_62 = arith.constant 7 : index
    %c0_63 = arith.constant 0 : index
    %c0_64 = arith.constant 0 : index
    %71 = vector.load %arg5[%c7_62, %c0_63, %c0_64] : memref<16x16x8xbf16, #tpu.memory_space<vmem>>, vector<1x16x8xbf16>
    %72 = vector.shape_cast %71 : vector<1x16x8xbf16> to vector<16x8xbf16>
    %73 = arith.truncf %70 : vector<8x64xf32> to vector<8x64xbf16>
    %cst_65 = arith.constant dense<0.000000e+00> : vector<16x64xf32>
    %74 = tpu.matmul %72, %73, %cst_65 {dimension_numbers = #tpu.dot_dimension_numbers<[1], [0], [0], [1], [0, 0, 1, 1], [], []>} : vector<16x8xbf16>, vector<8x64xbf16>, vector<16x64xf32> -> vector<16x64xf32>
    %75 = arith.addf %67, %74 : vector<16x64xf32>
    %c8 = arith.constant 8 : index
    %c0_66 = arith.constant 0 : index
    %c0_67 = arith.constant 0 : index
    %76 = vector.load %arg4[%c8, %c0_66, %c0_67] : memref<16x256x64xbf16, #tpu.memory_space<vmem>>, vector<1x256x64xbf16>
    %77 = vector.shape_cast %76 : vector<1x256x64xbf16> to vector<256x64xbf16>
    %cst_68 = arith.constant dense<0.000000e+00> : vector<8x64xf32>
    %78 = tpu.matmul %10, %77, %cst_68 {dimension_numbers = #tpu.dot_dimension_numbers<[1], [0], [0], [1], [0, 0, 1, 1], [], []>} : vector<8x256xbf16>, vector<256x64xbf16>, vector<8x64xf32> -> vector<8x64xf32>
    %c8_69 = arith.constant 8 : index
    %c0_70 = arith.constant 0 : index
    %c0_71 = arith.constant 0 : index
    %79 = vector.load %arg5[%c8_69, %c0_70, %c0_71] : memref<16x16x8xbf16, #tpu.memory_space<vmem>>, vector<1x16x8xbf16>
    %80 = vector.shape_cast %79 : vector<1x16x8xbf16> to vector<16x8xbf16>
    %81 = arith.truncf %78 : vector<8x64xf32> to vector<8x64xbf16>
    %cst_72 = arith.constant dense<0.000000e+00> : vector<16x64xf32>
    %82 = tpu.matmul %80, %81, %cst_72 {dimension_numbers = #tpu.dot_dimension_numbers<[1], [0], [0], [1], [0, 0, 1, 1], [], []>} : vector<16x8xbf16>, vector<8x64xbf16>, vector<16x64xf32> -> vector<16x64xf32>
    %83 = arith.addf %75, %82 : vector<16x64xf32>
    %c9 = arith.constant 9 : index
    %c0_73 = arith.constant 0 : index
    %c0_74 = arith.constant 0 : index
    %84 = vector.load %arg4[%c9, %c0_73, %c0_74] : memref<16x256x64xbf16, #tpu.memory_space<vmem>>, vector<1x256x64xbf16>
    %85 = vector.shape_cast %84 : vector<1x256x64xbf16> to vector<256x64xbf16>
    %cst_75 = arith.constant dense<0.000000e+00> : vector<8x64xf32>
    %86 = tpu.matmul %10, %85, %cst_75 {dimension_numbers = #tpu.dot_dimension_numbers<[1], [0], [0], [1], [0, 0, 1, 1], [], []>} : vector<8x256xbf16>, vector<256x64xbf16>, vector<8x64xf32> -> vector<8x64xf32>
    %c9_76 = arith.constant 9 : index
    %c0_77 = arith.constant 0 : index
    %c0_78 = arith.constant 0 : index
    %87 = vector.load %arg5[%c9_76, %c0_77, %c0_78] : memref<16x16x8xbf16, #tpu.memory_space<vmem>>, vector<1x16x8xbf16>
    %88 = vector.shape_cast %87 : vector<1x16x8xbf16> to vector<16x8xbf16>
    %89 = arith.truncf %86 : vector<8x64xf32> to vector<8x64xbf16>
    %cst_79 = arith.constant dense<0.000000e+00> : vector<16x64xf32>
    %90 = tpu.matmul %88, %89, %cst_79 {dimension_numbers = #tpu.dot_dimension_numbers<[1], [0], [0], [1], [0, 0, 1, 1], [], []>} : vector<16x8xbf16>, vector<8x64xbf16>, vector<16x64xf32> -> vector<16x64xf32>
    %91 = arith.addf %83, %90 : vector<16x64xf32>
    %c10 = arith.constant 10 : index
    %c0_80 = arith.constant 0 : index
    %c0_81 = arith.constant 0 : index
    %92 = vector.load %arg4[%c10, %c0_80, %c0_81] : memref<16x256x64xbf16, #tpu.memory_space<vmem>>, vector<1x256x64xbf16>
    %93 = vector.shape_cast %92 : vector<1x256x64xbf16> to vector<256x64xbf16>
    %cst_82 = arith.constant dense<0.000000e+00> : vector<8x64xf32>
    %94 = tpu.matmul %10, %93, %cst_82 {dimension_numbers = #tpu.dot_dimension_numbers<[1], [0], [0], [1], [0, 0, 1, 1], [], []>} : vector<8x256xbf16>, vector<256x64xbf16>, vector<8x64xf32> -> vector<8x64xf32>
    %c10_83 = arith.constant 10 : index
    %c0_84 = arith.constant 0 : index
    %c0_85 = arith.constant 0 : index
    %95 = vector.load %arg5[%c10_83, %c0_84, %c0_85] : memref<16x16x8xbf16, #tpu.memory_space<vmem>>, vector<1x16x8xbf16>
    %96 = vector.shape_cast %95 : vector<1x16x8xbf16> to vector<16x8xbf16>
    %97 = arith.truncf %94 : vector<8x64xf32> to vector<8x64xbf16>
    %cst_86 = arith.constant dense<0.000000e+00> : vector<16x64xf32>
    %98 = tpu.matmul %96, %97, %cst_86 {dimension_numbers = #tpu.dot_dimension_numbers<[1], [0], [0], [1], [0, 0, 1, 1], [], []>} : vector<16x8xbf16>, vector<8x64xbf16>, vector<16x64xf32> -> vector<16x64xf32>
    %99 = arith.addf %91, %98 : vector<16x64xf32>
    %c11 = arith.constant 11 : index
    %c0_87 = arith.constant 0 : index
    %c0_88 = arith.constant 0 : index
    %100 = vector.load %arg4[%c11, %c0_87, %c0_88] : memref<16x256x64xbf16, #tpu.memory_space<vmem>>, vector<1x256x64xbf16>
    %101 = vector.shape_cast %100 : vector<1x256x64xbf16> to vector<256x64xbf16>
    %cst_89 = arith.constant dense<0.000000e+00> : vector<8x64xf32>
    %102 = tpu.matmul %10, %101, %cst_89 {dimension_numbers = #tpu.dot_dimension_numbers<[1], [0], [0], [1], [0, 0, 1, 1], [], []>} : vector<8x256xbf16>, vector<256x64xbf16>, vector<8x64xf32> -> vector<8x64xf32>
    %c11_90 = arith.constant 11 : index
    %c0_91 = arith.constant 0 : index
    %c0_92 = arith.constant 0 : index
    %103 = vector.load %arg5[%c11_90, %c0_91, %c0_92] : memref<16x16x8xbf16, #tpu.memory_space<vmem>>, vector<1x16x8xbf16>
    %104 = vector.shape_cast %103 : vector<1x16x8xbf16> to vector<16x8xbf16>
    %105 = arith.truncf %102 : vector<8x64xf32> to vector<8x64xbf16>
    %cst_93 = arith.constant dense<0.000000e+00> : vector<16x64xf32>
    %106 = tpu.matmul %104, %105, %cst_93 {dimension_numbers = #tpu.dot_dimension_numbers<[1], [0], [0], [1], [0, 0, 1, 1], [], []>} : vector<16x8xbf16>, vector<8x64xbf16>, vector<16x64xf32> -> vector<16x64xf32>
    %107 = arith.addf %99, %106 : vector<16x64xf32>
    %c12 = arith.constant 12 : index
    %c0_94 = arith.constant 0 : index
    %c0_95 = arith.constant 0 : index
    %108 = vector.load %arg4[%c12, %c0_94, %c0_95] : memref<16x256x64xbf16, #tpu.memory_space<vmem>>, vector<1x256x64xbf16>
    %109 = vector.shape_cast %108 : vector<1x256x64xbf16> to vector<256x64xbf16>
    %cst_96 = arith.constant dense<0.000000e+00> : vector<8x64xf32>
    %110 = tpu.matmul %10, %109, %cst_96 {dimension_numbers = #tpu.dot_dimension_numbers<[1], [0], [0], [1], [0, 0, 1, 1], [], []>} : vector<8x256xbf16>, vector<256x64xbf16>, vector<8x64xf32> -> vector<8x64xf32>
    %c12_97 = arith.constant 12 : index
    %c0_98 = arith.constant 0 : index
    %c0_99 = arith.constant 0 : index
    %111 = vector.load %arg5[%c12_97, %c0_98, %c0_99] : memref<16x16x8xbf16, #tpu.memory_space<vmem>>, vector<1x16x8xbf16>
    %112 = vector.shape_cast %111 : vector<1x16x8xbf16> to vector<16x8xbf16>
    %113 = arith.truncf %110 : vector<8x64xf32> to vector<8x64xbf16>
    %cst_100 = arith.constant dense<0.000000e+00> : vector<16x64xf32>
    %114 = tpu.matmul %112, %113, %cst_100 {dimension_numbers = #tpu.dot_dimension_numbers<[1], [0], [0], [1], [0, 0, 1, 1], [], []>} : vector<16x8xbf16>, vector<8x64xbf16>, vector<16x64xf32> -> vector<16x64xf32>
    %115 = arith.addf %107, %114 : vector<16x64xf32>
    %c13 = arith.constant 13 : index
    %c0_101 = arith.constant 0 : index
    %c0_102 = arith.constant 0 : index
    %116 = vector.load %arg4[%c13, %c0_101, %c0_102] : memref<16x256x64xbf16, #tpu.memory_space<vmem>>, vector<1x256x64xbf16>
    %117 = vector.shape_cast %116 : vector<1x256x64xbf16> to vector<256x64xbf16>
    %cst_103 = arith.constant dense<0.000000e+00> : vector<8x64xf32>
    %118 = tpu.matmul %10, %117, %cst_103 {dimension_numbers = #tpu.dot_dimension_numbers<[1], [0], [0], [1], [0, 0, 1, 1], [], []>} : vector<8x256xbf16>, vector<256x64xbf16>, vector<8x64xf32> -> vector<8x64xf32>
    %c13_104 = arith.constant 13 : index
    %c0_105 = arith.constant 0 : index
    %c0_106 = arith.constant 0 : index
    %119 = vector.load %arg5[%c13_104, %c0_105, %c0_106] : memref<16x16x8xbf16, #tpu.memory_space<vmem>>, vector<1x16x8xbf16>
    %120 = vector.shape_cast %119 : vector<1x16x8xbf16> to vector<16x8xbf16>
    %121 = arith.truncf %118 : vector<8x64xf32> to vector<8x64xbf16>
    %cst_107 = arith.constant dense<0.000000e+00> : vector<16x64xf32>
    %122 = tpu.matmul %120, %121, %cst_107 {dimension_numbers = #tpu.dot_dimension_numbers<[1], [0], [0], [1], [0, 0, 1, 1], [], []>} : vector<16x8xbf16>, vector<8x64xbf16>, vector<16x64xf32> -> vector<16x64xf32>
    %123 = arith.addf %115, %122 : vector<16x64xf32>
    %c14 = arith.constant 14 : index
    %c0_108 = arith.constant 0 : index
    %c0_109 = arith.constant 0 : index
    %124 = vector.load %arg4[%c14, %c0_108, %c0_109] : memref<16x256x64xbf16, #tpu.memory_space<vmem>>, vector<1x256x64xbf16>
    %125 = vector.shape_cast %124 : vector<1x256x64xbf16> to vector<256x64xbf16>
    %cst_110 = arith.constant dense<0.000000e+00> : vector<8x64xf32>
    %126 = tpu.matmul %10, %125, %cst_110 {dimension_numbers = #tpu.dot_dimension_numbers<[1], [0], [0], [1], [0, 0, 1, 1], [], []>} : vector<8x256xbf16>, vector<256x64xbf16>, vector<8x64xf32> -> vector<8x64xf32>
    %c14_111 = arith.constant 14 : index
    %c0_112 = arith.constant 0 : index
    %c0_113 = arith.constant 0 : index
    %127 = vector.load %arg5[%c14_111, %c0_112, %c0_113] : memref<16x16x8xbf16, #tpu.memory_space<vmem>>, vector<1x16x8xbf16>
    %128 = vector.shape_cast %127 : vector<1x16x8xbf16> to vector<16x8xbf16>
    %129 = arith.truncf %126 : vector<8x64xf32> to vector<8x64xbf16>
    %cst_114 = arith.constant dense<0.000000e+00> : vector<16x64xf32>
    %130 = tpu.matmul %128, %129, %cst_114 {dimension_numbers = #tpu.dot_dimension_numbers<[1], [0], [0], [1], [0, 0, 1, 1], [], []>} : vector<16x8xbf16>, vector<8x64xbf16>, vector<16x64xf32> -> vector<16x64xf32>
    %131 = arith.addf %123, %130 : vector<16x64xf32>
    %c15 = arith.constant 15 : index
    %c0_115 = arith.constant 0 : index
    %c0_116 = arith.constant 0 : index
    %132 = vector.load %arg4[%c15, %c0_115, %c0_116] : memref<16x256x64xbf16, #tpu.memory_space<vmem>>, vector<1x256x64xbf16>
    %133 = vector.shape_cast %132 : vector<1x256x64xbf16> to vector<256x64xbf16>
    %cst_117 = arith.constant dense<0.000000e+00> : vector<8x64xf32>
    %134 = tpu.matmul %10, %133, %cst_117 {dimension_numbers = #tpu.dot_dimension_numbers<[1], [0], [0], [1], [0, 0, 1, 1], [], []>} : vector<8x256xbf16>, vector<256x64xbf16>, vector<8x64xf32> -> vector<8x64xf32>
    %c15_118 = arith.constant 15 : index
    %c0_119 = arith.constant 0 : index
    %c0_120 = arith.constant 0 : index
    %135 = vector.load %arg5[%c15_118, %c0_119, %c0_120] : memref<16x16x8xbf16, #tpu.memory_space<vmem>>, vector<1x16x8xbf16>
    %136 = vector.shape_cast %135 : vector<1x16x8xbf16> to vector<16x8xbf16>
    %137 = arith.truncf %134 : vector<8x64xf32> to vector<8x64xbf16>
    %cst_121 = arith.constant dense<0.000000e+00> : vector<16x64xf32>
    %138 = tpu.matmul %136, %137, %cst_121 {dimension_numbers = #tpu.dot_dimension_numbers<[1], [0], [0], [1], [0, 0, 1, 1], [], []>} : vector<16x8xbf16>, vector<8x64xbf16>, vector<16x64xf32> -> vector<16x64xf32>
    %139 = arith.addf %131, %138 : vector<16x64xf32>
    %c0_122 = arith.constant 0 : index
    %c0_123 = arith.constant 0 : index
    %140 = vector.load %arg6[%c0_122, %c0_123] : memref<16x1xf32, #tpu.memory_space<vmem>>, vector<16x1xf32>
    %141 = vector.broadcast %140 : vector<16x1xf32> to vector<16x64xf32>
    %142 = arith.addf %139, %141 : vector<16x64xf32>
    %cst_124 = arith.constant 0.000000e+00 : f32
    %143 = vector.broadcast %cst_124 : f32 to vector<16x64xf32>
    %144 = arith.maximumf %142, %143 : vector<16x64xf32>
    %145 = arith.truncf %144 : vector<16x64xf32> to vector<16x64xbf16>
    %cst_125 = arith.constant 0.000000e+00 : f32
    %146 = vector.broadcast %cst_125 : f32 to vector<1x25xf32>
    %c0_126 = arith.constant 0 : index
    %c0_127 = arith.constant 0 : index
    %c0_128 = arith.constant 0 : index
    %147 = vector.load %arg7[%c0_126, %c0_127, %c0_128] : memref<16x64x25xbf16, #tpu.memory_space<vmem>>, vector<1x64x25xbf16>
    %148 = vector.shape_cast %147 : vector<1x64x25xbf16> to vector<64x25xbf16>
    %cst_129 = arith.constant dense<0.000000e+00> : vector<16x25xf32>
    %149 = tpu.matmul %145, %148, %cst_129 {dimension_numbers = #tpu.dot_dimension_numbers<[1], [0], [0], [1], [0, 0, 1, 1], [], []>} : vector<16x64xbf16>, vector<64x25xbf16>, vector<16x25xf32> -> vector<16x25xf32>
    %c0_130 = arith.constant 0 : index
    %c0_131 = arith.constant 0 : index
    %c0_132 = arith.constant 0 : index
    %150 = vector.load %arg8[%c0_130, %c0_131, %c0_132] : memref<16x1x16xbf16, #tpu.memory_space<vmem>>, vector<1x1x16xbf16>
    %151 = vector.shape_cast %150 : vector<1x1x16xbf16> to vector<1x16xbf16>
    %152 = arith.truncf %149 : vector<16x25xf32> to vector<16x25xbf16>
    %cst_133 = arith.constant dense<0.000000e+00> : vector<1x25xf32>
    %153 = tpu.matmul %151, %152, %cst_133 {dimension_numbers = #tpu.dot_dimension_numbers<[1], [0], [0], [1], [0, 0, 1, 1], [], []>} : vector<1x16xbf16>, vector<16x25xbf16>, vector<1x25xf32> -> vector<1x25xf32>
    %154 = arith.addf %146, %153 : vector<1x25xf32>
    %c1_134 = arith.constant 1 : index
    %c0_135 = arith.constant 0 : index
    %c0_136 = arith.constant 0 : index
    %155 = vector.load %arg7[%c1_134, %c0_135, %c0_136] : memref<16x64x25xbf16, #tpu.memory_space<vmem>>, vector<1x64x25xbf16>
    %156 = vector.shape_cast %155 : vector<1x64x25xbf16> to vector<64x25xbf16>
    %cst_137 = arith.constant dense<0.000000e+00> : vector<16x25xf32>
    %157 = tpu.matmul %145, %156, %cst_137 {dimension_numbers = #tpu.dot_dimension_numbers<[1], [0], [0], [1], [0, 0, 1, 1], [], []>} : vector<16x64xbf16>, vector<64x25xbf16>, vector<16x25xf32> -> vector<16x25xf32>
    %c1_138 = arith.constant 1 : index
    %c0_139 = arith.constant 0 : index
    %c0_140 = arith.constant 0 : index
    %158 = vector.load %arg8[%c1_138, %c0_139, %c0_140] : memref<16x1x16xbf16, #tpu.memory_space<vmem>>, vector<1x1x16xbf16>
    %159 = vector.shape_cast %158 : vector<1x1x16xbf16> to vector<1x16xbf16>
    %160 = arith.truncf %157 : vector<16x25xf32> to vector<16x25xbf16>
    %cst_141 = arith.constant dense<0.000000e+00> : vector<1x25xf32>
    %161 = tpu.matmul %159, %160, %cst_141 {dimension_numbers = #tpu.dot_dimension_numbers<[1], [0], [0], [1], [0, 0, 1, 1], [], []>} : vector<1x16xbf16>, vector<16x25xbf16>, vector<1x25xf32> -> vector<1x25xf32>
    %162 = arith.addf %154, %161 : vector<1x25xf32>
    %c2_142 = arith.constant 2 : index
    %c0_143 = arith.constant 0 : index
    %c0_144 = arith.constant 0 : index
    %163 = vector.load %arg7[%c2_142, %c0_143, %c0_144] : memref<16x64x25xbf16, #tpu.memory_space<vmem>>, vector<1x64x25xbf16>
    %164 = vector.shape_cast %163 : vector<1x64x25xbf16> to vector<64x25xbf16>
    %cst_145 = arith.constant dense<0.000000e+00> : vector<16x25xf32>
    %165 = tpu.matmul %145, %164, %cst_145 {dimension_numbers = #tpu.dot_dimension_numbers<[1], [0], [0], [1], [0, 0, 1, 1], [], []>} : vector<16x64xbf16>, vector<64x25xbf16>, vector<16x25xf32> -> vector<16x25xf32>
    %c2_146 = arith.constant 2 : index
    %c0_147 = arith.constant 0 : index
    %c0_148 = arith.constant 0 : index
    %166 = vector.load %arg8[%c2_146, %c0_147, %c0_148] : memref<16x1x16xbf16, #tpu.memory_space<vmem>>, vector<1x1x16xbf16>
    %167 = vector.shape_cast %166 : vector<1x1x16xbf16> to vector<1x16xbf16>
    %168 = arith.truncf %165 : vector<16x25xf32> to vector<16x25xbf16>
    %cst_149 = arith.constant dense<0.000000e+00> : vector<1x25xf32>
    %169 = tpu.matmul %167, %168, %cst_149 {dimension_numbers = #tpu.dot_dimension_numbers<[1], [0], [0], [1], [0, 0, 1, 1], [], []>} : vector<1x16xbf16>, vector<16x25xbf16>, vector<1x25xf32> -> vector<1x25xf32>
    %170 = arith.addf %162, %169 : vector<1x25xf32>
    %c3_150 = arith.constant 3 : index
    %c0_151 = arith.constant 0 : index
    %c0_152 = arith.constant 0 : index
    %171 = vector.load %arg7[%c3_150, %c0_151, %c0_152] : memref<16x64x25xbf16, #tpu.memory_space<vmem>>, vector<1x64x25xbf16>
    %172 = vector.shape_cast %171 : vector<1x64x25xbf16> to vector<64x25xbf16>
    %cst_153 = arith.constant dense<0.000000e+00> : vector<16x25xf32>
    %173 = tpu.matmul %145, %172, %cst_153 {dimension_numbers = #tpu.dot_dimension_numbers<[1], [0], [0], [1], [0, 0, 1, 1], [], []>} : vector<16x64xbf16>, vector<64x25xbf16>, vector<16x25xf32> -> vector<16x25xf32>
    %c3_154 = arith.constant 3 : index
    %c0_155 = arith.constant 0 : index
    %c0_156 = arith.constant 0 : index
    %174 = vector.load %arg8[%c3_154, %c0_155, %c0_156] : memref<16x1x16xbf16, #tpu.memory_space<vmem>>, vector<1x1x16xbf16>
    %175 = vector.shape_cast %174 : vector<1x1x16xbf16> to vector<1x16xbf16>
    %176 = arith.truncf %173 : vector<16x25xf32> to vector<16x25xbf16>
    %cst_157 = arith.constant dense<0.000000e+00> : vector<1x25xf32>
    %177 = tpu.matmul %175, %176, %cst_157 {dimension_numbers = #tpu.dot_dimension_numbers<[1], [0], [0], [1], [0, 0, 1, 1], [], []>} : vector<1x16xbf16>, vector<16x25xbf16>, vector<1x25xf32> -> vector<1x25xf32>
    %178 = arith.addf %170, %177 : vector<1x25xf32>
    %c4_158 = arith.constant 4 : index
    %c0_159 = arith.constant 0 : index
    %c0_160 = arith.constant 0 : index
    %179 = vector.load %arg7[%c4_158, %c0_159, %c0_160] : memref<16x64x25xbf16, #tpu.memory_space<vmem>>, vector<1x64x25xbf16>
    %180 = vector.shape_cast %179 : vector<1x64x25xbf16> to vector<64x25xbf16>
    %cst_161 = arith.constant dense<0.000000e+00> : vector<16x25xf32>
    %181 = tpu.matmul %145, %180, %cst_161 {dimension_numbers = #tpu.dot_dimension_numbers<[1], [0], [0], [1], [0, 0, 1, 1], [], []>} : vector<16x64xbf16>, vector<64x25xbf16>, vector<16x25xf32> -> vector<16x25xf32>
    %c4_162 = arith.constant 4 : index
    %c0_163 = arith.constant 0 : index
    %c0_164 = arith.constant 0 : index
    %182 = vector.load %arg8[%c4_162, %c0_163, %c0_164] : memref<16x1x16xbf16, #tpu.memory_space<vmem>>, vector<1x1x16xbf16>
    %183 = vector.shape_cast %182 : vector<1x1x16xbf16> to vector<1x16xbf16>
    %184 = arith.truncf %181 : vector<16x25xf32> to vector<16x25xbf16>
    %cst_165 = arith.constant dense<0.000000e+00> : vector<1x25xf32>
    %185 = tpu.matmul %183, %184, %cst_165 {dimension_numbers = #tpu.dot_dimension_numbers<[1], [0], [0], [1], [0, 0, 1, 1], [], []>} : vector<1x16xbf16>, vector<16x25xbf16>, vector<1x25xf32> -> vector<1x25xf32>
    %186 = arith.addf %178, %185 : vector<1x25xf32>
    %c5_166 = arith.constant 5 : index
    %c0_167 = arith.constant 0 : index
    %c0_168 = arith.constant 0 : index
    %187 = vector.load %arg7[%c5_166, %c0_167, %c0_168] : memref<16x64x25xbf16, #tpu.memory_space<vmem>>, vector<1x64x25xbf16>
    %188 = vector.shape_cast %187 : vector<1x64x25xbf16> to vector<64x25xbf16>
    %cst_169 = arith.constant dense<0.000000e+00> : vector<16x25xf32>
    %189 = tpu.matmul %145, %188, %cst_169 {dimension_numbers = #tpu.dot_dimension_numbers<[1], [0], [0], [1], [0, 0, 1, 1], [], []>} : vector<16x64xbf16>, vector<64x25xbf16>, vector<16x25xf32> -> vector<16x25xf32>
    %c5_170 = arith.constant 5 : index
    %c0_171 = arith.constant 0 : index
    %c0_172 = arith.constant 0 : index
    %190 = vector.load %arg8[%c5_170, %c0_171, %c0_172] : memref<16x1x16xbf16, #tpu.memory_space<vmem>>, vector<1x1x16xbf16>
    %191 = vector.shape_cast %190 : vector<1x1x16xbf16> to vector<1x16xbf16>
    %192 = arith.truncf %189 : vector<16x25xf32> to vector<16x25xbf16>
    %cst_173 = arith.constant dense<0.000000e+00> : vector<1x25xf32>
    %193 = tpu.matmul %191, %192, %cst_173 {dimension_numbers = #tpu.dot_dimension_numbers<[1], [0], [0], [1], [0, 0, 1, 1], [], []>} : vector<1x16xbf16>, vector<16x25xbf16>, vector<1x25xf32> -> vector<1x25xf32>
    %194 = arith.addf %186, %193 : vector<1x25xf32>
    %c6_174 = arith.constant 6 : index
    %c0_175 = arith.constant 0 : index
    %c0_176 = arith.constant 0 : index
    %195 = vector.load %arg7[%c6_174, %c0_175, %c0_176] : memref<16x64x25xbf16, #tpu.memory_space<vmem>>, vector<1x64x25xbf16>
    %196 = vector.shape_cast %195 : vector<1x64x25xbf16> to vector<64x25xbf16>
    %cst_177 = arith.constant dense<0.000000e+00> : vector<16x25xf32>
    %197 = tpu.matmul %145, %196, %cst_177 {dimension_numbers = #tpu.dot_dimension_numbers<[1], [0], [0], [1], [0, 0, 1, 1], [], []>} : vector<16x64xbf16>, vector<64x25xbf16>, vector<16x25xf32> -> vector<16x25xf32>
    %c6_178 = arith.constant 6 : index
    %c0_179 = arith.constant 0 : index
    %c0_180 = arith.constant 0 : index
    %198 = vector.load %arg8[%c6_178, %c0_179, %c0_180] : memref<16x1x16xbf16, #tpu.memory_space<vmem>>, vector<1x1x16xbf16>
    %199 = vector.shape_cast %198 : vector<1x1x16xbf16> to vector<1x16xbf16>
    %200 = arith.truncf %197 : vector<16x25xf32> to vector<16x25xbf16>
    %cst_181 = arith.constant dense<0.000000e+00> : vector<1x25xf32>
    %201 = tpu.matmul %199, %200, %cst_181 {dimension_numbers = #tpu.dot_dimension_numbers<[1], [0], [0], [1], [0, 0, 1, 1], [], []>} : vector<1x16xbf16>, vector<16x25xbf16>, vector<1x25xf32> -> vector<1x25xf32>
    %202 = arith.addf %194, %201 : vector<1x25xf32>
    %c7_182 = arith.constant 7 : index
    %c0_183 = arith.constant 0 : index
    %c0_184 = arith.constant 0 : index
    %203 = vector.load %arg7[%c7_182, %c0_183, %c0_184] : memref<16x64x25xbf16, #tpu.memory_space<vmem>>, vector<1x64x25xbf16>
    %204 = vector.shape_cast %203 : vector<1x64x25xbf16> to vector<64x25xbf16>
    %cst_185 = arith.constant dense<0.000000e+00> : vector<16x25xf32>
    %205 = tpu.matmul %145, %204, %cst_185 {dimension_numbers = #tpu.dot_dimension_numbers<[1], [0], [0], [1], [0, 0, 1, 1], [], []>} : vector<16x64xbf16>, vector<64x25xbf16>, vector<16x25xf32> -> vector<16x25xf32>
    %c7_186 = arith.constant 7 : index
    %c0_187 = arith.constant 0 : index
    %c0_188 = arith.constant 0 : index
    %206 = vector.load %arg8[%c7_186, %c0_187, %c0_188] : memref<16x1x16xbf16, #tpu.memory_space<vmem>>, vector<1x1x16xbf16>
    %207 = vector.shape_cast %206 : vector<1x1x16xbf16> to vector<1x16xbf16>
    %208 = arith.truncf %205 : vector<16x25xf32> to vector<16x25xbf16>
    %cst_189 = arith.constant dense<0.000000e+00> : vector<1x25xf32>
    %209 = tpu.matmul %207, %208, %cst_189 {dimension_numbers = #tpu.dot_dimension_numbers<[1], [0], [0], [1], [0, 0, 1, 1], [], []>} : vector<1x16xbf16>, vector<16x25xbf16>, vector<1x25xf32> -> vector<1x25xf32>
    %210 = arith.addf %202, %209 : vector<1x25xf32>
    %c8_190 = arith.constant 8 : index
    %c0_191 = arith.constant 0 : index
    %c0_192 = arith.constant 0 : index
    %211 = vector.load %arg7[%c8_190, %c0_191, %c0_192] : memref<16x64x25xbf16, #tpu.memory_space<vmem>>, vector<1x64x25xbf16>
    %212 = vector.shape_cast %211 : vector<1x64x25xbf16> to vector<64x25xbf16>
    %cst_193 = arith.constant dense<0.000000e+00> : vector<16x25xf32>
    %213 = tpu.matmul %145, %212, %cst_193 {dimension_numbers = #tpu.dot_dimension_numbers<[1], [0], [0], [1], [0, 0, 1, 1], [], []>} : vector<16x64xbf16>, vector<64x25xbf16>, vector<16x25xf32> -> vector<16x25xf32>
    %c8_194 = arith.constant 8 : index
    %c0_195 = arith.constant 0 : index
    %c0_196 = arith.constant 0 : index
    %214 = vector.load %arg8[%c8_194, %c0_195, %c0_196] : memref<16x1x16xbf16, #tpu.memory_space<vmem>>, vector<1x1x16xbf16>
    %215 = vector.shape_cast %214 : vector<1x1x16xbf16> to vector<1x16xbf16>
    %216 = arith.truncf %213 : vector<16x25xf32> to vector<16x25xbf16>
    %cst_197 = arith.constant dense<0.000000e+00> : vector<1x25xf32>
    %217 = tpu.matmul %215, %216, %cst_197 {dimension_numbers = #tpu.dot_dimension_numbers<[1], [0], [0], [1], [0, 0, 1, 1], [], []>} : vector<1x16xbf16>, vector<16x25xbf16>, vector<1x25xf32> -> vector<1x25xf32>
    %218 = arith.addf %210, %217 : vector<1x25xf32>
    %c9_198 = arith.constant 9 : index
    %c0_199 = arith.constant 0 : index
    %c0_200 = arith.constant 0 : index
    %219 = vector.load %arg7[%c9_198, %c0_199, %c0_200] : memref<16x64x25xbf16, #tpu.memory_space<vmem>>, vector<1x64x25xbf16>
    %220 = vector.shape_cast %219 : vector<1x64x25xbf16> to vector<64x25xbf16>
    %cst_201 = arith.constant dense<0.000000e+00> : vector<16x25xf32>
    %221 = tpu.matmul %145, %220, %cst_201 {dimension_numbers = #tpu.dot_dimension_numbers<[1], [0], [0], [1], [0, 0, 1, 1], [], []>} : vector<16x64xbf16>, vector<64x25xbf16>, vector<16x25xf32> -> vector<16x25xf32>
    %c9_202 = arith.constant 9 : index
    %c0_203 = arith.constant 0 : index
    %c0_204 = arith.constant 0 : index
    %222 = vector.load %arg8[%c9_202, %c0_203, %c0_204] : memref<16x1x16xbf16, #tpu.memory_space<vmem>>, vector<1x1x16xbf16>
    %223 = vector.shape_cast %222 : vector<1x1x16xbf16> to vector<1x16xbf16>
    %224 = arith.truncf %221 : vector<16x25xf32> to vector<16x25xbf16>
    %cst_205 = arith.constant dense<0.000000e+00> : vector<1x25xf32>
    %225 = tpu.matmul %223, %224, %cst_205 {dimension_numbers = #tpu.dot_dimension_numbers<[1], [0], [0], [1], [0, 0, 1, 1], [], []>} : vector<1x16xbf16>, vector<16x25xbf16>, vector<1x25xf32> -> vector<1x25xf32>
    %226 = arith.addf %218, %225 : vector<1x25xf32>
    %c10_206 = arith.constant 10 : index
    %c0_207 = arith.constant 0 : index
    %c0_208 = arith.constant 0 : index
    %227 = vector.load %arg7[%c10_206, %c0_207, %c0_208] : memref<16x64x25xbf16, #tpu.memory_space<vmem>>, vector<1x64x25xbf16>
    %228 = vector.shape_cast %227 : vector<1x64x25xbf16> to vector<64x25xbf16>
    %cst_209 = arith.constant dense<0.000000e+00> : vector<16x25xf32>
    %229 = tpu.matmul %145, %228, %cst_209 {dimension_numbers = #tpu.dot_dimension_numbers<[1], [0], [0], [1], [0, 0, 1, 1], [], []>} : vector<16x64xbf16>, vector<64x25xbf16>, vector<16x25xf32> -> vector<16x25xf32>
    %c10_210 = arith.constant 10 : index
    %c0_211 = arith.constant 0 : index
    %c0_212 = arith.constant 0 : index
    %230 = vector.load %arg8[%c10_210, %c0_211, %c0_212] : memref<16x1x16xbf16, #tpu.memory_space<vmem>>, vector<1x1x16xbf16>
    %231 = vector.shape_cast %230 : vector<1x1x16xbf16> to vector<1x16xbf16>
    %232 = arith.truncf %229 : vector<16x25xf32> to vector<16x25xbf16>
    %cst_213 = arith.constant dense<0.000000e+00> : vector<1x25xf32>
    %233 = tpu.matmul %231, %232, %cst_213 {dimension_numbers = #tpu.dot_dimension_numbers<[1], [0], [0], [1], [0, 0, 1, 1], [], []>} : vector<1x16xbf16>, vector<16x25xbf16>, vector<1x25xf32> -> vector<1x25xf32>
    %234 = arith.addf %226, %233 : vector<1x25xf32>
    %c11_214 = arith.constant 11 : index
    %c0_215 = arith.constant 0 : index
    %c0_216 = arith.constant 0 : index
    %235 = vector.load %arg7[%c11_214, %c0_215, %c0_216] : memref<16x64x25xbf16, #tpu.memory_space<vmem>>, vector<1x64x25xbf16>
    %236 = vector.shape_cast %235 : vector<1x64x25xbf16> to vector<64x25xbf16>
    %cst_217 = arith.constant dense<0.000000e+00> : vector<16x25xf32>
    %237 = tpu.matmul %145, %236, %cst_217 {dimension_numbers = #tpu.dot_dimension_numbers<[1], [0], [0], [1], [0, 0, 1, 1], [], []>} : vector<16x64xbf16>, vector<64x25xbf16>, vector<16x25xf32> -> vector<16x25xf32>
    %c11_218 = arith.constant 11 : index
    %c0_219 = arith.constant 0 : index
    %c0_220 = arith.constant 0 : index
    %238 = vector.load %arg8[%c11_218, %c0_219, %c0_220] : memref<16x1x16xbf16, #tpu.memory_space<vmem>>, vector<1x1x16xbf16>
    %239 = vector.shape_cast %238 : vector<1x1x16xbf16> to vector<1x16xbf16>
    %240 = arith.truncf %237 : vector<16x25xf32> to vector<16x25xbf16>
    %cst_221 = arith.constant dense<0.000000e+00> : vector<1x25xf32>
    %241 = tpu.matmul %239, %240, %cst_221 {dimension_numbers = #tpu.dot_dimension_numbers<[1], [0], [0], [1], [0, 0, 1, 1], [], []>} : vector<1x16xbf16>, vector<16x25xbf16>, vector<1x25xf32> -> vector<1x25xf32>
    %242 = arith.addf %234, %241 : vector<1x25xf32>
    %c12_222 = arith.constant 12 : index
    %c0_223 = arith.constant 0 : index
    %c0_224 = arith.constant 0 : index
    %243 = vector.load %arg7[%c12_222, %c0_223, %c0_224] : memref<16x64x25xbf16, #tpu.memory_space<vmem>>, vector<1x64x25xbf16>
    %244 = vector.shape_cast %243 : vector<1x64x25xbf16> to vector<64x25xbf16>
    %cst_225 = arith.constant dense<0.000000e+00> : vector<16x25xf32>
    %245 = tpu.matmul %145, %244, %cst_225 {dimension_numbers = #tpu.dot_dimension_numbers<[1], [0], [0], [1], [0, 0, 1, 1], [], []>} : vector<16x64xbf16>, vector<64x25xbf16>, vector<16x25xf32> -> vector<16x25xf32>
    %c12_226 = arith.constant 12 : index
    %c0_227 = arith.constant 0 : index
    %c0_228 = arith.constant 0 : index
    %246 = vector.load %arg8[%c12_226, %c0_227, %c0_228] : memref<16x1x16xbf16, #tpu.memory_space<vmem>>, vector<1x1x16xbf16>
    %247 = vector.shape_cast %246 : vector<1x1x16xbf16> to vector<1x16xbf16>
    %248 = arith.truncf %245 : vector<16x25xf32> to vector<16x25xbf16>
    %cst_229 = arith.constant dense<0.000000e+00> : vector<1x25xf32>
    %249 = tpu.matmul %247, %248, %cst_229 {dimension_numbers = #tpu.dot_dimension_numbers<[1], [0], [0], [1], [0, 0, 1, 1], [], []>} : vector<1x16xbf16>, vector<16x25xbf16>, vector<1x25xf32> -> vector<1x25xf32>
    %250 = arith.addf %242, %249 : vector<1x25xf32>
    %c13_230 = arith.constant 13 : index
    %c0_231 = arith.constant 0 : index
    %c0_232 = arith.constant 0 : index
    %251 = vector.load %arg7[%c13_230, %c0_231, %c0_232] : memref<16x64x25xbf16, #tpu.memory_space<vmem>>, vector<1x64x25xbf16>
    %252 = vector.shape_cast %251 : vector<1x64x25xbf16> to vector<64x25xbf16>
    %cst_233 = arith.constant dense<0.000000e+00> : vector<16x25xf32>
    %253 = tpu.matmul %145, %252, %cst_233 {dimension_numbers = #tpu.dot_dimension_numbers<[1], [0], [0], [1], [0, 0, 1, 1], [], []>} : vector<16x64xbf16>, vector<64x25xbf16>, vector<16x25xf32> -> vector<16x25xf32>
    %c13_234 = arith.constant 13 : index
    %c0_235 = arith.constant 0 : index
    %c0_236 = arith.constant 0 : index
    %254 = vector.load %arg8[%c13_234, %c0_235, %c0_236] : memref<16x1x16xbf16, #tpu.memory_space<vmem>>, vector<1x1x16xbf16>
    %255 = vector.shape_cast %254 : vector<1x1x16xbf16> to vector<1x16xbf16>
    %256 = arith.truncf %253 : vector<16x25xf32> to vector<16x25xbf16>
    %cst_237 = arith.constant dense<0.000000e+00> : vector<1x25xf32>
    %257 = tpu.matmul %255, %256, %cst_237 {dimension_numbers = #tpu.dot_dimension_numbers<[1], [0], [0], [1], [0, 0, 1, 1], [], []>} : vector<1x16xbf16>, vector<16x25xbf16>, vector<1x25xf32> -> vector<1x25xf32>
    %258 = arith.addf %250, %257 : vector<1x25xf32>
    %c14_238 = arith.constant 14 : index
    %c0_239 = arith.constant 0 : index
    %c0_240 = arith.constant 0 : index
    %259 = vector.load %arg7[%c14_238, %c0_239, %c0_240] : memref<16x64x25xbf16, #tpu.memory_space<vmem>>, vector<1x64x25xbf16>
    %260 = vector.shape_cast %259 : vector<1x64x25xbf16> to vector<64x25xbf16>
    %cst_241 = arith.constant dense<0.000000e+00> : vector<16x25xf32>
    %261 = tpu.matmul %145, %260, %cst_241 {dimension_numbers = #tpu.dot_dimension_numbers<[1], [0], [0], [1], [0, 0, 1, 1], [], []>} : vector<16x64xbf16>, vector<64x25xbf16>, vector<16x25xf32> -> vector<16x25xf32>
    %c14_242 = arith.constant 14 : index
    %c0_243 = arith.constant 0 : index
    %c0_244 = arith.constant 0 : index
    %262 = vector.load %arg8[%c14_242, %c0_243, %c0_244] : memref<16x1x16xbf16, #tpu.memory_space<vmem>>, vector<1x1x16xbf16>
    %263 = vector.shape_cast %262 : vector<1x1x16xbf16> to vector<1x16xbf16>
    %264 = arith.truncf %261 : vector<16x25xf32> to vector<16x25xbf16>
    %cst_245 = arith.constant dense<0.000000e+00> : vector<1x25xf32>
    %265 = tpu.matmul %263, %264, %cst_245 {dimension_numbers = #tpu.dot_dimension_numbers<[1], [0], [0], [1], [0, 0, 1, 1], [], []>} : vector<1x16xbf16>, vector<16x25xbf16>, vector<1x25xf32> -> vector<1x25xf32>
    %266 = arith.addf %258, %265 : vector<1x25xf32>
    %c15_246 = arith.constant 15 : index
    %c0_247 = arith.constant 0 : index
    %c0_248 = arith.constant 0 : index
    %267 = vector.load %arg7[%c15_246, %c0_247, %c0_248] : memref<16x64x25xbf16, #tpu.memory_space<vmem>>, vector<1x64x25xbf16>
    %268 = vector.shape_cast %267 : vector<1x64x25xbf16> to vector<64x25xbf16>
    %cst_249 = arith.constant dense<0.000000e+00> : vector<16x25xf32>
    %269 = tpu.matmul %145, %268, %cst_249 {dimension_numbers = #tpu.dot_dimension_numbers<[1], [0], [0], [1], [0, 0, 1, 1], [], []>} : vector<16x64xbf16>, vector<64x25xbf16>, vector<16x25xf32> -> vector<16x25xf32>
    %c15_250 = arith.constant 15 : index
    %c0_251 = arith.constant 0 : index
    %c0_252 = arith.constant 0 : index
    %270 = vector.load %arg8[%c15_250, %c0_251, %c0_252] : memref<16x1x16xbf16, #tpu.memory_space<vmem>>, vector<1x1x16xbf16>
    %271 = vector.shape_cast %270 : vector<1x1x16xbf16> to vector<1x16xbf16>
    %272 = arith.truncf %269 : vector<16x25xf32> to vector<16x25xbf16>
    %cst_253 = arith.constant dense<0.000000e+00> : vector<1x25xf32>
    %273 = tpu.matmul %271, %272, %cst_253 {dimension_numbers = #tpu.dot_dimension_numbers<[1], [0], [0], [1], [0, 0, 1, 1], [], []>} : vector<1x16xbf16>, vector<16x25xbf16>, vector<1x25xf32> -> vector<1x25xf32>
    %274 = arith.addf %266, %273 : vector<1x25xf32>
    %c0_254 = arith.constant 0 : index
    %c0_255 = arith.constant 0 : index
    %275 = vector.load %arg9[%c0_254, %c0_255] : memref<1x1xf32, #tpu.memory_space<vmem>>, vector<1x1xf32>
    %276 = vector.broadcast %275 : vector<1x1xf32> to vector<1x25xf32>
    %277 = arith.addf %274, %276 : vector<1x25xf32>
    %cst_256 = arith.constant 0.000000e+00 : f32
    %278 = vector.broadcast %cst_256 : f32 to vector<1x25xf32>
    %279 = arith.maximumf %277, %278 : vector<1x25xf32>
    %c0_257 = arith.constant 0 : index
    %c0_258 = arith.constant 0 : index
    %c0_259 = arith.constant 0 : index
    %280 = vector.load %arg10[%c0_257, %c0_258, %c0_259] : memref<2x1x25xf32, #tpu.memory_space<vmem>>, vector<1x1x25xf32>
    %281 = vector.shape_cast %280 : vector<1x1x25xf32> to vector<1x25xf32>
    %282 = arith.mulf %281, %279 : vector<1x25xf32>
    %283 = vector.shape_cast %282 : vector<1x25xf32> to vector<1x1x25xf32>
    %cst_260 = arith.constant dense<0.000000e+00> : vector<1xf32>
    %284 = vector.multi_reduction <add>, %283, %cst_260 [1, 2] : vector<1x1x25xf32> to vector<1xf32>
    %285 = vector.shape_cast %284 : vector<1xf32> to vector<1x1x1xf32>
    %286 = vector.extract %285[0, 0, 0] : f32 from vector<1x1x1xf32>
    %287 = vector.broadcast %286 : f32 to vector<1x1xf32>
    %288 = arith.addf %0, %287 : vector<1x1xf32>
    %c0_261 = arith.constant 0 : index
    %c0_262 = arith.constant 0 : index
    %289 = vector.load %arg2[%c0_261, %c0_262] : memref<8x48xbf16, #tpu.memory_space<vmem>>, vector<8x48xbf16>
    %c1_263 = arith.constant 1 : index
    %c0_264 = arith.constant 0 : index
    %c0_265 = arith.constant 0 : index
    %290 = vector.load %arg1[%c1_263, %c0_264, %c0_265] : memref<2x48x256xbf16, #tpu.memory_space<vmem>>, vector<1x48x256xbf16>
    %291 = vector.shape_cast %290 : vector<1x48x256xbf16> to vector<48x256xbf16>
    %cst_266 = arith.constant dense<0.000000e+00> : vector<8x256xf32>
    %292 = tpu.matmul %289, %291, %cst_266 {dimension_numbers = #tpu.dot_dimension_numbers<[1], [0], [0], [1], [0, 0, 1, 1], [], []>} : vector<8x48xbf16>, vector<48x256xbf16>, vector<8x256xf32> -> vector<8x256xf32>
    %c0_267 = arith.constant 0 : index
    %c0_268 = arith.constant 0 : index
    %293 = vector.load %arg3[%c0_267, %c0_268] : memref<8x1xf32, #tpu.memory_space<vmem>>, vector<8x1xf32>
    %294 = vector.broadcast %293 : vector<8x1xf32> to vector<8x256xf32>
    %295 = arith.addf %292, %294 : vector<8x256xf32>
    %cst_269 = arith.constant 0.000000e+00 : f32
    %296 = vector.broadcast %cst_269 : f32 to vector<8x256xf32>
    %297 = arith.maximumf %295, %296 : vector<8x256xf32>
    %298 = arith.truncf %297 : vector<8x256xf32> to vector<8x256xbf16>
    %cst_270 = arith.constant 0.000000e+00 : f32
    %299 = vector.broadcast %cst_270 : f32 to vector<16x64xf32>
    %c0_271 = arith.constant 0 : index
    %c0_272 = arith.constant 0 : index
    %c0_273 = arith.constant 0 : index
    %300 = vector.load %arg4[%c0_271, %c0_272, %c0_273] : memref<16x256x64xbf16, #tpu.memory_space<vmem>>, vector<1x256x64xbf16>
    %301 = vector.shape_cast %300 : vector<1x256x64xbf16> to vector<256x64xbf16>
    %cst_274 = arith.constant dense<0.000000e+00> : vector<8x64xf32>
    %302 = tpu.matmul %298, %301, %cst_274 {dimension_numbers = #tpu.dot_dimension_numbers<[1], [0], [0], [1], [0, 0, 1, 1], [], []>} : vector<8x256xbf16>, vector<256x64xbf16>, vector<8x64xf32> -> vector<8x64xf32>
    %c0_275 = arith.constant 0 : index
    %c0_276 = arith.constant 0 : index
    %c0_277 = arith.constant 0 : index
    %303 = vector.load %arg5[%c0_275, %c0_276, %c0_277] : memref<16x16x8xbf16, #tpu.memory_space<vmem>>, vector<1x16x8xbf16>
    %304 = vector.shape_cast %303 : vector<1x16x8xbf16> to vector<16x8xbf16>
    %305 = arith.truncf %302 : vector<8x64xf32> to vector<8x64xbf16>
    %cst_278 = arith.constant dense<0.000000e+00> : vector<16x64xf32>
    %306 = tpu.matmul %304, %305, %cst_278 {dimension_numbers = #tpu.dot_dimension_numbers<[1], [0], [0], [1], [0, 0, 1, 1], [], []>} : vector<16x8xbf16>, vector<8x64xbf16>, vector<16x64xf32> -> vector<16x64xf32>
    %307 = arith.addf %299, %306 : vector<16x64xf32>
    %c1_279 = arith.constant 1 : index
    %c0_280 = arith.constant 0 : index
    %c0_281 = arith.constant 0 : index
    %308 = vector.load %arg4[%c1_279, %c0_280, %c0_281] : memref<16x256x64xbf16, #tpu.memory_space<vmem>>, vector<1x256x64xbf16>
    %309 = vector.shape_cast %308 : vector<1x256x64xbf16> to vector<256x64xbf16>
    %cst_282 = arith.constant dense<0.000000e+00> : vector<8x64xf32>
    %310 = tpu.matmul %298, %309, %cst_282 {dimension_numbers = #tpu.dot_dimension_numbers<[1], [0], [0], [1], [0, 0, 1, 1], [], []>} : vector<8x256xbf16>, vector<256x64xbf16>, vector<8x64xf32> -> vector<8x64xf32>
    %c1_283 = arith.constant 1 : index
    %c0_284 = arith.constant 0 : index
    %c0_285 = arith.constant 0 : index
    %311 = vector.load %arg5[%c1_283, %c0_284, %c0_285] : memref<16x16x8xbf16, #tpu.memory_space<vmem>>, vector<1x16x8xbf16>
    %312 = vector.shape_cast %311 : vector<1x16x8xbf16> to vector<16x8xbf16>
    %313 = arith.truncf %310 : vector<8x64xf32> to vector<8x64xbf16>
    %cst_286 = arith.constant dense<0.000000e+00> : vector<16x64xf32>
    %314 = tpu.matmul %312, %313, %cst_286 {dimension_numbers = #tpu.dot_dimension_numbers<[1], [0], [0], [1], [0, 0, 1, 1], [], []>} : vector<16x8xbf16>, vector<8x64xbf16>, vector<16x64xf32> -> vector<16x64xf32>
    %315 = arith.addf %307, %314 : vector<16x64xf32>
    %c2_287 = arith.constant 2 : index
    %c0_288 = arith.constant 0 : index
    %c0_289 = arith.constant 0 : index
    %316 = vector.load %arg4[%c2_287, %c0_288, %c0_289] : memref<16x256x64xbf16, #tpu.memory_space<vmem>>, vector<1x256x64xbf16>
    %317 = vector.shape_cast %316 : vector<1x256x64xbf16> to vector<256x64xbf16>
    %cst_290 = arith.constant dense<0.000000e+00> : vector<8x64xf32>
    %318 = tpu.matmul %298, %317, %cst_290 {dimension_numbers = #tpu.dot_dimension_numbers<[1], [0], [0], [1], [0, 0, 1, 1], [], []>} : vector<8x256xbf16>, vector<256x64xbf16>, vector<8x64xf32> -> vector<8x64xf32>
    %c2_291 = arith.constant 2 : index
    %c0_292 = arith.constant 0 : index
    %c0_293 = arith.constant 0 : index
    %319 = vector.load %arg5[%c2_291, %c0_292, %c0_293] : memref<16x16x8xbf16, #tpu.memory_space<vmem>>, vector<1x16x8xbf16>
    %320 = vector.shape_cast %319 : vector<1x16x8xbf16> to vector<16x8xbf16>
    %321 = arith.truncf %318 : vector<8x64xf32> to vector<8x64xbf16>
    %cst_294 = arith.constant dense<0.000000e+00> : vector<16x64xf32>
    %322 = tpu.matmul %320, %321, %cst_294 {dimension_numbers = #tpu.dot_dimension_numbers<[1], [0], [0], [1], [0, 0, 1, 1], [], []>} : vector<16x8xbf16>, vector<8x64xbf16>, vector<16x64xf32> -> vector<16x64xf32>
    %323 = arith.addf %315, %322 : vector<16x64xf32>
    %c3_295 = arith.constant 3 : index
    %c0_296 = arith.constant 0 : index
    %c0_297 = arith.constant 0 : index
    %324 = vector.load %arg4[%c3_295, %c0_296, %c0_297] : memref<16x256x64xbf16, #tpu.memory_space<vmem>>, vector<1x256x64xbf16>
    %325 = vector.shape_cast %324 : vector<1x256x64xbf16> to vector<256x64xbf16>
    %cst_298 = arith.constant dense<0.000000e+00> : vector<8x64xf32>
    %326 = tpu.matmul %298, %325, %cst_298 {dimension_numbers = #tpu.dot_dimension_numbers<[1], [0], [0], [1], [0, 0, 1, 1], [], []>} : vector<8x256xbf16>, vector<256x64xbf16>, vector<8x64xf32> -> vector<8x64xf32>
    %c3_299 = arith.constant 3 : index
    %c0_300 = arith.constant 0 : index
    %c0_301 = arith.constant 0 : index
    %327 = vector.load %arg5[%c3_299, %c0_300, %c0_301] : memref<16x16x8xbf16, #tpu.memory_space<vmem>>, vector<1x16x8xbf16>
    %328 = vector.shape_cast %327 : vector<1x16x8xbf16> to vector<16x8xbf16>
    %329 = arith.truncf %326 : vector<8x64xf32> to vector<8x64xbf16>
    %cst_302 = arith.constant dense<0.000000e+00> : vector<16x64xf32>
    %330 = tpu.matmul %328, %329, %cst_302 {dimension_numbers = #tpu.dot_dimension_numbers<[1], [0], [0], [1], [0, 0, 1, 1], [], []>} : vector<16x8xbf16>, vector<8x64xbf16>, vector<16x64xf32> -> vector<16x64xf32>
    %331 = arith.addf %323, %330 : vector<16x64xf32>
    %c4_303 = arith.constant 4 : index
    %c0_304 = arith.constant 0 : index
    %c0_305 = arith.constant 0 : index
    %332 = vector.load %arg4[%c4_303, %c0_304, %c0_305] : memref<16x256x64xbf16, #tpu.memory_space<vmem>>, vector<1x256x64xbf16>
    %333 = vector.shape_cast %332 : vector<1x256x64xbf16> to vector<256x64xbf16>
    %cst_306 = arith.constant dense<0.000000e+00> : vector<8x64xf32>
    %334 = tpu.matmul %298, %333, %cst_306 {dimension_numbers = #tpu.dot_dimension_numbers<[1], [0], [0], [1], [0, 0, 1, 1], [], []>} : vector<8x256xbf16>, vector<256x64xbf16>, vector<8x64xf32> -> vector<8x64xf32>
    %c4_307 = arith.constant 4 : index
    %c0_308 = arith.constant 0 : index
    %c0_309 = arith.constant 0 : index
    %335 = vector.load %arg5[%c4_307, %c0_308, %c0_309] : memref<16x16x8xbf16, #tpu.memory_space<vmem>>, vector<1x16x8xbf16>
    %336 = vector.shape_cast %335 : vector<1x16x8xbf16> to vector<16x8xbf16>
    %337 = arith.truncf %334 : vector<8x64xf32> to vector<8x64xbf16>
    %cst_310 = arith.constant dense<0.000000e+00> : vector<16x64xf32>
    %338 = tpu.matmul %336, %337, %cst_310 {dimension_numbers = #tpu.dot_dimension_numbers<[1], [0], [0], [1], [0, 0, 1, 1], [], []>} : vector<16x8xbf16>, vector<8x64xbf16>, vector<16x64xf32> -> vector<16x64xf32>
    %339 = arith.addf %331, %338 : vector<16x64xf32>
    %c5_311 = arith.constant 5 : index
    %c0_312 = arith.constant 0 : index
    %c0_313 = arith.constant 0 : index
    %340 = vector.load %arg4[%c5_311, %c0_312, %c0_313] : memref<16x256x64xbf16, #tpu.memory_space<vmem>>, vector<1x256x64xbf16>
    %341 = vector.shape_cast %340 : vector<1x256x64xbf16> to vector<256x64xbf16>
    %cst_314 = arith.constant dense<0.000000e+00> : vector<8x64xf32>
    %342 = tpu.matmul %298, %341, %cst_314 {dimension_numbers = #tpu.dot_dimension_numbers<[1], [0], [0], [1], [0, 0, 1, 1], [], []>} : vector<8x256xbf16>, vector<256x64xbf16>, vector<8x64xf32> -> vector<8x64xf32>
    %c5_315 = arith.constant 5 : index
    %c0_316 = arith.constant 0 : index
    %c0_317 = arith.constant 0 : index
    %343 = vector.load %arg5[%c5_315, %c0_316, %c0_317] : memref<16x16x8xbf16, #tpu.memory_space<vmem>>, vector<1x16x8xbf16>
    %344 = vector.shape_cast %343 : vector<1x16x8xbf16> to vector<16x8xbf16>
    %345 = arith.truncf %342 : vector<8x64xf32> to vector<8x64xbf16>
    %cst_318 = arith.constant dense<0.000000e+00> : vector<16x64xf32>
    %346 = tpu.matmul %344, %345, %cst_318 {dimension_numbers = #tpu.dot_dimension_numbers<[1], [0], [0], [1], [0, 0, 1, 1], [], []>} : vector<16x8xbf16>, vector<8x64xbf16>, vector<16x64xf32> -> vector<16x64xf32>
    %347 = arith.addf %339, %346 : vector<16x64xf32>
    %c6_319 = arith.constant 6 : index
    %c0_320 = arith.constant 0 : index
    %c0_321 = arith.constant 0 : index
    %348 = vector.load %arg4[%c6_319, %c0_320, %c0_321] : memref<16x256x64xbf16, #tpu.memory_space<vmem>>, vector<1x256x64xbf16>
    %349 = vector.shape_cast %348 : vector<1x256x64xbf16> to vector<256x64xbf16>
    %cst_322 = arith.constant dense<0.000000e+00> : vector<8x64xf32>
    %350 = tpu.matmul %298, %349, %cst_322 {dimension_numbers = #tpu.dot_dimension_numbers<[1], [0], [0], [1], [0, 0, 1, 1], [], []>} : vector<8x256xbf16>, vector<256x64xbf16>, vector<8x64xf32> -> vector<8x64xf32>
    %c6_323 = arith.constant 6 : index
    %c0_324 = arith.constant 0 : index
    %c0_325 = arith.constant 0 : index
    %351 = vector.load %arg5[%c6_323, %c0_324, %c0_325] : memref<16x16x8xbf16, #tpu.memory_space<vmem>>, vector<1x16x8xbf16>
    %352 = vector.shape_cast %351 : vector<1x16x8xbf16> to vector<16x8xbf16>
    %353 = arith.truncf %350 : vector<8x64xf32> to vector<8x64xbf16>
    %cst_326 = arith.constant dense<0.000000e+00> : vector<16x64xf32>
    %354 = tpu.matmul %352, %353, %cst_326 {dimension_numbers = #tpu.dot_dimension_numbers<[1], [0], [0], [1], [0, 0, 1, 1], [], []>} : vector<16x8xbf16>, vector<8x64xbf16>, vector<16x64xf32> -> vector<16x64xf32>
    %355 = arith.addf %347, %354 : vector<16x64xf32>
    %c7_327 = arith.constant 7 : index
    %c0_328 = arith.constant 0 : index
    %c0_329 = arith.constant 0 : index
    %356 = vector.load %arg4[%c7_327, %c0_328, %c0_329] : memref<16x256x64xbf16, #tpu.memory_space<vmem>>, vector<1x256x64xbf16>
    %357 = vector.shape_cast %356 : vector<1x256x64xbf16> to vector<256x64xbf16>
    %cst_330 = arith.constant dense<0.000000e+00> : vector<8x64xf32>
    %358 = tpu.matmul %298, %357, %cst_330 {dimension_numbers = #tpu.dot_dimension_numbers<[1], [0], [0], [1], [0, 0, 1, 1], [], []>} : vector<8x256xbf16>, vector<256x64xbf16>, vector<8x64xf32> -> vector<8x64xf32>
    %c7_331 = arith.constant 7 : index
    %c0_332 = arith.constant 0 : index
    %c0_333 = arith.constant 0 : index
    %359 = vector.load %arg5[%c7_331, %c0_332, %c0_333] : memref<16x16x8xbf16, #tpu.memory_space<vmem>>, vector<1x16x8xbf16>
    %360 = vector.shape_cast %359 : vector<1x16x8xbf16> to vector<16x8xbf16>
    %361 = arith.truncf %358 : vector<8x64xf32> to vector<8x64xbf16>
    %cst_334 = arith.constant dense<0.000000e+00> : vector<16x64xf32>
    %362 = tpu.matmul %360, %361, %cst_334 {dimension_numbers = #tpu.dot_dimension_numbers<[1], [0], [0], [1], [0, 0, 1, 1], [], []>} : vector<16x8xbf16>, vector<8x64xbf16>, vector<16x64xf32> -> vector<16x64xf32>
    %363 = arith.addf %355, %362 : vector<16x64xf32>
    %c8_335 = arith.constant 8 : index
    %c0_336 = arith.constant 0 : index
    %c0_337 = arith.constant 0 : index
    %364 = vector.load %arg4[%c8_335, %c0_336, %c0_337] : memref<16x256x64xbf16, #tpu.memory_space<vmem>>, vector<1x256x64xbf16>
    %365 = vector.shape_cast %364 : vector<1x256x64xbf16> to vector<256x64xbf16>
    %cst_338 = arith.constant dense<0.000000e+00> : vector<8x64xf32>
    %366 = tpu.matmul %298, %365, %cst_338 {dimension_numbers = #tpu.dot_dimension_numbers<[1], [0], [0], [1], [0, 0, 1, 1], [], []>} : vector<8x256xbf16>, vector<256x64xbf16>, vector<8x64xf32> -> vector<8x64xf32>
    %c8_339 = arith.constant 8 : index
    %c0_340 = arith.constant 0 : index
    %c0_341 = arith.constant 0 : index
    %367 = vector.load %arg5[%c8_339, %c0_340, %c0_341] : memref<16x16x8xbf16, #tpu.memory_space<vmem>>, vector<1x16x8xbf16>
    %368 = vector.shape_cast %367 : vector<1x16x8xbf16> to vector<16x8xbf16>
    %369 = arith.truncf %366 : vector<8x64xf32> to vector<8x64xbf16>
    %cst_342 = arith.constant dense<0.000000e+00> : vector<16x64xf32>
    %370 = tpu.matmul %368, %369, %cst_342 {dimension_numbers = #tpu.dot_dimension_numbers<[1], [0], [0], [1], [0, 0, 1, 1], [], []>} : vector<16x8xbf16>, vector<8x64xbf16>, vector<16x64xf32> -> vector<16x64xf32>
    %371 = arith.addf %363, %370 : vector<16x64xf32>
    %c9_343 = arith.constant 9 : index
    %c0_344 = arith.constant 0 : index
    %c0_345 = arith.constant 0 : index
    %372 = vector.load %arg4[%c9_343, %c0_344, %c0_345] : memref<16x256x64xbf16, #tpu.memory_space<vmem>>, vector<1x256x64xbf16>
    %373 = vector.shape_cast %372 : vector<1x256x64xbf16> to vector<256x64xbf16>
    %cst_346 = arith.constant dense<0.000000e+00> : vector<8x64xf32>
    %374 = tpu.matmul %298, %373, %cst_346 {dimension_numbers = #tpu.dot_dimension_numbers<[1], [0], [0], [1], [0, 0, 1, 1], [], []>} : vector<8x256xbf16>, vector<256x64xbf16>, vector<8x64xf32> -> vector<8x64xf32>
    %c9_347 = arith.constant 9 : index
    %c0_348 = arith.constant 0 : index
    %c0_349 = arith.constant 0 : index
    %375 = vector.load %arg5[%c9_347, %c0_348, %c0_349] : memref<16x16x8xbf16, #tpu.memory_space<vmem>>, vector<1x16x8xbf16>
    %376 = vector.shape_cast %375 : vector<1x16x8xbf16> to vector<16x8xbf16>
    %377 = arith.truncf %374 : vector<8x64xf32> to vector<8x64xbf16>
    %cst_350 = arith.constant dense<0.000000e+00> : vector<16x64xf32>
    %378 = tpu.matmul %376, %377, %cst_350 {dimension_numbers = #tpu.dot_dimension_numbers<[1], [0], [0], [1], [0, 0, 1, 1], [], []>} : vector<16x8xbf16>, vector<8x64xbf16>, vector<16x64xf32> -> vector<16x64xf32>
    %379 = arith.addf %371, %378 : vector<16x64xf32>
    %c10_351 = arith.constant 10 : index
    %c0_352 = arith.constant 0 : index
    %c0_353 = arith.constant 0 : index
    %380 = vector.load %arg4[%c10_351, %c0_352, %c0_353] : memref<16x256x64xbf16, #tpu.memory_space<vmem>>, vector<1x256x64xbf16>
    %381 = vector.shape_cast %380 : vector<1x256x64xbf16> to vector<256x64xbf16>
    %cst_354 = arith.constant dense<0.000000e+00> : vector<8x64xf32>
    %382 = tpu.matmul %298, %381, %cst_354 {dimension_numbers = #tpu.dot_dimension_numbers<[1], [0], [0], [1], [0, 0, 1, 1], [], []>} : vector<8x256xbf16>, vector<256x64xbf16>, vector<8x64xf32> -> vector<8x64xf32>
    %c10_355 = arith.constant 10 : index
    %c0_356 = arith.constant 0 : index
    %c0_357 = arith.constant 0 : index
    %383 = vector.load %arg5[%c10_355, %c0_356, %c0_357] : memref<16x16x8xbf16, #tpu.memory_space<vmem>>, vector<1x16x8xbf16>
    %384 = vector.shape_cast %383 : vector<1x16x8xbf16> to vector<16x8xbf16>
    %385 = arith.truncf %382 : vector<8x64xf32> to vector<8x64xbf16>
    %cst_358 = arith.constant dense<0.000000e+00> : vector<16x64xf32>
    %386 = tpu.matmul %384, %385, %cst_358 {dimension_numbers = #tpu.dot_dimension_numbers<[1], [0], [0], [1], [0, 0, 1, 1], [], []>} : vector<16x8xbf16>, vector<8x64xbf16>, vector<16x64xf32> -> vector<16x64xf32>
    %387 = arith.addf %379, %386 : vector<16x64xf32>
    %c11_359 = arith.constant 11 : index
    %c0_360 = arith.constant 0 : index
    %c0_361 = arith.constant 0 : index
    %388 = vector.load %arg4[%c11_359, %c0_360, %c0_361] : memref<16x256x64xbf16, #tpu.memory_space<vmem>>, vector<1x256x64xbf16>
    %389 = vector.shape_cast %388 : vector<1x256x64xbf16> to vector<256x64xbf16>
    %cst_362 = arith.constant dense<0.000000e+00> : vector<8x64xf32>
    %390 = tpu.matmul %298, %389, %cst_362 {dimension_numbers = #tpu.dot_dimension_numbers<[1], [0], [0], [1], [0, 0, 1, 1], [], []>} : vector<8x256xbf16>, vector<256x64xbf16>, vector<8x64xf32> -> vector<8x64xf32>
    %c11_363 = arith.constant 11 : index
    %c0_364 = arith.constant 0 : index
    %c0_365 = arith.constant 0 : index
    %391 = vector.load %arg5[%c11_363, %c0_364, %c0_365] : memref<16x16x8xbf16, #tpu.memory_space<vmem>>, vector<1x16x8xbf16>
    %392 = vector.shape_cast %391 : vector<1x16x8xbf16> to vector<16x8xbf16>
    %393 = arith.truncf %390 : vector<8x64xf32> to vector<8x64xbf16>
    %cst_366 = arith.constant dense<0.000000e+00> : vector<16x64xf32>
    %394 = tpu.matmul %392, %393, %cst_366 {dimension_numbers = #tpu.dot_dimension_numbers<[1], [0], [0], [1], [0, 0, 1, 1], [], []>} : vector<16x8xbf16>, vector<8x64xbf16>, vector<16x64xf32> -> vector<16x64xf32>
    %395 = arith.addf %387, %394 : vector<16x64xf32>
    %c12_367 = arith.constant 12 : index
    %c0_368 = arith.constant 0 : index
    %c0_369 = arith.constant 0 : index
    %396 = vector.load %arg4[%c12_367, %c0_368, %c0_369] : memref<16x256x64xbf16, #tpu.memory_space<vmem>>, vector<1x256x64xbf16>
    %397 = vector.shape_cast %396 : vector<1x256x64xbf16> to vector<256x64xbf16>
    %cst_370 = arith.constant dense<0.000000e+00> : vector<8x64xf32>
    %398 = tpu.matmul %298, %397, %cst_370 {dimension_numbers = #tpu.dot_dimension_numbers<[1], [0], [0], [1], [0, 0, 1, 1], [], []>} : vector<8x256xbf16>, vector<256x64xbf16>, vector<8x64xf32> -> vector<8x64xf32>
    %c12_371 = arith.constant 12 : index
    %c0_372 = arith.constant 0 : index
    %c0_373 = arith.constant 0 : index
    %399 = vector.load %arg5[%c12_371, %c0_372, %c0_373] : memref<16x16x8xbf16, #tpu.memory_space<vmem>>, vector<1x16x8xbf16>
    %400 = vector.shape_cast %399 : vector<1x16x8xbf16> to vector<16x8xbf16>
    %401 = arith.truncf %398 : vector<8x64xf32> to vector<8x64xbf16>
    %cst_374 = arith.constant dense<0.000000e+00> : vector<16x64xf32>
    %402 = tpu.matmul %400, %401, %cst_374 {dimension_numbers = #tpu.dot_dimension_numbers<[1], [0], [0], [1], [0, 0, 1, 1], [], []>} : vector<16x8xbf16>, vector<8x64xbf16>, vector<16x64xf32> -> vector<16x64xf32>
    %403 = arith.addf %395, %402 : vector<16x64xf32>
    %c13_375 = arith.constant 13 : index
    %c0_376 = arith.constant 0 : index
    %c0_377 = arith.constant 0 : index
    %404 = vector.load %arg4[%c13_375, %c0_376, %c0_377] : memref<16x256x64xbf16, #tpu.memory_space<vmem>>, vector<1x256x64xbf16>
    %405 = vector.shape_cast %404 : vector<1x256x64xbf16> to vector<256x64xbf16>
    %cst_378 = arith.constant dense<0.000000e+00> : vector<8x64xf32>
    %406 = tpu.matmul %298, %405, %cst_378 {dimension_numbers = #tpu.dot_dimension_numbers<[1], [0], [0], [1], [0, 0, 1, 1], [], []>} : vector<8x256xbf16>, vector<256x64xbf16>, vector<8x64xf32> -> vector<8x64xf32>
    %c13_379 = arith.constant 13 : index
    %c0_380 = arith.constant 0 : index
    %c0_381 = arith.constant 0 : index
    %407 = vector.load %arg5[%c13_379, %c0_380, %c0_381] : memref<16x16x8xbf16, #tpu.memory_space<vmem>>, vector<1x16x8xbf16>
    %408 = vector.shape_cast %407 : vector<1x16x8xbf16> to vector<16x8xbf16>
    %409 = arith.truncf %406 : vector<8x64xf32> to vector<8x64xbf16>
    %cst_382 = arith.constant dense<0.000000e+00> : vector<16x64xf32>
    %410 = tpu.matmul %408, %409, %cst_382 {dimension_numbers = #tpu.dot_dimension_numbers<[1], [0], [0], [1], [0, 0, 1, 1], [], []>} : vector<16x8xbf16>, vector<8x64xbf16>, vector<16x64xf32> -> vector<16x64xf32>
    %411 = arith.addf %403, %410 : vector<16x64xf32>
    %c14_383 = arith.constant 14 : index
    %c0_384 = arith.constant 0 : index
    %c0_385 = arith.constant 0 : index
    %412 = vector.load %arg4[%c14_383, %c0_384, %c0_385] : memref<16x256x64xbf16, #tpu.memory_space<vmem>>, vector<1x256x64xbf16>
    %413 = vector.shape_cast %412 : vector<1x256x64xbf16> to vector<256x64xbf16>
    %cst_386 = arith.constant dense<0.000000e+00> : vector<8x64xf32>
    %414 = tpu.matmul %298, %413, %cst_386 {dimension_numbers = #tpu.dot_dimension_numbers<[1], [0], [0], [1], [0, 0, 1, 1], [], []>} : vector<8x256xbf16>, vector<256x64xbf16>, vector<8x64xf32> -> vector<8x64xf32>
    %c14_387 = arith.constant 14 : index
    %c0_388 = arith.constant 0 : index
    %c0_389 = arith.constant 0 : index
    %415 = vector.load %arg5[%c14_387, %c0_388, %c0_389] : memref<16x16x8xbf16, #tpu.memory_space<vmem>>, vector<1x16x8xbf16>
    %416 = vector.shape_cast %415 : vector<1x16x8xbf16> to vector<16x8xbf16>
    %417 = arith.truncf %414 : vector<8x64xf32> to vector<8x64xbf16>
    %cst_390 = arith.constant dense<0.000000e+00> : vector<16x64xf32>
    %418 = tpu.matmul %416, %417, %cst_390 {dimension_numbers = #tpu.dot_dimension_numbers<[1], [0], [0], [1], [0, 0, 1, 1], [], []>} : vector<16x8xbf16>, vector<8x64xbf16>, vector<16x64xf32> -> vector<16x64xf32>
    %419 = arith.addf %411, %418 : vector<16x64xf32>
    %c15_391 = arith.constant 15 : index
    %c0_392 = arith.constant 0 : index
    %c0_393 = arith.constant 0 : index
    %420 = vector.load %arg4[%c15_391, %c0_392, %c0_393] : memref<16x256x64xbf16, #tpu.memory_space<vmem>>, vector<1x256x64xbf16>
    %421 = vector.shape_cast %420 : vector<1x256x64xbf16> to vector<256x64xbf16>
    %cst_394 = arith.constant dense<0.000000e+00> : vector<8x64xf32>
    %422 = tpu.matmul %298, %421, %cst_394 {dimension_numbers = #tpu.dot_dimension_numbers<[1], [0], [0], [1], [0, 0, 1, 1], [], []>} : vector<8x256xbf16>, vector<256x64xbf16>, vector<8x64xf32> -> vector<8x64xf32>
    %c15_395 = arith.constant 15 : index
    %c0_396 = arith.constant 0 : index
    %c0_397 = arith.constant 0 : index
    %423 = vector.load %arg5[%c15_395, %c0_396, %c0_397] : memref<16x16x8xbf16, #tpu.memory_space<vmem>>, vector<1x16x8xbf16>
    %424 = vector.shape_cast %423 : vector<1x16x8xbf16> to vector<16x8xbf16>
    %425 = arith.truncf %422 : vector<8x64xf32> to vector<8x64xbf16>
    %cst_398 = arith.constant dense<0.000000e+00> : vector<16x64xf32>
    %426 = tpu.matmul %424, %425, %cst_398 {dimension_numbers = #tpu.dot_dimension_numbers<[1], [0], [0], [1], [0, 0, 1, 1], [], []>} : vector<16x8xbf16>, vector<8x64xbf16>, vector<16x64xf32> -> vector<16x64xf32>
    %427 = arith.addf %419, %426 : vector<16x64xf32>
    %c0_399 = arith.constant 0 : index
    %c0_400 = arith.constant 0 : index
    %428 = vector.load %arg6[%c0_399, %c0_400] : memref<16x1xf32, #tpu.memory_space<vmem>>, vector<16x1xf32>
    %429 = vector.broadcast %428 : vector<16x1xf32> to vector<16x64xf32>
    %430 = arith.addf %427, %429 : vector<16x64xf32>
    %cst_401 = arith.constant 0.000000e+00 : f32
    %431 = vector.broadcast %cst_401 : f32 to vector<16x64xf32>
    %432 = arith.maximumf %430, %431 : vector<16x64xf32>
    %433 = arith.truncf %432 : vector<16x64xf32> to vector<16x64xbf16>
    %cst_402 = arith.constant 0.000000e+00 : f32
    %434 = vector.broadcast %cst_402 : f32 to vector<1x25xf32>
    %c0_403 = arith.constant 0 : index
    %c0_404 = arith.constant 0 : index
    %c0_405 = arith.constant 0 : index
    %435 = vector.load %arg7[%c0_403, %c0_404, %c0_405] : memref<16x64x25xbf16, #tpu.memory_space<vmem>>, vector<1x64x25xbf16>
    %436 = vector.shape_cast %435 : vector<1x64x25xbf16> to vector<64x25xbf16>
    %cst_406 = arith.constant dense<0.000000e+00> : vector<16x25xf32>
    %437 = tpu.matmul %433, %436, %cst_406 {dimension_numbers = #tpu.dot_dimension_numbers<[1], [0], [0], [1], [0, 0, 1, 1], [], []>} : vector<16x64xbf16>, vector<64x25xbf16>, vector<16x25xf32> -> vector<16x25xf32>
    %c0_407 = arith.constant 0 : index
    %c0_408 = arith.constant 0 : index
    %c0_409 = arith.constant 0 : index
    %438 = vector.load %arg8[%c0_407, %c0_408, %c0_409] : memref<16x1x16xbf16, #tpu.memory_space<vmem>>, vector<1x1x16xbf16>
    %439 = vector.shape_cast %438 : vector<1x1x16xbf16> to vector<1x16xbf16>
    %440 = arith.truncf %437 : vector<16x25xf32> to vector<16x25xbf16>
    %cst_410 = arith.constant dense<0.000000e+00> : vector<1x25xf32>
    %441 = tpu.matmul %439, %440, %cst_410 {dimension_numbers = #tpu.dot_dimension_numbers<[1], [0], [0], [1], [0, 0, 1, 1], [], []>} : vector<1x16xbf16>, vector<16x25xbf16>, vector<1x25xf32> -> vector<1x25xf32>
    %442 = arith.addf %434, %441 : vector<1x25xf32>
    %c1_411 = arith.constant 1 : index
    %c0_412 = arith.constant 0 : index
    %c0_413 = arith.constant 0 : index
    %443 = vector.load %arg7[%c1_411, %c0_412, %c0_413] : memref<16x64x25xbf16, #tpu.memory_space<vmem>>, vector<1x64x25xbf16>
    %444 = vector.shape_cast %443 : vector<1x64x25xbf16> to vector<64x25xbf16>
    %cst_414 = arith.constant dense<0.000000e+00> : vector<16x25xf32>
    %445 = tpu.matmul %433, %444, %cst_414 {dimension_numbers = #tpu.dot_dimension_numbers<[1], [0], [0], [1], [0, 0, 1, 1], [], []>} : vector<16x64xbf16>, vector<64x25xbf16>, vector<16x25xf32> -> vector<16x25xf32>
    %c1_415 = arith.constant 1 : index
    %c0_416 = arith.constant 0 : index
    %c0_417 = arith.constant 0 : index
    %446 = vector.load %arg8[%c1_415, %c0_416, %c0_417] : memref<16x1x16xbf16, #tpu.memory_space<vmem>>, vector<1x1x16xbf16>
    %447 = vector.shape_cast %446 : vector<1x1x16xbf16> to vector<1x16xbf16>
    %448 = arith.truncf %445 : vector<16x25xf32> to vector<16x25xbf16>
    %cst_418 = arith.constant dense<0.000000e+00> : vector<1x25xf32>
    %449 = tpu.matmul %447, %448, %cst_418 {dimension_numbers = #tpu.dot_dimension_numbers<[1], [0], [0], [1], [0, 0, 1, 1], [], []>} : vector<1x16xbf16>, vector<16x25xbf16>, vector<1x25xf32> -> vector<1x25xf32>
    %450 = arith.addf %442, %449 : vector<1x25xf32>
    %c2_419 = arith.constant 2 : index
    %c0_420 = arith.constant 0 : index
    %c0_421 = arith.constant 0 : index
    %451 = vector.load %arg7[%c2_419, %c0_420, %c0_421] : memref<16x64x25xbf16, #tpu.memory_space<vmem>>, vector<1x64x25xbf16>
    %452 = vector.shape_cast %451 : vector<1x64x25xbf16> to vector<64x25xbf16>
    %cst_422 = arith.constant dense<0.000000e+00> : vector<16x25xf32>
    %453 = tpu.matmul %433, %452, %cst_422 {dimension_numbers = #tpu.dot_dimension_numbers<[1], [0], [0], [1], [0, 0, 1, 1], [], []>} : vector<16x64xbf16>, vector<64x25xbf16>, vector<16x25xf32> -> vector<16x25xf32>
    %c2_423 = arith.constant 2 : index
    %c0_424 = arith.constant 0 : index
    %c0_425 = arith.constant 0 : index
    %454 = vector.load %arg8[%c2_423, %c0_424, %c0_425] : memref<16x1x16xbf16, #tpu.memory_space<vmem>>, vector<1x1x16xbf16>
    %455 = vector.shape_cast %454 : vector<1x1x16xbf16> to vector<1x16xbf16>
    %456 = arith.truncf %453 : vector<16x25xf32> to vector<16x25xbf16>
    %cst_426 = arith.constant dense<0.000000e+00> : vector<1x25xf32>
    %457 = tpu.matmul %455, %456, %cst_426 {dimension_numbers = #tpu.dot_dimension_numbers<[1], [0], [0], [1], [0, 0, 1, 1], [], []>} : vector<1x16xbf16>, vector<16x25xbf16>, vector<1x25xf32> -> vector<1x25xf32>
    %458 = arith.addf %450, %457 : vector<1x25xf32>
    %c3_427 = arith.constant 3 : index
    %c0_428 = arith.constant 0 : index
    %c0_429 = arith.constant 0 : index
    %459 = vector.load %arg7[%c3_427, %c0_428, %c0_429] : memref<16x64x25xbf16, #tpu.memory_space<vmem>>, vector<1x64x25xbf16>
    %460 = vector.shape_cast %459 : vector<1x64x25xbf16> to vector<64x25xbf16>
    %cst_430 = arith.constant dense<0.000000e+00> : vector<16x25xf32>
    %461 = tpu.matmul %433, %460, %cst_430 {dimension_numbers = #tpu.dot_dimension_numbers<[1], [0], [0], [1], [0, 0, 1, 1], [], []>} : vector<16x64xbf16>, vector<64x25xbf16>, vector<16x25xf32> -> vector<16x25xf32>
    %c3_431 = arith.constant 3 : index
    %c0_432 = arith.constant 0 : index
    %c0_433 = arith.constant 0 : index
    %462 = vector.load %arg8[%c3_431, %c0_432, %c0_433] : memref<16x1x16xbf16, #tpu.memory_space<vmem>>, vector<1x1x16xbf16>
    %463 = vector.shape_cast %462 : vector<1x1x16xbf16> to vector<1x16xbf16>
    %464 = arith.truncf %461 : vector<16x25xf32> to vector<16x25xbf16>
    %cst_434 = arith.constant dense<0.000000e+00> : vector<1x25xf32>
    %465 = tpu.matmul %463, %464, %cst_434 {dimension_numbers = #tpu.dot_dimension_numbers<[1], [0], [0], [1], [0, 0, 1, 1], [], []>} : vector<1x16xbf16>, vector<16x25xbf16>, vector<1x25xf32> -> vector<1x25xf32>
    %466 = arith.addf %458, %465 : vector<1x25xf32>
    %c4_435 = arith.constant 4 : index
    %c0_436 = arith.constant 0 : index
    %c0_437 = arith.constant 0 : index
    %467 = vector.load %arg7[%c4_435, %c0_436, %c0_437] : memref<16x64x25xbf16, #tpu.memory_space<vmem>>, vector<1x64x25xbf16>
    %468 = vector.shape_cast %467 : vector<1x64x25xbf16> to vector<64x25xbf16>
    %cst_438 = arith.constant dense<0.000000e+00> : vector<16x25xf32>
    %469 = tpu.matmul %433, %468, %cst_438 {dimension_numbers = #tpu.dot_dimension_numbers<[1], [0], [0], [1], [0, 0, 1, 1], [], []>} : vector<16x64xbf16>, vector<64x25xbf16>, vector<16x25xf32> -> vector<16x25xf32>
    %c4_439 = arith.constant 4 : index
    %c0_440 = arith.constant 0 : index
    %c0_441 = arith.constant 0 : index
    %470 = vector.load %arg8[%c4_439, %c0_440, %c0_441] : memref<16x1x16xbf16, #tpu.memory_space<vmem>>, vector<1x1x16xbf16>
    %471 = vector.shape_cast %470 : vector<1x1x16xbf16> to vector<1x16xbf16>
    %472 = arith.truncf %469 : vector<16x25xf32> to vector<16x25xbf16>
    %cst_442 = arith.constant dense<0.000000e+00> : vector<1x25xf32>
    %473 = tpu.matmul %471, %472, %cst_442 {dimension_numbers = #tpu.dot_dimension_numbers<[1], [0], [0], [1], [0, 0, 1, 1], [], []>} : vector<1x16xbf16>, vector<16x25xbf16>, vector<1x25xf32> -> vector<1x25xf32>
    %474 = arith.addf %466, %473 : vector<1x25xf32>
    %c5_443 = arith.constant 5 : index
    %c0_444 = arith.constant 0 : index
    %c0_445 = arith.constant 0 : index
    %475 = vector.load %arg7[%c5_443, %c0_444, %c0_445] : memref<16x64x25xbf16, #tpu.memory_space<vmem>>, vector<1x64x25xbf16>
    %476 = vector.shape_cast %475 : vector<1x64x25xbf16> to vector<64x25xbf16>
    %cst_446 = arith.constant dense<0.000000e+00> : vector<16x25xf32>
    %477 = tpu.matmul %433, %476, %cst_446 {dimension_numbers = #tpu.dot_dimension_numbers<[1], [0], [0], [1], [0, 0, 1, 1], [], []>} : vector<16x64xbf16>, vector<64x25xbf16>, vector<16x25xf32> -> vector<16x25xf32>
    %c5_447 = arith.constant 5 : index
    %c0_448 = arith.constant 0 : index
    %c0_449 = arith.constant 0 : index
    %478 = vector.load %arg8[%c5_447, %c0_448, %c0_449] : memref<16x1x16xbf16, #tpu.memory_space<vmem>>, vector<1x1x16xbf16>
    %479 = vector.shape_cast %478 : vector<1x1x16xbf16> to vector<1x16xbf16>
    %480 = arith.truncf %477 : vector<16x25xf32> to vector<16x25xbf16>
    %cst_450 = arith.constant dense<0.000000e+00> : vector<1x25xf32>
    %481 = tpu.matmul %479, %480, %cst_450 {dimension_numbers = #tpu.dot_dimension_numbers<[1], [0], [0], [1], [0, 0, 1, 1], [], []>} : vector<1x16xbf16>, vector<16x25xbf16>, vector<1x25xf32> -> vector<1x25xf32>
    %482 = arith.addf %474, %481 : vector<1x25xf32>
    %c6_451 = arith.constant 6 : index
    %c0_452 = arith.constant 0 : index
    %c0_453 = arith.constant 0 : index
    %483 = vector.load %arg7[%c6_451, %c0_452, %c0_453] : memref<16x64x25xbf16, #tpu.memory_space<vmem>>, vector<1x64x25xbf16>
    %484 = vector.shape_cast %483 : vector<1x64x25xbf16> to vector<64x25xbf16>
    %cst_454 = arith.constant dense<0.000000e+00> : vector<16x25xf32>
    %485 = tpu.matmul %433, %484, %cst_454 {dimension_numbers = #tpu.dot_dimension_numbers<[1], [0], [0], [1], [0, 0, 1, 1], [], []>} : vector<16x64xbf16>, vector<64x25xbf16>, vector<16x25xf32> -> vector<16x25xf32>
    %c6_455 = arith.constant 6 : index
    %c0_456 = arith.constant 0 : index
    %c0_457 = arith.constant 0 : index
    %486 = vector.load %arg8[%c6_455, %c0_456, %c0_457] : memref<16x1x16xbf16, #tpu.memory_space<vmem>>, vector<1x1x16xbf16>
    %487 = vector.shape_cast %486 : vector<1x1x16xbf16> to vector<1x16xbf16>
    %488 = arith.truncf %485 : vector<16x25xf32> to vector<16x25xbf16>
    %cst_458 = arith.constant dense<0.000000e+00> : vector<1x25xf32>
    %489 = tpu.matmul %487, %488, %cst_458 {dimension_numbers = #tpu.dot_dimension_numbers<[1], [0], [0], [1], [0, 0, 1, 1], [], []>} : vector<1x16xbf16>, vector<16x25xbf16>, vector<1x25xf32> -> vector<1x25xf32>
    %490 = arith.addf %482, %489 : vector<1x25xf32>
    %c7_459 = arith.constant 7 : index
    %c0_460 = arith.constant 0 : index
    %c0_461 = arith.constant 0 : index
    %491 = vector.load %arg7[%c7_459, %c0_460, %c0_461] : memref<16x64x25xbf16, #tpu.memory_space<vmem>>, vector<1x64x25xbf16>
    %492 = vector.shape_cast %491 : vector<1x64x25xbf16> to vector<64x25xbf16>
    %cst_462 = arith.constant dense<0.000000e+00> : vector<16x25xf32>
    %493 = tpu.matmul %433, %492, %cst_462 {dimension_numbers = #tpu.dot_dimension_numbers<[1], [0], [0], [1], [0, 0, 1, 1], [], []>} : vector<16x64xbf16>, vector<64x25xbf16>, vector<16x25xf32> -> vector<16x25xf32>
    %c7_463 = arith.constant 7 : index
    %c0_464 = arith.constant 0 : index
    %c0_465 = arith.constant 0 : index
    %494 = vector.load %arg8[%c7_463, %c0_464, %c0_465] : memref<16x1x16xbf16, #tpu.memory_space<vmem>>, vector<1x1x16xbf16>
    %495 = vector.shape_cast %494 : vector<1x1x16xbf16> to vector<1x16xbf16>
    %496 = arith.truncf %493 : vector<16x25xf32> to vector<16x25xbf16>
    %cst_466 = arith.constant dense<0.000000e+00> : vector<1x25xf32>
    %497 = tpu.matmul %495, %496, %cst_466 {dimension_numbers = #tpu.dot_dimension_numbers<[1], [0], [0], [1], [0, 0, 1, 1], [], []>} : vector<1x16xbf16>, vector<16x25xbf16>, vector<1x25xf32> -> vector<1x25xf32>
    %498 = arith.addf %490, %497 : vector<1x25xf32>
    %c8_467 = arith.constant 8 : index
    %c0_468 = arith.constant 0 : index
    %c0_469 = arith.constant 0 : index
    %499 = vector.load %arg7[%c8_467, %c0_468, %c0_469] : memref<16x64x25xbf16, #tpu.memory_space<vmem>>, vector<1x64x25xbf16>
    %500 = vector.shape_cast %499 : vector<1x64x25xbf16> to vector<64x25xbf16>
    %cst_470 = arith.constant dense<0.000000e+00> : vector<16x25xf32>
    %501 = tpu.matmul %433, %500, %cst_470 {dimension_numbers = #tpu.dot_dimension_numbers<[1], [0], [0], [1], [0, 0, 1, 1], [], []>} : vector<16x64xbf16>, vector<64x25xbf16>, vector<16x25xf32> -> vector<16x25xf32>
    %c8_471 = arith.constant 8 : index
    %c0_472 = arith.constant 0 : index
    %c0_473 = arith.constant 0 : index
    %502 = vector.load %arg8[%c8_471, %c0_472, %c0_473] : memref<16x1x16xbf16, #tpu.memory_space<vmem>>, vector<1x1x16xbf16>
    %503 = vector.shape_cast %502 : vector<1x1x16xbf16> to vector<1x16xbf16>
    %504 = arith.truncf %501 : vector<16x25xf32> to vector<16x25xbf16>
    %cst_474 = arith.constant dense<0.000000e+00> : vector<1x25xf32>
    %505 = tpu.matmul %503, %504, %cst_474 {dimension_numbers = #tpu.dot_dimension_numbers<[1], [0], [0], [1], [0, 0, 1, 1], [], []>} : vector<1x16xbf16>, vector<16x25xbf16>, vector<1x25xf32> -> vector<1x25xf32>
    %506 = arith.addf %498, %505 : vector<1x25xf32>
    %c9_475 = arith.constant 9 : index
    %c0_476 = arith.constant 0 : index
    %c0_477 = arith.constant 0 : index
    %507 = vector.load %arg7[%c9_475, %c0_476, %c0_477] : memref<16x64x25xbf16, #tpu.memory_space<vmem>>, vector<1x64x25xbf16>
    %508 = vector.shape_cast %507 : vector<1x64x25xbf16> to vector<64x25xbf16>
    %cst_478 = arith.constant dense<0.000000e+00> : vector<16x25xf32>
    %509 = tpu.matmul %433, %508, %cst_478 {dimension_numbers = #tpu.dot_dimension_numbers<[1], [0], [0], [1], [0, 0, 1, 1], [], []>} : vector<16x64xbf16>, vector<64x25xbf16>, vector<16x25xf32> -> vector<16x25xf32>
    %c9_479 = arith.constant 9 : index
    %c0_480 = arith.constant 0 : index
    %c0_481 = arith.constant 0 : index
    %510 = vector.load %arg8[%c9_479, %c0_480, %c0_481] : memref<16x1x16xbf16, #tpu.memory_space<vmem>>, vector<1x1x16xbf16>
    %511 = vector.shape_cast %510 : vector<1x1x16xbf16> to vector<1x16xbf16>
    %512 = arith.truncf %509 : vector<16x25xf32> to vector<16x25xbf16>
    %cst_482 = arith.constant dense<0.000000e+00> : vector<1x25xf32>
    %513 = tpu.matmul %511, %512, %cst_482 {dimension_numbers = #tpu.dot_dimension_numbers<[1], [0], [0], [1], [0, 0, 1, 1], [], []>} : vector<1x16xbf16>, vector<16x25xbf16>, vector<1x25xf32> -> vector<1x25xf32>
    %514 = arith.addf %506, %513 : vector<1x25xf32>
    %c10_483 = arith.constant 10 : index
    %c0_484 = arith.constant 0 : index
    %c0_485 = arith.constant 0 : index
    %515 = vector.load %arg7[%c10_483, %c0_484, %c0_485] : memref<16x64x25xbf16, #tpu.memory_space<vmem>>, vector<1x64x25xbf16>
    %516 = vector.shape_cast %515 : vector<1x64x25xbf16> to vector<64x25xbf16>
    %cst_486 = arith.constant dense<0.000000e+00> : vector<16x25xf32>
    %517 = tpu.matmul %433, %516, %cst_486 {dimension_numbers = #tpu.dot_dimension_numbers<[1], [0], [0], [1], [0, 0, 1, 1], [], []>} : vector<16x64xbf16>, vector<64x25xbf16>, vector<16x25xf32> -> vector<16x25xf32>
    %c10_487 = arith.constant 10 : index
    %c0_488 = arith.constant 0 : index
    %c0_489 = arith.constant 0 : index
    %518 = vector.load %arg8[%c10_487, %c0_488, %c0_489] : memref<16x1x16xbf16, #tpu.memory_space<vmem>>, vector<1x1x16xbf16>
    %519 = vector.shape_cast %518 : vector<1x1x16xbf16> to vector<1x16xbf16>
    %520 = arith.truncf %517 : vector<16x25xf32> to vector<16x25xbf16>
    %cst_490 = arith.constant dense<0.000000e+00> : vector<1x25xf32>
    %521 = tpu.matmul %519, %520, %cst_490 {dimension_numbers = #tpu.dot_dimension_numbers<[1], [0], [0], [1], [0, 0, 1, 1], [], []>} : vector<1x16xbf16>, vector<16x25xbf16>, vector<1x25xf32> -> vector<1x25xf32>
    %522 = arith.addf %514, %521 : vector<1x25xf32>
    %c11_491 = arith.constant 11 : index
    %c0_492 = arith.constant 0 : index
    %c0_493 = arith.constant 0 : index
    %523 = vector.load %arg7[%c11_491, %c0_492, %c0_493] : memref<16x64x25xbf16, #tpu.memory_space<vmem>>, vector<1x64x25xbf16>
    %524 = vector.shape_cast %523 : vector<1x64x25xbf16> to vector<64x25xbf16>
    %cst_494 = arith.constant dense<0.000000e+00> : vector<16x25xf32>
    %525 = tpu.matmul %433, %524, %cst_494 {dimension_numbers = #tpu.dot_dimension_numbers<[1], [0], [0], [1], [0, 0, 1, 1], [], []>} : vector<16x64xbf16>, vector<64x25xbf16>, vector<16x25xf32> -> vector<16x25xf32>
    %c11_495 = arith.constant 11 : index
    %c0_496 = arith.constant 0 : index
    %c0_497 = arith.constant 0 : index
    %526 = vector.load %arg8[%c11_495, %c0_496, %c0_497] : memref<16x1x16xbf16, #tpu.memory_space<vmem>>, vector<1x1x16xbf16>
    %527 = vector.shape_cast %526 : vector<1x1x16xbf16> to vector<1x16xbf16>
    %528 = arith.truncf %525 : vector<16x25xf32> to vector<16x25xbf16>
    %cst_498 = arith.constant dense<0.000000e+00> : vector<1x25xf32>
    %529 = tpu.matmul %527, %528, %cst_498 {dimension_numbers = #tpu.dot_dimension_numbers<[1], [0], [0], [1], [0, 0, 1, 1], [], []>} : vector<1x16xbf16>, vector<16x25xbf16>, vector<1x25xf32> -> vector<1x25xf32>
    %530 = arith.addf %522, %529 : vector<1x25xf32>
    %c12_499 = arith.constant 12 : index
    %c0_500 = arith.constant 0 : index
    %c0_501 = arith.constant 0 : index
    %531 = vector.load %arg7[%c12_499, %c0_500, %c0_501] : memref<16x64x25xbf16, #tpu.memory_space<vmem>>, vector<1x64x25xbf16>
    %532 = vector.shape_cast %531 : vector<1x64x25xbf16> to vector<64x25xbf16>
    %cst_502 = arith.constant dense<0.000000e+00> : vector<16x25xf32>
    %533 = tpu.matmul %433, %532, %cst_502 {dimension_numbers = #tpu.dot_dimension_numbers<[1], [0], [0], [1], [0, 0, 1, 1], [], []>} : vector<16x64xbf16>, vector<64x25xbf16>, vector<16x25xf32> -> vector<16x25xf32>
    %c12_503 = arith.constant 12 : index
    %c0_504 = arith.constant 0 : index
    %c0_505 = arith.constant 0 : index
    %534 = vector.load %arg8[%c12_503, %c0_504, %c0_505] : memref<16x1x16xbf16, #tpu.memory_space<vmem>>, vector<1x1x16xbf16>
    %535 = vector.shape_cast %534 : vector<1x1x16xbf16> to vector<1x16xbf16>
    %536 = arith.truncf %533 : vector<16x25xf32> to vector<16x25xbf16>
    %cst_506 = arith.constant dense<0.000000e+00> : vector<1x25xf32>
    %537 = tpu.matmul %535, %536, %cst_506 {dimension_numbers = #tpu.dot_dimension_numbers<[1], [0], [0], [1], [0, 0, 1, 1], [], []>} : vector<1x16xbf16>, vector<16x25xbf16>, vector<1x25xf32> -> vector<1x25xf32>
    %538 = arith.addf %530, %537 : vector<1x25xf32>
    %c13_507 = arith.constant 13 : index
    %c0_508 = arith.constant 0 : index
    %c0_509 = arith.constant 0 : index
    %539 = vector.load %arg7[%c13_507, %c0_508, %c0_509] : memref<16x64x25xbf16, #tpu.memory_space<vmem>>, vector<1x64x25xbf16>
    %540 = vector.shape_cast %539 : vector<1x64x25xbf16> to vector<64x25xbf16>
    %cst_510 = arith.constant dense<0.000000e+00> : vector<16x25xf32>
    %541 = tpu.matmul %433, %540, %cst_510 {dimension_numbers = #tpu.dot_dimension_numbers<[1], [0], [0], [1], [0, 0, 1, 1], [], []>} : vector<16x64xbf16>, vector<64x25xbf16>, vector<16x25xf32> -> vector<16x25xf32>
    %c13_511 = arith.constant 13 : index
    %c0_512 = arith.constant 0 : index
    %c0_513 = arith.constant 0 : index
    %542 = vector.load %arg8[%c13_511, %c0_512, %c0_513] : memref<16x1x16xbf16, #tpu.memory_space<vmem>>, vector<1x1x16xbf16>
    %543 = vector.shape_cast %542 : vector<1x1x16xbf16> to vector<1x16xbf16>
    %544 = arith.truncf %541 : vector<16x25xf32> to vector<16x25xbf16>
    %cst_514 = arith.constant dense<0.000000e+00> : vector<1x25xf32>
    %545 = tpu.matmul %543, %544, %cst_514 {dimension_numbers = #tpu.dot_dimension_numbers<[1], [0], [0], [1], [0, 0, 1, 1], [], []>} : vector<1x16xbf16>, vector<16x25xbf16>, vector<1x25xf32> -> vector<1x25xf32>
    %546 = arith.addf %538, %545 : vector<1x25xf32>
    %c14_515 = arith.constant 14 : index
    %c0_516 = arith.constant 0 : index
    %c0_517 = arith.constant 0 : index
    %547 = vector.load %arg7[%c14_515, %c0_516, %c0_517] : memref<16x64x25xbf16, #tpu.memory_space<vmem>>, vector<1x64x25xbf16>
    %548 = vector.shape_cast %547 : vector<1x64x25xbf16> to vector<64x25xbf16>
    %cst_518 = arith.constant dense<0.000000e+00> : vector<16x25xf32>
    %549 = tpu.matmul %433, %548, %cst_518 {dimension_numbers = #tpu.dot_dimension_numbers<[1], [0], [0], [1], [0, 0, 1, 1], [], []>} : vector<16x64xbf16>, vector<64x25xbf16>, vector<16x25xf32> -> vector<16x25xf32>
    %c14_519 = arith.constant 14 : index
    %c0_520 = arith.constant 0 : index
    %c0_521 = arith.constant 0 : index
    %550 = vector.load %arg8[%c14_519, %c0_520, %c0_521] : memref<16x1x16xbf16, #tpu.memory_space<vmem>>, vector<1x1x16xbf16>
    %551 = vector.shape_cast %550 : vector<1x1x16xbf16> to vector<1x16xbf16>
    %552 = arith.truncf %549 : vector<16x25xf32> to vector<16x25xbf16>
    %cst_522 = arith.constant dense<0.000000e+00> : vector<1x25xf32>
    %553 = tpu.matmul %551, %552, %cst_522 {dimension_numbers = #tpu.dot_dimension_numbers<[1], [0], [0], [1], [0, 0, 1, 1], [], []>} : vector<1x16xbf16>, vector<16x25xbf16>, vector<1x25xf32> -> vector<1x25xf32>
    %554 = arith.addf %546, %553 : vector<1x25xf32>
    %c15_523 = arith.constant 15 : index
    %c0_524 = arith.constant 0 : index
    %c0_525 = arith.constant 0 : index
    %555 = vector.load %arg7[%c15_523, %c0_524, %c0_525] : memref<16x64x25xbf16, #tpu.memory_space<vmem>>, vector<1x64x25xbf16>
    %556 = vector.shape_cast %555 : vector<1x64x25xbf16> to vector<64x25xbf16>
    %cst_526 = arith.constant dense<0.000000e+00> : vector<16x25xf32>
    %557 = tpu.matmul %433, %556, %cst_526 {dimension_numbers = #tpu.dot_dimension_numbers<[1], [0], [0], [1], [0, 0, 1, 1], [], []>} : vector<16x64xbf16>, vector<64x25xbf16>, vector<16x25xf32> -> vector<16x25xf32>
    %c15_527 = arith.constant 15 : index
    %c0_528 = arith.constant 0 : index
    %c0_529 = arith.constant 0 : index
    %558 = vector.load %arg8[%c15_527, %c0_528, %c0_529] : memref<16x1x16xbf16, #tpu.memory_space<vmem>>, vector<1x1x16xbf16>
    %559 = vector.shape_cast %558 : vector<1x1x16xbf16> to vector<1x16xbf16>
    %560 = arith.truncf %557 : vector<16x25xf32> to vector<16x25xbf16>
    %cst_530 = arith.constant dense<0.000000e+00> : vector<1x25xf32>
    %561 = tpu.matmul %559, %560, %cst_530 {dimension_numbers = #tpu.dot_dimension_numbers<[1], [0], [0], [1], [0, 0, 1, 1], [], []>} : vector<1x16xbf16>, vector<16x25xbf16>, vector<1x25xf32> -> vector<1x25xf32>
    %562 = arith.addf %554, %561 : vector<1x25xf32>
    %c0_531 = arith.constant 0 : index
    %c0_532 = arith.constant 0 : index
    %563 = vector.load %arg9[%c0_531, %c0_532] : memref<1x1xf32, #tpu.memory_space<vmem>>, vector<1x1xf32>
    %564 = vector.broadcast %563 : vector<1x1xf32> to vector<1x25xf32>
    %565 = arith.addf %562, %564 : vector<1x25xf32>
    %cst_533 = arith.constant 0.000000e+00 : f32
    %566 = vector.broadcast %cst_533 : f32 to vector<1x25xf32>
    %567 = arith.maximumf %565, %566 : vector<1x25xf32>
    %c1_534 = arith.constant 1 : index
    %c0_535 = arith.constant 0 : index
    %c0_536 = arith.constant 0 : index
    %568 = vector.load %arg10[%c1_534, %c0_535, %c0_536] : memref<2x1x25xf32, #tpu.memory_space<vmem>>, vector<1x1x25xf32>
    %569 = vector.shape_cast %568 : vector<1x1x25xf32> to vector<1x25xf32>
    %570 = arith.mulf %569, %567 : vector<1x25xf32>
    %571 = vector.shape_cast %570 : vector<1x25xf32> to vector<1x1x25xf32>
    %cst_537 = arith.constant dense<0.000000e+00> : vector<1xf32>
    %572 = vector.multi_reduction <add>, %571, %cst_537 [1, 2] : vector<1x1x25xf32> to vector<1xf32>
    %573 = vector.shape_cast %572 : vector<1xf32> to vector<1x1x1xf32>
    %574 = vector.extract %573[0, 0, 0] : f32 from vector<1x1x1xf32>
    %575 = vector.broadcast %574 : f32 to vector<1x1xf32>
    %576 = arith.addf %288, %575 : vector<1x1xf32>
    %c0_538 = arith.constant 0 : index
    %c0_539 = arith.constant 0 : index
    %577 = vector.load %arg11[%c0_538, %c0_539] : memref<1x1xf32, #tpu.memory_space<vmem>>, vector<1x1xf32>
    %578 = arith.addf %576, %577 : vector<1x1xf32>
    %cst_540 = arith.constant 0.000000e+00 : f32
    %579 = vector.broadcast %cst_540 : f32 to vector<1x1xf32>
    %580 = arith.subf %579, %578 : vector<1x1xf32>
    %581 = math.exp %580 : vector<1x1xf32>
    %cst_541 = arith.constant 1.000000e+00 : f32
    %582 = vector.broadcast %cst_541 : f32 to vector<1x1xf32>
    %583 = arith.addf %582, %581 : vector<1x1xf32>
    %584 = tpu.reciprocal %583 {approx = true} : vector<1x1xf32> -> vector<1x1xf32>
    %c0_542 = arith.constant 0 : index
    %c0_543 = arith.constant 0 : index
    %585 = vector.load %arg12[%c0_542, %c0_543] : memref<1x1xf32, #tpu.memory_space<vmem>>, vector<1x1xf32>
    tpu.vector_store %arg12[%c0_542, %c0_543], %584 {strides = array<i32>} : memref<1x1xf32, #tpu.memory_space<vmem>>, vector<1x1xf32>,
    return
  }
  func.func @transform_0(%arg0: i32) -> (i32, i32, i32) {
    %c0_i32 = arith.constant 0 : i32
    %c0_i32_0 = arith.constant 0 : i32
    %c0_i32_1 = arith.constant 0 : i32
    %c0_i32_2 = arith.constant 0 : i32
    return %c0_i32, %c0_i32_0, %c0_i32_1 : i32, i32, i32
  }
  func.func @transform_1(%arg0: i32) -> (i32, i32) {
    %c0_i32 = arith.constant 0 : i32
    %c0_i32_0 = arith.constant 0 : i32
    %c0_i32_1 = arith.constant 0 : i32
    return %c0_i32, %c0_i32_0 : i32, i32
  }
  func.func @transform_2(%arg0: i32) -> (i32, i32) {
    %c0_i32 = arith.constant 0 : i32
    %c0_i32_0 = arith.constant 0 : i32
    %c0_i32_1 = arith.constant 0 : i32
    return %c0_i32, %c0_i32_0 : i32, i32
  }
  func.func @transform_3(%arg0: i32) -> (i32, i32, i32) {
    %c0_i32 = arith.constant 0 : i32
    %c0_i32_0 = arith.constant 0 : i32
    %c0_i32_1 = arith.constant 0 : i32
    %c0_i32_2 = arith.constant 0 : i32
    return %c0_i32, %c0_i32_0, %c0_i32_1 : i32, i32, i32
  }
  func.func @transform_4(%arg0: i32) -> (i32, i32, i32) {
    %c0_i32 = arith.constant 0 : i32
    %c0_i32_0 = arith.constant 0 : i32
    %c0_i32_1 = arith.constant 0 : i32
    %c0_i32_2 = arith.constant 0 : i32
    return %c0_i32, %c0_i32_0, %c0_i32_1 : i32, i32, i32
  }
  func.func @transform_5(%arg0: i32) -> (i32, i32) {
    %c0_i32 = arith.constant 0 : i32
    %c0_i32_0 = arith.constant 0 : i32
    %c0_i32_1 = arith.constant 0 : i32
    return %c0_i32, %c0_i32_0 : i32, i32
  }
  func.func @transform_6(%arg0: i32) -> (i32, i32, i32) {
    %c0_i32 = arith.constant 0 : i32
    %c0_i32_0 = arith.constant 0 : i32
    %c0_i32_1 = arith.constant 0 : i32
    %c0_i32_2 = arith.constant 0 : i32
    return %c0_i32, %c0_i32_0, %c0_i32_1 : i32, i32, i32
  }
  func.func @transform_7(%arg0: i32) -> (i32, i32, i32) {
    %c0_i32 = arith.constant 0 : i32
    %c0_i32_0 = arith.constant 0 : i32
    %c0_i32_1 = arith.constant 0 : i32
    %c0_i32_2 = arith.constant 0 : i32
    return %c0_i32, %c0_i32_0, %c0_i32_1 : i32, i32, i32
  }
  func.func @transform_8(%arg0: i32) -> (i32, i32) {
    %c0_i32 = arith.constant 0 : i32
    %c0_i32_0 = arith.constant 0 : i32
    %c0_i32_1 = arith.constant 0 : i32
    return %c0_i32, %c0_i32_0 : i32, i32
  }
  func.func @transform_9(%arg0: i32) -> (i32, i32, i32) {
    %c0_i32 = arith.constant 0 : i32
    %c0_i32_0 = arith.constant 0 : i32
    %c0_i32_1 = arith.constant 0 : i32
    %c0_i32_2 = arith.constant 0 : i32
    return %c0_i32, %c0_i32_0, %c0_i32_1 : i32, i32, i32
  }
  func.func @transform_10(%arg0: i32) -> (i32, i32) {
    %c0_i32 = arith.constant 0 : i32
    %c0_i32_0 = arith.constant 0 : i32
    %c0_i32_1 = arith.constant 0 : i32
    return %c0_i32, %c0_i32_0 : i32, i32
  }
  func.func @transform_11(%arg0: i32) -> (i32, i32) {
    %c0_i32 = arith.constant 0 : i32
    %c0_i32_0 = arith.constant 0 : i32
    %c0_i32_1 = arith.constant 0 : i32
    return %c0_i32, %c0_i32_0 : i32, i32
  }
}

</mosaic_0001>

<bundles_post_ra>
// kernel: discriminator_forward.1
= control target key start
LH: loop header
LB: loop body
LE: loop exit
PB: predicated region body
PF: predicated region fallthrough
CT: control target
= control target key end

     0   :  { %s15098_s0 = inlined_call_operand.vmem [shape: bf16[2,48,256], index: 0, kind: input, shape index: {}]   ;;  %s15099_s1 = inlined_call_operand.vmem [shape: bf16[8,48], index: 1, kind: input, shape index: {}]   ;;  %s15100_s2 = inlined_call_operand.vmem [shape: f32[8,1], index: 2, kind: input, shape index: {}]   ;;  %s15101_s3 = inlined_call_operand.vmem [shape: bf16[16,256,64], index: 3, kind: input, shape index: {}]   ;;  %s15102_s4 = inlined_call_operand.vmem [shape: bf16[16,16,8], index: 4, kind: input, shape index: {}]   ;;  %s15103_s5 = inlined_call_operand.vmem [shape: f32[16,1], index: 5, kind: input, shape index: {}]   ;;  %s15104_s6 = inlined_call_operand.vmem [shape: bf16[16,64,25], index: 6, kind: input, shape index: {}]   ;;  %s15105_s7 = inlined_call_operand.vmem [shape: bf16[16,1,16], index: 7, kind: input, shape index: {}]   ;;  %s15106_s8 = inlined_call_operand.<no memory space> [shape: f32[1,1], index: 8, kind: input, shape index: {}]   ;;  %s15107_s9 = inlined_call_operand.vmem [shape: f32[2,1,25], index: 9, kind: input, shape index: {}]   ;;  %s15108_s11 = inlined_call_operand.hbm [shape: f32[1,1], index: 11, kind: output, shape index: {}]   ;;  %s15109_s10 = inlined_call_operand.<no memory space> [shape: f32[1,1], index: 10, kind: input, shape index: {}]  }
   0x1   :  { %v16_v0 = vstv %s15106_s8  ;;  %v18_v1 = vstv %s15109_s10 }
   0x2   :  { %17 = vst [vmem:[#allocation2] sm:$0x1] %v16_v0  ;;  %19 = vst [vmem:[#allocation3] sm:$0x1] %v18_v1 }
   0x3   :  { %v11457_v2 = vld [vmem:[%s15098_s0 + $0x4] ss:$8 sps:$4 sm:$0xff]   ;;  %v11459_v3 = vld [vmem:[%s15098_s0] ss:$8 sps:$4 sm:$0xff]   ;;  %v12192_v4 = vmov 0   ;;  %vm87_vm0 = vcmask 392192  }
   0x4   :  { %123 = vmatprep.mubr.bf16.mxu0 %v12192_v4  ;;  %11455 = vset.pattern.permute.xlu0 %v12192_v4  ;;  %v11460_v5 = vld [vmem:[%s15098_s0 + $0x14] ss:$8 sps:$4 sm:$0xff]   ;;  %v11462_v6 = vld [vmem:[%s15098_s0 + $0x10] ss:$8 sps:$4 sm:$0xff]   ;;  %v11463_v7 = vld [vmem:[%s15098_s0 + $0x24] ss:$8 sps:$4 sm:$0xff]  }
   0x5   :  { %91 = vmatprep.subr.bf16.mxu0 %v11457_v2  ;;  %11456 = vset.pattern.permute.xlu1 %v12192_v4  ;;  %v51_v8 = vld [vmem:[%s15100_s2] sm:$0xff]  ;;  %v11471_v16 = vld [vmem:[%s15101_s3 + $0x48] sm:$0xff]   ;;  %v11475_v20 = vld [vmem:[%s15101_s3 + $0x50] sm:$0xff]  }
   0x6   :  { %92 = vmatpush1.bf16.msra.mxu0 %v11459_v3  ;;  %v11465_v9 = vld [vmem:[%s15098_s0 + $0x20] ss:$8 sps:$4 sm:$0xff]   ;;  %54 = vperm.xlu0 %11455, %v51_v8   ;;  %v11474_v21 = vld [vmem:[%s15101_s3 + $0xd0] sm:$0xff]   ;;  %v11479_v24 = vld [vmem:[%s15101_s3 + $0x58] sm:$0xff]  }
   0x7   :  { %93 = vmatprep.subr.bf16.mxu0 %v11460_v5  ;;  %v3764_v10 = vld [vmem:[%s15103_s5] sm:$0xff]  ;;  %v11470_v17 = vld [vmem:[%s15101_s3 + $0xc8] sm:$0xff]   ;;  %v11477_v22 = vld [vmem:[%s15101_s3 + $0x10] sm:$0xff]  }
   0x8   :  { %v11467_v11 = vld [vmem:[%s15101_s3 + $0x40] sm:$0xff]   ;;  %v11473_v18 = vld [vmem:[%s15101_s3 + $0x8] sm:$0xff]   ;;  %v11476_v23 = vld [vmem:[%s15101_s3 + $0x90] sm:$0xff]  }
   0x9   :  { %v11466_v12 = vld [vmem:[%s15101_s3 + $0xc0] sm:$0xff]   ;;  %9687 = vmatprep.subr.bf16.mxu1 %v11467_v11  ;;  %v11472_v19 = vld [vmem:[%s15101_s3 + $0x88] sm:$0xff]   ;;  %v11478_v25 = vld [vmem:[%s15101_s3 + $0xd8] sm:$0xff]  }
   0xa   :  { %94 = vmatpush1.bf16.msra.mxu0 %v11462_v6  ;;  %v11469_v13 = vld [vmem:[%s15101_s3] sm:$0xff]   ;;  %3768 = vperm.xlu0 %11455, %v3764_v10   ;;  %v11481_v26 = vld [vmem:[%s15101_s3 + $0x18] sm:$0xff]   ;;  %v11487_v32 = vld [vmem:[%s15101_s3 + $0x68] sm:$0xff]  }
   0xb   :  { %95 = vmatprep.subr.bf16.mxu0 %v11463_v7  ;;  %v44_v14 = vld [vmem:[%s15099_s1] sm:$0xf]  ;;  %9688 = vmatpush3.bf16.msra.mxu1 %v11469_v13  ;;  %v11480_v27 = vld [vmem:[%s15101_s3 + $0x98] sm:$0xff]   ;;  %v11486_v33 = vld [vmem:[%s15101_s3 + $0xe8] sm:$0xff]  }
   0xc   :  { %v11468_v15 = vld [vmem:[%s15101_s3 + $0x80] sm:$0xff]   ;;  %9689 = vmatprep.subr.bf16.mxu1 %v11471_v16  ;;  %v11489_v34 = vld [vmem:[%s15101_s3 + $0x28] sm:$0xff]   ;;  %v11490_v36 = vld [vmem:[%s15101_s3 + $0xf0] sm:$0xff]  }
   0xd   :  { %v11483_v28 = vld [vmem:[%s15101_s3 + $0x60] sm:$0xff]   ;;  %v11488_v35 = vld [vmem:[%s15101_s3 + $0xa8] sm:$0xff]   ;;  %v11491_v37 = vld [vmem:[%s15101_s3 + $0x70] sm:$0xff]  }
   0xe   :  { %96 = vmatpush1.bf16.msra.mxu0 %v11465_v9  ;;  %v11482_v29 = vld [vmem:[%s15101_s3 + $0xe0] sm:$0xff]   ;;  %v11492_v38 = vld [vmem:[%s15101_s3 + $0xb0] sm:$0xff]   ;;  %v11494_v40 = vld [vmem:[%s15101_s3 + $0xf8] sm:$0xff]  }
   0xf   :  { %9709 = vmatprep.subr.bf16.mxu0 %v11466_v12  ;;  %9690 = vmatpush3.bf16.msra.mxu1 %v11473_v18  ;;  %v11485_v30 = vld [vmem:[%s15101_s3 + $0x20] sm:$0xff]   ;;  %v11493_v39 = vld [vmem:[%s15101_s3 + $0x30] sm:$0xff]   ;;  %v11495_v41 = vld [vmem:[%s15101_s3 + $0x78] sm:$0xff]  }
  0x10   :  { %9691 = vmatprep.subr.bf16.mxu1 %v11475_v20  ;;  %v11484_v31 = vld [vmem:[%s15101_s3 + $0xa0] sm:$0xff]   ;;  %v11496_v42 = vld [vmem:[%s15101_s3 + $0xb8] sm:$0xff]   ;;  %v11500_v55 = vld [vmem:[%s15101_s3 + $0x148] sm:$0xff]  }
  0x11   :  { %8595 = vmatmul.mubr.msk.bf16.vlgmr.msra.gmra.mrb[0].mxu0 %vm87_vm0, %v44_v14  ;;  %v11497_v43 = vld [vmem:[%s15101_s3 + $0x38] sm:$0xff]   ;;  %v11498_v44 = vld [vmem:[%s15101_s3 + $0x140] sm:$0xff]   ;;  %v11501_v58 = vld [vmem:[%s15101_s3 + $0x108] sm:$0xff]  }
  0x12   :  { %9710 = vmatpush3.bf16.msra.mxu0 %v11468_v15  ;;  %v11499_v54 = vld [vmem:[%s15101_s3 + $0x100] sm:$0xff]   ;;  %v11502_v59 = vld [vmem:[%s15101_s3 + $0x150] sm:$0xff]   ;;  %v11504_v61 = vld [vmem:[%s15101_s3 + $0x158] sm:$0xff]  }
  0x13   :  { %9711 = vmatprep.subr.bf16.mxu0 %v11470_v17  ;;  %9692 = vmatpush3.bf16.msra.mxu1 %v11477_v22  ;;  %v11503_v60 = vld [vmem:[%s15101_s3 + $0x110] sm:$0xff]   ;;  %v11505_v62 = vld [vmem:[%s15101_s3 + $0x118] sm:$0xff]   ;;  %v11506_v63 = vld [vmem:[%s15101_s3 + $0x160] sm:$0xff]  }
  0x14   :  { %9693 = vmatprep.subr.bf16.mxu1 %v11479_v24  ;;  %v11507_v0 = vld [vmem:[%s15101_s3 + $0x120] sm:$0xff]  }
  0x16   :  { %9712 = vmatpush3.bf16.msra.mxu0 %v11472_v19 }
  0x17   :  { %9713 = vmatprep.subr.bf16.mxu0 %v11474_v21  ;;  %9694 = vmatpush3.bf16.msra.mxu1 %v11481_v26 }
  0x18   :  { %9695 = vmatprep.subr.bf16.mxu1 %v11483_v28 }
  0x1a   :  { %9714 = vmatpush3.bf16.msra.mxu0 %v11476_v23 }
  0x1b   :  { %9715 = vmatprep.subr.bf16.mxu0 %v11478_v25  ;;  %9696 = vmatpush3.bf16.msra.mxu1 %v11485_v30 }
  0x1c   :  { %9697 = vmatprep.subr.bf16.mxu1 %v11487_v32 }
  0x1e   :  { %9716 = vmatpush3.bf16.msra.mxu0 %v11480_v27 }
  0x1f   :  { %9717 = vmatprep.subr.bf16.mxu0 %v11482_v29  ;;  %9698 = vmatpush3.bf16.msra.mxu1 %v11489_v34 }
  0x20   :  { %9699 = vmatprep.subr.bf16.mxu1 %v11491_v37 }
  0x22   :  { %9718 = vmatpush3.bf16.msra.mxu0 %v11484_v31 }
  0x23   :  { %9719 = vmatprep.subr.bf16.mxu0 %v11486_v33  ;;  %9700 = vmatpush3.bf16.msra.mxu1 %v11493_v39 }
  0x24   :  { %9701 = vmatprep.subr.bf16.mxu1 %v11495_v41 }
  0x26   :  { %9720 = vmatpush3.bf16.msra.mxu0 %v11488_v35 }
  0x27   :  { %9721 = vmatprep.subr.bf16.mxu0 %v11490_v36  ;;  %9702 = vmatpush3.bf16.msra.mxu1 %v11497_v43 }
  0x2a   :  { %9722 = vmatpush3.bf16.msra.mxu0 %v11492_v38 }
  0x2b   :  { %9723 = vmatprep.subr.bf16.mxu0 %v11494_v40 }
  0x2e   :  { %9724 = vmatpush3.bf16.msra.mxu0 %v11496_v42 }
  0x2f   :  { %9735 = vmatprep.subr.bf16.mxu0 %v11498_v44 }
  0x85   :  { %v12392_v45 = vpop.permute.xlu0 %54 }
  0xe4   :  { %v125_v46 = vpop.f32.mrb[0].mxu0 }
  0xe5   :  { %v126_v47 = vadd.f32 %v125_v46, %v12392_v45  ;;  %v127_v48 = vpop.f32.mrb[1].mxu0 }
  0xe6   :  { %v128_v49 = vadd.f32 %v127_v48, %v12392_v45  ;;  %v129_v50 = vpop.f32.mrb[2].mxu0 }
  0xe7   :  { %v132_v51 = vmax.f32 %v126_v47, 0.0  ;;  %v130_v52 = vpop.f32.mrb[3].mxu0 }
  0xe8   :  { %v133_v53 = vmax.f32 %v128_v49, 0.0 }
  0xe9   :  { %v12404_v57 = vpack.c.bf16 %v132_v51, %v132_v51 }
  0xea   :  { %v12402_v56 = vpack.c.bf16 %v133_v53, %v133_v53 }
  0xec   :  { %296 = vmatprep.mubr.bf16.mxu1 %v12402_v56  ;;  %468 = vmatprep.mubr.bf16.mxu0 %v12402_v56 }
  0xed   :  { %297 = vmatmul.mubr.bf16.vlgmr.msra.gmra.mrb[0].mxu1 %v12404_v57  ;;  %469 = vmatmul.mubr.bf16.vlgmr.msra.gmra.mrb[4].mxu0 %v12404_v57 }
  0xee   :  { %9736 = vmatpush3.bf16.msra.mxu0 %v11499_v54  ;;  %747 = vmatprep.mubr.bf16.mxu0 %v12402_v56 }
  0xef   :  { %9737 = vmatprep.subr.bf16.mxu0 %v11500_v55 }
  0xf2   :  { %9738 = vmatpush3.bf16.msra.mxu0 %v11501_v58 }
  0xf3   :  { %9739 = vmatprep.subr.bf16.mxu0 %v11502_v59 }
  0xf6   :  { %9740 = vmatpush3.bf16.msra.mxu0 %v11503_v60 }
  0xf7   :  { %9741 = vmatprep.subr.bf16.mxu0 %v11504_v61 }
  0xfa   :  { %9742 = vmatpush3.bf16.msra.mxu0 %v11505_v62 }
  0xfb   :  { %20 = vsyncpa [#allocation5], 0  ;;  %9743 = vmatprep.subr.bf16.mxu0 %v11506_v63  ;;  %v11508_v1 = vld [vmem:[%s15101_s3 + $0x168] sm:$0xff]   ;;  %v11510_v3 = vld [vmem:[%s15101_s3 + $0x170] sm:$0xff]   ;;  %v12193_v8 = vmov 0.0   ;;  %vm12194_vm1 = vmmov 0  }
  0xfc   :  { %v11509_v2 = vld [vmem:[%s15101_s3 + $0x128] sm:$0xff]   ;;  %v11511_v5 = vld [vmem:[%s15101_s3 + $0x130] sm:$0xff]   ;;  %v11512_v6 = vld [vmem:[%s15101_s3 + $0x178] sm:$0xff]   ;;  %10679 = vmatprep.subr.bf16.mxu1 %v12193_v8  ;;  %10681 = vmatprep.mubr.msk.bf16.mxu1 %vm12194_vm1, %v12193_v8  ;;  %vm489_vm2 = vcmask 1043456   ;;  %vm485_vm3 = vcmask 64512   ;;  %vm3813_vm4 = vcmask 523264  }
  0xfd   :  { %v11513_v7 = vld [vmem:[%s15101_s3 + $0x138] sm:$0xff]   ;;  %v11514_v22 = vld [vmem:[%s15102_s4 + $0x8] sm:$0xff]   ;;  %v11515_v24 = vld [vmem:[%s15102_s4] sm:$0xff]   ;;  %vm3937_vm5 = vcmask 130048   ;;  %vm5732_vm6 = vcmask 196608   ;;  %vm8573_vm7 = vcmask 0  }
  0xfe   :  { %9744 = vmatpush3.bf16.msra.mxu0 %v11507_v0  ;;  %v11517_v31 = vld [vmem:[%s15101_s3 + $0x1c0] sm:$0xff]   ;;  %v11516_v33 = vld [vmem:[%s15102_s4 + $0x10] sm:$0xff]   ;;  %v11519_v35 = vld [vmem:[%s15101_s3 + $0x1c8] sm:$0xff]  }
  0xff   :  { %9745 = vmatprep.subr.bf16.mxu0 %v11508_v1  ;;  %v11518_v34 = vld [vmem:[%s15101_s3 + $0x180] sm:$0xff]   ;;  %v11520_v36 = vld [vmem:[%s15101_s3 + $0x188] sm:$0xff]   ;;  %v11521_v37 = vld [vmem:[%s15101_s3 + $0x1d0] sm:$0xff]  }
 0x100   :  { %v11522_v38 = vld [vmem:[%s15101_s3 + $0x190] sm:$0xff]   ;;  %v11523_v39 = vld [vmem:[%s15101_s3 + $0x1d8] sm:$0xff]   ;;  %v11525_v41 = vld [vmem:[%s15101_s3 + $0x1e0] sm:$0xff]  }
 0x101   :  { %v11524_v40 = vld [vmem:[%s15101_s3 + $0x198] sm:$0xff]   ;;  %v11526_v42 = vld [vmem:[%s15101_s3 + $0x1a0] sm:$0xff]   ;;  %v11527_v43 = vld [vmem:[%s15101_s3 + $0x1e8] sm:$0xff]  }
 0x102   :  { %9746 = vmatpush3.bf16.msra.mxu0 %v11509_v2  ;;  %v11528_v44 = vld [vmem:[%s15101_s3 + $0x1a8] sm:$0xff]   ;;  %v11529_v46 = vld [vmem:[%s15101_s3 + $0x1f0] sm:$0xff]   ;;  %v11531_v48 = vld [vmem:[%s15101_s3 + $0x1f8] sm:$0xff]  }
 0x103   :  { %9747 = vmatprep.subr.bf16.mxu0 %v11510_v3  ;;  %v11530_v47 = vld [vmem:[%s15101_s3 + $0x1b0] sm:$0xff]   ;;  %v11532_v49 = vld [vmem:[%s15101_s3 + $0x1b8] sm:$0xff]  }
 0x106   :  { %9748 = vmatpush3.bf16.msra.mxu0 %v11511_v5 }
 0x107   :  { %9749 = vmatprep.subr.bf16.mxu0 %v11512_v6 }
 0x10a   :  { %9750 = vmatpush3.bf16.msra.mxu0 %v11513_v7 }
 0x10b   :  { %10697 = vmatprep.subr.bf16.mxu0 %v12193_v8 }
 0x10d   :  { %748 = vmatmul.mubr.bf16.vlgmr.msra.gmra.mrb[8].mxu0 %v12404_v57 }
 0x10e   :  { %10699 = vmatprep.mubr.msk.bf16.mxu0 %vm12194_vm1, %v12193_v8 }
 0x1c0   :  { %v9703_v9 = vpop.f32.mrb[0].mxu1  ;;  %v9725_v10 = vpop.f32.mrb[4].mxu0 }
 0x1c1   :  { %v9704_v11 = vpop.f32.mrb[1].mxu1  ;;  %v9726_v12 = vpop.f32.mrb[5].mxu0 }
 0x1c2   :  { %v9705_v13 = vadd.f32 %v9704_v11, %v9703_v9  ;;  %v9727_v14 = vadd.f32 %v9726_v12, %v9725_v10  ;;  %v9706_v15 = vpop.f32.mrb[2].mxu1  ;;  %v9728_v16 = vpop.f32.mrb[6].mxu0  ;;  %v11534_v12 = vld [vmem:[%s15101_s3 + $0x240] sm:$0xff]  }
 0x1c3   :  { %v9707_v17 = vpop.f32.mrb[3].mxu1  ;;  %v9729_v18 = vpop.f32.mrb[7].mxu0  ;;  %v11535_v15 = vld [vmem:[%s15101_s3 + $0x200] sm:$0xff]   ;;  %v11536_v16 = vld [vmem:[%s15101_s3 + $0x248] sm:$0xff]  }
 0x1c4   :  { %v479_v19 = vpack.c.bf16 %v9727_v14, %v9727_v14  ;;  %v306_v20 = vpack.c.bf16 %v9705_v13, %v9705_v13  ;;  %v11533_v14 = vld [vmem:[%s15102_s4 + $0x18] sm:$0xff]   ;;  %v11537_v17 = vld [vmem:[%s15101_s3 + $0x208] sm:$0xff]   ;;  %v11538_v18 = vld [vmem:[%s15101_s3 + $0x250] sm:$0xff]  }
 0x1c6   :  { %v491_v21 = vsel %vm489_vm2, %v479_v19, 0  ;;  %v543_v23 = vsel %vm489_vm2, %v306_v20, 0  ;;  %v11539_v19 = vld [vmem:[%s15101_s3 + $0x210] sm:$0xff]   ;;  %v11540_v20 = vld [vmem:[%s15101_s3 + $0x258] sm:$0xff]  }
 0x1c7   :  { %10680 = vmatpush3.bf16.msra.mxu1 %v491_v21  ;;  %v11541_v21 = vld [vmem:[%s15101_s3 + $0x218] sm:$0xff]  }
 0x1c8   :  { %10685 = vmatprep.subr.bf16.mxu1 %v12193_v8 }
 0x1ca   :  { %10682 = vmatmul.mubr.msk.bf16.vlgmr.msra.gmra.mrb[4].mxu1 %vm485_vm3, %v11514_v22  ;;  %v11542_v22 = vld [vmem:[%s15101_s3 + $0x260] sm:$0xff]  }
 0x1cb   :  { %10686 = vmatpush3.bf16.msra.mxu1 %v543_v23  ;;  %10687 = vmatprep.mubr.msk.bf16.mxu1 %vm12194_vm1, %v12193_v8  ;;  %v11543_v23 = vld [vmem:[%s15101_s3 + $0x220] sm:$0xff]  }
 0x1cc   :  { %10691 = vmatprep.subr.bf16.mxu1 %v12193_v8 }
 0x1d2   :  { %10688 = vmatmul.mubr.msk.bf16.vlgmr.msra.gmra.mrb[8].mxu1 %vm485_vm3, %v11515_v24  ;;  %v11544_v24 = vld [vmem:[%s15101_s3 + $0x268] sm:$0xff]  }
 0x1d3   :  { %10693 = vmatprep.mubr.msk.bf16.mxu1 %vm12194_vm1, %v12193_v8 }
 0x1e0   :  { %v9751_v25 = vpop.f32.mrb[8].mxu0 }
 0x1e1   :  { %v9752_v26 = vpop.f32.mrb[9].mxu0 }
 0x1e2   :  { %v9753_v27 = vadd.f32 %v9752_v26, %v9751_v25  ;;  %v9754_v28 = vpop.f32.mrb[10].mxu0  ;;  %v11545_v25 = vld [vmem:[%s15101_s3 + $0x228] sm:$0xff]   ;;  %v11546_v26 = vld [vmem:[%s15101_s3 + $0x270] sm:$0xff]  }
 0x1e3   :  { %v9755_v29 = vpop.f32.mrb[11].mxu0  ;;  %v11548_v28 = vld [vmem:[%s15101_s3 + $0x278] sm:$0xff]  }
 0x1e4   :  { %v758_v30 = vpack.c.bf16 %v9753_v27, %v9753_v27  ;;  %v11547_v27 = vld [vmem:[%s15101_s3 + $0x230] sm:$0xff]   ;;  %v11549_v29 = vld [vmem:[%s15101_s3 + $0x238] sm:$0xff]  }
 0x1e6   :  { %v768_v32 = vsel %vm489_vm2, %v758_v30, 0 }
 0x1e7   :  { %10692 = vmatpush3.bf16.msra.mxu1 %v768_v32 }
 0x1e8   :  { %9759 = vmatprep.subr.bf16.mxu1 %v11517_v31 }
 0x1ea   :  { %10694 = vmatmul.mubr.msk.bf16.vlgmr.msra.gmra.mrb[12].mxu1 %vm485_vm3, %v11516_v33 }
 0x1eb   :  { %9760 = vmatpush3.bf16.msra.mxu1 %v11518_v34  ;;  %974 = vmatprep.mubr.bf16.mxu1 %v12402_v56 }
 0x1ec   :  { %9761 = vmatprep.subr.bf16.mxu1 %v11519_v35 }
 0x1ef   :  { %9762 = vmatpush3.bf16.msra.mxu1 %v11520_v36 }
 0x1f0   :  { %9763 = vmatprep.subr.bf16.mxu1 %v11521_v37 }
 0x1f3   :  { %9764 = vmatpush3.bf16.msra.mxu1 %v11522_v38 }
 0x1f4   :  { %9765 = vmatprep.subr.bf16.mxu1 %v11523_v39 }
 0x1f7   :  { %9766 = vmatpush3.bf16.msra.mxu1 %v11524_v40 }
 0x1f8   :  { %9767 = vmatprep.subr.bf16.mxu1 %v11525_v41 }
 0x1fb   :  { %9768 = vmatpush3.bf16.msra.mxu1 %v11526_v42  ;;  %v11551_v42 = vld [vmem:[%s15101_s3 + $0x2c0] sm:$0xff]  }
 0x1fc   :  { %9769 = vmatprep.subr.bf16.mxu1 %v11527_v43 }
 0x1ff   :  { %9770 = vmatpush3.bf16.msra.mxu1 %v11528_v44  ;;  %v11550_v44 = vld [vmem:[%s15102_s4 + $0x20] sm:$0xff]  }
 0x200   :  { %9771 = vmatprep.subr.bf16.mxu1 %v11529_v46  ;;  %v11552_v46 = vld [vmem:[%s15101_s3 + $0x280] sm:$0xff]  }
 0x203   :  { %9772 = vmatpush3.bf16.msra.mxu1 %v11530_v47  ;;  %v11553_v47 = vld [vmem:[%s15101_s3 + $0x2c8] sm:$0xff]  }
 0x204   :  { %9773 = vmatprep.subr.bf16.mxu1 %v11531_v48  ;;  %v11554_v48 = vld [vmem:[%s15101_s3 + $0x288] sm:$0xff]  }
 0x207   :  { %9774 = vmatpush3.bf16.msra.mxu1 %v11532_v49  ;;  %v11555_v49 = vld [vmem:[%s15101_s3 + $0x2d0] sm:$0xff]  }
 0x208   :  { %10703 = vmatprep.subr.bf16.mxu1 %v12193_v8 }
 0x20a   :  { %975 = vmatmul.mubr.bf16.vlgmr.msra.gmra.mrb[16].mxu1 %v12404_v57 }
 0x20b   :  { %10705 = vmatprep.mubr.msk.bf16.mxu1 %vm12194_vm1, %v12193_v8 }
 0x29d   :  { %v527_v50 = vpop.f32.mrb[4].mxu1 }
 0x29e   :  { %v10683_v51 = vpop.f32.mrb[5].mxu1 }
 0x29f   :  { %v530_v52 = vpop.f32.mrb[6].mxu1  ;;  %v11557_v51 = vld [vmem:[%s15101_s3 + $0x2d8] sm:$0xff]  }
 0x2a0   :  { %v10684_v53 = vpop.f32.mrb[7].mxu1 }
 0x2a1   :  { %v11559_v53 = vld [vmem:[%s15101_s3 + $0x2e0] sm:$0xff]  }
 0x2a5   :  { %v579_v54 = vpop.f32.mrb[8].mxu1 }
 0x2a6   :  { %v580_v55 = vadd.f32 %v579_v54, %v527_v50  ;;  %v10689_v58 = vpop.f32.mrb[9].mxu1  ;;  %v11556_v50 = vld [vmem:[%s15101_s3 + $0x290] sm:$0xff]   ;;  %v11560_v54 = vld [vmem:[%s15101_s3 + $0x2a0] sm:$0xff]  }
 0x2a7   :  { %v582_v59 = vpop.f32.mrb[10].mxu1  ;;  %v11562_v58 = vld [vmem:[%s15101_s3 + $0x2a8] sm:$0xff]  }
 0x2a8   :  { %v583_v60 = vadd.f32 %v582_v59, %v530_v52  ;;  %v10690_v61 = vpop.f32.mrb[11].mxu1  ;;  %v11558_v52 = vld [vmem:[%s15101_s3 + $0x298] sm:$0xff]   ;;  %v11563_v59 = vld [vmem:[%s15101_s3 + $0x2f0] sm:$0xff]  }
 0x2a9   :  { %v11565_v61 = vld [vmem:[%s15101_s3 + $0x2f8] sm:$0xff]  }
 0x2bd   :  { %v804_v62 = vpop.f32.mrb[12].mxu1 }
 0x2be   :  { %v811_v63 = vadd.f32 %v804_v62, %v580_v55  ;;  %v10695_v0 = vpop.f32.mrb[13].mxu1  ;;  %v11561_v55 = vld [vmem:[%s15101_s3 + $0x2e8] sm:$0xff]   ;;  %v11566_v62 = vld [vmem:[%s15101_s3 + $0x2b8] sm:$0xff]  }
 0x2bf   :  { %v807_v1 = vpop.f32.mrb[14].mxu1 }
 0x2c0   :  { %v812_v2 = vadd.f32 %v807_v1, %v583_v60  ;;  %v10696_v3 = vpop.f32.mrb[15].mxu1  ;;  %v11564_v60 = vld [vmem:[%s15101_s3 + $0x2b0] sm:$0xff]  }
 0x2dd   :  { %v9775_v5 = vpop.f32.mrb[16].mxu1 }
 0x2de   :  { %v9776_v6 = vpop.f32.mrb[17].mxu1 }
 0x2df   :  { %v9777_v7 = vadd.f32 %v9776_v6, %v9775_v5  ;;  %v9778_v9 = vpop.f32.mrb[18].mxu1 }
 0x2e0   :  { %v9779_v10 = vpop.f32.mrb[19].mxu1 }
 0x2e1   :  { %v985_v11 = vpack.c.bf16 %v9777_v7, %v9777_v7 }
 0x2e3   :  { %v995_v13 = vsel %vm489_vm2, %v985_v11, 0 }
 0x2e4   :  { %10698 = vmatpush3.bf16.msra.mxu0 %v995_v13  ;;  %v11568_v13 = vld [vmem:[%s15101_s3 + $0x340] sm:$0xff]  }
 0x2e5   :  { %9783 = vmatprep.subr.bf16.mxu0 %v11534_v12 }
 0x2e7   :  { %10700 = vmatmul.mubr.msk.bf16.vlgmr.msra.gmra.mrb[12].mxu0 %vm485_vm3, %v11533_v14 }
 0x2e8   :  { %9784 = vmatpush3.bf16.msra.mxu0 %v11535_v15  ;;  %1201 = vmatprep.mubr.bf16.mxu0 %v12402_v56  ;;  %v11567_v15 = vld [vmem:[%s15102_s4 + $0x28] sm:$0xff]  }
 0x2e9   :  { %9785 = vmatprep.subr.bf16.mxu0 %v11536_v16  ;;  %v11569_v16 = vld [vmem:[%s15101_s3 + $0x300] sm:$0xff]  }
 0x2ec   :  { %9786 = vmatpush3.bf16.msra.mxu0 %v11537_v17  ;;  %v11570_v17 = vld [vmem:[%s15101_s3 + $0x348] sm:$0xff]  }
 0x2ed   :  { %9787 = vmatprep.subr.bf16.mxu0 %v11538_v18  ;;  %v11571_v18 = vld [vmem:[%s15101_s3 + $0x308] sm:$0xff]  }
 0x2f0   :  { %9788 = vmatpush3.bf16.msra.mxu0 %v11539_v19  ;;  %v11572_v19 = vld [vmem:[%s15101_s3 + $0x350] sm:$0xff]  }
 0x2f1   :  { %9789 = vmatprep.subr.bf16.mxu0 %v11540_v20  ;;  %v11573_v20 = vld [vmem:[%s15101_s3 + $0x310] sm:$0xff]  }
 0x2f4   :  { %9790 = vmatpush3.bf16.msra.mxu0 %v11541_v21  ;;  %v11574_v21 = vld [vmem:[%s15101_s3 + $0x358] sm:$0xff]  }
 0x2f5   :  { %9791 = vmatprep.subr.bf16.mxu0 %v11542_v22  ;;  %v11575_v22 = vld [vmem:[%s15101_s3 + $0x318] sm:$0xff]  }
 0x2f8   :  { %9792 = vmatpush3.bf16.msra.mxu0 %v11543_v23  ;;  %v11576_v23 = vld [vmem:[%s15101_s3 + $0x360] sm:$0xff]  }
 0x2f9   :  { %9793 = vmatprep.subr.bf16.mxu0 %v11544_v24  ;;  %v11577_v24 = vld [vmem:[%s15101_s3 + $0x320] sm:$0xff]  }
 0x2fc   :  { %9794 = vmatpush3.bf16.msra.mxu0 %v11545_v25  ;;  %v11578_v25 = vld [vmem:[%s15101_s3 + $0x368] sm:$0xff]  }
 0x2fd   :  { %9795 = vmatprep.subr.bf16.mxu0 %v11546_v26  ;;  %v11579_v26 = vld [vmem:[%s15101_s3 + $0x328] sm:$0xff]  }
 0x300   :  { %9796 = vmatpush3.bf16.msra.mxu0 %v11547_v27  ;;  %v11580_v27 = vld [vmem:[%s15101_s3 + $0x370] sm:$0xff]  }
 0x301   :  { %9797 = vmatprep.subr.bf16.mxu0 %v11548_v28  ;;  %v11581_v28 = vld [vmem:[%s15101_s3 + $0x330] sm:$0xff]  }
 0x304   :  { %9798 = vmatpush3.bf16.msra.mxu0 %v11549_v29  ;;  %v11582_v29 = vld [vmem:[%s15101_s3 + $0x378] sm:$0xff]  }
 0x305   :  { %10709 = vmatprep.subr.bf16.mxu0 %v12193_v8 }
 0x307   :  { %1202 = vmatmul.mubr.bf16.vlgmr.msra.gmra.mrb[16].mxu0 %v12404_v57 }
 0x308   :  { %10711 = vmatprep.mubr.msk.bf16.mxu0 %vm12194_vm1, %v12193_v8 }
 0x3ba   :  { %v1031_v30 = vpop.f32.mrb[12].mxu0 }
 0x3bb   :  { %v1038_v31 = vadd.f32 %v1031_v30, %v811_v63  ;;  %v10701_v32 = vpop.f32.mrb[13].mxu0  ;;  %v11583_v30 = vld [vmem:[%s15101_s3 + $0x338] sm:$0xff]  }
 0x3bc   :  { %v1034_v33 = vpop.f32.mrb[14].mxu0 }
 0x3bd   :  { %v1039_v34 = vadd.f32 %v1034_v33, %v812_v2  ;;  %v10702_v35 = vpop.f32.mrb[15].mxu0 }
 0x3da   :  { %v9799_v36 = vpop.f32.mrb[16].mxu0 }
 0x3db   :  { %v9800_v37 = vpop.f32.mrb[17].mxu0 }
 0x3dc   :  { %v9801_v38 = vadd.f32 %v9800_v37, %v9799_v36  ;;  %v9802_v39 = vpop.f32.mrb[18].mxu0 }
 0x3dd   :  { %v9803_v40 = vpop.f32.mrb[19].mxu0 }
 0x3de   :  { %v1212_v41 = vpack.c.bf16 %v9801_v38, %v9801_v38 }
 0x3e0   :  { %v1222_v43 = vsel %vm489_vm2, %v1212_v41, 0 }
 0x3e1   :  { %10704 = vmatpush3.bf16.msra.mxu1 %v1222_v43  ;;  %v11585_v43 = vld [vmem:[%s15101_s3 + $0x3c0] sm:$0xff]  }
 0x3e2   :  { %9807 = vmatprep.subr.bf16.mxu1 %v11551_v42 }
 0x3e4   :  { %10706 = vmatmul.mubr.msk.bf16.vlgmr.msra.gmra.mrb[20].mxu1 %vm485_vm3, %v11550_v44 }
 0x3e5   :  { %9808 = vmatpush3.bf16.msra.mxu1 %v11552_v46  ;;  %1428 = vmatprep.mubr.bf16.mxu1 %v12402_v56  ;;  %v11584_v46 = vld [vmem:[%s15102_s4 + $0x30] sm:$0xff]  }
 0x3e6   :  { %9809 = vmatprep.subr.bf16.mxu1 %v11553_v47  ;;  %v11586_v47 = vld [vmem:[%s15101_s3 + $0x380] sm:$0xff]  }
 0x3e9   :  { %9810 = vmatpush3.bf16.msra.mxu1 %v11554_v48  ;;  %v11587_v48 = vld [vmem:[%s15101_s3 + $0x3c8] sm:$0xff]  }
 0x3ea   :  { %9811 = vmatprep.subr.bf16.mxu1 %v11555_v49  ;;  %v11588_v49 = vld [vmem:[%s15101_s3 + $0x388] sm:$0xff]  }
 0x3ed   :  { %9812 = vmatpush3.bf16.msra.mxu1 %v11556_v50  ;;  %v11589_v50 = vld [vmem:[%s15101_s3 + $0x3d0] sm:$0xff]  }
 0x3ee   :  { %9813 = vmatprep.subr.bf16.mxu1 %v11557_v51  ;;  %v11590_v51 = vld [vmem:[%s15101_s3 + $0x390] sm:$0xff]  }
 0x3f1   :  { %9814 = vmatpush3.bf16.msra.mxu1 %v11558_v52  ;;  %v11591_v52 = vld [vmem:[%s15101_s3 + $0x3d8] sm:$0xff]  }
 0x3f2   :  { %9815 = vmatprep.subr.bf16.mxu1 %v11559_v53  ;;  %v11592_v53 = vld [vmem:[%s15101_s3 + $0x398] sm:$0xff]  }
 0x3f5   :  { %9816 = vmatpush3.bf16.msra.mxu1 %v11560_v54  ;;  %v11593_v54 = vld [vmem:[%s15101_s3 + $0x3e0] sm:$0xff]  }
 0x3f6   :  { %9817 = vmatprep.subr.bf16.mxu1 %v11561_v55  ;;  %v11594_v55 = vld [vmem:[%s15101_s3 + $0x3a0] sm:$0xff]  }
 0x3f9   :  { %9818 = vmatpush3.bf16.msra.mxu1 %v11562_v58  ;;  %v11595_v58 = vld [vmem:[%s15101_s3 + $0x3e8] sm:$0xff]  }
 0x3fa   :  { %9819 = vmatprep.subr.bf16.mxu1 %v11563_v59  ;;  %v11596_v59 = vld [vmem:[%s15101_s3 + $0x3a8] sm:$0xff]  }
 0x3fd   :  { %9820 = vmatpush3.bf16.msra.mxu1 %v11564_v60  ;;  %v11597_v60 = vld [vmem:[%s15101_s3 + $0x3f0] sm:$0xff]  }
 0x3fe   :  { %9821 = vmatprep.subr.bf16.mxu1 %v11565_v61  ;;  %v11598_v61 = vld [vmem:[%s15101_s3 + $0x3b0] sm:$0xff]  }
 0x401   :  { %9822 = vmatpush3.bf16.msra.mxu1 %v11566_v62  ;;  %v11599_v62 = vld [vmem:[%s15101_s3 + $0x3f8] sm:$0xff]  }
 0x402   :  { %10715 = vmatprep.subr.bf16.mxu1 %v12193_v8 }
 0x404   :  { %1429 = vmatmul.mubr.bf16.vlgmr.msra.gmra.mrb[24].mxu1 %v12404_v57 }
 0x405   :  { %10717 = vmatprep.mubr.msk.bf16.mxu1 %vm12194_vm1, %v12193_v8 }
 0x4b7   :  { %v1258_v63 = vpop.f32.mrb[20].mxu1 }
 0x4b8   :  { %v1265_v0 = vadd.f32 %v1258_v63, %v1038_v31  ;;  %v10707_v1 = vpop.f32.mrb[21].mxu1  ;;  %v11600_v63 = vld [vmem:[%s15101_s3 + $0x3b8] sm:$0xff]  }
 0x4b9   :  { %v1261_v2 = vpop.f32.mrb[22].mxu1 }
 0x4ba   :  { %v1266_v3 = vadd.f32 %v1261_v2, %v1039_v34  ;;  %v10708_v5 = vpop.f32.mrb[23].mxu1 }
 0x4d7   :  { %v9823_v6 = vpop.f32.mrb[24].mxu1 }
 0x4d8   :  { %v9824_v7 = vpop.f32.mrb[25].mxu1 }
 0x4d9   :  { %v9825_v9 = vadd.f32 %v9824_v7, %v9823_v6  ;;  %v9826_v10 = vpop.f32.mrb[26].mxu1 }
 0x4da   :  { %v9827_v11 = vpop.f32.mrb[27].mxu1 }
 0x4db   :  { %v1439_v12 = vpack.c.bf16 %v9825_v9, %v9825_v9 }
 0x4dd   :  { %v1449_v14 = vsel %vm489_vm2, %v1439_v12, 0 }
 0x4de   :  { %10710 = vmatpush3.bf16.msra.mxu0 %v1449_v14  ;;  %v11602_v14 = vld [vmem:[%s15101_s3 + $0x440] sm:$0xff]  }
 0x4df   :  { %9831 = vmatprep.subr.bf16.mxu0 %v11568_v13 }
 0x4e1   :  { %10712 = vmatmul.mubr.msk.bf16.vlgmr.msra.gmra.mrb[20].mxu0 %vm485_vm3, %v11567_v15 }
 0x4e2   :  { %9832 = vmatpush3.bf16.msra.mxu0 %v11569_v16  ;;  %1655 = vmatprep.mubr.bf16.mxu0 %v12402_v56  ;;  %v11601_v16 = vld [vmem:[%s15102_s4 + $0x38] sm:$0xff]  }
 0x4e3   :  { %9833 = vmatprep.subr.bf16.mxu0 %v11570_v17  ;;  %v11603_v17 = vld [vmem:[%s15101_s3 + $0x400] sm:$0xff]  }
 0x4e6   :  { %9834 = vmatpush3.bf16.msra.mxu0 %v11571_v18  ;;  %v11604_v18 = vld [vmem:[%s15101_s3 + $0x448] sm:$0xff]  }
 0x4e7   :  { %9835 = vmatprep.subr.bf16.mxu0 %v11572_v19  ;;  %v11605_v19 = vld [vmem:[%s15101_s3 + $0x408] sm:$0xff]  }
 0x4ea   :  { %9836 = vmatpush3.bf16.msra.mxu0 %v11573_v20  ;;  %v11606_v20 = vld [vmem:[%s15101_s3 + $0x450] sm:$0xff]  }
 0x4eb   :  { %9837 = vmatprep.subr.bf16.mxu0 %v11574_v21  ;;  %v11607_v21 = vld [vmem:[%s15101_s3 + $0x410] sm:$0xff]  }
 0x4ee   :  { %9838 = vmatpush3.bf16.msra.mxu0 %v11575_v22  ;;  %v11608_v22 = vld [vmem:[%s15101_s3 + $0x458] sm:$0xff]  }
 0x4ef   :  { %9839 = vmatprep.subr.bf16.mxu0 %v11576_v23  ;;  %v11609_v23 = vld [vmem:[%s15101_s3 + $0x418] sm:$0xff]  }
 0x4f2   :  { %9840 = vmatpush3.bf16.msra.mxu0 %v11577_v24  ;;  %v11610_v24 = vld [vmem:[%s15101_s3 + $0x460] sm:$0xff]  }
 0x4f3   :  { %9841 = vmatprep.subr.bf16.mxu0 %v11578_v25  ;;  %v11611_v25 = vld [vmem:[%s15101_s3 + $0x420] sm:$0xff]  }
 0x4f6   :  { %9842 = vmatpush3.bf16.msra.mxu0 %v11579_v26  ;;  %v11612_v26 = vld [vmem:[%s15101_s3 + $0x468] sm:$0xff]  }
 0x4f7   :  { %9843 = vmatprep.subr.bf16.mxu0 %v11580_v27  ;;  %v11613_v27 = vld [vmem:[%s15101_s3 + $0x428] sm:$0xff]  }
 0x4fa   :  { %9844 = vmatpush3.bf16.msra.mxu0 %v11581_v28  ;;  %v11614_v28 = vld [vmem:[%s15101_s3 + $0x470] sm:$0xff]  }
 0x4fb   :  { %9845 = vmatprep.subr.bf16.mxu0 %v11582_v29  ;;  %v11615_v29 = vld [vmem:[%s15101_s3 + $0x430] sm:$0xff]  }
 0x4fe   :  { %9846 = vmatpush3.bf16.msra.mxu0 %v11583_v30  ;;  %v11616_v30 = vld [vmem:[%s15101_s3 + $0x478] sm:$0xff]  }
 0x4ff   :  { %10721 = vmatprep.subr.bf16.mxu0 %v12193_v8 }
 0x501   :  { %1656 = vmatmul.mubr.bf16.vlgmr.msra.gmra.mrb[24].mxu0 %v12404_v57 }
 0x502   :  { %10723 = vmatprep.mubr.msk.bf16.mxu0 %vm12194_vm1, %v12193_v8 }
 0x5b4   :  { %v1485_v31 = vpop.f32.mrb[20].mxu0 }
 0x5b5   :  { %v1492_v32 = vadd.f32 %v1485_v31, %v1265_v0  ;;  %v10713_v33 = vpop.f32.mrb[21].mxu0  ;;  %v11617_v31 = vld [vmem:[%s15101_s3 + $0x438] sm:$0xff]  }
 0x5b6   :  { %v1488_v34 = vpop.f32.mrb[22].mxu0 }
 0x5b7   :  { %v1493_v35 = vadd.f32 %v1488_v34, %v1266_v3  ;;  %v10714_v36 = vpop.f32.mrb[23].mxu0 }
 0x5d4   :  { %v9847_v37 = vpop.f32.mrb[24].mxu0 }
 0x5d5   :  { %v9848_v38 = vpop.f32.mrb[25].mxu0 }
 0x5d6   :  { %v9849_v39 = vadd.f32 %v9848_v38, %v9847_v37  ;;  %v9850_v40 = vpop.f32.mrb[26].mxu0 }
 0x5d7   :  { %v9851_v41 = vpop.f32.mrb[27].mxu0 }
 0x5d8   :  { %v1666_v42 = vpack.c.bf16 %v9849_v39, %v9849_v39 }
 0x5da   :  { %v1676_v44 = vsel %vm489_vm2, %v1666_v42, 0 }
 0x5db   :  { %10716 = vmatpush3.bf16.msra.mxu1 %v1676_v44  ;;  %v11619_v44 = vld [vmem:[%s15101_s3 + $0x4c0] sm:$0xff]  }
 0x5dc   :  { %9855 = vmatprep.subr.bf16.mxu1 %v11585_v43 }
 0x5de   :  { %10718 = vmatmul.mubr.msk.bf16.vlgmr.msra.gmra.mrb[28].mxu1 %vm485_vm3, %v11584_v46 }
 0x5df   :  { %9856 = vmatpush3.bf16.msra.mxu1 %v11586_v47  ;;  %1882 = vmatprep.mubr.bf16.mxu1 %v12402_v56  ;;  %v11618_v47 = vld [vmem:[%s15102_s4 + $0x40] sm:$0xff]  }
 0x5e0   :  { %9857 = vmatprep.subr.bf16.mxu1 %v11587_v48  ;;  %v11620_v48 = vld [vmem:[%s15101_s3 + $0x480] sm:$0xff]  }
 0x5e3   :  { %9858 = vmatpush3.bf16.msra.mxu1 %v11588_v49  ;;  %v11621_v49 = vld [vmem:[%s15101_s3 + $0x4c8] sm:$0xff]  }
 0x5e4   :  { %9859 = vmatprep.subr.bf16.mxu1 %v11589_v50  ;;  %v11622_v50 = vld [vmem:[%s15101_s3 + $0x488] sm:$0xff]  }
 0x5e7   :  { %9860 = vmatpush3.bf16.msra.mxu1 %v11590_v51  ;;  %v11623_v51 = vld [vmem:[%s15101_s3 + $0x4d0] sm:$0xff]  }
 0x5e8   :  { %9861 = vmatprep.subr.bf16.mxu1 %v11591_v52  ;;  %v11624_v52 = vld [vmem:[%s15101_s3 + $0x490] sm:$0xff]  }
 0x5eb   :  { %9862 = vmatpush3.bf16.msra.mxu1 %v11592_v53  ;;  %v11625_v53 = vld [vmem:[%s15101_s3 + $0x4d8] sm:$0xff]  }
 0x5ec   :  { %9863 = vmatprep.subr.bf16.mxu1 %v11593_v54  ;;  %v11626_v54 = vld [vmem:[%s15101_s3 + $0x498] sm:$0xff]  }
 0x5ef   :  { %9864 = vmatpush3.bf16.msra.mxu1 %v11594_v55  ;;  %v11627_v55 = vld [vmem:[%s15101_s3 + $0x4e0] sm:$0xff]  }
 0x5f0   :  { %9865 = vmatprep.subr.bf16.mxu1 %v11595_v58  ;;  %v11628_v58 = vld [vmem:[%s15101_s3 + $0x4a0] sm:$0xff]  }
 0x5f3   :  { %9866 = vmatpush3.bf16.msra.mxu1 %v11596_v59  ;;  %v11629_v59 = vld [vmem:[%s15101_s3 + $0x4e8] sm:$0xff]  }
 0x5f4   :  { %9867 = vmatprep.subr.bf16.mxu1 %v11597_v60  ;;  %v11630_v60 = vld [vmem:[%s15101_s3 + $0x4a8] sm:$0xff]  }
 0x5f7   :  { %9868 = vmatpush3.bf16.msra.mxu1 %v11598_v61  ;;  %v11631_v61 = vld [vmem:[%s15101_s3 + $0x4f0] sm:$0xff]  }
 0x5f8   :  { %9869 = vmatprep.subr.bf16.mxu1 %v11599_v62  ;;  %v11632_v62 = vld [vmem:[%s15101_s3 + $0x4b0] sm:$0xff]  }
 0x5fb   :  { %9870 = vmatpush3.bf16.msra.mxu1 %v11600_v63  ;;  %v11633_v63 = vld [vmem:[%s15101_s3 + $0x4f8] sm:$0xff]  }
 0x5fc   :  { %10727 = vmatprep.subr.bf16.mxu1 %v12193_v8 }
 0x5fe   :  { %1883 = vmatmul.mubr.bf16.vlgmr.msra.gmra.mrb[32].mxu1 %v12404_v57 }
 0x5ff   :  { %10729 = vmatprep.mubr.msk.bf16.mxu1 %vm12194_vm1, %v12193_v8 }
 0x6b1   :  { %v1712_v0 = vpop.f32.mrb[28].mxu1 }
 0x6b2   :  { %v1719_v1 = vadd.f32 %v1712_v0, %v1492_v32  ;;  %v10719_v2 = vpop.f32.mrb[29].mxu1  ;;  %v11634_v0 = vld [vmem:[%s15101_s3 + $0x4b8] sm:$0xff]  }
 0x6b3   :  { %v1715_v3 = vpop.f32.mrb[30].mxu1 }
 0x6b4   :  { %v1720_v5 = vadd.f32 %v1715_v3, %v1493_v35  ;;  %v10720_v6 = vpop.f32.mrb[31].mxu1 }
 0x6d1   :  { %v9871_v7 = vpop.f32.mrb[32].mxu1 }
 0x6d2   :  { %v9872_v9 = vpop.f32.mrb[33].mxu1 }
 0x6d3   :  { %v9873_v10 = vadd.f32 %v9872_v9, %v9871_v7  ;;  %v9874_v11 = vpop.f32.mrb[34].mxu1 }
 0x6d4   :  { %v9875_v12 = vpop.f32.mrb[35].mxu1 }
 0x6d5   :  { %v1893_v13 = vpack.c.bf16 %v9873_v10, %v9873_v10 }
 0x6d7   :  { %v1903_v15 = vsel %vm489_vm2, %v1893_v13, 0 }
 0x6d8   :  { %10722 = vmatpush3.bf16.msra.mxu0 %v1903_v15  ;;  %v11636_v15 = vld [vmem:[%s15101_s3 + $0x540] sm:$0xff]  }
 0x6d9   :  { %9879 = vmatprep.subr.bf16.mxu0 %v11602_v14 }
 0x6db   :  { %10724 = vmatmul.mubr.msk.bf16.vlgmr.msra.gmra.mrb[28].mxu0 %vm485_vm3, %v11601_v16 }
 0x6dc   :  { %9880 = vmatpush3.bf16.msra.mxu0 %v11603_v17  ;;  %2109 = vmatprep.mubr.bf16.mxu0 %v12402_v56  ;;  %v11635_v17 = vld [vmem:[%s15102_s4 + $0x48] sm:$0xff]  }
 0x6dd   :  { %9881 = vmatprep.subr.bf16.mxu0 %v11604_v18  ;;  %v11637_v18 = vld [vmem:[%s15101_s3 + $0x500] sm:$0xff]  }
 0x6e0   :  { %9882 = vmatpush3.bf16.msra.mxu0 %v11605_v19  ;;  %v11638_v19 = vld [vmem:[%s15101_s3 + $0x548] sm:$0xff]  }
 0x6e1   :  { %9883 = vmatprep.subr.bf16.mxu0 %v11606_v20  ;;  %v11639_v20 = vld [vmem:[%s15101_s3 + $0x508] sm:$0xff]  }
 0x6e4   :  { %9884 = vmatpush3.bf16.msra.mxu0 %v11607_v21  ;;  %v11640_v21 = vld [vmem:[%s15101_s3 + $0x550] sm:$0xff]  }
 0x6e5   :  { %9885 = vmatprep.subr.bf16.mxu0 %v11608_v22  ;;  %v11641_v22 = vld [vmem:[%s15101_s3 + $0x510] sm:$0xff]  }
 0x6e8   :  { %9886 = vmatpush3.bf16.msra.mxu0 %v11609_v23  ;;  %v11642_v23 = vld [vmem:[%s15101_s3 + $0x558] sm:$0xff]  }
 0x6e9   :  { %9887 = vmatprep.subr.bf16.mxu0 %v11610_v24  ;;  %v11643_v24 = vld [vmem:[%s15101_s3 + $0x518] sm:$0xff]  }
 0x6ec   :  { %9888 = vmatpush3.bf16.msra.mxu0 %v11611_v25  ;;  %v11644_v25 = vld [vmem:[%s15101_s3 + $0x560] sm:$0xff]  }
 0x6ed   :  { %9889 = vmatprep.subr.bf16.mxu0 %v11612_v26  ;;  %v11645_v26 = vld [vmem:[%s15101_s3 + $0x520] sm:$0xff]  }
 0x6f0   :  { %9890 = vmatpush3.bf16.msra.mxu0 %v11613_v27  ;;  %v11646_v27 = vld [vmem:[%s15101_s3 + $0x568] sm:$0xff]  }
 0x6f1   :  { %9891 = vmatprep.subr.bf16.mxu0 %v11614_v28  ;;  %v11647_v28 = vld [vmem:[%s15101_s3 + $0x528] sm:$0xff]  }
 0x6f4   :  { %9892 = vmatpush3.bf16.msra.mxu0 %v11615_v29  ;;  %v11648_v29 = vld [vmem:[%s15101_s3 + $0x570] sm:$0xff]  }
 0x6f5   :  { %9893 = vmatprep.subr.bf16.mxu0 %v11616_v30  ;;  %v11649_v30 = vld [vmem:[%s15101_s3 + $0x530] sm:$0xff]  }
 0x6f8   :  { %9894 = vmatpush3.bf16.msra.mxu0 %v11617_v31  ;;  %v11650_v31 = vld [vmem:[%s15101_s3 + $0x578] sm:$0xff]  }
 0x6f9   :  { %10733 = vmatprep.subr.bf16.mxu0 %v12193_v8 }
 0x6fb   :  { %2110 = vmatmul.mubr.bf16.vlgmr.msra.gmra.mrb[32].mxu0 %v12404_v57 }
 0x6fc   :  { %10735 = vmatprep.mubr.msk.bf16.mxu0 %vm12194_vm1, %v12193_v8 }
 0x7ae   :  { %v1939_v32 = vpop.f32.mrb[28].mxu0 }
 0x7af   :  { %v1946_v33 = vadd.f32 %v1939_v32, %v1719_v1  ;;  %v10725_v34 = vpop.f32.mrb[29].mxu0  ;;  %v11651_v32 = vld [vmem:[%s15101_s3 + $0x538] sm:$0xff]  }
 0x7b0   :  { %v1942_v35 = vpop.f32.mrb[30].mxu0 }
 0x7b1   :  { %v1947_v36 = vadd.f32 %v1942_v35, %v1720_v5  ;;  %v10726_v37 = vpop.f32.mrb[31].mxu0 }
 0x7ce   :  { %v9895_v38 = vpop.f32.mrb[32].mxu0 }
 0x7cf   :  { %v9896_v39 = vpop.f32.mrb[33].mxu0 }
 0x7d0   :  { %v9897_v40 = vadd.f32 %v9896_v39, %v9895_v38  ;;  %v9898_v41 = vpop.f32.mrb[34].mxu0 }
 0x7d1   :  { %v9899_v42 = vpop.f32.mrb[35].mxu0 }
 0x7d2   :  { %v2120_v43 = vpack.c.bf16 %v9897_v40, %v9897_v40 }
 0x7d4   :  { %v2130_v46 = vsel %vm489_vm2, %v2120_v43, 0 }
 0x7d5   :  { %10728 = vmatpush3.bf16.msra.mxu1 %v2130_v46  ;;  %v11653_v46 = vld [vmem:[%s15101_s3 + $0x5c0] sm:$0xff]  }
 0x7d6   :  { %9903 = vmatprep.subr.bf16.mxu1 %v11619_v44 }
 0x7d8   :  { %10730 = vmatmul.mubr.msk.bf16.vlgmr.msra.gmra.mrb[36].mxu1 %vm485_vm3, %v11618_v47 }
 0x7d9   :  { %9904 = vmatpush3.bf16.msra.mxu1 %v11620_v48  ;;  %2336 = vmatprep.mubr.bf16.mxu1 %v12402_v56  ;;  %v11652_v48 = vld [vmem:[%s15102_s4 + $0x50] sm:$0xff]  }
 0x7da   :  { %9905 = vmatprep.subr.bf16.mxu1 %v11621_v49  ;;  %v11654_v49 = vld [vmem:[%s15101_s3 + $0x580] sm:$0xff]  }
 0x7dd   :  { %9906 = vmatpush3.bf16.msra.mxu1 %v11622_v50  ;;  %v11655_v50 = vld [vmem:[%s15101_s3 + $0x5c8] sm:$0xff]  }
 0x7de   :  { %9907 = vmatprep.subr.bf16.mxu1 %v11623_v51  ;;  %v11656_v51 = vld [vmem:[%s15101_s3 + $0x588] sm:$0xff]  }
 0x7e1   :  { %9908 = vmatpush3.bf16.msra.mxu1 %v11624_v52  ;;  %v11657_v52 = vld [vmem:[%s15101_s3 + $0x5d0] sm:$0xff]  }
 0x7e2   :  { %9909 = vmatprep.subr.bf16.mxu1 %v11625_v53  ;;  %v11658_v53 = vld [vmem:[%s15101_s3 + $0x590] sm:$0xff]  }
 0x7e5   :  { %9910 = vmatpush3.bf16.msra.mxu1 %v11626_v54  ;;  %v11659_v54 = vld [vmem:[%s15101_s3 + $0x5d8] sm:$0xff]  }
 0x7e6   :  { %9911 = vmatprep.subr.bf16.mxu1 %v11627_v55  ;;  %v11660_v55 = vld [vmem:[%s15101_s3 + $0x598] sm:$0xff]  }
 0x7e9   :  { %9912 = vmatpush3.bf16.msra.mxu1 %v11628_v58  ;;  %v11661_v58 = vld [vmem:[%s15101_s3 + $0x5e0] sm:$0xff]  }
 0x7ea   :  { %9913 = vmatprep.subr.bf16.mxu1 %v11629_v59  ;;  %v11662_v59 = vld [vmem:[%s15101_s3 + $0x5a0] sm:$0xff]  }
 0x7ed   :  { %9914 = vmatpush3.bf16.msra.mxu1 %v11630_v60  ;;  %v11663_v60 = vld [vmem:[%s15101_s3 + $0x5e8] sm:$0xff]  }
 0x7ee   :  { %9915 = vmatprep.subr.bf16.mxu1 %v11631_v61  ;;  %v11664_v61 = vld [vmem:[%s15101_s3 + $0x5a8] sm:$0xff]  }
 0x7f1   :  { %9916 = vmatpush3.bf16.msra.mxu1 %v11632_v62  ;;  %v11665_v62 = vld [vmem:[%s15101_s3 + $0x5f0] sm:$0xff]  }
 0x7f2   :  { %9917 = vmatprep.subr.bf16.mxu1 %v11633_v63  ;;  %v11666_v63 = vld [vmem:[%s15101_s3 + $0x5b0] sm:$0xff]  }
 0x7f5   :  { %9918 = vmatpush3.bf16.msra.mxu1 %v11634_v0  ;;  %v11667_v0 = vld [vmem:[%s15101_s3 + $0x5f8] sm:$0xff]  }
 0x7f6   :  { %10739 = vmatprep.subr.bf16.mxu1 %v12193_v8 }
 0x7f8   :  { %2337 = vmatmul.mubr.bf16.vlgmr.msra.gmra.mrb[40].mxu1 %v12404_v57 }
 0x7f9   :  { %10741 = vmatprep.mubr.msk.bf16.mxu1 %vm12194_vm1, %v12193_v8 }
 0x8ab   :  { %v2166_v1 = vpop.f32.mrb[36].mxu1 }
 0x8ac   :  { %v2173_v2 = vadd.f32 %v2166_v1, %v1946_v33  ;;  %v10731_v3 = vpop.f32.mrb[37].mxu1  ;;  %v11668_v1 = vld [vmem:[%s15101_s3 + $0x5b8] sm:$0xff]  }
 0x8ad   :  { %v2169_v5 = vpop.f32.mrb[38].mxu1 }
 0x8ae   :  { %v2174_v6 = vadd.f32 %v2169_v5, %v1947_v36  ;;  %v10732_v7 = vpop.f32.mrb[39].mxu1 }
 0x8cb   :  { %v9919_v9 = vpop.f32.mrb[40].mxu1 }
 0x8cc   :  { %v9920_v10 = vpop.f32.mrb[41].mxu1 }
 0x8cd   :  { %v9921_v11 = vadd.f32 %v9920_v10, %v9919_v9  ;;  %v9922_v12 = vpop.f32.mrb[42].mxu1 }
 0x8ce   :  { %v9923_v13 = vpop.f32.mrb[43].mxu1 }
 0x8cf   :  { %v2347_v14 = vpack.c.bf16 %v9921_v11, %v9921_v11 }
 0x8d1   :  { %v2357_v16 = vsel %vm489_vm2, %v2347_v14, 0 }
 0x8d2   :  { %10734 = vmatpush3.bf16.msra.mxu0 %v2357_v16  ;;  %v11670_v16 = vld [vmem:[%s15101_s3 + $0x640] sm:$0xff]  }
 0x8d3   :  { %9927 = vmatprep.subr.bf16.mxu0 %v11636_v15 }
 0x8d5   :  { %10736 = vmatmul.mubr.msk.bf16.vlgmr.msra.gmra.mrb[36].mxu0 %vm485_vm3, %v11635_v17 }
 0x8d6   :  { %9928 = vmatpush3.bf16.msra.mxu0 %v11637_v18  ;;  %2563 = vmatprep.mubr.bf16.mxu0 %v12402_v56  ;;  %v11669_v18 = vld [vmem:[%s15102_s4 + $0x58] sm:$0xff]  }
 0x8d7   :  { %9929 = vmatprep.subr.bf16.mxu0 %v11638_v19  ;;  %v11671_v19 = vld [vmem:[%s15101_s3 + $0x600] sm:$0xff]  }
 0x8da   :  { %9930 = vmatpush3.bf16.msra.mxu0 %v11639_v20  ;;  %v11672_v20 = vld [vmem:[%s15101_s3 + $0x648] sm:$0xff]  }
 0x8db   :  { %9931 = vmatprep.subr.bf16.mxu0 %v11640_v21  ;;  %v11673_v21 = vld [vmem:[%s15101_s3 + $0x608] sm:$0xff]  }
 0x8de   :  { %9932 = vmatpush3.bf16.msra.mxu0 %v11641_v22  ;;  %v11674_v22 = vld [vmem:[%s15101_s3 + $0x650] sm:$0xff]  }
 0x8df   :  { %9933 = vmatprep.subr.bf16.mxu0 %v11642_v23  ;;  %v11675_v23 = vld [vmem:[%s15101_s3 + $0x610] sm:$0xff]  }
 0x8e2   :  { %9934 = vmatpush3.bf16.msra.mxu0 %v11643_v24  ;;  %v11676_v24 = vld [vmem:[%s15101_s3 + $0x658] sm:$0xff]  }
 0x8e3   :  { %9935 = vmatprep.subr.bf16.mxu0 %v11644_v25  ;;  %v11677_v25 = vld [vmem:[%s15101_s3 + $0x618] sm:$0xff]  }
 0x8e6   :  { %9936 = vmatpush3.bf16.msra.mxu0 %v11645_v26  ;;  %v11678_v26 = vld [vmem:[%s15101_s3 + $0x660] sm:$0xff]  }
 0x8e7   :  { %9937 = vmatprep.subr.bf16.mxu0 %v11646_v27  ;;  %v11679_v27 = vld [vmem:[%s15101_s3 + $0x620] sm:$0xff]  }
 0x8ea   :  { %9938 = vmatpush3.bf16.msra.mxu0 %v11647_v28  ;;  %v11680_v28 = vld [vmem:[%s15101_s3 + $0x668] sm:$0xff]  }
 0x8eb   :  { %9939 = vmatprep.subr.bf16.mxu0 %v11648_v29  ;;  %v11681_v29 = vld [vmem:[%s15101_s3 + $0x628] sm:$0xff]  }
 0x8ee   :  { %9940 = vmatpush3.bf16.msra.mxu0 %v11649_v30  ;;  %v11682_v30 = vld [vmem:[%s15101_s3 + $0x670] sm:$0xff]  }
 0x8ef   :  { %9941 = vmatprep.subr.bf16.mxu0 %v11650_v31  ;;  %v11683_v31 = vld [vmem:[%s15101_s3 + $0x630] sm:$0xff]  }
 0x8f2   :  { %9942 = vmatpush3.bf16.msra.mxu0 %v11651_v32  ;;  %v11684_v32 = vld [vmem:[%s15101_s3 + $0x678] sm:$0xff]  }
 0x8f3   :  { %10745 = vmatprep.subr.bf16.mxu0 %v12193_v8 }
 0x8f5   :  { %2564 = vmatmul.mubr.bf16.vlgmr.msra.gmra.mrb[40].mxu0 %v12404_v57 }
 0x8f6   :  { %10747 = vmatprep.mubr.msk.bf16.mxu0 %vm12194_vm1, %v12193_v8 }
 0x9a8   :  { %v2393_v33 = vpop.f32.mrb[36].mxu0 }
 0x9a9   :  { %v2400_v34 = vadd.f32 %v2393_v33, %v2173_v2  ;;  %v10737_v35 = vpop.f32.mrb[37].mxu0  ;;  %v11685_v33 = vld [vmem:[%s15101_s3 + $0x638] sm:$0xff]  }
 0x9aa   :  { %v2396_v36 = vpop.f32.mrb[38].mxu0 }
 0x9ab   :  { %v2401_v37 = vadd.f32 %v2396_v36, %v2174_v6  ;;  %v10738_v38 = vpop.f32.mrb[39].mxu0 }
 0x9c8   :  { %v9943_v39 = vpop.f32.mrb[40].mxu0 }
 0x9c9   :  { %v9944_v40 = vpop.f32.mrb[41].mxu0 }
 0x9ca   :  { %v9945_v41 = vadd.f32 %v9944_v40, %v9943_v39  ;;  %v9946_v42 = vpop.f32.mrb[42].mxu0 }
 0x9cb   :  { %v9947_v43 = vpop.f32.mrb[43].mxu0 }
 0x9cc   :  { %v2574_v44 = vpack.c.bf16 %v9945_v41, %v9945_v41 }
 0x9ce   :  { %v2584_v47 = vsel %vm489_vm2, %v2574_v44, 0 }
 0x9cf   :  { %10740 = vmatpush3.bf16.msra.mxu1 %v2584_v47  ;;  %v11687_v47 = vld [vmem:[%s15101_s3 + $0x6c0] sm:$0xff]  }
 0x9d0   :  { %9951 = vmatprep.subr.bf16.mxu1 %v11653_v46 }
 0x9d2   :  { %10742 = vmatmul.mubr.msk.bf16.vlgmr.msra.gmra.mrb[44].mxu1 %vm485_vm3, %v11652_v48 }
 0x9d3   :  { %9952 = vmatpush3.bf16.msra.mxu1 %v11654_v49  ;;  %2790 = vmatprep.mubr.bf16.mxu1 %v12402_v56  ;;  %v11686_v49 = vld [vmem:[%s15102_s4 + $0x60] sm:$0xff]  }
 0x9d4   :  { %9953 = vmatprep.subr.bf16.mxu1 %v11655_v50  ;;  %v11688_v50 = vld [vmem:[%s15101_s3 + $0x680] sm:$0xff]  }
 0x9d7   :  { %9954 = vmatpush3.bf16.msra.mxu1 %v11656_v51  ;;  %v11689_v51 = vld [vmem:[%s15101_s3 + $0x6c8] sm:$0xff]  }
 0x9d8   :  { %9955 = vmatprep.subr.bf16.mxu1 %v11657_v52  ;;  %v11690_v52 = vld [vmem:[%s15101_s3 + $0x688] sm:$0xff]  }
 0x9db   :  { %9956 = vmatpush3.bf16.msra.mxu1 %v11658_v53  ;;  %v11691_v53 = vld [vmem:[%s15101_s3 + $0x6d0] sm:$0xff]  }
 0x9dc   :  { %9957 = vmatprep.subr.bf16.mxu1 %v11659_v54  ;;  %v11692_v54 = vld [vmem:[%s15101_s3 + $0x690] sm:$0xff]  }
 0x9df   :  { %9958 = vmatpush3.bf16.msra.mxu1 %v11660_v55  ;;  %v11693_v55 = vld [vmem:[%s15101_s3 + $0x6d8] sm:$0xff]  }
 0x9e0   :  { %9959 = vmatprep.subr.bf16.mxu1 %v11661_v58  ;;  %v11694_v58 = vld [vmem:[%s15101_s3 + $0x698] sm:$0xff]  }
 0x9e3   :  { %9960 = vmatpush3.bf16.msra.mxu1 %v11662_v59  ;;  %v11695_v59 = vld [vmem:[%s15101_s3 + $0x6e0] sm:$0xff]  }
 0x9e4   :  { %9961 = vmatprep.subr.bf16.mxu1 %v11663_v60  ;;  %v11696_v60 = vld [vmem:[%s15101_s3 + $0x6a0] sm:$0xff]  }
 0x9e7   :  { %9962 = vmatpush3.bf16.msra.mxu1 %v11664_v61  ;;  %v11697_v61 = vld [vmem:[%s15101_s3 + $0x6e8] sm:$0xff]  }
 0x9e8   :  { %9963 = vmatprep.subr.bf16.mxu1 %v11665_v62  ;;  %v11698_v62 = vld [vmem:[%s15101_s3 + $0x6a8] sm:$0xff]  }
 0x9eb   :  { %9964 = vmatpush3.bf16.msra.mxu1 %v11666_v63  ;;  %v11699_v63 = vld [vmem:[%s15101_s3 + $0x6f0] sm:$0xff]  }
 0x9ec   :  { %9965 = vmatprep.subr.bf16.mxu1 %v11667_v0  ;;  %v11700_v0 = vld [vmem:[%s15101_s3 + $0x6b0] sm:$0xff]  }
 0x9ef   :  { %9966 = vmatpush3.bf16.msra.mxu1 %v11668_v1  ;;  %v11701_v1 = vld [vmem:[%s15101_s3 + $0x6f8] sm:$0xff]  }
 0x9f0   :  { %10751 = vmatprep.subr.bf16.mxu1 %v12193_v8 }
 0x9f2   :  { %2791 = vmatmul.mubr.bf16.vlgmr.msra.gmra.mrb[48].mxu1 %v12404_v57 }
 0x9f3   :  { %10753 = vmatprep.mubr.msk.bf16.mxu1 %vm12194_vm1, %v12193_v8 }
 0xaa5   :  { %v2620_v2 = vpop.f32.mrb[44].mxu1 }
 0xaa6   :  { %v2627_v3 = vadd.f32 %v2620_v2, %v2400_v34  ;;  %v10743_v5 = vpop.f32.mrb[45].mxu1  ;;  %v11702_v2 = vld [vmem:[%s15101_s3 + $0x6b8] sm:$0xff]  }
 0xaa7   :  { %v2623_v6 = vpop.f32.mrb[46].mxu1 }
 0xaa8   :  { %v2628_v7 = vadd.f32 %v2623_v6, %v2401_v37  ;;  %v10744_v9 = vpop.f32.mrb[47].mxu1 }
 0xac5   :  { %v9967_v10 = vpop.f32.mrb[48].mxu1 }
 0xac6   :  { %v9968_v11 = vpop.f32.mrb[49].mxu1 }
 0xac7   :  { %v9969_v12 = vadd.f32 %v9968_v11, %v9967_v10  ;;  %v9970_v13 = vpop.f32.mrb[50].mxu1 }
 0xac8   :  { %v9971_v14 = vpop.f32.mrb[51].mxu1 }
 0xac9   :  { %v2801_v15 = vpack.c.bf16 %v9969_v12, %v9969_v12 }
 0xacb   :  { %v2811_v17 = vsel %vm489_vm2, %v2801_v15, 0 }
 0xacc   :  { %10746 = vmatpush3.bf16.msra.mxu0 %v2811_v17  ;;  %v11704_v17 = vld [vmem:[%s15101_s3 + $0x740] sm:$0xff]  }
 0xacd   :  { %9975 = vmatprep.subr.bf16.mxu0 %v11670_v16 }
 0xacf   :  { %10748 = vmatmul.mubr.msk.bf16.vlgmr.msra.gmra.mrb[44].mxu0 %vm485_vm3, %v11669_v18 }
 0xad0   :  { %9976 = vmatpush3.bf16.msra.mxu0 %v11671_v19  ;;  %3017 = vmatprep.mubr.bf16.mxu0 %v12402_v56  ;;  %v11703_v19 = vld [vmem:[%s15102_s4 + $0x68] sm:$0xff]  }
 0xad1   :  { %9977 = vmatprep.subr.bf16.mxu0 %v11672_v20  ;;  %v11705_v20 = vld [vmem:[%s15101_s3 + $0x700] sm:$0xff]  }
 0xad4   :  { %9978 = vmatpush3.bf16.msra.mxu0 %v11673_v21  ;;  %v11706_v21 = vld [vmem:[%s15101_s3 + $0x748] sm:$0xff]  }
 0xad5   :  { %9979 = vmatprep.subr.bf16.mxu0 %v11674_v22  ;;  %v11707_v22 = vld [vmem:[%s15101_s3 + $0x708] sm:$0xff]  }
 0xad8   :  { %9980 = vmatpush3.bf16.msra.mxu0 %v11675_v23  ;;  %v11708_v23 = vld [vmem:[%s15101_s3 + $0x750] sm:$0xff]  }
 0xad9   :  { %9981 = vmatprep.subr.bf16.mxu0 %v11676_v24  ;;  %v11709_v24 = vld [vmem:[%s15101_s3 + $0x710] sm:$0xff]  }
 0xadc   :  { %9982 = vmatpush3.bf16.msra.mxu0 %v11677_v25  ;;  %v11710_v25 = vld [vmem:[%s15101_s3 + $0x758] sm:$0xff]  }
 0xadd   :  { %9983 = vmatprep.subr.bf16.mxu0 %v11678_v26  ;;  %v11711_v26 = vld [vmem:[%s15101_s3 + $0x718] sm:$0xff]  }
 0xae0   :  { %9984 = vmatpush3.bf16.msra.mxu0 %v11679_v27  ;;  %v11712_v27 = vld [vmem:[%s15101_s3 + $0x760] sm:$0xff]  }
 0xae1   :  { %9985 = vmatprep.subr.bf16.mxu0 %v11680_v28  ;;  %v11713_v28 = vld [vmem:[%s15101_s3 + $0x720] sm:$0xff]  }
 0xae4   :  { %9986 = vmatpush3.bf16.msra.mxu0 %v11681_v29  ;;  %v11714_v29 = vld [vmem:[%s15101_s3 + $0x768] sm:$0xff]  }
 0xae5   :  { %9987 = vmatprep.subr.bf16.mxu0 %v11682_v30  ;;  %v11715_v30 = vld [vmem:[%s15101_s3 + $0x728] sm:$0xff]  }
 0xae8   :  { %9988 = vmatpush3.bf16.msra.mxu0 %v11683_v31  ;;  %v11716_v31 = vld [vmem:[%s15101_s3 + $0x770] sm:$0xff]  }
 0xae9   :  { %9989 = vmatprep.subr.bf16.mxu0 %v11684_v32  ;;  %v11717_v32 = vld [vmem:[%s15101_s3 + $0x730] sm:$0xff]  }
 0xaec   :  { %9990 = vmatpush3.bf16.msra.mxu0 %v11685_v33  ;;  %v11718_v33 = vld [vmem:[%s15101_s3 + $0x778] sm:$0xff]  }
 0xaed   :  { %10757 = vmatprep.subr.bf16.mxu0 %v12193_v8 }
 0xaef   :  { %3018 = vmatmul.mubr.bf16.vlgmr.msra.gmra.mrb[48].mxu0 %v12404_v57 }
 0xaf0   :  { %10759 = vmatprep.mubr.msk.bf16.mxu0 %vm12194_vm1, %v12193_v8 }
 0xba2   :  { %v2847_v34 = vpop.f32.mrb[44].mxu0 }
 0xba3   :  { %v2854_v35 = vadd.f32 %v2847_v34, %v2627_v3  ;;  %v10749_v36 = vpop.f32.mrb[45].mxu0  ;;  %v11719_v34 = vld [vmem:[%s15101_s3 + $0x738] sm:$0xff]  }
 0xba4   :  { %v2850_v37 = vpop.f32.mrb[46].mxu0 }
 0xba5   :  { %v2855_v38 = vadd.f32 %v2850_v37, %v2628_v7  ;;  %v10750_v39 = vpop.f32.mrb[47].mxu0 }
 0xbc2   :  { %v9991_v40 = vpop.f32.mrb[48].mxu0 }
 0xbc3   :  { %v9992_v41 = vpop.f32.mrb[49].mxu0 }
 0xbc4   :  { %v9993_v42 = vadd.f32 %v9992_v41, %v9991_v40  ;;  %v9994_v43 = vpop.f32.mrb[50].mxu0 }
 0xbc5   :  { %v9995_v44 = vpop.f32.mrb[51].mxu0 }
 0xbc6   :  { %v3028_v46 = vpack.c.bf16 %v9993_v42, %v9993_v42 }
 0xbc8   :  { %v3038_v48 = vsel %vm489_vm2, %v3028_v46, 0 }
 0xbc9   :  { %10752 = vmatpush3.bf16.msra.mxu1 %v3038_v48  ;;  %v11721_v48 = vld [vmem:[%s15101_s3 + $0x7c0] sm:$0xff]  }
 0xbca   :  { %9999 = vmatprep.subr.bf16.mxu1 %v11687_v47 }
 0xbcc   :  { %10754 = vmatmul.mubr.msk.bf16.vlgmr.msra.gmra.mrb[52].mxu1 %vm485_vm3, %v11686_v49 }
 0xbcd   :  { %10000 = vmatpush3.bf16.msra.mxu1 %v11688_v50  ;;  %3244 = vmatprep.mubr.bf16.mxu1 %v12402_v56  ;;  %v11720_v50 = vld [vmem:[%s15102_s4 + $0x70] sm:$0xff]  }
 0xbce   :  { %10001 = vmatprep.subr.bf16.mxu1 %v11689_v51  ;;  %v11722_v51 = vld [vmem:[%s15101_s3 + $0x780] sm:$0xff]  }
 0xbd1   :  { %10002 = vmatpush3.bf16.msra.mxu1 %v11690_v52  ;;  %v11723_v52 = vld [vmem:[%s15101_s3 + $0x7c8] sm:$0xff]  }
 0xbd2   :  { %10003 = vmatprep.subr.bf16.mxu1 %v11691_v53  ;;  %v11724_v53 = vld [vmem:[%s15101_s3 + $0x788] sm:$0xff]  }
 0xbd5   :  { %10004 = vmatpush3.bf16.msra.mxu1 %v11692_v54  ;;  %v11725_v54 = vld [vmem:[%s15101_s3 + $0x7d0] sm:$0xff]  }
 0xbd6   :  { %10005 = vmatprep.subr.bf16.mxu1 %v11693_v55  ;;  %v11726_v55 = vld [vmem:[%s15101_s3 + $0x790] sm:$0xff]  }
 0xbd9   :  { %10006 = vmatpush3.bf16.msra.mxu1 %v11694_v58  ;;  %v11727_v58 = vld [vmem:[%s15101_s3 + $0x7d8] sm:$0xff]  }
 0xbda   :  { %10007 = vmatprep.subr.bf16.mxu1 %v11695_v59  ;;  %v11729_v59 = vld [vmem:[%s15101_s3 + $0x7e0] sm:$0xff]  }
 0xbdd   :  { %10008 = vmatpush3.bf16.msra.mxu1 %v11696_v60  ;;  %v11730_v60 = vld [vmem:[%s15101_s3 + $0x7a0] sm:$0xff]  }
 0xbde   :  { %10009 = vmatprep.subr.bf16.mxu1 %v11697_v61  ;;  %v11731_v61 = vld [vmem:[%s15101_s3 + $0x7e8] sm:$0xff]  }
 0xbe1   :  { %10010 = vmatpush3.bf16.msra.mxu1 %v11698_v62  ;;  %v11732_v62 = vld [vmem:[%s15101_s3 + $0x7a8] sm:$0xff]  }
 0xbe2   :  { %10011 = vmatprep.subr.bf16.mxu1 %v11699_v63  ;;  %v11733_v63 = vld [vmem:[%s15101_s3 + $0x7f0] sm:$0xff]  }
 0xbe5   :  { %10012 = vmatpush3.bf16.msra.mxu1 %v11700_v0  ;;  %v11734_v0 = vld [vmem:[%s15101_s3 + $0x7b0] sm:$0xff]  }
 0xbe6   :  { %10013 = vmatprep.subr.bf16.mxu1 %v11701_v1  ;;  %v11735_v1 = vld [vmem:[%s15101_s3 + $0x7f8] sm:$0xff]  }
 0xbe9   :  { %10014 = vmatpush3.bf16.msra.mxu1 %v11702_v2  ;;  %v11736_v2 = vld [vmem:[%s15101_s3 + $0x7b8] sm:$0xff]  }
 0xbea   :  { %10763 = vmatprep.subr.bf16.mxu1 %v12193_v8 }
 0xbec   :  { %3245 = vmatmul.mubr.bf16.vlgmr.msra.gmra.mrb[56].mxu1 %v12404_v57 }
 0xbed   :  { %10765 = vmatprep.mubr.msk.bf16.mxu1 %vm12194_vm1, %v12193_v8 }
 0xc9f   :  { %v3074_v3 = vpop.f32.mrb[52].mxu1 }
 0xca0   :  { %v3081_v5 = vadd.f32 %v3074_v3, %v2854_v35  ;;  %v10755_v6 = vpop.f32.mrb[53].mxu1  ;;  %v3765_v3 = vld [vmem:[%s15103_s5 + $0x8] sm:$0xff] }
 0xca1   :  { %v3077_v7 = vpop.f32.mrb[54].mxu1  ;;  %3773 = vperm.xlu1 %11456, %v3765_v3   ;;  %v5718_v6 = vld [vmem:[#allocation2] sm:$0x1] }
 0xca2   :  { %v3082_v9 = vadd.f32 %v3077_v7, %v2855_v38  ;;  %v10756_v10 = vpop.f32.mrb[55].mxu1 }
 0xca5   :  { %5721 = vperm.xlu1 %11456, %v5718_v6  }
 0xcbf   :  { %v10015_v11 = vpop.f32.mrb[56].mxu1 }
 0xcc0   :  { %v10016_v12 = vpop.f32.mrb[57].mxu1 }
 0xcc1   :  { %v10017_v13 = vadd.f32 %v10016_v12, %v10015_v11  ;;  %v10018_v14 = vpop.f32.mrb[58].mxu1 }
 0xcc2   :  { %v10019_v15 = vpop.f32.mrb[59].mxu1 }
 0xcc3   :  { %v3255_v16 = vpack.c.bf16 %v10017_v13, %v10017_v13 }
 0xcc5   :  { %v3265_v18 = vsel %vm489_vm2, %v3255_v16, 0 }
 0xcc6   :  { %10758 = vmatpush3.bf16.msra.mxu0 %v3265_v18 }
 0xcc7   :  { %10023 = vmatprep.subr.bf16.mxu0 %v11704_v17 }
 0xcc9   :  { %10760 = vmatmul.mubr.msk.bf16.vlgmr.msra.gmra.mrb[52].mxu0 %vm485_vm3, %v11703_v19 }
 0xcca   :  { %10024 = vmatpush3.bf16.msra.mxu0 %v11705_v20  ;;  %3471 = vmatprep.mubr.bf16.mxu0 %v12402_v56  ;;  %v11737_v20 = vld [vmem:[%s15102_s4 + $0x78] sm:$0xff]  }
 0xccb   :  { %10025 = vmatprep.subr.bf16.mxu0 %v11706_v21  ;;  %v11738_v21 = vld [vmem:[%s15104_s6] sm:$0xff]  }
 0xcce   :  { %10026 = vmatpush3.bf16.msra.mxu0 %v11707_v22  ;;  %v11740_v22 = vld [vmem:[%s15104_s6 + $0x8] sm:$0xff]  }
 0xccf   :  { %10027 = vmatprep.subr.bf16.mxu0 %v11708_v23  ;;  %v11741_v23 = vld [vmem:[%s15104_s6 + $0x28] sm:$0xff]  }
 0xcd2   :  { %10028 = vmatpush3.bf16.msra.mxu0 %v11709_v24  ;;  %v11742_v24 = vld [vmem:[%s15104_s6 + $0x10] sm:$0xff]  }
 0xcd3   :  { %10029 = vmatprep.subr.bf16.mxu0 %v11710_v25  ;;  %v11743_v25 = vld [vmem:[%s15104_s6 + $0x30] sm:$0xff]  }
 0xcd6   :  { %10030 = vmatpush3.bf16.msra.mxu0 %v11711_v26  ;;  %v11744_v26 = vld [vmem:[%s15104_s6 + $0x18] sm:$0xff]  }
 0xcd7   :  { %10031 = vmatprep.subr.bf16.mxu0 %v11712_v27  ;;  %v11745_v27 = vld [vmem:[%s15104_s6 + $0x38] sm:$0xff]  }
 0xcda   :  { %10032 = vmatpush3.bf16.msra.mxu0 %v11713_v28 }
 0xcdb   :  { %10033 = vmatprep.subr.bf16.mxu0 %v11714_v29 }
 0xcde   :  { %10034 = vmatpush3.bf16.msra.mxu0 %v11715_v30 }
 0xcdf   :  { %10035 = vmatprep.subr.bf16.mxu0 %v11716_v31  ;;  %v13270_v31 = vpop.permute.xlu0 %3768 }
 0xce2   :  { %10036 = vmatpush3.bf16.msra.mxu0 %v11717_v32 }
 0xce3   :  { %10037 = vmatprep.subr.bf16.mxu0 %v11718_v33 }
 0xce6   :  { %10038 = vmatpush3.bf16.msra.mxu0 %v11719_v34 }
 0xce7   :  { %10769 = vmatprep.subr.bf16.mxu0 %v12193_v8 }
 0xce9   :  { %3472 = vmatmul.mubr.bf16.vlgmr.msra.gmra.mrb[56].mxu0 %v12404_v57 }
 0xcea   :  { %10771 = vmatprep.mubr.msk.bf16.mxu0 %vm12194_vm1, %v12193_v8 }
 0xd9c   :  { %v3301_v35 = vpop.f32.mrb[52].mxu0 }
 0xd9d   :  { %v3308_v36 = vadd.f32 %v3301_v35, %v3081_v5  ;;  %v10761_v37 = vpop.f32.mrb[53].mxu0  ;;  %v11739_v5 = vld [vmem:[%s15104_s6 + $0x20] sm:$0xff]  }
 0xd9e   :  { %v3304_v38 = vpop.f32.mrb[54].mxu0 }
 0xd9f   :  { %v3309_v39 = vadd.f32 %v3304_v38, %v3082_v9  ;;  %v10762_v40 = vpop.f32.mrb[55].mxu0 }
 0xdbc   :  { %v10039_v41 = vpop.f32.mrb[56].mxu0 }
 0xdbd   :  { %v10040_v42 = vpop.f32.mrb[57].mxu0 }
 0xdbe   :  { %v10041_v43 = vadd.f32 %v10040_v42, %v10039_v41  ;;  %v10042_v44 = vpop.f32.mrb[58].mxu0 }
 0xdbf   :  { %v10043_v46 = vpop.f32.mrb[59].mxu0 }
 0xdc0   :  { %v3482_v47 = vpack.c.bf16 %v10041_v43, %v10041_v43 }
 0xdc2   :  { %v3492_v49 = vsel %vm489_vm2, %v3482_v47, 0 }
 0xdc3   :  { %10764 = vmatpush3.bf16.msra.mxu1 %v3492_v49 }
 0xdc4   :  { %10047 = vmatprep.subr.bf16.mxu1 %v11721_v48 }
 0xdc6   :  { %10766 = vmatmul.mubr.msk.bf16.vlgmr.msra.gmra.mrb[60].mxu1 %vm485_vm3, %v11720_v50 }
 0xdc7   :  { %10048 = vmatpush3.bf16.msra.mxu1 %v11722_v51  ;;  %3698 = vmatprep.mubr.bf16.mxu1 %v12402_v56  ;;  %v11728_v56 = vld [vmem:[%s15101_s3 + $0x798] sm:$0xff]  }
 0xdc8   :  { %10049 = vmatprep.subr.bf16.mxu1 %v11723_v52  ;;  %v9412_v52 = vld [vmem:[%s15105_s7 + $0x1] sm:$0x1] }
 0xdcb   :  { %10050 = vmatpush3.bf16.msra.mxu1 %v11724_v53  ;;  %v3858_v53 = vld [vmem:[%s15105_s7] sm:$0x1] }
 0xdcc   :  { %10051 = vmatprep.subr.bf16.mxu1 %v11725_v54  ;;  %v11746_v54 = vld [vmem:[%s15104_s6 + $0x40] sm:$0xff]  }
 0xdcf   :  { %10052 = vmatpush3.bf16.msra.mxu1 %v11726_v55  ;;  %v11747_v55 = vld [vmem:[%s15104_s6 + $0x48] sm:$0xff]  }
 0xdd0   :  { %10053 = vmatprep.subr.bf16.mxu1 %v11727_v58  ;;  %v11748_v58 = vld [vmem:[%s15104_s6 + $0x50] sm:$0xff]  }
 0xdd3   :  { %10054 = vmatpush3.bf16.msra.mxu1 %v11728_v56  ;;  %v11749_v56 = vld [vmem:[%s15104_s6 + $0x58] sm:$0xff]  }
 0xdd4   :  { %10055 = vmatprep.subr.bf16.mxu1 %v11729_v59 }
 0xdd7   :  { %10056 = vmatpush3.bf16.msra.mxu1 %v11730_v60 }
 0xdd8   :  { %10057 = vmatprep.subr.bf16.mxu1 %v11731_v61 }
 0xddb   :  { %10058 = vmatpush3.bf16.msra.mxu1 %v11732_v62 }
 0xddc   :  { %10059 = vmatprep.subr.bf16.mxu1 %v11733_v63 }
 0xddf   :  { %10060 = vmatpush3.bf16.msra.mxu1 %v11734_v0 }
 0xde0   :  { %10061 = vmatprep.subr.bf16.mxu1 %v11735_v1 }
 0xde3   :  { %10062 = vmatpush3.bf16.msra.mxu1 %v11736_v2 }
 0xde4   :  { %10787 = vmatprep.subr.bf16.mxu1 %v12193_v8 }
 0xde6   :  { %3699 = vmatmul.mubr.bf16.vlgmr.msra.gmra.mrb[64].mxu1 %v12404_v57 }
 0xde7   :  { %10795 = vmatprep.mubr.msk.bf16.mxu1 %vm12194_vm1, %v12193_v8  ;;  %10788 = vmatpush3.bf16.msra.mxu1 %v11739_v5 }
 0xde8   :  { %10789 = vmatprep.subr.bf16.mxu1 %v12193_v8 }
 0xdeb   :  { %10790 = vmatpush3.bf16.msra.mxu1 %v11741_v23 }
 0xdec   :  { %10791 = vmatprep.subr.bf16.mxu1 %v12193_v8 }
 0xdef   :  { %10792 = vmatpush3.bf16.msra.mxu1 %v11743_v25  ;;  %v9443_v25 = vld [vmem:[%s15105_s7 + $0x3] sm:$0x1] }
 0xdf0   :  { %10793 = vmatprep.subr.bf16.mxu1 %v12193_v8 }
 0xdf3   :  { %10794 = vmatpush3.bf16.msra.mxu1 %v11745_v27  ;;  %v11755_v27 = vld [vmem:[%s15104_s6 + $0x88] sm:$0xff]  }
 0xdf4   :  { %10805 = vmatprep.subr.bf16.mxu1 %v12193_v8 }
 0xe99   :  { %v3528_v7 = vpop.f32.mrb[60].mxu1 }
 0xe9a   :  { %v3535_v9 = vadd.f32 %v3528_v7, %v3308_v36  ;;  %v10767_v57 = vpop.f32.mrb[61].mxu1  ;;  %v13273_v36 = vpop.permute.xlu1 %3773 }
 0xe9b   :  { %v3531_v10 = vpop.f32.mrb[62].mxu1 }
 0xe9c   :  { %v3536_v11 = vadd.f32 %v3531_v10, %v3309_v39  ;;  %v10768_v12 = vpop.f32.mrb[63].mxu1  ;;  %v9428_v10 = vld [vmem:[%s15105_s7 + $0x2] sm:$0x1] }
 0xe9d   :  { %v11751_v12 = vld [vmem:[%s15104_s6 + $0x68] sm:$0xff]  }
 0xeb9   :  { %v10063_v13 = vpop.f32.mrb[64].mxu1 }
 0xeba   :  { %v10064_v14 = vpop.f32.mrb[65].mxu1 }
 0xebb   :  { %v10065_v15 = vadd.f32 %v10064_v14, %v10063_v13  ;;  %v10066_v16 = vpop.f32.mrb[66].mxu1  ;;  %v11752_v13 = vld [vmem:[%s15104_s6 + $0x70] sm:$0xff]   ;;  %v11753_v14 = vld [vmem:[%s15104_s6 + $0x78] sm:$0xff]  }
 0xebc   :  { %v10067_v17 = vpop.f32.mrb[67].mxu1 }
 0xebd   :  { %v3709_v18 = vpack.c.bf16 %v10065_v15, %v10065_v15 }
 0xebf   :  { %v3719_v19 = vsel %vm489_vm2, %v3709_v18, 0 }
 0xec0   :  { %10770 = vmatpush3.bf16.msra.mxu0 %v3719_v19 }
 0xec1   :  { %10775 = vmatprep.subr.bf16.mxu0 %v12193_v8 }
 0xec3   :  { %10772 = vmatmul.mubr.msk.bf16.vlgmr.msra.gmra.mrb[60].mxu0 %vm485_vm3, %v11737_v20 }
 0xec4   :  { %10776 = vmatpush3.bf16.msra.mxu0 %v11738_v21  ;;  %10783 = vmatprep.mubr.msk.bf16.mxu0 %vm12194_vm1, %v12193_v8 }
 0xec5   :  { %10777 = vmatprep.subr.bf16.mxu0 %v12193_v8 }
 0xec8   :  { %10778 = vmatpush3.bf16.msra.mxu0 %v11740_v22 }
 0xec9   :  { %10779 = vmatprep.subr.bf16.mxu0 %v12193_v8 }
 0xecc   :  { %10780 = vmatpush3.bf16.msra.mxu0 %v11742_v24 }
 0xecd   :  { %10781 = vmatprep.subr.bf16.mxu0 %v12193_v8 }
 0xed0   :  { %10782 = vmatpush3.bf16.msra.mxu0 %v11744_v26  ;;  %v11754_v26 = vld [vmem:[%s15104_s6 + $0x80] sm:$0xff]  }
 0xed1   :  { %10799 = vmatprep.subr.bf16.mxu0 %v12193_v8 }
 0xf96   :  { %v3755_v28 = vpop.f32.mrb[60].mxu0 }
 0xf97   :  { %v3762_v29 = vadd.f32 %v3755_v28, %v3535_v9  ;;  %v10773_v30 = vpop.f32.mrb[61].mxu0  ;;  %v11756_v28 = vld [vmem:[%s15104_s6 + $0x90] sm:$0xff]  }
 0xf98   :  { %v3758_v32 = vpop.f32.mrb[62].mxu0 }
 0xf99   :  { %v3776_v33 = vadd.f32 %v13270_v31, %v3762_v29  ;;  %v3763_v34 = vadd.f32 %v3758_v32, %v3536_v11  ;;  %v10774_v35 = vpop.f32.mrb[63].mxu0  ;;  %v11750_v11 = vld [vmem:[%s15104_s6 + $0x60] sm:$0xff]   ;;  %v11757_v29 = vld [vmem:[%s15104_s6 + $0x98] sm:$0xff]  }
 0xf9b   :  { %v3777_v37 = vadd.f32 %v13273_v36, %v3763_v34  ;;  %v3778_v38 = vmax.f32 %v3776_v33, 0.0 }
 0xf9d   :  { %v3779_v39 = vmax.f32 %v3777_v37, 0.0 }
 0xf9f   :  { %v13276_v40 = vpack.c.bf16 %v3779_v39, %v3778_v38 }
 0xfa1   :  { %10784 = vmatmul.mubr.msk.bf16.vlgmr.msra.gmra.mrb[64].mxu0 %vm3813_vm4, %v13276_v40  ;;  %10796 = vmatmul.mubr.msk.bf16.vlgmr.msra.gmra.mrb[68].mxu1 %vm3813_vm4, %v13276_v40 }
 0xfa2   :  { %10801 = vmatprep.mubr.msk.bf16.mxu0 %vm12194_vm1, %v12193_v8  ;;  %10807 = vmatprep.mubr.msk.bf16.mxu1 %vm12194_vm1, %v12193_v8 }
0x1074   :  { %v3851_v41 = vpop.f32.mrb[64].mxu0  ;;  %v3927_v42 = vpop.f32.mrb[68].mxu1 }
0x1075   :  { %v10785_v43 = vpop.f32.mrb[65].mxu0  ;;  %v10797_v44 = vpop.f32.mrb[69].mxu1 }
0x1076   :  { %v3854_v46 = vpop.f32.mrb[66].mxu0  ;;  %v3930_v47 = vpop.f32.mrb[70].mxu1  ;;  %v9458_v43 = vld [vmem:[%s15105_s7 + $0x4] sm:$0x1] }
0x1077   :  { %v3859_v48 = vpack.c.bf16 %v3854_v46, %v3851_v41  ;;  %v3936_v49 = vpack.c.bf16 %v3930_v47, %v3927_v42  ;;  %v10786_v50 = vpop.f32.mrb[67].mxu0  ;;  %v10798_v51 = vpop.f32.mrb[71].mxu1  ;;  %v11758_v44 = vld [vmem:[%s15104_s6 + $0xa0] sm:$0xff]   ;;  %v11759_v46 = vld [vmem:[%s15104_s6 + $0xa8] sm:$0xff]   ;;  %v11760_v47 = vld [vmem:[%s15104_s6 + $0xb0] sm:$0xff]  }
0x1079   :  { %10800 = vmatpush3.bf16.msra.mxu0 %v3936_v49  ;;  %10806 = vmatpush3.bf16.msra.mxu1 %v3859_v48  ;;  %v11761_v48 = vld [vmem:[%s15104_s6 + $0xb8] sm:$0xff]  }
0x107a   :  { %10811 = vmatprep.subr.bf16.mxu0 %v12193_v8  ;;  %10823 = vmatprep.subr.bf16.mxu1 %v12193_v8 }
0x107c   :  { %10802 = vmatmul.mubr.msk.bf16.vlgmr.msra.gmra.mrb[68].mxu0 %vm3937_vm5, %v9412_v52  ;;  %10808 = vmatmul.mubr.msk.bf16.vlgmr.msra.gmra.mrb[72].mxu1 %vm3937_vm5, %v3858_v53 }
0x107d   :  { %10812 = vmatpush3.bf16.msra.mxu0 %v11746_v54  ;;  %10819 = vmatprep.mubr.msk.bf16.mxu0 %vm12194_vm1, %v12193_v8 }
0x107e   :  { %10813 = vmatprep.subr.bf16.mxu0 %v12193_v8  ;;  %10825 = vmatprep.mubr.msk.bf16.mxu1 %vm12194_vm1, %v12193_v8 }
0x1081   :  { %10814 = vmatpush3.bf16.msra.mxu0 %v11747_v55 }
0x1082   :  { %10815 = vmatprep.subr.bf16.mxu0 %v12193_v8 }
0x1085   :  { %10816 = vmatpush3.bf16.msra.mxu0 %v11748_v58 }
0x1086   :  { %10817 = vmatprep.subr.bf16.mxu0 %v12193_v8 }
0x1089   :  { %10818 = vmatpush3.bf16.msra.mxu0 %v11749_v56 }
0x108a   :  { %10841 = vmatprep.subr.bf16.mxu0 %v12193_v8 }
0x108c   :  { %10820 = vmatmul.mubr.msk.bf16.vlgmr.msra.gmra.mrb[72].mxu0 %vm3813_vm4, %v13276_v40 }
0x108d   :  { %10843 = vmatprep.mubr.msk.bf16.mxu0 %vm12194_vm1, %v12193_v8 }
0x114f   :  { %v3975_v59 = vpop.f32.mrb[68].mxu0  ;;  %v4018_v60 = vpop.f32.mrb[72].mxu1 }
0x1150   :  { %v10803_v61 = vpop.f32.mrb[69].mxu0  ;;  %v4019_v62 = vadd.f32 %v4018_v60, %v3975_v59  ;;  %v10809_v63 = vpop.f32.mrb[73].mxu1  ;;  %v9473_v60 = vld [vmem:[%s15105_s7 + $0x5] sm:$0x1] }
0x1151   :  { %v3978_v0 = vpop.f32.mrb[70].mxu0  ;;  %v4021_v1 = vpop.f32.mrb[74].mxu1  ;;  %v11762_v61 = vld [vmem:[%s15104_s6 + $0xc0] sm:$0xff]   ;;  %v11764_v63 = vld [vmem:[%s15104_s6 + $0xd0] sm:$0xff]  }
0x1152   :  { %v10804_v2 = vpop.f32.mrb[71].mxu0  ;;  %v10810_v3 = vpop.f32.mrb[75].mxu1  ;;  %v11765_v0 = vld [vmem:[%s15104_s6 + $0xd8] sm:$0xff]  }
0x115f   :  { %v4091_v5 = vpop.f32.mrb[72].mxu0 }
0x1160   :  { %v10821_v6 = vpop.f32.mrb[73].mxu0 }
0x1161   :  { %v4094_v7 = vpop.f32.mrb[74].mxu0 }
0x1162   :  { %v4100_v9 = vpack.c.bf16 %v4094_v7, %v4091_v5  ;;  %v10822_v57 = vpop.f32.mrb[75].mxu0 }
0x1164   :  { %10824 = vmatpush3.bf16.msra.mxu1 %v4100_v9 }
0x1165   :  { %10829 = vmatprep.subr.bf16.mxu1 %v12193_v8 }
0x1167   :  { %10826 = vmatmul.mubr.msk.bf16.vlgmr.msra.gmra.mrb[76].mxu1 %vm3937_vm5, %v9428_v10 }
0x1168   :  { %10830 = vmatpush3.bf16.msra.mxu1 %v11750_v11  ;;  %10837 = vmatprep.mubr.msk.bf16.mxu1 %vm12194_vm1, %v12193_v8 }
0x1169   :  { %10831 = vmatprep.subr.bf16.mxu1 %v12193_v8 }
0x116c   :  { %10832 = vmatpush3.bf16.msra.mxu1 %v11751_v12  ;;  %v9488_v12 = vld [vmem:[%s15105_s7 + $0x6] sm:$0x1] }
0x116d   :  { %10833 = vmatprep.subr.bf16.mxu1 %v12193_v8 }
0x1170   :  { %10834 = vmatpush3.bf16.msra.mxu1 %v11752_v13  ;;  %v11766_v13 = vld [vmem:[%s15104_s6 + $0xe0] sm:$0xff]  }
0x1171   :  { %10835 = vmatprep.subr.bf16.mxu1 %v12193_v8 }
0x1174   :  { %10836 = vmatpush3.bf16.msra.mxu1 %v11753_v14  ;;  %v11767_v14 = vld [vmem:[%s15104_s6 + $0xe8] sm:$0xff]  }
0x1175   :  { %10859 = vmatprep.subr.bf16.mxu1 %v12193_v8 }
0x1177   :  { %10838 = vmatmul.mubr.msk.bf16.vlgmr.msra.gmra.mrb[80].mxu1 %vm3813_vm4, %v13276_v40 }
0x1178   :  { %10861 = vmatprep.mubr.msk.bf16.mxu1 %vm12194_vm1, %v12193_v8 }
0x123a   :  { %v4138_v15 = vpop.f32.mrb[76].mxu1 }
0x123b   :  { %v4144_v16 = vadd.f32 %v4138_v15, %v4019_v62  ;;  %v10827_v17 = vpop.f32.mrb[77].mxu1  ;;  %v11763_v62 = vld [vmem:[%s15104_s6 + $0xc8] sm:$0xff]   ;;  %v11768_v15 = vld [vmem:[%s15104_s6 + $0xf0] sm:$0xff]  }
0x123c   :  { %v4141_v18 = vpop.f32.mrb[78].mxu1 }
0x123d   :  { %v10828_v19 = vpop.f32.mrb[79].mxu1 }
0x124a   :  { %v4212_v20 = vpop.f32.mrb[80].mxu1 }
0x124b   :  { %v10839_v21 = vpop.f32.mrb[81].mxu1 }
0x124c   :  { %v4215_v22 = vpop.f32.mrb[82].mxu1 }
0x124d   :  { %v4221_v23 = vpack.c.bf16 %v4215_v22, %v4212_v20  ;;  %v10840_v24 = vpop.f32.mrb[83].mxu1 }
0x124f   :  { %10842 = vmatpush3.bf16.msra.mxu0 %v4221_v23 }
0x1250   :  { %10847 = vmatprep.subr.bf16.mxu0 %v12193_v8 }
0x1252   :  { %10844 = vmatmul.mubr.msk.bf16.vlgmr.msra.gmra.mrb[76].mxu0 %vm3937_vm5, %v9443_v25 }
0x1253   :  { %10848 = vmatpush3.bf16.msra.mxu0 %v11754_v26  ;;  %10855 = vmatprep.mubr.msk.bf16.mxu0 %vm12194_vm1, %v12193_v8 }
0x1254   :  { %10849 = vmatprep.subr.bf16.mxu0 %v12193_v8 }
0x1257   :  { %10850 = vmatpush3.bf16.msra.mxu0 %v11755_v27  ;;  %v9503_v27 = vld [vmem:[%s15105_s7 + $0x7] sm:$0x1] }
0x1258   :  { %10851 = vmatprep.subr.bf16.mxu0 %v12193_v8 }
0x125b   :  { %10852 = vmatpush3.bf16.msra.mxu0 %v11756_v28  ;;  %v11770_v28 = vld [vmem:[%s15104_s6 + $0x100] sm:$0xff]  }
0x125c   :  { %10853 = vmatprep.subr.bf16.mxu0 %v12193_v8 }
0x125f   :  { %10854 = vmatpush3.bf16.msra.mxu0 %v11757_v29  ;;  %v11771_v29 = vld [vmem:[%s15104_s6 + $0x108] sm:$0xff]  }
0x1260   :  { %10877 = vmatprep.subr.bf16.mxu0 %v12193_v8 }
0x1262   :  { %10856 = vmatmul.mubr.msk.bf16.vlgmr.msra.gmra.mrb[80].mxu0 %vm3813_vm4, %v13276_v40 }
0x1263   :  { %10879 = vmatprep.mubr.msk.bf16.mxu0 %vm12194_vm1, %v12193_v8 }
0x1325   :  { %v4259_v30 = vpop.f32.mrb[76].mxu0 }
0x1326   :  { %v4265_v32 = vadd.f32 %v4259_v30, %v4144_v16  ;;  %v10845_v33 = vpop.f32.mrb[77].mxu0  ;;  %v11769_v16 = vld [vmem:[%s15104_s6 + $0xf8] sm:$0xff]   ;;  %v11772_v30 = vld [vmem:[%s15104_s6 + $0x110] sm:$0xff]  }
0x1327   :  { %v4262_v34 = vpop.f32.mrb[78].mxu0 }
0x1328   :  { %v10846_v35 = vpop.f32.mrb[79].mxu0 }
0x1335   :  { %v4333_v37 = vpop.f32.mrb[80].mxu0 }
0x1336   :  { %v10857_v38 = vpop.f32.mrb[81].mxu0 }
0x1337   :  { %v4336_v39 = vpop.f32.mrb[82].mxu0 }
0x1338   :  { %v4342_v41 = vpack.c.bf16 %v4336_v39, %v4333_v37  ;;  %v10858_v42 = vpop.f32.mrb[83].mxu0 }
0x133a   :  { %10860 = vmatpush3.bf16.msra.mxu1 %v4342_v41 }
0x133b   :  { %10865 = vmatprep.subr.bf16.mxu1 %v12193_v8 }
0x133d   :  { %10862 = vmatmul.mubr.msk.bf16.vlgmr.msra.gmra.mrb[84].mxu1 %vm3937_vm5, %v9458_v43 }
0x133e   :  { %10866 = vmatpush3.bf16.msra.mxu1 %v11758_v44  ;;  %10873 = vmatprep.mubr.msk.bf16.mxu1 %vm12194_vm1, %v12193_v8 }
0x133f   :  { %10867 = vmatprep.subr.bf16.mxu1 %v12193_v8 }
0x1342   :  { %10868 = vmatpush3.bf16.msra.mxu1 %v11759_v46  ;;  %v9518_v46 = vld [vmem:[%s15105_s7 + $0x8] sm:$0x1] }
0x1343   :  { %10869 = vmatprep.subr.bf16.mxu1 %v12193_v8 }
0x1346   :  { %10870 = vmatpush3.bf16.msra.mxu1 %v11760_v47  ;;  %v11774_v47 = vld [vmem:[%s15104_s6 + $0x120] sm:$0xff]  }
0x1347   :  { %10871 = vmatprep.subr.bf16.mxu1 %v12193_v8 }
0x134a   :  { %10872 = vmatpush3.bf16.msra.mxu1 %v11761_v48  ;;  %v11775_v48 = vld [vmem:[%s15104_s6 + $0x128] sm:$0xff]  }
0x134b   :  { %10895 = vmatprep.subr.bf16.mxu1 %v12193_v8 }
0x134d   :  { %10874 = vmatmul.mubr.msk.bf16.vlgmr.msra.gmra.mrb[88].mxu1 %vm3813_vm4, %v13276_v40 }
0x134e   :  { %10897 = vmatprep.mubr.msk.bf16.mxu1 %vm12194_vm1, %v12193_v8 }
0x1410   :  { %v4380_v49 = vpop.f32.mrb[84].mxu1 }
0x1411   :  { %v4386_v50 = vadd.f32 %v4380_v49, %v4265_v32  ;;  %v10863_v51 = vpop.f32.mrb[85].mxu1  ;;  %v11773_v32 = vld [vmem:[%s15104_s6 + $0x118] sm:$0xff]   ;;  %v11776_v49 = vld [vmem:[%s15104_s6 + $0x130] sm:$0xff]  }
0x1412   :  { %v4383_v52 = vpop.f32.mrb[86].mxu1 }
0x1413   :  { %v10864_v53 = vpop.f32.mrb[87].mxu1 }
0x1420   :  { %v4454_v54 = vpop.f32.mrb[88].mxu1 }
0x1421   :  { %v10875_v55 = vpop.f32.mrb[89].mxu1 }
0x1422   :  { %v4457_v58 = vpop.f32.mrb[90].mxu1 }
0x1423   :  { %v4463_v56 = vpack.c.bf16 %v4457_v58, %v4454_v54  ;;  %v10876_v59 = vpop.f32.mrb[91].mxu1 }
0x1425   :  { %10878 = vmatpush3.bf16.msra.mxu0 %v4463_v56 }
0x1426   :  { %10883 = vmatprep.subr.bf16.mxu0 %v12193_v8 }
0x1428   :  { %10880 = vmatmul.mubr.msk.bf16.vlgmr.msra.gmra.mrb[84].mxu0 %vm3937_vm5, %v9473_v60 }
0x1429   :  { %10884 = vmatpush3.bf16.msra.mxu0 %v11762_v61  ;;  %10891 = vmatprep.mubr.msk.bf16.mxu0 %vm12194_vm1, %v12193_v8 }
0x142a   :  { %10885 = vmatprep.subr.bf16.mxu0 %v12193_v8 }
0x142d   :  { %10886 = vmatpush3.bf16.msra.mxu0 %v11763_v62  ;;  %v9533_v62 = vld [vmem:[%s15105_s7 + $0x9] sm:$0x1] }
0x142e   :  { %10887 = vmatprep.subr.bf16.mxu0 %v12193_v8 }
0x1431   :  { %10888 = vmatpush3.bf16.msra.mxu0 %v11764_v63  ;;  %v11778_v63 = vld [vmem:[%s15104_s6 + $0x140] sm:$0xff]  }
0x1432   :  { %10889 = vmatprep.subr.bf16.mxu0 %v12193_v8 }
0x1435   :  { %10890 = vmatpush3.bf16.msra.mxu0 %v11765_v0  ;;  %v11779_v0 = vld [vmem:[%s15104_s6 + $0x148] sm:$0xff]  }
0x1436   :  { %10913 = vmatprep.subr.bf16.mxu0 %v12193_v8 }
0x1438   :  { %10892 = vmatmul.mubr.msk.bf16.vlgmr.msra.gmra.mrb[88].mxu0 %vm3813_vm4, %v13276_v40 }
0x1439   :  { %10915 = vmatprep.mubr.msk.bf16.mxu0 %vm12194_vm1, %v12193_v8 }
0x14fb   :  { %v4501_v1 = vpop.f32.mrb[84].mxu0 }
0x14fc   :  { %v4507_v2 = vadd.f32 %v4501_v1, %v4386_v50  ;;  %v10881_v3 = vpop.f32.mrb[85].mxu0  ;;  %v11777_v50 = vld [vmem:[%s15104_s6 + $0x138] sm:$0xff]   ;;  %v11780_v1 = vld [vmem:[%s15104_s6 + $0x150] sm:$0xff]  }
0x14fd   :  { %v4504_v5 = vpop.f32.mrb[86].mxu0 }
0x14fe   :  { %v10882_v6 = vpop.f32.mrb[87].mxu0 }
0x150b   :  { %v4575_v7 = vpop.f32.mrb[88].mxu0 }
0x150c   :  { %v10893_v9 = vpop.f32.mrb[89].mxu0 }
0x150d   :  { %v4578_v57 = vpop.f32.mrb[90].mxu0 }
0x150e   :  { %v4584_v10 = vpack.c.bf16 %v4578_v57, %v4575_v7  ;;  %v10894_v11 = vpop.f32.mrb[91].mxu0 }
0x1510   :  { %10896 = vmatpush3.bf16.msra.mxu1 %v4584_v10 }
0x1511   :  { %10901 = vmatprep.subr.bf16.mxu1 %v12193_v8 }
0x1513   :  { %10898 = vmatmul.mubr.msk.bf16.vlgmr.msra.gmra.mrb[92].mxu1 %vm3937_vm5, %v9488_v12 }
0x1514   :  { %10902 = vmatpush3.bf16.msra.mxu1 %v11766_v13  ;;  %10909 = vmatprep.mubr.msk.bf16.mxu1 %vm12194_vm1, %v12193_v8 }
0x1515   :  { %10903 = vmatprep.subr.bf16.mxu1 %v12193_v8 }
0x1518   :  { %10904 = vmatpush3.bf16.msra.mxu1 %v11767_v14  ;;  %v9548_v14 = vld [vmem:[%s15105_s7 + $0xa] sm:$0x1] }
0x1519   :  { %10905 = vmatprep.subr.bf16.mxu1 %v12193_v8 }
0x151c   :  { %10906 = vmatpush3.bf16.msra.mxu1 %v11768_v15  ;;  %v11782_v15 = vld [vmem:[%s15104_s6 + $0x160] sm:$0xff]  }
0x151d   :  { %10907 = vmatprep.subr.bf16.mxu1 %v12193_v8 }
0x1520   :  { %10908 = vmatpush3.bf16.msra.mxu1 %v11769_v16  ;;  %v11783_v16 = vld [vmem:[%s15104_s6 + $0x168] sm:$0xff]  }
0x1521   :  { %10931 = vmatprep.subr.bf16.mxu1 %v12193_v8 }
0x1523   :  { %10910 = vmatmul.mubr.msk.bf16.vlgmr.msra.gmra.mrb[96].mxu1 %vm3813_vm4, %v13276_v40 }
0x1524   :  { %10933 = vmatprep.mubr.msk.bf16.mxu1 %vm12194_vm1, %v12193_v8 }
0x15e6   :  { %v4622_v17 = vpop.f32.mrb[92].mxu1 }
0x15e7   :  { %v4628_v18 = vadd.f32 %v4622_v17, %v4507_v2  ;;  %v10899_v19 = vpop.f32.mrb[93].mxu1  ;;  %v11781_v2 = vld [vmem:[%s15104_s6 + $0x158] sm:$0xff]   ;;  %v11784_v17 = vld [vmem:[%s15104_s6 + $0x170] sm:$0xff]  }
0x15e8   :  { %v4625_v20 = vpop.f32.mrb[94].mxu1 }
0x15e9   :  { %v10900_v21 = vpop.f32.mrb[95].mxu1 }
0x15f6   :  { %v4696_v22 = vpop.f32.mrb[96].mxu1 }
0x15f7   :  { %v10911_v23 = vpop.f32.mrb[97].mxu1 }
0x15f8   :  { %v4699_v24 = vpop.f32.mrb[98].mxu1 }
0x15f9   :  { %v4705_v25 = vpack.c.bf16 %v4699_v24, %v4696_v22  ;;  %v10912_v26 = vpop.f32.mrb[99].mxu1 }
0x15fb   :  { %10914 = vmatpush3.bf16.msra.mxu0 %v4705_v25 }
0x15fc   :  { %10919 = vmatprep.subr.bf16.mxu0 %v12193_v8 }
0x15fe   :  { %10916 = vmatmul.mubr.msk.bf16.vlgmr.msra.gmra.mrb[92].mxu0 %vm3937_vm5, %v9503_v27 }
0x15ff   :  { %10920 = vmatpush3.bf16.msra.mxu0 %v11770_v28  ;;  %10927 = vmatprep.mubr.msk.bf16.mxu0 %vm12194_vm1, %v12193_v8 }
0x1600   :  { %10921 = vmatprep.subr.bf16.mxu0 %v12193_v8 }
0x1603   :  { %10922 = vmatpush3.bf16.msra.mxu0 %v11771_v29  ;;  %v9563_v29 = vld [vmem:[%s15105_s7 + $0xb] sm:$0x1] }
0x1604   :  { %10923 = vmatprep.subr.bf16.mxu0 %v12193_v8 }
0x1607   :  { %10924 = vmatpush3.bf16.msra.mxu0 %v11772_v30  ;;  %v11786_v30 = vld [vmem:[%s15104_s6 + $0x180] sm:$0xff]  }
0x1608   :  { %10925 = vmatprep.subr.bf16.mxu0 %v12193_v8 }
0x160b   :  { %10926 = vmatpush3.bf16.msra.mxu0 %v11773_v32  ;;  %v11787_v32 = vld [vmem:[%s15104_s6 + $0x188] sm:$0xff]  }
0x160c   :  { %10949 = vmatprep.subr.bf16.mxu0 %v12193_v8 }
0x160e   :  { %10928 = vmatmul.mubr.msk.bf16.vlgmr.msra.gmra.mrb[96].mxu0 %vm3813_vm4, %v13276_v40 }
0x160f   :  { %10951 = vmatprep.mubr.msk.bf16.mxu0 %vm12194_vm1, %v12193_v8 }
0x16d1   :  { %v4743_v33 = vpop.f32.mrb[92].mxu0 }
0x16d2   :  { %v4749_v34 = vadd.f32 %v4743_v33, %v4628_v18  ;;  %v10917_v35 = vpop.f32.mrb[93].mxu0  ;;  %v11785_v18 = vld [vmem:[%s15104_s6 + $0x178] sm:$0xff]   ;;  %v11788_v33 = vld [vmem:[%s15104_s6 + $0x190] sm:$0xff]  }
0x16d3   :  { %v4746_v37 = vpop.f32.mrb[94].mxu0 }
0x16d4   :  { %v10918_v38 = vpop.f32.mrb[95].mxu0 }
0x16e1   :  { %v4817_v39 = vpop.f32.mrb[96].mxu0 }
0x16e2   :  { %v10929_v41 = vpop.f32.mrb[97].mxu0 }
0x16e3   :  { %v4820_v42 = vpop.f32.mrb[98].mxu0 }
0x16e4   :  { %v4826_v43 = vpack.c.bf16 %v4820_v42, %v4817_v39  ;;  %v10930_v44 = vpop.f32.mrb[99].mxu0 }
0x16e6   :  { %10932 = vmatpush3.bf16.msra.mxu1 %v4826_v43 }
0x16e7   :  { %10937 = vmatprep.subr.bf16.mxu1 %v12193_v8 }
0x16e9   :  { %10934 = vmatmul.mubr.msk.bf16.vlgmr.msra.gmra.mrb[100].mxu1 %vm3937_vm5, %v9518_v46 }
0x16ea   :  { %10938 = vmatpush3.bf16.msra.mxu1 %v11774_v47  ;;  %10945 = vmatprep.mubr.msk.bf16.mxu1 %vm12194_vm1, %v12193_v8 }
0x16eb   :  { %10939 = vmatprep.subr.bf16.mxu1 %v12193_v8 }
0x16ee   :  { %10940 = vmatpush3.bf16.msra.mxu1 %v11775_v48  ;;  %v9578_v48 = vld [vmem:[%s15105_s7 + $0xc] sm:$0x1] }
0x16ef   :  { %10941 = vmatprep.subr.bf16.mxu1 %v12193_v8 }
0x16f2   :  { %10942 = vmatpush3.bf16.msra.mxu1 %v11776_v49  ;;  %v11790_v49 = vld [vmem:[%s15104_s6 + $0x1a0] sm:$0xff]  }
0x16f3   :  { %10943 = vmatprep.subr.bf16.mxu1 %v12193_v8 }
0x16f6   :  { %10944 = vmatpush3.bf16.msra.mxu1 %v11777_v50  ;;  %v11791_v50 = vld [vmem:[%s15104_s6 + $0x1a8] sm:$0xff]  }
0x16f7   :  { %10967 = vmatprep.subr.bf16.mxu1 %v12193_v8 }
0x16f9   :  { %10946 = vmatmul.mubr.msk.bf16.vlgmr.msra.gmra.mrb[104].mxu1 %vm3813_vm4, %v13276_v40 }
0x16fa   :  { %10969 = vmatprep.mubr.msk.bf16.mxu1 %vm12194_vm1, %v12193_v8 }
0x17bc   :  { %v4864_v51 = vpop.f32.mrb[100].mxu1 }
0x17bd   :  { %v4870_v52 = vadd.f32 %v4864_v51, %v4749_v34  ;;  %v10935_v53 = vpop.f32.mrb[101].mxu1  ;;  %v11789_v34 = vld [vmem:[%s15104_s6 + $0x198] sm:$0xff]   ;;  %v11792_v51 = vld [vmem:[%s15104_s6 + $0x1b0] sm:$0xff]  }
0x17be   :  { %v4867_v54 = vpop.f32.mrb[102].mxu1 }
0x17bf   :  { %v10936_v55 = vpop.f32.mrb[103].mxu1 }
0x17cc   :  { %v4938_v58 = vpop.f32.mrb[104].mxu1 }
0x17cd   :  { %v10947_v56 = vpop.f32.mrb[105].mxu1 }
0x17ce   :  { %v4941_v59 = vpop.f32.mrb[106].mxu1 }
0x17cf   :  { %v4947_v60 = vpack.c.bf16 %v4941_v59, %v4938_v58  ;;  %v10948_v61 = vpop.f32.mrb[107].mxu1 }
0x17d1   :  { %10950 = vmatpush3.bf16.msra.mxu0 %v4947_v60 }
0x17d2   :  { %10955 = vmatprep.subr.bf16.mxu0 %v12193_v8 }
0x17d4   :  { %10952 = vmatmul.mubr.msk.bf16.vlgmr.msra.gmra.mrb[100].mxu0 %vm3937_vm5, %v9533_v62 }
0x17d5   :  { %10956 = vmatpush3.bf16.msra.mxu0 %v11778_v63  ;;  %10963 = vmatprep.mubr.msk.bf16.mxu0 %vm12194_vm1, %v12193_v8 }
0x17d6   :  { %10957 = vmatprep.subr.bf16.mxu0 %v12193_v8 }
0x17d9   :  { %10958 = vmatpush3.bf16.msra.mxu0 %v11779_v0  ;;  %v9593_v0 = vld [vmem:[%s15105_s7 + $0xd] sm:$0x1] }
0x17da   :  { %10959 = vmatprep.subr.bf16.mxu0 %v12193_v8 }
0x17dd   :  { %10960 = vmatpush3.bf16.msra.mxu0 %v11780_v1  ;;  %v11794_v1 = vld [vmem:[%s15104_s6 + $0x1c0] sm:$0xff]  }
0x17de   :  { %10961 = vmatprep.subr.bf16.mxu0 %v12193_v8 }
0x17e1   :  { %10962 = vmatpush3.bf16.msra.mxu0 %v11781_v2  ;;  %v11795_v2 = vld [vmem:[%s15104_s6 + $0x1c8] sm:$0xff]  }
0x17e2   :  { %10985 = vmatprep.subr.bf16.mxu0 %v12193_v8 }
0x17e4   :  { %10964 = vmatmul.mubr.msk.bf16.vlgmr.msra.gmra.mrb[104].mxu0 %vm3813_vm4, %v13276_v40 }
0x17e5   :  { %10987 = vmatprep.mubr.msk.bf16.mxu0 %vm12194_vm1, %v12193_v8 }
0x18a7   :  { %v4985_v3 = vpop.f32.mrb[100].mxu0 }
0x18a8   :  { %v4991_v5 = vadd.f32 %v4985_v3, %v4870_v52  ;;  %v10953_v6 = vpop.f32.mrb[101].mxu0  ;;  %v11793_v52 = vld [vmem:[%s15104_s6 + $0x1b8] sm:$0xff]   ;;  %v11796_v3 = vld [vmem:[%s15104_s6 + $0x1d0] sm:$0xff]  }
0x18a9   :  { %v4988_v7 = vpop.f32.mrb[102].mxu0 }
0x18aa   :  { %v10954_v9 = vpop.f32.mrb[103].mxu0 }
0x18b7   :  { %v5059_v57 = vpop.f32.mrb[104].mxu0 }
0x18b8   :  { %v10965_v10 = vpop.f32.mrb[105].mxu0 }
0x18b9   :  { %v5062_v11 = vpop.f32.mrb[106].mxu0 }
0x18ba   :  { %v5068_v12 = vpack.c.bf16 %v5062_v11, %v5059_v57  ;;  %v10966_v13 = vpop.f32.mrb[107].mxu0 }
0x18bc   :  { %10968 = vmatpush3.bf16.msra.mxu1 %v5068_v12 }
0x18bd   :  { %10973 = vmatprep.subr.bf16.mxu1 %v12193_v8 }
0x18bf   :  { %10970 = vmatmul.mubr.msk.bf16.vlgmr.msra.gmra.mrb[108].mxu1 %vm3937_vm5, %v9548_v14 }
0x18c0   :  { %10974 = vmatpush3.bf16.msra.mxu1 %v11782_v15  ;;  %10981 = vmatprep.mubr.msk.bf16.mxu1 %vm12194_vm1, %v12193_v8 }
0x18c1   :  { %10975 = vmatprep.subr.bf16.mxu1 %v12193_v8 }
0x18c4   :  { %10976 = vmatpush3.bf16.msra.mxu1 %v11783_v16  ;;  %v9608_v16 = vld [vmem:[%s15105_s7 + $0xe] sm:$0x1] }
0x18c5   :  { %10977 = vmatprep.subr.bf16.mxu1 %v12193_v8 }
0x18c8   :  { %10978 = vmatpush3.bf16.msra.mxu1 %v11784_v17  ;;  %v11798_v17 = vld [vmem:[%s15104_s6 + $0x1e0] sm:$0xff]  }
0x18c9   :  { %10979 = vmatprep.subr.bf16.mxu1 %v12193_v8 }
0x18cc   :  { %10980 = vmatpush3.bf16.msra.mxu1 %v11785_v18  ;;  %v11799_v18 = vld [vmem:[%s15104_s6 + $0x1e8] sm:$0xff]  }
0x18cd   :  { %11003 = vmatprep.subr.bf16.mxu1 %v12193_v8 }
0x18cf   :  { %10982 = vmatmul.mubr.msk.bf16.vlgmr.msra.gmra.mrb[112].mxu1 %vm3813_vm4, %v13276_v40 }
0x18d0   :  { %11005 = vmatprep.mubr.msk.bf16.mxu1 %vm12194_vm1, %v12193_v8 }
0x1992   :  { %v5106_v19 = vpop.f32.mrb[108].mxu1 }
0x1993   :  { %v5112_v20 = vadd.f32 %v5106_v19, %v4991_v5  ;;  %v10971_v21 = vpop.f32.mrb[109].mxu1  ;;  %v11797_v5 = vld [vmem:[%s15104_s6 + $0x1d8] sm:$0xff]   ;;  %v11800_v19 = vld [vmem:[%s15104_s6 + $0x1f0] sm:$0xff]  }
0x1994   :  { %v5109_v22 = vpop.f32.mrb[110].mxu1  ;;  %v11815_v21 = vld [vmem:[%s15101_s3 + $0x40] sm:$0xff]  }
0x1995   :  { %v10972_v23 = vpop.f32.mrb[111].mxu1  ;;  %v11816_v22 = vld [vmem:[%s15101_s3] sm:$0xff]  }
0x1996   :  { %v11817_v23 = vld [vmem:[%s15101_s3 + $0x48] sm:$0xff]  }
0x19a2   :  { %v5180_v24 = vpop.f32.mrb[112].mxu1 }
0x19a3   :  { %v10983_v25 = vpop.f32.mrb[113].mxu1 }
0x19a4   :  { %v5183_v26 = vpop.f32.mrb[114].mxu1  ;;  %v11819_v25 = vld [vmem:[%s15101_s3 + $0x50] sm:$0xff]  }
0x19a5   :  { %v5189_v27 = vpack.c.bf16 %v5183_v26, %v5180_v24  ;;  %v10984_v28 = vpop.f32.mrb[115].mxu1  ;;  %v11818_v24 = vld [vmem:[%s15101_s3 + $0x8] sm:$0xff]   ;;  %v11821_v26 = vld [vmem:[%s15101_s3 + $0x58] sm:$0xff]  }
0x19a6   :  { %v11823_v28 = vld [vmem:[%s15101_s3 + $0x60] sm:$0xff]  }
0x19a7   :  { %10986 = vmatpush3.bf16.msra.mxu0 %v5189_v27  ;;  %v11822_v27 = vld [vmem:[%s15101_s3 + $0x18] sm:$0xff]  }
0x19a8   :  { %10991 = vmatprep.subr.bf16.mxu0 %v12193_v8 }
0x19aa   :  { %10988 = vmatmul.mubr.msk.bf16.vlgmr.msra.gmra.mrb[108].mxu0 %vm3937_vm5, %v9563_v29  ;;  %v11824_v29 = vld [vmem:[%s15101_s3 + $0x20] sm:$0xff]  }
0x19ab   :  { %10992 = vmatpush3.bf16.msra.mxu0 %v11786_v30  ;;  %10999 = vmatprep.mubr.msk.bf16.mxu0 %vm12194_vm1, %v12193_v8  ;;  %v11825_v30 = vld [vmem:[%s15101_s3 + $0x68] sm:$0xff]  }
0x19ac   :  { %10993 = vmatprep.subr.bf16.mxu0 %v12193_v8 }
0x19af   :  { %10994 = vmatpush3.bf16.msra.mxu0 %v11787_v32  ;;  %v11826_v32 = vld [vmem:[%s15101_s3 + $0x28] sm:$0xff]  }
0x19b0   :  { %10995 = vmatprep.subr.bf16.mxu0 %v12193_v8 }
0x19b3   :  { %10996 = vmatpush3.bf16.msra.mxu0 %v11788_v33  ;;  %v11827_v33 = vld [vmem:[%s15101_s3 + $0x70] sm:$0xff]  }
0x19b4   :  { %10997 = vmatprep.subr.bf16.mxu0 %v12193_v8 }
0x19b7   :  { %10998 = vmatpush3.bf16.msra.mxu0 %v11789_v34  ;;  %v11828_v34 = vld [vmem:[%s15101_s3 + $0x30] sm:$0xff]  }
0x19b8   :  { %11021 = vmatprep.subr.bf16.mxu0 %v12193_v8 }
0x19ba   :  { %11000 = vmatmul.mubr.msk.bf16.vlgmr.msra.gmra.mrb[112].mxu0 %vm3813_vm4, %v13276_v40 }
0x19bb   :  { %11023 = vmatprep.mubr.msk.bf16.mxu0 %vm12194_vm1, %v12193_v8 }
0x1a7d   :  { %v5227_v35 = vpop.f32.mrb[108].mxu0 }
0x1a7e   :  { %v5233_v37 = vadd.f32 %v5227_v35, %v5112_v20  ;;  %v10989_v38 = vpop.f32.mrb[109].mxu0  ;;  %v11801_v20 = vld [vmem:[%s15104_s6 + $0x1f8] sm:$0xff]  }
0x1a7f   :  { %v5230_v39 = vpop.f32.mrb[110].mxu0  ;;  %v11829_v35 = vld [vmem:[%s15101_s3 + $0x78] sm:$0xff]  }
0x1a80   :  { %v10990_v41 = vpop.f32.mrb[111].mxu0 }
0x1a8d   :  { %v5301_v42 = vpop.f32.mrb[112].mxu0 }
0x1a8e   :  { %v11001_v43 = vpop.f32.mrb[113].mxu0 }
0x1a8f   :  { %v5304_v44 = vpop.f32.mrb[114].mxu0 }
0x1a90   :  { %v5310_v46 = vpack.c.bf16 %v5304_v44, %v5301_v42  ;;  %v11002_v47 = vpop.f32.mrb[115].mxu0 }
0x1a92   :  { %11004 = vmatpush3.bf16.msra.mxu1 %v5310_v46 }
0x1a93   :  { %11009 = vmatprep.subr.bf16.mxu1 %v12193_v8 }
0x1a95   :  { %11006 = vmatmul.mubr.msk.bf16.vlgmr.msra.gmra.mrb[116].mxu1 %vm3937_vm5, %v9578_v48  ;;  %v11804_v48 = vld [vmem:[%s15098_s0 + $0x34] ss:$8 sps:$4 sm:$0xff]  }
0x1a96   :  { %11010 = vmatpush3.bf16.msra.mxu1 %v11790_v49  ;;  %11017 = vmatprep.mubr.msk.bf16.mxu1 %vm12194_vm1, %v12193_v8 }
0x1a97   :  { %11011 = vmatprep.subr.bf16.mxu1 %v12193_v8 }
0x1a9a   :  { %11012 = vmatpush3.bf16.msra.mxu1 %v11791_v50 }
0x1a9b   :  { %11013 = vmatprep.subr.bf16.mxu1 %v12193_v8 }
0x1a9e   :  { %11014 = vmatpush3.bf16.msra.mxu1 %v11792_v51  ;;  %v9623_v51 = vld [vmem:[%s15105_s7 + $0xf] sm:$0x1] }
0x1a9f   :  { %11015 = vmatprep.subr.bf16.mxu1 %v12193_v8 }
0x1aa2   :  { %11016 = vmatpush3.bf16.msra.mxu1 %v11793_v52  ;;  %v11802_v52 = vld [vmem:[%s15098_s0 + $0x30] ss:$8 sps:$4 sm:$0xff]  }
0x1aa3   :  { %11039 = vmatprep.subr.bf16.mxu1 %v12193_v8 }
0x1aa5   :  { %11018 = vmatmul.mubr.msk.bf16.vlgmr.msra.gmra.mrb[120].mxu1 %vm3813_vm4, %v13276_v40 }
0x1aa6   :  { %11041 = vmatprep.mubr.msk.bf16.mxu1 %vm12194_vm1, %v12193_v8 }
0x1b68   :  { %v5348_v53 = vpop.f32.mrb[116].mxu1 }
0x1b69   :  { %v5354_v54 = vadd.f32 %v5348_v53, %v5233_v37  ;;  %v11007_v55 = vpop.f32.mrb[117].mxu1  ;;  %v11830_v37 = vld [vmem:[%s15101_s3 + $0x38] sm:$0xff]   ;;  %v11807_v53 = vld [vmem:[%s15098_s0 + $0x44] ss:$8 sps:$4 sm:$0xff]  }
0x1b6a   :  { %v5351_v58 = vpop.f32.mrb[118].mxu1  ;;  %v11810_v55 = vld [vmem:[%s15098_s0 + $0x54] ss:$8 sps:$4 sm:$0xff]  }
0x1b6b   :  { %v11008_v56 = vpop.f32.mrb[119].mxu1  ;;  %v11808_v58 = vld [vmem:[%s15098_s0 + $0x50] ss:$8 sps:$4 sm:$0xff]  }
0x1b6c   :  { %v11831_v56 = vld [vmem:[%s15101_s3 + $0xc0] sm:$0xff]  }
0x1b78   :  { %v5422_v59 = vpop.f32.mrb[120].mxu1 }
0x1b79   :  { %v11019_v60 = vpop.f32.mrb[121].mxu1 }
0x1b7a   :  { %v5425_v61 = vpop.f32.mrb[122].mxu1  ;;  %v11834_v60 = vld [vmem:[%s15101_s3 + $0xc8] sm:$0xff]  }
0x1b7b   :  { %v5431_v62 = vpack.c.bf16 %v5425_v61, %v5422_v59  ;;  %v11020_v63 = vpop.f32.mrb[123].mxu1  ;;  %v11833_v59 = vld [vmem:[%s15101_s3 + $0x80] sm:$0xff]   ;;  %v11835_v61 = vld [vmem:[%s15101_s3 + $0x88] sm:$0xff]  }
0x1b7c   :  { %v11837_v63 = vld [vmem:[%s15101_s3 + $0x90] sm:$0xff]  }
0x1b7d   :  { %11022 = vmatpush3.bf16.msra.mxu0 %v5431_v62  ;;  %v11836_v62 = vld [vmem:[%s15101_s3 + $0xd0] sm:$0xff]  }
0x1b7e   :  { %11027 = vmatprep.subr.bf16.mxu0 %v12193_v8 }
0x1b80   :  { %11024 = vmatmul.mubr.msk.bf16.vlgmr.msra.gmra.mrb[116].mxu0 %vm3937_vm5, %v9593_v0  ;;  %v11838_v0 = vld [vmem:[%s15101_s3 + $0xd8] sm:$0xff]  }
0x1b81   :  { %11028 = vmatpush3.bf16.msra.mxu0 %v11794_v1  ;;  %11035 = vmatprep.mubr.msk.bf16.mxu0 %vm12194_vm1, %v12193_v8  ;;  %v11839_v1 = vld [vmem:[%s15101_s3 + $0x98] sm:$0xff]  }
0x1b82   :  { %11029 = vmatprep.subr.bf16.mxu0 %v12193_v8 }
0x1b85   :  { %11030 = vmatpush3.bf16.msra.mxu0 %v11795_v2  ;;  %v11840_v2 = vld [vmem:[%s15101_s3 + $0xe0] sm:$0xff]  }
0x1b86   :  { %11031 = vmatprep.subr.bf16.mxu0 %v12193_v8 }
0x1b89   :  { %11032 = vmatpush3.bf16.msra.mxu0 %v11796_v3  ;;  %v11841_v3 = vld [vmem:[%s15101_s3 + $0xa0] sm:$0xff]  }
0x1b8a   :  { %11033 = vmatprep.subr.bf16.mxu0 %v12193_v8 }
0x1b8d   :  { %11034 = vmatpush3.bf16.msra.mxu0 %v11797_v5  ;;  %v11842_v5 = vld [vmem:[%s15101_s3 + $0xe8] sm:$0xff]  }
0x1b8e   :  { %11057 = vmatprep.subr.bf16.mxu0 %v12193_v8 }
0x1b90   :  { %11036 = vmatmul.mubr.msk.bf16.vlgmr.msra.gmra.mrb[120].mxu0 %vm3813_vm4, %v13276_v40 }
0x1b91   :  { %11059 = vmatprep.mubr.msk.bf16.mxu0 %vm12194_vm1, %v12193_v8 }
0x1c53   :  { %v5469_v6 = vpop.f32.mrb[116].mxu0 }
0x1c54   :  { %v5475_v7 = vadd.f32 %v5469_v6, %v5354_v54  ;;  %v11025_v9 = vpop.f32.mrb[117].mxu0  ;;  %v11805_v54 = vld [vmem:[%s15098_s0 + $0x40] ss:$8 sps:$4 sm:$0xff]  }
0x1c55   :  { %v5472_v57 = vpop.f32.mrb[118].mxu0  ;;  %v11843_v6 = vld [vmem:[%s15101_s3 + $0xa8] sm:$0xff]   ;;  %v11845_v9 = vld [vmem:[%s15101_s3 + $0xb0] sm:$0xff]  }
0x1c56   :  { %v11026_v10 = vpop.f32.mrb[119].mxu0  ;;  %v11846_v57 = vld [vmem:[%s15101_s3 + $0xf8] sm:$0xff]  }
0x1c57   :  { %v11847_v10 = vld [vmem:[%s15101_s3 + $0xb8] sm:$0xff]  }
0x1c63   :  { %v5543_v11 = vpop.f32.mrb[120].mxu0 }
0x1c64   :  { %v11037_v12 = vpop.f32.mrb[121].mxu0 }
0x1c65   :  { %v5546_v13 = vpop.f32.mrb[122].mxu0 }
0x1c66   :  { %v5552_v14 = vpack.c.bf16 %v5546_v13, %v5543_v11  ;;  %v11038_v15 = vpop.f32.mrb[123].mxu0  ;;  %v5724_v11 = vlaneseq }
0x1c68   :  { %11040 = vmatpush3.bf16.msra.mxu1 %v5552_v14  ;;  %v5725_v12 = vshrl.u32 %v5724_v11, 7  ;;  %v5722_v14 = vpop.permute.xlu1 %5721  ;;  %v11863_v11 = vld [vmem:[%s15101_s3 + $0x130] sm:$0xff]  }
0x1c69   :  { %11045 = vmatprep.subr.bf16.mxu1 %v12193_v8 }
0x1c6a   :  { %v5726_v13 = vsub.s32 0, %v5725_v12  ;;  %v11864_v12 = vld [vmem:[%s15101_s3 + $0x178] sm:$0xff]  }
0x1c6b   :  { %11042 = vmatmul.mubr.msk.bf16.vlgmr.msra.gmra.mrb[124].mxu1 %vm3937_vm5, %v9608_v16 }
0x1c6c   :  { %11046 = vmatpush3.bf16.msra.mxu1 %v11798_v17  ;;  %11053 = vmatprep.mubr.msk.bf16.mxu1 %vm12194_vm1, %v12193_v8  ;;  %v13795_v16 = vrot.slane %v5722_v14, %v5726_v13  ;;  %v11865_v13 = vld [vmem:[%s15101_s3 + $0x138] sm:$0xff]  }
0x1c6d   :  { %11047 = vmatprep.subr.bf16.mxu1 %v12193_v8 }
0x1c70   :  { %11048 = vmatpush3.bf16.msra.mxu1 %v11799_v18 }
0x1c71   :  { %11049 = vmatprep.subr.bf16.mxu1 %v12193_v8 }
0x1c74   :  { %11050 = vmatpush3.bf16.msra.mxu1 %v11800_v19 }
0x1c75   :  { %11051 = vmatprep.subr.bf16.mxu1 %v12193_v8 }
0x1c78   :  { %11052 = vmatpush3.bf16.msra.mxu1 %v11801_v20 }
0x1c79   :  { %10183 = vmatprep.subr.bf16.mxu1 %v11815_v21 }
0x1c7b   :  { %11054 = vmatmul.mubr.msk.bf16.vlgmr.msra.gmra.mrb[128].mxu1 %vm3813_vm4, %v13276_v40  ;;  %v11820_v40 = vld [vmem:[%s15101_s3 + $0x10] sm:$0xff]  }
0x1c7c   :  { %10184 = vmatpush3.bf16.msra.mxu1 %v11816_v22  ;;  %v5730_v22 = vld [vmem:[%s15107_s9] sm:$0x1] }
0x1c7d   :  { %10185 = vmatprep.subr.bf16.mxu1 %v11817_v23 }
0x1c80   :  { %10186 = vmatpush3.bf16.msra.mxu1 %v11818_v24 }
0x1c81   :  { %10187 = vmatprep.subr.bf16.mxu1 %v11819_v25 }
0x1c84   :  { %10188 = vmatpush3.bf16.msra.mxu1 %v11820_v40 }
0x1c85   :  { %10189 = vmatprep.subr.bf16.mxu1 %v11821_v26 }
0x1c88   :  { %10190 = vmatpush3.bf16.msra.mxu1 %v11822_v27 }
0x1c89   :  { %10191 = vmatprep.subr.bf16.mxu1 %v11823_v28 }
0x1c8c   :  { %10192 = vmatpush3.bf16.msra.mxu1 %v11824_v29 }
0x1c8d   :  { %10193 = vmatprep.subr.bf16.mxu1 %v11825_v30 }
0x1c90   :  { %10194 = vmatpush3.bf16.msra.mxu1 %v11826_v32 }
0x1c91   :  { %10195 = vmatprep.subr.bf16.mxu1 %v11827_v33 }
0x1c94   :  { %10196 = vmatpush3.bf16.msra.mxu1 %v11828_v34 }
0x1c95   :  { %10197 = vmatprep.subr.bf16.mxu1 %v11829_v35 }
0x1c98   :  { %10198 = vmatpush3.bf16.msra.mxu1 %v11830_v37 }
0x1c99   :  { %11063 = vmatprep.subr.bf16.mxu1 %v12193_v8 }
0x1d3e   :  { %v5590_v38 = vpop.f32.mrb[124].mxu1 }
0x1d3f   :  { %v13717_v39 = vadd.f32 %v5590_v38, %v5475_v7  ;;  %v11043_v41 = vpop.f32.mrb[125].mxu1  ;;  %v11844_v7 = vld [vmem:[%s15101_s3 + $0xf0] sm:$0xff]  }
0x1d40   :  { %v5593_v42 = vpop.f32.mrb[126].mxu1 }
0x1d41   :  { %v11044_v43 = vpop.f32.mrb[127].mxu1 }
0x1d4e   :  { %v5664_v44 = vpop.f32.mrb[128].mxu1 }
0x1d4f   :  { %v11055_v46 = vpop.f32.mrb[129].mxu1 }
0x1d50   :  { %v5667_v47 = vpop.f32.mrb[130].mxu1 }
0x1d51   :  { %v5673_v49 = vpack.c.bf16 %v5667_v47, %v5664_v44  ;;  %v11056_v50 = vpop.f32.mrb[131].mxu1 }
0x1d53   :  { %11058 = vmatpush3.bf16.msra.mxu0 %v5673_v49 }
0x1d54   :  { %5782 = vmatprep.subr.bf16.mxu0 %v11804_v48 }
0x1d56   :  { %11060 = vmatmul.mubr.msk.bf16.vlgmr.msra.gmra.mrb[124].mxu0 %vm3937_vm5, %v9623_v51 }
0x1d57   :  { %5783 = vmatpush1.bf16.msra.mxu0 %v11802_v52  ;;  %5814 = vmatprep.mubr.bf16.mxu0 %v12192_v4  ;;  %v11832_v4 = vld [vmem:[%s15099_s1] sm:$0xf] }
0x1d58   :  { %5784 = vmatprep.subr.bf16.mxu0 %v11807_v53 }
0x1d5b   :  { %5785 = vmatpush1.bf16.msra.mxu0 %v11805_v54 }
0x1d5c   :  { %5786 = vmatprep.subr.bf16.mxu0 %v11810_v55 }
0x1d5f   :  { %5787 = vmatpush1.bf16.msra.mxu0 %v11808_v58 }
0x1d60   :  { %10205 = vmatprep.subr.bf16.mxu0 %v11831_v56 }
0x1d62   :  { %9637 = vmatmul.mubr.msk.bf16.vlgmr.msra.gmra.mrb[128].mxu0 %vm87_vm0, %v11832_v4 }
0x1d63   :  { %10206 = vmatpush3.bf16.msra.mxu0 %v11833_v59  ;;  %v11848_v59 = vld [vmem:[%s15101_s3 + $0x140] sm:$0xff]  }
0x1d64   :  { %10207 = vmatprep.subr.bf16.mxu0 %v11834_v60  ;;  %v11849_v60 = vld [vmem:[%s15102_s4 + $0x8] sm:$0xff]  }
0x1d67   :  { %10208 = vmatpush3.bf16.msra.mxu0 %v11835_v61  ;;  %v11850_v61 = vld [vmem:[%s15102_s4] sm:$0xff]  }
0x1d68   :  { %10209 = vmatprep.subr.bf16.mxu0 %v11836_v62  ;;  %v11851_v62 = vld [vmem:[%s15101_s3 + $0x100] sm:$0xff]  }
0x1d6b   :  { %10210 = vmatpush3.bf16.msra.mxu0 %v11837_v63  ;;  %v11852_v63 = vld [vmem:[%s15101_s3 + $0x148] sm:$0xff]  }
0x1d6c   :  { %10211 = vmatprep.subr.bf16.mxu0 %v11838_v0  ;;  %v11853_v0 = vld [vmem:[%s15101_s3 + $0x108] sm:$0xff]  }
0x1d6f   :  { %10212 = vmatpush3.bf16.msra.mxu0 %v11839_v1  ;;  %v11854_v1 = vld [vmem:[%s15101_s3 + $0x150] sm:$0xff]  }
0x1d70   :  { %10213 = vmatprep.subr.bf16.mxu0 %v11840_v2  ;;  %v11855_v2 = vld [vmem:[%s15101_s3 + $0x110] sm:$0xff]  }
0x1d73   :  { %10214 = vmatpush3.bf16.msra.mxu0 %v11841_v3  ;;  %v11856_v3 = vld [vmem:[%s15101_s3 + $0x158] sm:$0xff]  }
0x1d74   :  { %10215 = vmatprep.subr.bf16.mxu0 %v11842_v5  ;;  %v11857_v5 = vld [vmem:[%s15101_s3 + $0x118] sm:$0xff]  }
0x1d77   :  { %10216 = vmatpush3.bf16.msra.mxu0 %v11843_v6  ;;  %v11858_v6 = vld [vmem:[%s15101_s3 + $0x160] sm:$0xff]  }
0x1d78   :  { %10217 = vmatprep.subr.bf16.mxu0 %v11844_v7  ;;  %v11859_v7 = vld [vmem:[%s15101_s3 + $0x120] sm:$0xff]  }
0x1d7b   :  { %10218 = vmatpush3.bf16.msra.mxu0 %v11845_v9  ;;  %v11860_v9 = vld [vmem:[%s15101_s3 + $0x168] sm:$0xff]  }
0x1d7c   :  { %10219 = vmatprep.subr.bf16.mxu0 %v11846_v57  ;;  %v11861_v57 = vld [vmem:[%s15101_s3 + $0x128] sm:$0xff]  }
0x1d7f   :  { %10220 = vmatpush3.bf16.msra.mxu0 %v11847_v10  ;;  %v11862_v10 = vld [vmem:[%s15101_s3 + $0x170] sm:$0xff]  }
0x1d80   :  { %11069 = vmatprep.subr.bf16.mxu0 %v12193_v8 }
0x1e29   :  { %v5711_v15 = vpop.f32.mrb[124].mxu0 }
0x1e2a   :  { %v5717_v17 = vadd.f32 %v5711_v15, %v13717_v39  ;;  %v11061_v18 = vpop.f32.mrb[125].mxu0 }
0x1e2b   :  { %v5714_v19 = vpop.f32.mrb[126].mxu0 }
0x1e2c   :  { %v5728_v20 = vadd.f32 %v13795_v16, %v5717_v17  ;;  %v11062_v21 = vpop.f32.mrb[127].mxu0 }
0x1e2e   :  { %v5729_v23 = vmax.f32 %v5728_v20, 0.0 }
0x1e30   :  { %v5731_v24 = vmul.f32 %v5730_v22, %v5729_v23 }
0x1e32   :  { %v5733_v25 = vsel %vm5732_vm6, %v5731_v24, 0.0 }
0x1e33   :  { %5734 = vadd.xlane.f32.xlu0 %v5733_v25 }
0x1e35   :  { %v5816_v40 = vpop.f32.mrb[128].mxu0 }
0x1e36   :  { %v5817_v26 = vadd.f32 %v5816_v40, %v12392_v45  ;;  %v5818_v27 = vpop.f32.mrb[129].mxu0 }
0x1e37   :  { %v5819_v28 = vadd.f32 %v5818_v27, %v12392_v45  ;;  %v5820_v29 = vpop.f32.mrb[130].mxu0 }
0x1e38   :  { %v5823_v30 = vmax.f32 %v5817_v26, 0.0  ;;  %v5821_v32 = vpop.f32.mrb[131].mxu0 }
0x1e39   :  { %v5824_v33 = vmax.f32 %v5819_v28, 0.0  ;;  %v11866_v32 = vld [vmem:[%s15101_s3 + $0x1c0] sm:$0xff]  }
0x1e3a   :  { %v13807_v35 = vpack.c.bf16 %v5823_v30, %v5823_v30 }
0x1e3b   :  { %v13805_v34 = vpack.c.bf16 %v5824_v33, %v5824_v33  ;;  %v11867_v33 = vld [vmem:[%s15102_s4 + $0x10] sm:$0xff]  }
0x1e3d   :  { %5859 = vmatprep.mubr.bf16.mxu1 %v13805_v34  ;;  %5900 = vmatprep.mubr.bf16.mxu0 %v13805_v34 }
0x1e3e   :  { %5860 = vmatmul.mubr.bf16.vlgmr.msra.gmra.mrb[132].mxu1 %v13807_v35  ;;  %5901 = vmatmul.mubr.bf16.vlgmr.msra.gmra.mrb[132].mxu0 %v13807_v35 }
0x1e3f   :  { %11065 = vmatprep.mubr.msk.bf16.mxu1 %vm12194_vm1, %v12193_v8  ;;  %11071 = vmatprep.mubr.msk.bf16.mxu0 %vm12194_vm1, %v12193_v8 }
0x1ec0   :  { %v5735_v45 = vpop.xlane.xlu0 %5734 }
0x1ec1   :  { %v5736_v37 = vrot.slane %v5735_v45, 4 }
0x1ec3   :  { %v5737_v38 = vadd.f32 %v5736_v37, %v5735_v45  ;;  %v11868_v45 = vld [vmem:[%s15101_s3 + $0x180] sm:$0xff]   ;;  %v11869_v37 = vld [vmem:[%s15101_s3 + $0x1c8] sm:$0xff]  }
0x1ec5   :  { %v5738_v39 = vrot.slane %v5737_v38, 2 }
0x1ec7   :  { %v5739_v41 = vadd.f32 %v5738_v39, %v5737_v38  ;;  %v11870_v38 = vld [vmem:[%s15101_s3 + $0x188] sm:$0xff]   ;;  %v11871_v39 = vld [vmem:[%s15101_s3 + $0x1d0] sm:$0xff]  }
0x1ec9   :  { %v5740_v42 = vrot.slane %v5739_v41, 1 }
0x1ecb   :  { %v5741_v43 = vadd.f32 %v5740_v42, %v5739_v41  ;;  %v11872_v41 = vld [vmem:[%s15101_s3 + $0x190] sm:$0xff]   ;;  %v11873_v42 = vld [vmem:[%s15101_s3 + $0x1d8] sm:$0xff]  }
0x1ecd   :  { %11447 = vpush %v5741_v43  ;;  %v11874_v43 = vld [vmem:[%s15101_s3 + $0x198] sm:$0xff]  }
0x1f11   :  { %v10199_v44 = vpop.f32.mrb[132].mxu1  ;;  %v10221_v46 = vpop.f32.mrb[132].mxu0 }
0x1f12   :  { %v10200_v47 = vpop.f32.mrb[133].mxu1  ;;  %v10222_v48 = vpop.f32.mrb[133].mxu0 }
0x1f13   :  { %v10201_v49 = vadd.f32 %v10200_v47, %v10199_v44  ;;  %v10223_v50 = vadd.f32 %v10222_v48, %v10221_v46  ;;  %v10202_v51 = vpop.f32.mrb[134].mxu1  ;;  %v10224_v52 = vpop.f32.mrb[134].mxu0  ;;  %v11875_v44 = vld [vmem:[%s15101_s3 + $0x1e0] sm:$0xff]   ;;  %v11877_v47 = vld [vmem:[%s15101_s3 + $0x1e8] sm:$0xff]  }
0x1f14   :  { %v10203_v53 = vpop.f32.mrb[135].mxu1  ;;  %v10225_v54 = vpop.f32.mrb[135].mxu0  ;;  %v11876_v46 = vld [vmem:[%s15101_s3 + $0x1a0] sm:$0xff]   ;;  %v11878_v48 = vld [vmem:[%s15101_s3 + $0x1a8] sm:$0xff]   ;;  %v11881_v51 = vld [vmem:[%s15101_s3 + $0x1f8] sm:$0xff]  }
0x1f15   :  { %v5867_v55 = vpack.c.bf16 %v10201_v49, %v10201_v49  ;;  %v5908_v58 = vpack.c.bf16 %v10223_v50, %v10223_v50  ;;  %v11879_v49 = vld [vmem:[%s15101_s3 + $0x1f0] sm:$0xff]   ;;  %v11882_v52 = vld [vmem:[%s15101_s3 + $0x1b8] sm:$0xff]  }
0x1f16   :  { %v11880_v50 = vld [vmem:[%s15101_s3 + $0x1b0] sm:$0xff]  }
0x1f17   :  { %v5954_v56 = vsel %vm489_vm2, %v5867_v55, 0  ;;  %v5910_v4 = vsel %vm489_vm2, %v5908_v58, 0 }
0x1f18   :  { %11064 = vmatpush3.bf16.msra.mxu1 %v5910_v4  ;;  %11070 = vmatpush3.bf16.msra.mxu0 %v5954_v56 }
0x1f19   :  { %10231 = vmatprep.subr.bf16.mxu1 %v11848_v59  ;;  %11075 = vmatprep.subr.bf16.mxu0 %v12193_v8 }
0x1f1b   :  { %11066 = vmatmul.mubr.msk.bf16.vlgmr.msra.gmra.mrb[136].mxu1 %vm485_vm3, %v11849_v60  ;;  %11072 = vmatmul.mubr.msk.bf16.vlgmr.msra.gmra.mrb[136].mxu0 %vm485_vm3, %v11850_v61 }
0x1f1c   :  { %10232 = vmatpush3.bf16.msra.mxu1 %v11851_v62  ;;  %6029 = vmatprep.mubr.bf16.mxu1 %v13805_v34 }
0x1f1d   :  { %10233 = vmatprep.subr.bf16.mxu1 %v11852_v63  ;;  %11077 = vmatprep.mubr.msk.bf16.mxu0 %vm12194_vm1, %v12193_v8 }
0x1f20   :  { %10234 = vmatpush3.bf16.msra.mxu1 %v11853_v0 }
0x1f21   :  { %10235 = vmatprep.subr.bf16.mxu1 %v11854_v1 }
0x1f24   :  { %10236 = vmatpush3.bf16.msra.mxu1 %v11855_v2  ;;  %v11883_v2 = vld [vmem:[%s15101_s3 + $0x240] sm:$0xff]  }
0x1f25   :  { %10237 = vmatprep.subr.bf16.mxu1 %v11856_v3  ;;  %v11884_v3 = vld [vmem:[%s15102_s4 + $0x18] sm:$0xff]  }
0x1f28   :  { %10238 = vmatpush3.bf16.msra.mxu1 %v11857_v5  ;;  %v11885_v5 = vld [vmem:[%s15101_s3 + $0x200] sm:$0xff]  }
0x1f29   :  { %10239 = vmatprep.subr.bf16.mxu1 %v11858_v6  ;;  %v11886_v6 = vld [vmem:[%s15101_s3 + $0x248] sm:$0xff]  }
0x1f2c   :  { %10240 = vmatpush3.bf16.msra.mxu1 %v11859_v7  ;;  %v11887_v7 = vld [vmem:[%s15101_s3 + $0x208] sm:$0xff]  }
0x1f2d   :  { %10241 = vmatprep.subr.bf16.mxu1 %v11860_v9  ;;  %v11888_v9 = vld [vmem:[%s15101_s3 + $0x250] sm:$0xff]  }
0x1f30   :  { %10242 = vmatpush3.bf16.msra.mxu1 %v11861_v57  ;;  %v11889_v57 = vld [vmem:[%s15101_s3 + $0x210] sm:$0xff]  }
0x1f31   :  { %10243 = vmatprep.subr.bf16.mxu1 %v11862_v10  ;;  %v11890_v10 = vld [vmem:[%s15101_s3 + $0x258] sm:$0xff]  }
0x1f34   :  { %10244 = vmatpush3.bf16.msra.mxu1 %v11863_v11  ;;  %v11891_v11 = vld [vmem:[%s15101_s3 + $0x218] sm:$0xff]  }
0x1f35   :  { %10245 = vmatprep.subr.bf16.mxu1 %v11864_v12  ;;  %v11892_v12 = vld [vmem:[%s15101_s3 + $0x260] sm:$0xff]  }
0x1f38   :  { %10246 = vmatpush3.bf16.msra.mxu1 %v11865_v13  ;;  %v11893_v13 = vld [vmem:[%s15101_s3 + $0x220] sm:$0xff]  }
0x1f39   :  { %11081 = vmatprep.subr.bf16.mxu1 %v12193_v8 }
0x1f3b   :  { %6030 = vmatmul.mubr.bf16.vlgmr.msra.gmra.mrb[140].mxu1 %v13807_v35 }
0x1f3c   :  { %11083 = vmatprep.mubr.msk.bf16.mxu1 %vm12194_vm1, %v12193_v8 }
0x1fee   :  { %v5946_v14 = vpop.f32.mrb[136].mxu1  ;;  %v5990_v15 = vpop.f32.mrb[136].mxu0 }
0x1fef   :  { %v5991_v17 = vadd.f32 %v5990_v15, %v5946_v14  ;;  %v11067_v18 = vpop.f32.mrb[137].mxu1  ;;  %v11073_v19 = vpop.f32.mrb[137].mxu0  ;;  %v11894_v14 = vld [vmem:[%s15101_s3 + $0x268] sm:$0xff]  }
0x1ff0   :  { %v5949_v20 = vpop.f32.mrb[138].mxu1  ;;  %v5993_v21 = vpop.f32.mrb[138].mxu0  ;;  %v11895_v15 = vld [vmem:[%s15101_s3 + $0x228] sm:$0xff]   ;;  %v11897_v18 = vld [vmem:[%s15101_s3 + $0x230] sm:$0xff]   ;;  %v11898_v19 = vld [vmem:[%s15101_s3 + $0x278] sm:$0xff]  }
0x1ff1   :  { %v5994_v22 = vadd.f32 %v5993_v21, %v5949_v20  ;;  %v11068_v23 = vpop.f32.mrb[139].mxu1  ;;  %v11074_v24 = vpop.f32.mrb[139].mxu0  ;;  %v11899_v20 = vld [vmem:[%s15101_s3 + $0x238] sm:$0xff]  }
0x200e   :  { %v10247_v25 = vpop.f32.mrb[140].mxu1 }
0x200f   :  { %v10248_v40 = vpop.f32.mrb[141].mxu1 }
0x2010   :  { %v10249_v26 = vadd.f32 %v10248_v40, %v10247_v25  ;;  %v10250_v27 = vpop.f32.mrb[142].mxu1 }
0x2011   :  { %v10251_v28 = vpop.f32.mrb[143].mxu1 }
0x2012   :  { %v6037_v29 = vpack.c.bf16 %v10249_v26, %v10249_v26 }
0x2014   :  { %v6039_v30 = vsel %vm489_vm2, %v6037_v29, 0 }
0x2015   :  { %11076 = vmatpush3.bf16.msra.mxu0 %v6039_v30 }
0x2016   :  { %10255 = vmatprep.subr.bf16.mxu0 %v11866_v32 }
0x2018   :  { %11078 = vmatmul.mubr.msk.bf16.vlgmr.msra.gmra.mrb[140].mxu0 %vm485_vm3, %v11867_v33 }
0x2019   :  { %10256 = vmatpush3.bf16.msra.mxu0 %v11868_v45  ;;  %6116 = vmatprep.mubr.bf16.mxu0 %v13805_v34  ;;  %v11900_v45 = vld [vmem:[%s15101_s3 + $0x2c0] sm:$0xff]  }
0x201a   :  { %10257 = vmatprep.subr.bf16.mxu0 %v11869_v37  ;;  %v11901_v37 = vld [vmem:[%s15102_s4 + $0x20] sm:$0xff]  }
0x201d   :  { %10258 = vmatpush3.bf16.msra.mxu0 %v11870_v38  ;;  %v11902_v38 = vld [vmem:[%s15101_s3 + $0x280] sm:$0xff]  }
0x201e   :  { %10259 = vmatprep.subr.bf16.mxu0 %v11871_v39  ;;  %v11903_v39 = vld [vmem:[%s15101_s3 + $0x2c8] sm:$0xff]  }
0x2021   :  { %10260 = vmatpush3.bf16.msra.mxu0 %v11872_v41  ;;  %v11904_v41 = vld [vmem:[%s15101_s3 + $0x288] sm:$0xff]  }
0x2022   :  { %10261 = vmatprep.subr.bf16.mxu0 %v11873_v42  ;;  %v11905_v42 = vld [vmem:[%s15101_s3 + $0x2d0] sm:$0xff]  }
0x2025   :  { %10262 = vmatpush3.bf16.msra.mxu0 %v11874_v43  ;;  %v11906_v43 = vld [vmem:[%s15101_s3 + $0x290] sm:$0xff]  }
0x2026   :  { %10263 = vmatprep.subr.bf16.mxu0 %v11875_v44  ;;  %v11907_v44 = vld [vmem:[%s15101_s3 + $0x2d8] sm:$0xff]  }
0x2029   :  { %10264 = vmatpush3.bf16.msra.mxu0 %v11876_v46  ;;  %v11908_v46 = vld [vmem:[%s15101_s3 + $0x298] sm:$0xff]  }
0x202a   :  { %10265 = vmatprep.subr.bf16.mxu0 %v11877_v47  ;;  %v11909_v47 = vld [vmem:[%s15101_s3 + $0x2e0] sm:$0xff]  }
0x202d   :  { %10266 = vmatpush3.bf16.msra.mxu0 %v11878_v48  ;;  %v11910_v48 = vld [vmem:[%s15101_s3 + $0x2a0] sm:$0xff]  }
0x202e   :  { %10267 = vmatprep.subr.bf16.mxu0 %v11879_v49  ;;  %v11911_v49 = vld [vmem:[%s15101_s3 + $0x2e8] sm:$0xff]  }
0x2031   :  { %10268 = vmatpush3.bf16.msra.mxu0 %v11880_v50  ;;  %v11912_v50 = vld [vmem:[%s15101_s3 + $0x2a8] sm:$0xff]  }
0x2032   :  { %10269 = vmatprep.subr.bf16.mxu0 %v11881_v51  ;;  %v11913_v51 = vld [vmem:[%s15101_s3 + $0x2f0] sm:$0xff]  }
0x2035   :  { %10270 = vmatpush3.bf16.msra.mxu0 %v11882_v52  ;;  %v11914_v52 = vld [vmem:[%s15101_s3 + $0x2b0] sm:$0xff]  }
0x2036   :  { %11087 = vmatprep.subr.bf16.mxu0 %v12193_v8 }
0x2038   :  { %6117 = vmatmul.mubr.bf16.vlgmr.msra.gmra.mrb[144].mxu0 %v13807_v35 }
0x2039   :  { %11089 = vmatprep.mubr.msk.bf16.mxu0 %vm12194_vm1, %v12193_v8 }
0x20eb   :  { %v6075_v53 = vpop.f32.mrb[140].mxu0 }
0x20ec   :  { %v6082_v54 = vadd.f32 %v6075_v53, %v5991_v17  ;;  %v11079_v55 = vpop.f32.mrb[141].mxu0  ;;  %v11896_v17 = vld [vmem:[%s15101_s3 + $0x270] sm:$0xff]   ;;  %v11915_v53 = vld [vmem:[%s15101_s3 + $0x2f8] sm:$0xff]  }
0x20ed   :  { %v6078_v58 = vpop.f32.mrb[142].mxu0 }
0x20ee   :  { %v6083_v56 = vadd.f32 %v6078_v58, %v5994_v22  ;;  %v11080_v4 = vpop.f32.mrb[143].mxu0 }
0x210b   :  { %v10271_v59 = vpop.f32.mrb[144].mxu0 }
0x210c   :  { %v10272_v60 = vpop.f32.mrb[145].mxu0 }
0x210d   :  { %v10273_v61 = vadd.f32 %v10272_v60, %v10271_v59  ;;  %v10274_v62 = vpop.f32.mrb[146].mxu0 }
0x210e   :  { %v10275_v63 = vpop.f32.mrb[147].mxu0 }
0x210f   :  { %v6124_v0 = vpack.c.bf16 %v10273_v61, %v10273_v61 }
0x2111   :  { %v6126_v1 = vsel %vm489_vm2, %v6124_v0, 0 }
0x2112   :  { %11082 = vmatpush3.bf16.msra.mxu1 %v6126_v1 }
0x2113   :  { %10279 = vmatprep.subr.bf16.mxu1 %v11883_v2 }
0x2115   :  { %11084 = vmatmul.mubr.msk.bf16.vlgmr.msra.gmra.mrb[144].mxu1 %vm485_vm3, %v11884_v3 }
0x2116   :  { %10280 = vmatpush3.bf16.msra.mxu1 %v11885_v5  ;;  %6203 = vmatprep.mubr.bf16.mxu1 %v13805_v34  ;;  %v11917_v5 = vld [vmem:[%s15101_s3 + $0x340] sm:$0xff]  }
0x2117   :  { %10281 = vmatprep.subr.bf16.mxu1 %v11886_v6  ;;  %v11918_v6 = vld [vmem:[%s15102_s4 + $0x28] sm:$0xff]  }
0x211a   :  { %10282 = vmatpush3.bf16.msra.mxu1 %v11887_v7  ;;  %v11919_v7 = vld [vmem:[%s15101_s3 + $0x300] sm:$0xff]  }
0x211b   :  { %10283 = vmatprep.subr.bf16.mxu1 %v11888_v9  ;;  %v11920_v9 = vld [vmem:[%s15101_s3 + $0x348] sm:$0xff]  }
0x211e   :  { %10284 = vmatpush3.bf16.msra.mxu1 %v11889_v57  ;;  %v11921_v57 = vld [vmem:[%s15101_s3 + $0x308] sm:$0xff]  }
0x211f   :  { %10285 = vmatprep.subr.bf16.mxu1 %v11890_v10  ;;  %v11922_v10 = vld [vmem:[%s15101_s3 + $0x350] sm:$0xff]  }
0x2122   :  { %10286 = vmatpush3.bf16.msra.mxu1 %v11891_v11  ;;  %v11923_v11 = vld [vmem:[%s15101_s3 + $0x310] sm:$0xff]  }
0x2123   :  { %10287 = vmatprep.subr.bf16.mxu1 %v11892_v12  ;;  %v11924_v12 = vld [vmem:[%s15101_s3 + $0x358] sm:$0xff]  }
0x2126   :  { %10288 = vmatpush3.bf16.msra.mxu1 %v11893_v13  ;;  %v11925_v13 = vld [vmem:[%s15101_s3 + $0x318] sm:$0xff]  }
0x2127   :  { %10289 = vmatprep.subr.bf16.mxu1 %v11894_v14  ;;  %v11926_v14 = vld [vmem:[%s15101_s3 + $0x360] sm:$0xff]  }
0x212a   :  { %10290 = vmatpush3.bf16.msra.mxu1 %v11895_v15  ;;  %v11927_v15 = vld [vmem:[%s15101_s3 + $0x320] sm:$0xff]  }
0x212b   :  { %10291 = vmatprep.subr.bf16.mxu1 %v11896_v17  ;;  %v11928_v17 = vld [vmem:[%s15101_s3 + $0x368] sm:$0xff]  }
0x212e   :  { %10292 = vmatpush3.bf16.msra.mxu1 %v11897_v18  ;;  %v11929_v18 = vld [vmem:[%s15101_s3 + $0x328] sm:$0xff]  }
0x212f   :  { %10293 = vmatprep.subr.bf16.mxu1 %v11898_v19  ;;  %v11930_v19 = vld [vmem:[%s15101_s3 + $0x370] sm:$0xff]  }
0x2132   :  { %10294 = vmatpush3.bf16.msra.mxu1 %v11899_v20  ;;  %v11931_v20 = vld [vmem:[%s15101_s3 + $0x330] sm:$0xff]  }
0x2133   :  { %11093 = vmatprep.subr.bf16.mxu1 %v12193_v8 }
0x2135   :  { %6204 = vmatmul.mubr.bf16.vlgmr.msra.gmra.mrb[148].mxu1 %v13807_v35 }
0x2136   :  { %11095 = vmatprep.mubr.msk.bf16.mxu1 %vm12194_vm1, %v12193_v8 }
0x21e8   :  { %v6162_v21 = vpop.f32.mrb[144].mxu1 }
0x21e9   :  { %v6169_v22 = vadd.f32 %v6162_v21, %v6082_v54  ;;  %v11085_v23 = vpop.f32.mrb[145].mxu1  ;;  %v11916_v54 = vld [vmem:[%s15101_s3 + $0x2b8] sm:$0xff]  }
0x21ea   :  { %v6165_v24 = vpop.f32.mrb[146].mxu1  ;;  %v11932_v21 = vld [vmem:[%s15101_s3 + $0x378] sm:$0xff]  }
0x21eb   :  { %v6170_v25 = vadd.f32 %v6165_v24, %v6083_v56  ;;  %v11086_v40 = vpop.f32.mrb[147].mxu1 }
0x2208   :  { %v10295_v26 = vpop.f32.mrb[148].mxu1 }
0x2209   :  { %v10296_v27 = vpop.f32.mrb[149].mxu1 }
0x220a   :  { %v10297_v28 = vadd.f32 %v10296_v27, %v10295_v26  ;;  %v10298_v29 = vpop.f32.mrb[150].mxu1 }
0x220b   :  { %v10299_v30 = vpop.f32.mrb[151].mxu1 }
0x220c   :  { %v6211_v32 = vpack.c.bf16 %v10297_v28, %v10297_v28 }
0x220e   :  { %v6213_v33 = vsel %vm489_vm2, %v6211_v32, 0 }
0x220f   :  { %11088 = vmatpush3.bf16.msra.mxu0 %v6213_v33 }
0x2210   :  { %10303 = vmatprep.subr.bf16.mxu0 %v11900_v45 }
0x2212   :  { %11090 = vmatmul.mubr.msk.bf16.vlgmr.msra.gmra.mrb[148].mxu0 %vm485_vm3, %v11901_v37 }
0x2213   :  { %10304 = vmatpush3.bf16.msra.mxu0 %v11902_v38  ;;  %6290 = vmatprep.mubr.bf16.mxu0 %v13805_v34  ;;  %v11934_v38 = vld [vmem:[%s15101_s3 + $0x3c0] sm:$0xff]  }
0x2214   :  { %10305 = vmatprep.subr.bf16.mxu0 %v11903_v39  ;;  %v11935_v39 = vld [vmem:[%s15102_s4 + $0x30] sm:$0xff]  }
0x2217   :  { %10306 = vmatpush3.bf16.msra.mxu0 %v11904_v41  ;;  %v11936_v41 = vld [vmem:[%s15101_s3 + $0x380] sm:$0xff]  }
0x2218   :  { %10307 = vmatprep.subr.bf16.mxu0 %v11905_v42  ;;  %v11937_v42 = vld [vmem:[%s15101_s3 + $0x3c8] sm:$0xff]  }
0x221b   :  { %10308 = vmatpush3.bf16.msra.mxu0 %v11906_v43  ;;  %v11938_v43 = vld [vmem:[%s15101_s3 + $0x388] sm:$0xff]  }
0x221c   :  { %10309 = vmatprep.subr.bf16.mxu0 %v11907_v44  ;;  %v11939_v44 = vld [vmem:[%s15101_s3 + $0x3d0] sm:$0xff]  }
0x221f   :  { %10310 = vmatpush3.bf16.msra.mxu0 %v11908_v46  ;;  %v11940_v46 = vld [vmem:[%s15101_s3 + $0x390] sm:$0xff]  }
0x2220   :  { %10311 = vmatprep.subr.bf16.mxu0 %v11909_v47  ;;  %v11941_v47 = vld [vmem:[%s15101_s3 + $0x3d8] sm:$0xff]  }
0x2223   :  { %10312 = vmatpush3.bf16.msra.mxu0 %v11910_v48  ;;  %v11942_v48 = vld [vmem:[%s15101_s3 + $0x398] sm:$0xff]  }
0x2224   :  { %10313 = vmatprep.subr.bf16.mxu0 %v11911_v49  ;;  %v11943_v49 = vld [vmem:[%s15101_s3 + $0x3e0] sm:$0xff]  }
0x2227   :  { %10314 = vmatpush3.bf16.msra.mxu0 %v11912_v50  ;;  %v11944_v50 = vld [vmem:[%s15101_s3 + $0x3a0] sm:$0xff]  }
0x2228   :  { %10315 = vmatprep.subr.bf16.mxu0 %v11913_v51  ;;  %v11945_v51 = vld [vmem:[%s15101_s3 + $0x3e8] sm:$0xff]  }
0x222b   :  { %10316 = vmatpush3.bf16.msra.mxu0 %v11914_v52  ;;  %v11946_v52 = vld [vmem:[%s15101_s3 + $0x3a8] sm:$0xff]  }
0x222c   :  { %10317 = vmatprep.subr.bf16.mxu0 %v11915_v53  ;;  %v11947_v53 = vld [vmem:[%s15101_s3 + $0x3f0] sm:$0xff]  }
0x222f   :  { %10318 = vmatpush3.bf16.msra.mxu0 %v11916_v54  ;;  %v11948_v54 = vld [vmem:[%s15101_s3 + $0x3b0] sm:$0xff]  }
0x2230   :  { %11099 = vmatprep.subr.bf16.mxu0 %v12193_v8 }
0x2232   :  { %6291 = vmatmul.mubr.bf16.vlgmr.msra.gmra.mrb[152].mxu0 %v13807_v35 }
0x2233   :  { %11101 = vmatprep.mubr.msk.bf16.mxu0 %vm12194_vm1, %v12193_v8 }
0x22e5   :  { %v6249_v55 = vpop.f32.mrb[148].mxu0 }
0x22e6   :  { %v6256_v58 = vadd.f32 %v6249_v55, %v6169_v22  ;;  %v11091_v56 = vpop.f32.mrb[149].mxu0  ;;  %v11933_v22 = vld [vmem:[%s15101_s3 + $0x338] sm:$0xff]  }
0x22e7   :  { %v6252_v4 = vpop.f32.mrb[150].mxu0  ;;  %v11949_v55 = vld [vmem:[%s15101_s3 + $0x3f8] sm:$0xff]  }
0x22e8   :  { %v6257_v59 = vadd.f32 %v6252_v4, %v6170_v25  ;;  %v11092_v60 = vpop.f32.mrb[151].mxu0 }
0x2305   :  { %v10319_v61 = vpop.f32.mrb[152].mxu0 }
0x2306   :  { %v10320_v62 = vpop.f32.mrb[153].mxu0 }
0x2307   :  { %v10321_v63 = vadd.f32 %v10320_v62, %v10319_v61  ;;  %v10322_v0 = vpop.f32.mrb[154].mxu0 }
0x2308   :  { %v10323_v1 = vpop.f32.mrb[155].mxu0 }
0x2309   :  { %v6298_v2 = vpack.c.bf16 %v10321_v63, %v10321_v63 }
0x230b   :  { %v6300_v3 = vsel %vm489_vm2, %v6298_v2, 0 }
0x230c   :  { %11094 = vmatpush3.bf16.msra.mxu1 %v6300_v3 }
0x230d   :  { %10327 = vmatprep.subr.bf16.mxu1 %v11917_v5 }
0x230f   :  { %11096 = vmatmul.mubr.msk.bf16.vlgmr.msra.gmra.mrb[152].mxu1 %vm485_vm3, %v11918_v6 }
0x2310   :  { %10328 = vmatpush3.bf16.msra.mxu1 %v11919_v7  ;;  %6377 = vmatprep.mubr.bf16.mxu1 %v13805_v34  ;;  %v11951_v7 = vld [vmem:[%s15101_s3 + $0x440] sm:$0xff]  }
0x2311   :  { %10329 = vmatprep.subr.bf16.mxu1 %v11920_v9  ;;  %v11952_v9 = vld [vmem:[%s15102_s4 + $0x38] sm:$0xff]  }
0x2314   :  { %10330 = vmatpush3.bf16.msra.mxu1 %v11921_v57  ;;  %v11953_v57 = vld [vmem:[%s15101_s3 + $0x400] sm:$0xff]  }
0x2315   :  { %10331 = vmatprep.subr.bf16.mxu1 %v11922_v10  ;;  %v11954_v10 = vld [vmem:[%s15101_s3 + $0x448] sm:$0xff]  }
0x2318   :  { %10332 = vmatpush3.bf16.msra.mxu1 %v11923_v11  ;;  %v11955_v11 = vld [vmem:[%s15101_s3 + $0x408] sm:$0xff]  }
0x2319   :  { %10333 = vmatprep.subr.bf16.mxu1 %v11924_v12  ;;  %v11956_v12 = vld [vmem:[%s15101_s3 + $0x450] sm:$0xff]  }
0x231c   :  { %10334 = vmatpush3.bf16.msra.mxu1 %v11925_v13  ;;  %v11957_v13 = vld [vmem:[%s15101_s3 + $0x410] sm:$0xff]  }
0x231d   :  { %10335 = vmatprep.subr.bf16.mxu1 %v11926_v14  ;;  %v11958_v14 = vld [vmem:[%s15101_s3 + $0x458] sm:$0xff]  }
0x2320   :  { %10336 = vmatpush3.bf16.msra.mxu1 %v11927_v15  ;;  %v11959_v15 = vld [vmem:[%s15101_s3 + $0x418] sm:$0xff]  }
0x2321   :  { %10337 = vmatprep.subr.bf16.mxu1 %v11928_v17  ;;  %v11960_v17 = vld [vmem:[%s15101_s3 + $0x460] sm:$0xff]  }
0x2324   :  { %10338 = vmatpush3.bf16.msra.mxu1 %v11929_v18  ;;  %v11961_v18 = vld [vmem:[%s15101_s3 + $0x420] sm:$0xff]  }
0x2325   :  { %10339 = vmatprep.subr.bf16.mxu1 %v11930_v19  ;;  %v11962_v19 = vld [vmem:[%s15101_s3 + $0x468] sm:$0xff]  }
0x2328   :  { %10340 = vmatpush3.bf16.msra.mxu1 %v11931_v20  ;;  %v11963_v20 = vld [vmem:[%s15101_s3 + $0x428] sm:$0xff]  }
0x2329   :  { %10341 = vmatprep.subr.bf16.mxu1 %v11932_v21  ;;  %v11964_v21 = vld [vmem:[%s15101_s3 + $0x470] sm:$0xff]  }
0x232c   :  { %10342 = vmatpush3.bf16.msra.mxu1 %v11933_v22  ;;  %v11965_v22 = vld [vmem:[%s15101_s3 + $0x430] sm:$0xff]  }
0x232d   :  { %11105 = vmatprep.subr.bf16.mxu1 %v12193_v8 }
0x232f   :  { %6378 = vmatmul.mubr.bf16.vlgmr.msra.gmra.mrb[156].mxu1 %v13807_v35 }
0x2330   :  { %11107 = vmatprep.mubr.msk.bf16.mxu1 %vm12194_vm1, %v12193_v8 }
0x23e2   :  { %v6336_v23 = vpop.f32.mrb[152].mxu1 }
0x23e3   :  { %v6343_v24 = vadd.f32 %v6336_v23, %v6256_v58  ;;  %v11097_v25 = vpop.f32.mrb[153].mxu1  ;;  %v11950_v58 = vld [vmem:[%s15101_s3 + $0x3b8] sm:$0xff]  }
0x23e4   :  { %v6339_v40 = vpop.f32.mrb[154].mxu1  ;;  %v11966_v23 = vld [vmem:[%s15101_s3 + $0x478] sm:$0xff]  }
0x23e5   :  { %v6344_v26 = vadd.f32 %v6339_v40, %v6257_v59  ;;  %v11098_v27 = vpop.f32.mrb[155].mxu1 }
0x2402   :  { %v10343_v28 = vpop.f32.mrb[156].mxu1 }
0x2403   :  { %v10344_v29 = vpop.f32.mrb[157].mxu1 }
0x2404   :  { %v10345_v30 = vadd.f32 %v10344_v29, %v10343_v28  ;;  %v10346_v32 = vpop.f32.mrb[158].mxu1 }
0x2405   :  { %v10347_v33 = vpop.f32.mrb[159].mxu1 }
0x2406   :  { %v6385_v45 = vpack.c.bf16 %v10345_v30, %v10345_v30 }
0x2408   :  { %v6387_v37 = vsel %vm489_vm2, %v6385_v45, 0 }
0x2409   :  { %11100 = vmatpush3.bf16.msra.mxu0 %v6387_v37 }
0x240a   :  { %10351 = vmatprep.subr.bf16.mxu0 %v11934_v38 }
0x240c   :  { %11102 = vmatmul.mubr.msk.bf16.vlgmr.msra.gmra.mrb[156].mxu0 %vm485_vm3, %v11935_v39 }
0x240d   :  { %10352 = vmatpush3.bf16.msra.mxu0 %v11936_v41  ;;  %6464 = vmatprep.mubr.bf16.mxu0 %v13805_v34  ;;  %v11968_v41 = vld [vmem:[%s15101_s3 + $0x4c0] sm:$0xff]  }
0x240e   :  { %10353 = vmatprep.subr.bf16.mxu0 %v11937_v42  ;;  %v11969_v42 = vld [vmem:[%s15102_s4 + $0x40] sm:$0xff]  }
0x2411   :  { %10354 = vmatpush3.bf16.msra.mxu0 %v11938_v43  ;;  %v11970_v43 = vld [vmem:[%s15101_s3 + $0x480] sm:$0xff]  }
0x2412   :  { %10355 = vmatprep.subr.bf16.mxu0 %v11939_v44  ;;  %v11971_v44 = vld [vmem:[%s15101_s3 + $0x4c8] sm:$0xff]  }
0x2415   :  { %10356 = vmatpush3.bf16.msra.mxu0 %v11940_v46  ;;  %v11972_v46 = vld [vmem:[%s15101_s3 + $0x488] sm:$0xff]  }
0x2416   :  { %10357 = vmatprep.subr.bf16.mxu0 %v11941_v47  ;;  %v11973_v47 = vld [vmem:[%s15101_s3 + $0x4d0] sm:$0xff]  }
0x2419   :  { %10358 = vmatpush3.bf16.msra.mxu0 %v11942_v48  ;;  %v11974_v48 = vld [vmem:[%s15101_s3 + $0x490] sm:$0xff]  }
0x241a   :  { %10359 = vmatprep.subr.bf16.mxu0 %v11943_v49  ;;  %v11975_v49 = vld [vmem:[%s15101_s3 + $0x4d8] sm:$0xff]  }
0x241d   :  { %10360 = vmatpush3.bf16.msra.mxu0 %v11944_v50  ;;  %v11976_v50 = vld [vmem:[%s15101_s3 + $0x498] sm:$0xff]  }
0x241e   :  { %10361 = vmatprep.subr.bf16.mxu0 %v11945_v51  ;;  %v11977_v51 = vld [vmem:[%s15101_s3 + $0x4e0] sm:$0xff]  }
0x2421   :  { %10362 = vmatpush3.bf16.msra.mxu0 %v11946_v52  ;;  %v11978_v52 = vld [vmem:[%s15101_s3 + $0x4a0] sm:$0xff]  }
0x2422   :  { %10363 = vmatprep.subr.bf16.mxu0 %v11947_v53  ;;  %v11979_v53 = vld [vmem:[%s15101_s3 + $0x4e8] sm:$0xff]  }
0x2425   :  { %10364 = vmatpush3.bf16.msra.mxu0 %v11948_v54  ;;  %v11980_v54 = vld [vmem:[%s15101_s3 + $0x4a8] sm:$0xff]  }
0x2426   :  { %10365 = vmatprep.subr.bf16.mxu0 %v11949_v55  ;;  %v11981_v55 = vld [vmem:[%s15101_s3 + $0x4f0] sm:$0xff]  }
0x2429   :  { %10366 = vmatpush3.bf16.msra.mxu0 %v11950_v58  ;;  %v11982_v58 = vld [vmem:[%s15101_s3 + $0x4b0] sm:$0xff]  }
0x242a   :  { %11111 = vmatprep.subr.bf16.mxu0 %v12193_v8 }
0x242c   :  { %6465 = vmatmul.mubr.bf16.vlgmr.msra.gmra.mrb[160].mxu0 %v13807_v35 }
0x242d   :  { %11113 = vmatprep.mubr.msk.bf16.mxu0 %vm12194_vm1, %v12193_v8 }
0x24df   :  { %v6423_v56 = vpop.f32.mrb[156].mxu0 }
0x24e0   :  { %v6430_v4 = vadd.f32 %v6423_v56, %v6343_v24  ;;  %v11103_v59 = vpop.f32.mrb[157].mxu0  ;;  %v11967_v24 = vld [vmem:[%s15101_s3 + $0x438] sm:$0xff]  }
0x24e1   :  { %v6426_v60 = vpop.f32.mrb[158].mxu0  ;;  %v11983_v56 = vld [vmem:[%s15101_s3 + $0x4f8] sm:$0xff]  }
0x24e2   :  { %v6431_v61 = vadd.f32 %v6426_v60, %v6344_v26  ;;  %v11104_v62 = vpop.f32.mrb[159].mxu0 }
0x24ff   :  { %v10367_v63 = vpop.f32.mrb[160].mxu0 }
0x2500   :  { %v10368_v0 = vpop.f32.mrb[161].mxu0 }
0x2501   :  { %v10369_v1 = vadd.f32 %v10368_v0, %v10367_v63  ;;  %v10370_v2 = vpop.f32.mrb[162].mxu0 }
0x2502   :  { %v10371_v3 = vpop.f32.mrb[163].mxu0 }
0x2503   :  { %v6472_v5 = vpack.c.bf16 %v10369_v1, %v10369_v1 }
0x2505   :  { %v6474_v6 = vsel %vm489_vm2, %v6472_v5, 0 }
0x2506   :  { %11106 = vmatpush3.bf16.msra.mxu1 %v6474_v6 }
0x2507   :  { %10375 = vmatprep.subr.bf16.mxu1 %v11951_v7 }
0x2509   :  { %11108 = vmatmul.mubr.msk.bf16.vlgmr.msra.gmra.mrb[160].mxu1 %vm485_vm3, %v11952_v9 }
0x250a   :  { %10376 = vmatpush3.bf16.msra.mxu1 %v11953_v57  ;;  %6551 = vmatprep.mubr.bf16.mxu1 %v13805_v34  ;;  %v11985_v57 = vld [vmem:[%s15101_s3 + $0x540] sm:$0xff]  }
0x250b   :  { %10377 = vmatprep.subr.bf16.mxu1 %v11954_v10  ;;  %v11986_v10 = vld [vmem:[%s15102_s4 + $0x48] sm:$0xff]  }
0x250e   :  { %10378 = vmatpush3.bf16.msra.mxu1 %v11955_v11  ;;  %v11987_v11 = vld [vmem:[%s15101_s3 + $0x500] sm:$0xff]  }
0x250f   :  { %10379 = vmatprep.subr.bf16.mxu1 %v11956_v12  ;;  %v11988_v12 = vld [vmem:[%s15101_s3 + $0x548] sm:$0xff]  }
0x2512   :  { %10380 = vmatpush3.bf16.msra.mxu1 %v11957_v13  ;;  %v11989_v13 = vld [vmem:[%s15101_s3 + $0x508] sm:$0xff]  }
0x2513   :  { %10381 = vmatprep.subr.bf16.mxu1 %v11958_v14  ;;  %v11990_v14 = vld [vmem:[%s15101_s3 + $0x550] sm:$0xff]  }
0x2516   :  { %10382 = vmatpush3.bf16.msra.mxu1 %v11959_v15  ;;  %v11991_v15 = vld [vmem:[%s15101_s3 + $0x510] sm:$0xff]  }
0x2517   :  { %10383 = vmatprep.subr.bf16.mxu1 %v11960_v17  ;;  %v11992_v17 = vld [vmem:[%s15101_s3 + $0x558] sm:$0xff]  }
0x251a   :  { %10384 = vmatpush3.bf16.msra.mxu1 %v11961_v18  ;;  %v11993_v18 = vld [vmem:[%s15101_s3 + $0x518] sm:$0xff]  }
0x251b   :  { %10385 = vmatprep.subr.bf16.mxu1 %v11962_v19  ;;  %v11994_v19 = vld [vmem:[%s15101_s3 + $0x560] sm:$0xff]  }
0x251e   :  { %10386 = vmatpush3.bf16.msra.mxu1 %v11963_v20  ;;  %v11995_v20 = vld [vmem:[%s15101_s3 + $0x520] sm:$0xff]  }
0x251f   :  { %10387 = vmatprep.subr.bf16.mxu1 %v11964_v21  ;;  %v11996_v21 = vld [vmem:[%s15101_s3 + $0x568] sm:$0xff]  }
0x2522   :  { %10388 = vmatpush3.bf16.msra.mxu1 %v11965_v22  ;;  %v11997_v22 = vld [vmem:[%s15101_s3 + $0x528] sm:$0xff]  }
0x2523   :  { %10389 = vmatprep.subr.bf16.mxu1 %v11966_v23  ;;  %v11998_v23 = vld [vmem:[%s15101_s3 + $0x570] sm:$0xff]  }
0x2526   :  { %10390 = vmatpush3.bf16.msra.mxu1 %v11967_v24  ;;  %v11999_v24 = vld [vmem:[%s15101_s3 + $0x530] sm:$0xff]  }
0x2527   :  { %11117 = vmatprep.subr.bf16.mxu1 %v12193_v8 }
0x2529   :  { %6552 = vmatmul.mubr.bf16.vlgmr.msra.gmra.mrb[164].mxu1 %v13807_v35 }
0x252a   :  { %11119 = vmatprep.mubr.msk.bf16.mxu1 %vm12194_vm1, %v12193_v8 }
0x25dc   :  { %v6510_v25 = vpop.f32.mrb[160].mxu1 }
0x25dd   :  { %v6517_v40 = vadd.f32 %v6510_v25, %v6430_v4  ;;  %v11109_v26 = vpop.f32.mrb[161].mxu1  ;;  %v11984_v4 = vld [vmem:[%s15101_s3 + $0x4b8] sm:$0xff]  }
0x25de   :  { %v6513_v27 = vpop.f32.mrb[162].mxu1  ;;  %v12000_v25 = vld [vmem:[%s15101_s3 + $0x578] sm:$0xff]  }
0x25df   :  { %v6518_v28 = vadd.f32 %v6513_v27, %v6431_v61  ;;  %v11110_v29 = vpop.f32.mrb[163].mxu1 }
0x25fc   :  { %v10391_v30 = vpop.f32.mrb[164].mxu1 }
0x25fd   :  { %v10392_v32 = vpop.f32.mrb[165].mxu1 }
0x25fe   :  { %v10393_v33 = vadd.f32 %v10392_v32, %v10391_v30  ;;  %v10394_v45 = vpop.f32.mrb[166].mxu1 }
0x25ff   :  { %v10395_v37 = vpop.f32.mrb[167].mxu1 }
0x2600   :  { %v6559_v38 = vpack.c.bf16 %v10393_v33, %v10393_v33 }
0x2602   :  { %v6561_v39 = vsel %vm489_vm2, %v6559_v38, 0 }
0x2603   :  { %11112 = vmatpush3.bf16.msra.mxu0 %v6561_v39 }
0x2604   :  { %10399 = vmatprep.subr.bf16.mxu0 %v11968_v41 }
0x2606   :  { %11114 = vmatmul.mubr.msk.bf16.vlgmr.msra.gmra.mrb[164].mxu0 %vm485_vm3, %v11969_v42 }
0x2607   :  { %10400 = vmatpush3.bf16.msra.mxu0 %v11970_v43  ;;  %6638 = vmatprep.mubr.bf16.mxu0 %v13805_v34  ;;  %v12002_v43 = vld [vmem:[%s15101_s3 + $0x5c0] sm:$0xff]  }
0x2608   :  { %10401 = vmatprep.subr.bf16.mxu0 %v11971_v44  ;;  %v12003_v44 = vld [vmem:[%s15102_s4 + $0x50] sm:$0xff]  }
0x260b   :  { %10402 = vmatpush3.bf16.msra.mxu0 %v11972_v46  ;;  %v12004_v46 = vld [vmem:[%s15101_s3 + $0x580] sm:$0xff]  }
0x260c   :  { %10403 = vmatprep.subr.bf16.mxu0 %v11973_v47  ;;  %v12005_v47 = vld [vmem:[%s15101_s3 + $0x5c8] sm:$0xff]  }
0x260f   :  { %10404 = vmatpush3.bf16.msra.mxu0 %v11974_v48  ;;  %v12006_v48 = vld [vmem:[%s15101_s3 + $0x588] sm:$0xff]  }
0x2610   :  { %10405 = vmatprep.subr.bf16.mxu0 %v11975_v49  ;;  %v12007_v49 = vld [vmem:[%s15101_s3 + $0x5d0] sm:$0xff]  }
0x2613   :  { %10406 = vmatpush3.bf16.msra.mxu0 %v11976_v50  ;;  %v12008_v50 = vld [vmem:[%s15101_s3 + $0x590] sm:$0xff]  }
0x2614   :  { %10407 = vmatprep.subr.bf16.mxu0 %v11977_v51  ;;  %v12009_v51 = vld [vmem:[%s15101_s3 + $0x5d8] sm:$0xff]  }
0x2617   :  { %10408 = vmatpush3.bf16.msra.mxu0 %v11978_v52  ;;  %v12010_v52 = vld [vmem:[%s15101_s3 + $0x598] sm:$0xff]  }
0x2618   :  { %10409 = vmatprep.subr.bf16.mxu0 %v11979_v53  ;;  %v12011_v53 = vld [vmem:[%s15101_s3 + $0x5e0] sm:$0xff]  }
0x261b   :  { %10410 = vmatpush3.bf16.msra.mxu0 %v11980_v54  ;;  %v12012_v54 = vld [vmem:[%s15101_s3 + $0x5a0] sm:$0xff]  }
0x261c   :  { %10411 = vmatprep.subr.bf16.mxu0 %v11981_v55  ;;  %v12013_v55 = vld [vmem:[%s15101_s3 + $0x5e8] sm:$0xff]  }
0x261f   :  { %10412 = vmatpush3.bf16.msra.mxu0 %v11982_v58  ;;  %v12014_v58 = vld [vmem:[%s15101_s3 + $0x5a8] sm:$0xff]  }
0x2620   :  { %10413 = vmatprep.subr.bf16.mxu0 %v11983_v56  ;;  %v12015_v56 = vld [vmem:[%s15101_s3 + $0x5f0] sm:$0xff]  }
0x2623   :  { %10414 = vmatpush3.bf16.msra.mxu0 %v11984_v4  ;;  %v12016_v4 = vld [vmem:[%s15101_s3 + $0x5b0] sm:$0xff]  }
0x2624   :  { %11123 = vmatprep.subr.bf16.mxu0 %v12193_v8 }
0x2626   :  { %6639 = vmatmul.mubr.bf16.vlgmr.msra.gmra.mrb[168].mxu0 %v13807_v35 }
0x2627   :  { %11125 = vmatprep.mubr.msk.bf16.mxu0 %vm12194_vm1, %v12193_v8 }
0x26d9   :  { %v6597_v59 = vpop.f32.mrb[164].mxu0 }
0x26da   :  { %v6604_v60 = vadd.f32 %v6597_v59, %v6517_v40  ;;  %v11115_v61 = vpop.f32.mrb[165].mxu0  ;;  %v12001_v40 = vld [vmem:[%s15101_s3 + $0x538] sm:$0xff]  }
0x26db   :  { %v6600_v62 = vpop.f32.mrb[166].mxu0  ;;  %v12017_v59 = vld [vmem:[%s15101_s3 + $0x5f8] sm:$0xff]  }
0x26dc   :  { %v6605_v63 = vadd.f32 %v6600_v62, %v6518_v28  ;;  %v11116_v0 = vpop.f32.mrb[167].mxu0 }
0x26f9   :  { %v10415_v1 = vpop.f32.mrb[168].mxu0 }
0x26fa   :  { %v10416_v2 = vpop.f32.mrb[169].mxu0 }
0x26fb   :  { %v10417_v3 = vadd.f32 %v10416_v2, %v10415_v1  ;;  %v10418_v5 = vpop.f32.mrb[170].mxu0 }
0x26fc   :  { %v10419_v6 = vpop.f32.mrb[171].mxu0 }
0x26fd   :  { %v6646_v7 = vpack.c.bf16 %v10417_v3, %v10417_v3 }
0x26ff   :  { %v6648_v9 = vsel %vm489_vm2, %v6646_v7, 0 }
0x2700   :  { %11118 = vmatpush3.bf16.msra.mxu1 %v6648_v9 }
0x2701   :  { %10423 = vmatprep.subr.bf16.mxu1 %v11985_v57 }
0x2703   :  { %11120 = vmatmul.mubr.msk.bf16.vlgmr.msra.gmra.mrb[168].mxu1 %vm485_vm3, %v11986_v10 }
0x2704   :  { %10424 = vmatpush3.bf16.msra.mxu1 %v11987_v11  ;;  %6725 = vmatprep.mubr.bf16.mxu1 %v13805_v34  ;;  %v12019_v11 = vld [vmem:[%s15101_s3 + $0x640] sm:$0xff]  }
0x2705   :  { %10425 = vmatprep.subr.bf16.mxu1 %v11988_v12  ;;  %v12020_v12 = vld [vmem:[%s15102_s4 + $0x58] sm:$0xff]  }
0x2708   :  { %10426 = vmatpush3.bf16.msra.mxu1 %v11989_v13  ;;  %v12021_v13 = vld [vmem:[%s15101_s3 + $0x600] sm:$0xff]  }
0x2709   :  { %10427 = vmatprep.subr.bf16.mxu1 %v11990_v14  ;;  %v12022_v14 = vld [vmem:[%s15101_s3 + $0x648] sm:$0xff]  }
0x270c   :  { %10428 = vmatpush3.bf16.msra.mxu1 %v11991_v15  ;;  %v12023_v15 = vld [vmem:[%s15101_s3 + $0x608] sm:$0xff]  }
0x270d   :  { %10429 = vmatprep.subr.bf16.mxu1 %v11992_v17  ;;  %v12024_v17 = vld [vmem:[%s15101_s3 + $0x650] sm:$0xff]  }
0x2710   :  { %10430 = vmatpush3.bf16.msra.mxu1 %v11993_v18  ;;  %v12025_v18 = vld [vmem:[%s15101_s3 + $0x610] sm:$0xff]  }
0x2711   :  { %10431 = vmatprep.subr.bf16.mxu1 %v11994_v19  ;;  %v12026_v19 = vld [vmem:[%s15101_s3 + $0x658] sm:$0xff]  }
0x2714   :  { %10432 = vmatpush3.bf16.msra.mxu1 %v11995_v20  ;;  %v12027_v20 = vld [vmem:[%s15101_s3 + $0x618] sm:$0xff]  }
0x2715   :  { %10433 = vmatprep.subr.bf16.mxu1 %v11996_v21  ;;  %v12028_v21 = vld [vmem:[%s15101_s3 + $0x660] sm:$0xff]  }
0x2718   :  { %10434 = vmatpush3.bf16.msra.mxu1 %v11997_v22  ;;  %v12029_v22 = vld [vmem:[%s15101_s3 + $0x620] sm:$0xff]  }
0x2719   :  { %10435 = vmatprep.subr.bf16.mxu1 %v11998_v23  ;;  %v12030_v23 = vld [vmem:[%s15101_s3 + $0x668] sm:$0xff]  }
0x271c   :  { %10436 = vmatpush3.bf16.msra.mxu1 %v11999_v24  ;;  %v12031_v24 = vld [vmem:[%s15101_s3 + $0x628] sm:$0xff]  }
0x271d   :  { %10437 = vmatprep.subr.bf16.mxu1 %v12000_v25  ;;  %v12032_v25 = vld [vmem:[%s15101_s3 + $0x670] sm:$0xff]  }
0x2720   :  { %10438 = vmatpush3.bf16.msra.mxu1 %v12001_v40  ;;  %v12033_v40 = vld [vmem:[%s15101_s3 + $0x630] sm:$0xff]  }
0x2721   :  { %11129 = vmatprep.subr.bf16.mxu1 %v12193_v8 }
0x2723   :  { %6726 = vmatmul.mubr.bf16.vlgmr.msra.gmra.mrb[172].mxu1 %v13807_v35 }
0x2724   :  { %11131 = vmatprep.mubr.msk.bf16.mxu1 %vm12194_vm1, %v12193_v8 }
0x27d6   :  { %v6684_v26 = vpop.f32.mrb[168].mxu1 }
0x27d7   :  { %v6691_v27 = vadd.f32 %v6684_v26, %v6604_v60  ;;  %v11121_v28 = vpop.f32.mrb[169].mxu1  ;;  %v12018_v60 = vld [vmem:[%s15101_s3 + $0x5b8] sm:$0xff]  }
0x27d8   :  { %v6687_v29 = vpop.f32.mrb[170].mxu1  ;;  %v12034_v26 = vld [vmem:[%s15101_s3 + $0x678] sm:$0xff]  }
0x27d9   :  { %v6692_v30 = vadd.f32 %v6687_v29, %v6605_v63  ;;  %v11122_v32 = vpop.f32.mrb[171].mxu1 }
0x27f6   :  { %v10439_v33 = vpop.f32.mrb[172].mxu1 }
0x27f7   :  { %v10440_v45 = vpop.f32.mrb[173].mxu1 }
0x27f8   :  { %v10441_v37 = vadd.f32 %v10440_v45, %v10439_v33  ;;  %v10442_v38 = vpop.f32.mrb[174].mxu1 }
0x27f9   :  { %v10443_v39 = vpop.f32.mrb[175].mxu1 }
0x27fa   :  { %v6733_v41 = vpack.c.bf16 %v10441_v37, %v10441_v37 }
0x27fc   :  { %v6735_v42 = vsel %vm489_vm2, %v6733_v41, 0 }
0x27fd   :  { %11124 = vmatpush3.bf16.msra.mxu0 %v6735_v42 }
0x27fe   :  { %10447 = vmatprep.subr.bf16.mxu0 %v12002_v43 }
0x2800   :  { %11126 = vmatmul.mubr.msk.bf16.vlgmr.msra.gmra.mrb[172].mxu0 %vm485_vm3, %v12003_v44 }
0x2801   :  { %10448 = vmatpush3.bf16.msra.mxu0 %v12004_v46  ;;  %6812 = vmatprep.mubr.bf16.mxu0 %v13805_v34  ;;  %v12036_v46 = vld [vmem:[%s15101_s3 + $0x6c0] sm:$0xff]  }
0x2802   :  { %10449 = vmatprep.subr.bf16.mxu0 %v12005_v47  ;;  %v12037_v47 = vld [vmem:[%s15102_s4 + $0x60] sm:$0xff]  }
0x2805   :  { %10450 = vmatpush3.bf16.msra.mxu0 %v12006_v48  ;;  %v12038_v48 = vld [vmem:[%s15101_s3 + $0x680] sm:$0xff]  }
0x2806   :  { %10451 = vmatprep.subr.bf16.mxu0 %v12007_v49  ;;  %v12039_v49 = vld [vmem:[%s15101_s3 + $0x6c8] sm:$0xff]  }
0x2809   :  { %10452 = vmatpush3.bf16.msra.mxu0 %v12008_v50  ;;  %v12040_v50 = vld [vmem:[%s15101_s3 + $0x688] sm:$0xff]  }
0x280a   :  { %10453 = vmatprep.subr.bf16.mxu0 %v12009_v51  ;;  %v12041_v51 = vld [vmem:[%s15101_s3 + $0x6d0] sm:$0xff]  }
0x280d   :  { %10454 = vmatpush3.bf16.msra.mxu0 %v12010_v52  ;;  %v12042_v52 = vld [vmem:[%s15101_s3 + $0x690] sm:$0xff]  }
0x280e   :  { %10455 = vmatprep.subr.bf16.mxu0 %v12011_v53  ;;  %v12043_v53 = vld [vmem:[%s15101_s3 + $0x6d8] sm:$0xff]  }
0x2811   :  { %10456 = vmatpush3.bf16.msra.mxu0 %v12012_v54  ;;  %v12044_v54 = vld [vmem:[%s15101_s3 + $0x698] sm:$0xff]  }
0x2812   :  { %10457 = vmatprep.subr.bf16.mxu0 %v12013_v55  ;;  %v12045_v55 = vld [vmem:[%s15101_s3 + $0x6e0] sm:$0xff]  }
0x2815   :  { %10458 = vmatpush3.bf16.msra.mxu0 %v12014_v58  ;;  %v12046_v58 = vld [vmem:[%s15101_s3 + $0x6a0] sm:$0xff]  }
0x2816   :  { %10459 = vmatprep.subr.bf16.mxu0 %v12015_v56  ;;  %v12047_v56 = vld [vmem:[%s15101_s3 + $0x6e8] sm:$0xff]  }
0x2819   :  { %10460 = vmatpush3.bf16.msra.mxu0 %v12016_v4  ;;  %v12048_v4 = vld [vmem:[%s15101_s3 + $0x6a8] sm:$0xff]  }
0x281a   :  { %10461 = vmatprep.subr.bf16.mxu0 %v12017_v59  ;;  %v12049_v59 = vld [vmem:[%s15101_s3 + $0x6f0] sm:$0xff]  }
0x281d   :  { %10462 = vmatpush3.bf16.msra.mxu0 %v12018_v60  ;;  %v12050_v60 = vld [vmem:[%s15101_s3 + $0x6b0] sm:$0xff]  }
0x281e   :  { %11135 = vmatprep.subr.bf16.mxu0 %v12193_v8 }
0x2820   :  { %6813 = vmatmul.mubr.bf16.vlgmr.msra.gmra.mrb[176].mxu0 %v13807_v35 }
0x2821   :  { %11137 = vmatprep.mubr.msk.bf16.mxu0 %vm12194_vm1, %v12193_v8 }
0x28d3   :  { %v6771_v61 = vpop.f32.mrb[172].mxu0 }
0x28d4   :  { %v6778_v62 = vadd.f32 %v6771_v61, %v6691_v27  ;;  %v11127_v63 = vpop.f32.mrb[173].mxu0  ;;  %v12035_v27 = vld [vmem:[%s15101_s3 + $0x638] sm:$0xff]  }
0x28d5   :  { %v6774_v0 = vpop.f32.mrb[174].mxu0  ;;  %v12051_v61 = vld [vmem:[%s15101_s3 + $0x6f8] sm:$0xff]  }
0x28d6   :  { %v6779_v1 = vadd.f32 %v6774_v0, %v6692_v30  ;;  %v11128_v2 = vpop.f32.mrb[175].mxu0 }
0x28f3   :  { %v10463_v3 = vpop.f32.mrb[176].mxu0 }
0x28f4   :  { %v10464_v5 = vpop.f32.mrb[177].mxu0 }
0x28f5   :  { %v10465_v6 = vadd.f32 %v10464_v5, %v10463_v3  ;;  %v10466_v7 = vpop.f32.mrb[178].mxu0 }
0x28f6   :  { %v10467_v9 = vpop.f32.mrb[179].mxu0 }
0x28f7   :  { %v6820_v57 = vpack.c.bf16 %v10465_v6, %v10465_v6 }
0x28f9   :  { %v6822_v10 = vsel %vm489_vm2, %v6820_v57, 0 }
0x28fa   :  { %11130 = vmatpush3.bf16.msra.mxu1 %v6822_v10 }
0x28fb   :  { %10471 = vmatprep.subr.bf16.mxu1 %v12019_v11 }
0x28fd   :  { %11132 = vmatmul.mubr.msk.bf16.vlgmr.msra.gmra.mrb[176].mxu1 %vm485_vm3, %v12020_v12 }
0x28fe   :  { %10472 = vmatpush3.bf16.msra.mxu1 %v12021_v13  ;;  %6899 = vmatprep.mubr.bf16.mxu1 %v13805_v34  ;;  %v12053_v13 = vld [vmem:[%s15101_s3 + $0x740] sm:$0xff]  }
0x28ff   :  { %10473 = vmatprep.subr.bf16.mxu1 %v12022_v14  ;;  %v12054_v14 = vld [vmem:[%s15102_s4 + $0x68] sm:$0xff]  }
0x2902   :  { %10474 = vmatpush3.bf16.msra.mxu1 %v12023_v15  ;;  %v12055_v15 = vld [vmem:[%s15101_s3 + $0x700] sm:$0xff]  }
0x2903   :  { %10475 = vmatprep.subr.bf16.mxu1 %v12024_v17  ;;  %v12056_v17 = vld [vmem:[%s15101_s3 + $0x748] sm:$0xff]  }
0x2906   :  { %10476 = vmatpush3.bf16.msra.mxu1 %v12025_v18  ;;  %v12057_v18 = vld [vmem:[%s15101_s3 + $0x708] sm:$0xff]  }
0x2907   :  { %10477 = vmatprep.subr.bf16.mxu1 %v12026_v19  ;;  %v12058_v19 = vld [vmem:[%s15101_s3 + $0x750] sm:$0xff]  }
0x290a   :  { %10478 = vmatpush3.bf16.msra.mxu1 %v12027_v20  ;;  %v12059_v20 = vld [vmem:[%s15101_s3 + $0x710] sm:$0xff]  }
0x290b   :  { %10479 = vmatprep.subr.bf16.mxu1 %v12028_v21  ;;  %v12060_v21 = vld [vmem:[%s15101_s3 + $0x758] sm:$0xff]  }
0x290e   :  { %10480 = vmatpush3.bf16.msra.mxu1 %v12029_v22  ;;  %v12061_v22 = vld [vmem:[%s15101_s3 + $0x718] sm:$0xff]  }
0x290f   :  { %10481 = vmatprep.subr.bf16.mxu1 %v12030_v23  ;;  %v12062_v23 = vld [vmem:[%s15101_s3 + $0x760] sm:$0xff]  }
0x2912   :  { %10482 = vmatpush3.bf16.msra.mxu1 %v12031_v24  ;;  %v12063_v24 = vld [vmem:[%s15101_s3 + $0x720] sm:$0xff]  }
0x2913   :  { %10483 = vmatprep.subr.bf16.mxu1 %v12032_v25  ;;  %v12064_v25 = vld [vmem:[%s15101_s3 + $0x768] sm:$0xff]  }
0x2916   :  { %10484 = vmatpush3.bf16.msra.mxu1 %v12033_v40  ;;  %v12065_v40 = vld [vmem:[%s15101_s3 + $0x728] sm:$0xff]  }
0x2917   :  { %10485 = vmatprep.subr.bf16.mxu1 %v12034_v26  ;;  %v12066_v26 = vld [vmem:[%s15101_s3 + $0x770] sm:$0xff]  }
0x291a   :  { %10486 = vmatpush3.bf16.msra.mxu1 %v12035_v27  ;;  %v12067_v27 = vld [vmem:[%s15101_s3 + $0x730] sm:$0xff]  }
0x291b   :  { %11141 = vmatprep.subr.bf16.mxu1 %v12193_v8 }
0x291d   :  { %6900 = vmatmul.mubr.bf16.vlgmr.msra.gmra.mrb[180].mxu1 %v13807_v35 }
0x291e   :  { %11143 = vmatprep.mubr.msk.bf16.mxu1 %vm12194_vm1, %v12193_v8 }
0x29d0   :  { %v6858_v28 = vpop.f32.mrb[176].mxu1 }
0x29d1   :  { %v6865_v29 = vadd.f32 %v6858_v28, %v6778_v62  ;;  %v11133_v30 = vpop.f32.mrb[177].mxu1  ;;  %v12052_v62 = vld [vmem:[%s15101_s3 + $0x6b8] sm:$0xff]  }
0x29d2   :  { %v6861_v32 = vpop.f32.mrb[178].mxu1  ;;  %v12068_v28 = vld [vmem:[%s15101_s3 + $0x778] sm:$0xff]  }
0x29d3   :  { %v6866_v33 = vadd.f32 %v6861_v32, %v6779_v1  ;;  %v11134_v45 = vpop.f32.mrb[179].mxu1 }
0x29f0   :  { %v10487_v37 = vpop.f32.mrb[180].mxu1 }
0x29f1   :  { %v10488_v38 = vpop.f32.mrb[181].mxu1 }
0x29f2   :  { %v10489_v39 = vadd.f32 %v10488_v38, %v10487_v37  ;;  %v10490_v41 = vpop.f32.mrb[182].mxu1 }
0x29f3   :  { %v10491_v42 = vpop.f32.mrb[183].mxu1 }
0x29f4   :  { %v6907_v43 = vpack.c.bf16 %v10489_v39, %v10489_v39 }
0x29f6   :  { %v6909_v44 = vsel %vm489_vm2, %v6907_v43, 0 }
0x29f7   :  { %11136 = vmatpush3.bf16.msra.mxu0 %v6909_v44 }
0x29f8   :  { %10495 = vmatprep.subr.bf16.mxu0 %v12036_v46 }
0x29fa   :  { %11138 = vmatmul.mubr.msk.bf16.vlgmr.msra.gmra.mrb[180].mxu0 %vm485_vm3, %v12037_v47 }
0x29fb   :  { %10496 = vmatpush3.bf16.msra.mxu0 %v12038_v48  ;;  %6986 = vmatprep.mubr.bf16.mxu0 %v13805_v34  ;;  %v12070_v48 = vld [vmem:[%s15101_s3 + $0x7c0] sm:$0xff]  }
0x29fc   :  { %10497 = vmatprep.subr.bf16.mxu0 %v12039_v49  ;;  %v12071_v49 = vld [vmem:[%s15102_s4 + $0x70] sm:$0xff]  }
0x29ff   :  { %10498 = vmatpush3.bf16.msra.mxu0 %v12040_v50  ;;  %v12072_v50 = vld [vmem:[%s15101_s3 + $0x780] sm:$0xff]  }
0x2a00   :  { %10499 = vmatprep.subr.bf16.mxu0 %v12041_v51  ;;  %v12073_v51 = vld [vmem:[%s15101_s3 + $0x7c8] sm:$0xff]  }
0x2a03   :  { %10500 = vmatpush3.bf16.msra.mxu0 %v12042_v52  ;;  %v12074_v52 = vld [vmem:[%s15101_s3 + $0x788] sm:$0xff]  }
0x2a04   :  { %10501 = vmatprep.subr.bf16.mxu0 %v12043_v53  ;;  %v12075_v53 = vld [vmem:[%s15101_s3 + $0x7d0] sm:$0xff]  }
0x2a07   :  { %10502 = vmatpush3.bf16.msra.mxu0 %v12044_v54  ;;  %v12076_v54 = vld [vmem:[%s15101_s3 + $0x790] sm:$0xff]  }
0x2a08   :  { %10503 = vmatprep.subr.bf16.mxu0 %v12045_v55  ;;  %v12078_v55 = vld [vmem:[%s15101_s3 + $0x798] sm:$0xff]  }
0x2a0b   :  { %10504 = vmatpush3.bf16.msra.mxu0 %v12046_v58  ;;  %v12079_v58 = vld [vmem:[%s15101_s3 + $0x7e0] sm:$0xff]  }
0x2a0c   :  { %10505 = vmatprep.subr.bf16.mxu0 %v12047_v56  ;;  %v12080_v56 = vld [vmem:[%s15101_s3 + $0x7a0] sm:$0xff]  }
0x2a0f   :  { %10506 = vmatpush3.bf16.msra.mxu0 %v12048_v4  ;;  %v12081_v4 = vld [vmem:[%s15101_s3 + $0x7e8] sm:$0xff]  }
0x2a10   :  { %10507 = vmatprep.subr.bf16.mxu0 %v12049_v59  ;;  %v12082_v59 = vld [vmem:[%s15101_s3 + $0x7a8] sm:$0xff]  }
0x2a13   :  { %10508 = vmatpush3.bf16.msra.mxu0 %v12050_v60  ;;  %v12083_v60 = vld [vmem:[%s15101_s3 + $0x7f0] sm:$0xff]  }
0x2a14   :  { %10509 = vmatprep.subr.bf16.mxu0 %v12051_v61  ;;  %v12084_v61 = vld [vmem:[%s15101_s3 + $0x7b0] sm:$0xff]  }
0x2a17   :  { %10510 = vmatpush3.bf16.msra.mxu0 %v12052_v62  ;;  %v12085_v62 = vld [vmem:[%s15101_s3 + $0x7f8] sm:$0xff]  }
0x2a18   :  { %11147 = vmatprep.subr.bf16.mxu0 %v12193_v8 }
0x2a1a   :  { %6987 = vmatmul.mubr.bf16.vlgmr.msra.gmra.mrb[184].mxu0 %v13807_v35 }
0x2a1b   :  { %11149 = vmatprep.mubr.msk.bf16.mxu0 %vm12194_vm1, %v12193_v8 }
0x2acd   :  { %v6945_v63 = vpop.f32.mrb[180].mxu0 }
0x2ace   :  { %v6952_v0 = vadd.f32 %v6945_v63, %v6865_v29  ;;  %v11139_v1 = vpop.f32.mrb[181].mxu0  ;;  %v12069_v29 = vld [vmem:[%s15101_s3 + $0x738] sm:$0xff]  }
0x2acf   :  { %v6948_v2 = vpop.f32.mrb[182].mxu0  ;;  %v12086_v63 = vld [vmem:[%s15101_s3 + $0x7b8] sm:$0xff]   ;;  %v12088_v1 = vld [vmem:[%s15104_s6 + $0x28] sm:$0xff]  }
0x2ad0   :  { %v6953_v3 = vadd.f32 %v6948_v2, %v6866_v33  ;;  %v11140_v5 = vpop.f32.mrb[183].mxu0  ;;  %v12090_v2 = vld [vmem:[%s15104_s6 + $0x38] sm:$0xff]  }
0x2aed   :  { %v10511_v6 = vpop.f32.mrb[184].mxu0 }
0x2aee   :  { %v10512_v7 = vpop.f32.mrb[185].mxu0 }
0x2aef   :  { %v10513_v9 = vadd.f32 %v10512_v7, %v10511_v6  ;;  %v10514_v57 = vpop.f32.mrb[186].mxu0 }
0x2af0   :  { %v10515_v10 = vpop.f32.mrb[187].mxu0 }
0x2af1   :  { %v6994_v11 = vpack.c.bf16 %v10513_v9, %v10513_v9 }
0x2af3   :  { %v6996_v12 = vsel %vm489_vm2, %v6994_v11, 0 }
0x2af4   :  { %11142 = vmatpush3.bf16.msra.mxu1 %v6996_v12 }
0x2af5   :  { %10519 = vmatprep.subr.bf16.mxu1 %v12053_v13 }
0x2af7   :  { %11144 = vmatmul.mubr.msk.bf16.vlgmr.msra.gmra.mrb[184].mxu1 %vm485_vm3, %v12054_v14 }
0x2af8   :  { %10520 = vmatpush3.bf16.msra.mxu1 %v12055_v15  ;;  %7073 = vmatprep.mubr.bf16.mxu1 %v13805_v34 }
0x2af9   :  { %10521 = vmatprep.subr.bf16.mxu1 %v12056_v17 }
0x2afc   :  { %10522 = vmatpush3.bf16.msra.mxu1 %v12057_v18  ;;  %v12091_v18 = vld [vmem:[%s15102_s4 + $0x78] sm:$0xff]  }
0x2afd   :  { %10523 = vmatprep.subr.bf16.mxu1 %v12058_v19  ;;  %v12092_v19 = vld [vmem:[%s15104_s6] sm:$0xff]  }
0x2b00   :  { %10524 = vmatpush3.bf16.msra.mxu1 %v12059_v20  ;;  %v12093_v20 = vld [vmem:[%s15104_s6 + $0x8] sm:$0xff]  }
0x2b01   :  { %10525 = vmatprep.subr.bf16.mxu1 %v12060_v21  ;;  %v12094_v21 = vld [vmem:[%s15104_s6 + $0x10] sm:$0xff]  }
0x2b04   :  { %10526 = vmatpush3.bf16.msra.mxu1 %v12061_v22  ;;  %v12095_v22 = vld [vmem:[%s15104_s6 + $0x18] sm:$0xff]  }
0x2b05   :  { %10527 = vmatprep.subr.bf16.mxu1 %v12062_v23 }
0x2b08   :  { %10528 = vmatpush3.bf16.msra.mxu1 %v12063_v24 }
0x2b09   :  { %10529 = vmatprep.subr.bf16.mxu1 %v12064_v25 }
0x2b0c   :  { %10530 = vmatpush3.bf16.msra.mxu1 %v12065_v40 }
0x2b0d   :  { %10531 = vmatprep.subr.bf16.mxu1 %v12066_v26 }
0x2b10   :  { %10532 = vmatpush3.bf16.msra.mxu1 %v12067_v27 }
0x2b11   :  { %10533 = vmatprep.subr.bf16.mxu1 %v12068_v28 }
0x2b14   :  { %10534 = vmatpush3.bf16.msra.mxu1 %v12069_v29 }
0x2b15   :  { %11153 = vmatprep.subr.bf16.mxu1 %v12193_v8 }
0x2b17   :  { %7074 = vmatmul.mubr.bf16.vlgmr.msra.gmra.mrb[188].mxu1 %v13807_v35 }
0x2b18   :  { %11155 = vmatprep.mubr.msk.bf16.mxu1 %vm12194_vm1, %v12193_v8 }
0x2bca   :  { %v7032_v30 = vpop.f32.mrb[184].mxu1 }
0x2bcb   :  { %v14579_v32 = vadd.f32 %v7032_v30, %v6952_v0  ;;  %v11145_v33 = vpop.f32.mrb[185].mxu1  ;;  %v12087_v0 = vld [vmem:[%s15104_s6 + $0x20] sm:$0xff]  }
0x2bcc   :  { %v7035_v45 = vpop.f32.mrb[186].mxu1 }
0x2bcd   :  { %v14581_v37 = vadd.f32 %v7035_v45, %v6953_v3  ;;  %v11146_v38 = vpop.f32.mrb[187].mxu1 }
0x2bea   :  { %v10535_v39 = vpop.f32.mrb[188].mxu1 }
0x2beb   :  { %v10536_v41 = vpop.f32.mrb[189].mxu1 }
0x2bec   :  { %v10537_v42 = vadd.f32 %v10536_v41, %v10535_v39  ;;  %v10538_v43 = vpop.f32.mrb[190].mxu1 }
0x2bed   :  { %v10539_v44 = vpop.f32.mrb[191].mxu1 }
0x2bee   :  { %v7081_v46 = vpack.c.bf16 %v10537_v42, %v10537_v42 }
0x2bf0   :  { %v7083_v47 = vsel %vm489_vm2, %v7081_v46, 0  ;;  %v12096_v46 = vld [vmem:[%s15105_s7 + $0x1] sm:$0x1] }
0x2bf1   :  { %11148 = vmatpush3.bf16.msra.mxu0 %v7083_v47  ;;  %v12097_v47 = vld [vmem:[%s15105_s7] sm:$0x1] }
0x2bf2   :  { %10543 = vmatprep.subr.bf16.mxu0 %v12070_v48  ;;  %v12098_v48 = vld [vmem:[%s15104_s6 + $0x40] sm:$0xff]  }
0x2bf4   :  { %11150 = vmatmul.mubr.msk.bf16.vlgmr.msra.gmra.mrb[188].mxu0 %vm485_vm3, %v12071_v49  ;;  %v12099_v49 = vld [vmem:[%s15104_s6 + $0x48] sm:$0xff]  }
0x2bf5   :  { %10544 = vmatpush3.bf16.msra.mxu0 %v12072_v50  ;;  %7160 = vmatprep.mubr.bf16.mxu0 %v13805_v34  ;;  %v12077_v34 = vld [vmem:[%s15101_s3 + $0x7d8] sm:$0xff]   ;;  %v12100_v50 = vld [vmem:[%s15104_s6 + $0x50] sm:$0xff]  }
0x2bf6   :  { %10545 = vmatprep.subr.bf16.mxu0 %v12073_v51  ;;  %v12101_v51 = vld [vmem:[%s15104_s6 + $0x58] sm:$0xff]  }
0x2bf9   :  { %10546 = vmatpush3.bf16.msra.mxu0 %v12074_v52 }
0x2bfa   :  { %10547 = vmatprep.subr.bf16.mxu0 %v12075_v53 }
0x2bfd   :  { %10548 = vmatpush3.bf16.msra.mxu0 %v12076_v54 }
0x2bfe   :  { %10549 = vmatprep.subr.bf16.mxu0 %v12077_v34 }
0x2c01   :  { %10550 = vmatpush3.bf16.msra.mxu0 %v12078_v55 }
0x2c02   :  { %10551 = vmatprep.subr.bf16.mxu0 %v12079_v58 }
0x2c05   :  { %10552 = vmatpush3.bf16.msra.mxu0 %v12080_v56 }
0x2c06   :  { %10553 = vmatprep.subr.bf16.mxu0 %v12081_v4 }
0x2c09   :  { %10554 = vmatpush3.bf16.msra.mxu0 %v12082_v59 }
0x2c0a   :  { %10555 = vmatprep.subr.bf16.mxu0 %v12083_v60 }
0x2c0d   :  { %10556 = vmatpush3.bf16.msra.mxu0 %v12084_v61 }
0x2c0e   :  { %10557 = vmatprep.subr.bf16.mxu0 %v12085_v62 }
0x2c11   :  { %10558 = vmatpush3.bf16.msra.mxu0 %v12086_v63 }
0x2c12   :  { %11171 = vmatprep.subr.bf16.mxu0 %v12193_v8 }
0x2c14   :  { %7161 = vmatmul.mubr.bf16.vlgmr.msra.gmra.mrb[192].mxu0 %v13807_v35  ;;  %v12089_v35 = vld [vmem:[%s15104_s6 + $0x30] sm:$0xff]  }
0x2c15   :  { %11172 = vmatpush3.bf16.msra.mxu0 %v12087_v0  ;;  %11179 = vmatprep.mubr.msk.bf16.mxu0 %vm12194_vm1, %v12193_v8 }
0x2c16   :  { %11173 = vmatprep.subr.bf16.mxu0 %v12193_v8 }
0x2c19   :  { %11174 = vmatpush3.bf16.msra.mxu0 %v12088_v1  ;;  %v12102_v1 = vld [vmem:[%s15105_s7 + $0x2] sm:$0x1] }
0x2c1a   :  { %11175 = vmatprep.subr.bf16.mxu0 %v12193_v8 }
0x2c1d   :  { %11176 = vmatpush3.bf16.msra.mxu0 %v12089_v35  ;;  %v12103_v35 = vld [vmem:[%s15104_s6 + $0x60] sm:$0xff]  }
0x2c1e   :  { %11177 = vmatprep.subr.bf16.mxu0 %v12193_v8 }
0x2c21   :  { %11178 = vmatpush3.bf16.msra.mxu0 %v12090_v2  ;;  %v12104_v2 = vld [vmem:[%s15104_s6 + $0x68] sm:$0xff]  }
0x2c22   :  { %11189 = vmatprep.subr.bf16.mxu0 %v12193_v8 }
0x2cc7   :  { %v7119_v3 = vpop.f32.mrb[188].mxu0 }
0x2cc8   :  { %v7126_v5 = vadd.f32 %v7119_v3, %v14579_v32  ;;  %v11151_v6 = vpop.f32.mrb[189].mxu0  ;;  %v12105_v3 = vld [vmem:[%s15104_s6 + $0x70] sm:$0xff]  }
0x2cc9   :  { %v7122_v7 = vpop.f32.mrb[190].mxu0 }
0x2cca   :  { %v7127_v9 = vadd.f32 %v7122_v7, %v14581_v37  ;;  %v11152_v57 = vpop.f32.mrb[191].mxu0 }
0x2ce7   :  { %v10559_v10 = vpop.f32.mrb[192].mxu0 }
0x2ce8   :  { %v10560_v11 = vpop.f32.mrb[193].mxu0 }
0x2ce9   :  { %v10561_v12 = vadd.f32 %v10560_v11, %v10559_v10  ;;  %v10562_v13 = vpop.f32.mrb[194].mxu0 }
0x2cea   :  { %v10563_v14 = vpop.f32.mrb[195].mxu0 }
0x2ceb   :  { %v7168_v15 = vpack.c.bf16 %v10561_v12, %v10561_v12 }
0x2ced   :  { %v7170_v17 = vsel %vm489_vm2, %v7168_v15, 0 }
0x2cee   :  { %11154 = vmatpush3.bf16.msra.mxu1 %v7170_v17  ;;  %v12107_v17 = vld [vmem:[%s15105_s7 + $0x3] sm:$0x1] }
0x2cef   :  { %11159 = vmatprep.subr.bf16.mxu1 %v12193_v8 }
0x2cf1   :  { %11156 = vmatmul.mubr.msk.bf16.vlgmr.msra.gmra.mrb[192].mxu1 %vm485_vm3, %v12091_v18  ;;  %v12108_v18 = vld [vmem:[%s15104_s6 + $0x80] sm:$0xff]  }
0x2cf2   :  { %11160 = vmatpush3.bf16.msra.mxu1 %v12092_v19  ;;  %11167 = vmatprep.mubr.msk.bf16.mxu1 %vm12194_vm1, %v12193_v8  ;;  %v12109_v19 = vld [vmem:[%s15104_s6 + $0x88] sm:$0xff]  }
0x2cf3   :  { %11161 = vmatprep.subr.bf16.mxu1 %v12193_v8 }
0x2cf6   :  { %11162 = vmatpush3.bf16.msra.mxu1 %v12093_v20  ;;  %v12110_v20 = vld [vmem:[%s15104_s6 + $0x90] sm:$0xff]  }
0x2cf7   :  { %11163 = vmatprep.subr.bf16.mxu1 %v12193_v8 }
0x2cfa   :  { %11164 = vmatpush3.bf16.msra.mxu1 %v12094_v21  ;;  %v12111_v21 = vld [vmem:[%s15104_s6 + $0x98] sm:$0xff]  }
0x2cfb   :  { %11165 = vmatprep.subr.bf16.mxu1 %v12193_v8 }
0x2cfe   :  { %11166 = vmatpush3.bf16.msra.mxu1 %v12095_v22 }
0x2cff   :  { %11183 = vmatprep.subr.bf16.mxu1 %v12193_v8 }
0x2dc4   :  { %v7206_v23 = vpop.f32.mrb[192].mxu1 }
0x2dc5   :  { %v7213_v24 = vadd.f32 %v7206_v23, %v7126_v5  ;;  %v11157_v25 = vpop.f32.mrb[193].mxu1  ;;  %v12106_v5 = vld [vmem:[%s15104_s6 + $0x78] sm:$0xff]  }
0x2dc6   :  { %v7209_v40 = vpop.f32.mrb[194].mxu1 }
0x2dc7   :  { %v7215_v26 = vadd.f32 %v7213_v24, %v13270_v31  ;;  %v7214_v27 = vadd.f32 %v7209_v40, %v7127_v9  ;;  %v11158_v28 = vpop.f32.mrb[195].mxu1 }
0x2dc9   :  { %v7216_v29 = vadd.f32 %v7214_v27, %v13273_v36  ;;  %v7217_v30 = vmax.f32 %v7215_v26, 0.0 }
0x2dcb   :  { %v7218_v32 = vmax.f32 %v7216_v29, 0.0 }
0x2dcd   :  { %v14685_v33 = vpack.c.bf16 %v7218_v32, %v7217_v30  ;;  %v12112_v32 = vld [vmem:[%s15105_s7 + $0x4] sm:$0x1] }
0x2dcf   :  { %11168 = vmatmul.mubr.msk.bf16.vlgmr.msra.gmra.mrb[196].mxu1 %vm3813_vm4, %v14685_v33  ;;  %11180 = vmatmul.mubr.msk.bf16.vlgmr.msra.gmra.mrb[196].mxu0 %vm3813_vm4, %v14685_v33 }
0x2dd0   :  { %11185 = vmatprep.mubr.msk.bf16.mxu1 %vm12194_vm1, %v12193_v8  ;;  %11191 = vmatprep.mubr.msk.bf16.mxu0 %vm12194_vm1, %v12193_v8 }
0x2ea2   :  { %v7257_v31 = vpop.f32.mrb[196].mxu1  ;;  %v7299_v45 = vpop.f32.mrb[196].mxu0 }
0x2ea3   :  { %v11169_v37 = vpop.f32.mrb[197].mxu1  ;;  %v11181_v36 = vpop.f32.mrb[197].mxu0 }
0x2ea4   :  { %v7260_v38 = vpop.f32.mrb[198].mxu1  ;;  %v7302_v39 = vpop.f32.mrb[198].mxu0  ;;  %v12115_v37 = vld [vmem:[%s15104_s6 + $0xb0] sm:$0xff]   ;;  %v12116_v36 = vld [vmem:[%s15104_s6 + $0xb8] sm:$0xff]  }
0x2ea5   :  { %v7264_v41 = vpack.c.bf16 %v7260_v38, %v7257_v31  ;;  %v7306_v42 = vpack.c.bf16 %v7302_v39, %v7299_v45  ;;  %v11170_v43 = vpop.f32.mrb[199].mxu1  ;;  %v11182_v44 = vpop.f32.mrb[199].mxu0  ;;  %v12113_v31 = vld [vmem:[%s15104_s6 + $0xa0] sm:$0xff]   ;;  %v12114_v45 = vld [vmem:[%s15104_s6 + $0xa8] sm:$0xff]  }
0x2ea7   :  { %11184 = vmatpush3.bf16.msra.mxu1 %v7306_v42  ;;  %11190 = vmatpush3.bf16.msra.mxu0 %v7264_v41 }
0x2ea8   :  { %11195 = vmatprep.subr.bf16.mxu1 %v12193_v8  ;;  %11207 = vmatprep.subr.bf16.mxu0 %v12193_v8 }
0x2eaa   :  { %11186 = vmatmul.mubr.msk.bf16.vlgmr.msra.gmra.mrb[200].mxu1 %vm3937_vm5, %v12096_v46  ;;  %11192 = vmatmul.mubr.msk.bf16.vlgmr.msra.gmra.mrb[200].mxu0 %vm3937_vm5, %v12097_v47 }
0x2eab   :  { %11196 = vmatpush3.bf16.msra.mxu1 %v12098_v48  ;;  %11203 = vmatprep.mubr.msk.bf16.mxu1 %vm12194_vm1, %v12193_v8 }
0x2eac   :  { %11197 = vmatprep.subr.bf16.mxu1 %v12193_v8  ;;  %11209 = vmatprep.mubr.msk.bf16.mxu0 %vm12194_vm1, %v12193_v8 }
0x2eaf   :  { %11198 = vmatpush3.bf16.msra.mxu1 %v12099_v49 }
0x2eb0   :  { %11199 = vmatprep.subr.bf16.mxu1 %v12193_v8 }
0x2eb3   :  { %11200 = vmatpush3.bf16.msra.mxu1 %v12100_v50  ;;  %v12117_v50 = vld [vmem:[%s15105_s7 + $0x5] sm:$0x1] }
0x2eb4   :  { %11201 = vmatprep.subr.bf16.mxu1 %v12193_v8 }
0x2eb7   :  { %11202 = vmatpush3.bf16.msra.mxu1 %v12101_v51  ;;  %v12118_v51 = vld [vmem:[%s15104_s6 + $0xc0] sm:$0xff]  }
0x2eb8   :  { %11225 = vmatprep.subr.bf16.mxu1 %v12193_v8 }
0x2eba   :  { %11204 = vmatmul.mubr.msk.bf16.vlgmr.msra.gmra.mrb[204].mxu1 %vm3813_vm4, %v14685_v33 }
0x2ebb   :  { %11227 = vmatprep.mubr.msk.bf16.mxu1 %vm12194_vm1, %v12193_v8 }
0x2f7d   :  { %v7341_v52 = vpop.f32.mrb[200].mxu1  ;;  %v7381_v53 = vpop.f32.mrb[200].mxu0 }
0x2f7e   :  { %v11187_v54 = vpop.f32.mrb[201].mxu1  ;;  %v7382_v34 = vadd.f32 %v7381_v53, %v7341_v52  ;;  %v11193_v55 = vpop.f32.mrb[201].mxu0  ;;  %v12119_v52 = vld [vmem:[%s15104_s6 + $0xc8] sm:$0xff]   ;;  %v12120_v53 = vld [vmem:[%s15104_s6 + $0xd0] sm:$0xff]  }
0x2f7f   :  { %v7344_v58 = vpop.f32.mrb[202].mxu1  ;;  %v7384_v56 = vpop.f32.mrb[202].mxu0  ;;  %v12121_v54 = vld [vmem:[%s15104_s6 + $0xd8] sm:$0xff]  }
0x2f80   :  { %v11188_v4 = vpop.f32.mrb[203].mxu1  ;;  %v11194_v59 = vpop.f32.mrb[203].mxu0 }
0x2f8d   :  { %v7421_v60 = vpop.f32.mrb[204].mxu1 }
0x2f8e   :  { %v11205_v61 = vpop.f32.mrb[205].mxu1 }
0x2f8f   :  { %v7424_v62 = vpop.f32.mrb[206].mxu1 }
0x2f90   :  { %v7428_v63 = vpack.c.bf16 %v7424_v62, %v7421_v60  ;;  %v11206_v0 = vpop.f32.mrb[207].mxu1 }
0x2f91   :  { %v12122_v0 = vld [vmem:[%s15105_s7 + $0x6] sm:$0x1] }
0x2f92   :  { %11208 = vmatpush3.bf16.msra.mxu0 %v7428_v63 }
0x2f93   :  { %11213 = vmatprep.subr.bf16.mxu0 %v12193_v8 }
0x2f95   :  { %11210 = vmatmul.mubr.msk.bf16.vlgmr.msra.gmra.mrb[204].mxu0 %vm3937_vm5, %v12102_v1  ;;  %v12123_v1 = vld [vmem:[%s15104_s6 + $0xe0] sm:$0xff]  }
0x2f96   :  { %11214 = vmatpush3.bf16.msra.mxu0 %v12103_v35  ;;  %11221 = vmatprep.mubr.msk.bf16.mxu0 %vm12194_vm1, %v12193_v8  ;;  %v12124_v35 = vld [vmem:[%s15104_s6 + $0xe8] sm:$0xff]  }
0x2f97   :  { %11215 = vmatprep.subr.bf16.mxu0 %v12193_v8 }
0x2f9a   :  { %11216 = vmatpush3.bf16.msra.mxu0 %v12104_v2  ;;  %v12125_v2 = vld [vmem:[%s15104_s6 + $0xf0] sm:$0xff]  }
0x2f9b   :  { %11217 = vmatprep.subr.bf16.mxu0 %v12193_v8 }
0x2f9e   :  { %11218 = vmatpush3.bf16.msra.mxu0 %v12105_v3  ;;  %v12126_v3 = vld [vmem:[%s15104_s6 + $0xf8] sm:$0xff]  }
0x2f9f   :  { %11219 = vmatprep.subr.bf16.mxu0 %v12193_v8 }
0x2fa2   :  { %11220 = vmatpush3.bf16.msra.mxu0 %v12106_v5 }
0x2fa3   :  { %11243 = vmatprep.subr.bf16.mxu0 %v12193_v8 }
0x2fa5   :  { %11222 = vmatmul.mubr.msk.bf16.vlgmr.msra.gmra.mrb[208].mxu0 %vm3813_vm4, %v14685_v33 }
0x2fa6   :  { %11245 = vmatprep.mubr.msk.bf16.mxu0 %vm12194_vm1, %v12193_v8 }
0x3068   :  { %v7463_v6 = vpop.f32.mrb[204].mxu0 }
0x3069   :  { %v7469_v7 = vadd.f32 %v7463_v6, %v7382_v34  ;;  %v11211_v9 = vpop.f32.mrb[205].mxu0 }
0x306a   :  { %v7466_v57 = vpop.f32.mrb[206].mxu0 }
0x306b   :  { %v11212_v10 = vpop.f32.mrb[207].mxu0 }
0x3078   :  { %v7504_v11 = vpop.f32.mrb[208].mxu0 }
0x3079   :  { %v11223_v12 = vpop.f32.mrb[209].mxu0 }
0x307a   :  { %v7507_v13 = vpop.f32.mrb[210].mxu0 }
0x307b   :  { %v7511_v14 = vpack.c.bf16 %v7507_v13, %v7504_v11  ;;  %v11224_v15 = vpop.f32.mrb[211].mxu0 }
0x307c   :  { %v12127_v15 = vld [vmem:[%s15105_s7 + $0x7] sm:$0x1] }
0x307d   :  { %11226 = vmatpush3.bf16.msra.mxu1 %v7511_v14 }
0x307e   :  { %11231 = vmatprep.subr.bf16.mxu1 %v12193_v8 }
0x3080   :  { %11228 = vmatmul.mubr.msk.bf16.vlgmr.msra.gmra.mrb[208].mxu1 %vm3937_vm5, %v12107_v17  ;;  %v12128_v17 = vld [vmem:[%s15104_s6 + $0x100] sm:$0xff]  }
0x3081   :  { %11232 = vmatpush3.bf16.msra.mxu1 %v12108_v18  ;;  %11239 = vmatprep.mubr.msk.bf16.mxu1 %vm12194_vm1, %v12193_v8  ;;  %v12129_v18 = vld [vmem:[%s15104_s6 + $0x108] sm:$0xff]  }
0x3082   :  { %11233 = vmatprep.subr.bf16.mxu1 %v12193_v8 }
0x3085   :  { %11234 = vmatpush3.bf16.msra.mxu1 %v12109_v19  ;;  %v12130_v19 = vld [vmem:[%s15104_s6 + $0x110] sm:$0xff]  }
0x3086   :  { %11235 = vmatprep.subr.bf16.mxu1 %v12193_v8 }
0x3089   :  { %11236 = vmatpush3.bf16.msra.mxu1 %v12110_v20  ;;  %v12131_v20 = vld [vmem:[%s15104_s6 + $0x118] sm:$0xff]  }
0x308a   :  { %11237 = vmatprep.subr.bf16.mxu1 %v12193_v8 }
0x308d   :  { %11238 = vmatpush3.bf16.msra.mxu1 %v12111_v21 }
0x308e   :  { %11261 = vmatprep.subr.bf16.mxu1 %v12193_v8 }
0x3090   :  { %11240 = vmatmul.mubr.msk.bf16.vlgmr.msra.gmra.mrb[212].mxu1 %vm3813_vm4, %v14685_v33 }
0x3091   :  { %11263 = vmatprep.mubr.msk.bf16.mxu1 %vm12194_vm1, %v12193_v8 }
0x3153   :  { %v7546_v22 = vpop.f32.mrb[208].mxu1 }
0x3154   :  { %v7552_v23 = vadd.f32 %v7546_v22, %v7469_v7  ;;  %v11229_v24 = vpop.f32.mrb[209].mxu1 }
0x3155   :  { %v7549_v25 = vpop.f32.mrb[210].mxu1 }
0x3156   :  { %v11230_v40 = vpop.f32.mrb[211].mxu1 }
0x3163   :  { %v7587_v26 = vpop.f32.mrb[212].mxu1 }
0x3164   :  { %v11241_v27 = vpop.f32.mrb[213].mxu1 }
0x3165   :  { %v7590_v28 = vpop.f32.mrb[214].mxu1 }
0x3166   :  { %v7594_v29 = vpack.c.bf16 %v7590_v28, %v7587_v26  ;;  %v11242_v30 = vpop.f32.mrb[215].mxu1 }
0x3167   :  { %v12132_v30 = vld [vmem:[%s15105_s7 + $0x8] sm:$0x1] }
0x3168   :  { %11244 = vmatpush3.bf16.msra.mxu0 %v7594_v29 }
0x3169   :  { %11249 = vmatprep.subr.bf16.mxu0 %v12193_v8 }
0x316b   :  { %11246 = vmatmul.mubr.msk.bf16.vlgmr.msra.gmra.mrb[212].mxu0 %vm3937_vm5, %v12112_v32  ;;  %v12133_v32 = vld [vmem:[%s15104_s6 + $0x120] sm:$0xff]  }
0x316c   :  { %11250 = vmatpush3.bf16.msra.mxu0 %v12113_v31  ;;  %11257 = vmatprep.mubr.msk.bf16.mxu0 %vm12194_vm1, %v12193_v8  ;;  %v12134_v31 = vld [vmem:[%s15104_s6 + $0x128] sm:$0xff]  }
0x316d   :  { %11251 = vmatprep.subr.bf16.mxu0 %v12193_v8 }
0x3170   :  { %11252 = vmatpush3.bf16.msra.mxu0 %v12114_v45  ;;  %v12135_v45 = vld [vmem:[%s15104_s6 + $0x130] sm:$0xff]  }
0x3171   :  { %11253 = vmatprep.subr.bf16.mxu0 %v12193_v8 }
0x3174   :  { %11254 = vmatpush3.bf16.msra.mxu0 %v12115_v37  ;;  %v12136_v37 = vld [vmem:[%s15104_s6 + $0x138] sm:$0xff]  }
0x3175   :  { %11255 = vmatprep.subr.bf16.mxu0 %v12193_v8 }
0x3178   :  { %11256 = vmatpush3.bf16.msra.mxu0 %v12116_v36 }
0x3179   :  { %11279 = vmatprep.subr.bf16.mxu0 %v12193_v8 }
0x317b   :  { %11258 = vmatmul.mubr.msk.bf16.vlgmr.msra.gmra.mrb[216].mxu0 %vm3813_vm4, %v14685_v33 }
0x317c   :  { %11281 = vmatprep.mubr.msk.bf16.mxu0 %vm12194_vm1, %v12193_v8 }
0x323e   :  { %v7629_v38 = vpop.f32.mrb[212].mxu0 }
0x323f   :  { %v7635_v39 = vadd.f32 %v7629_v38, %v7552_v23  ;;  %v11247_v41 = vpop.f32.mrb[213].mxu0 }
0x3240   :  { %v7632_v42 = vpop.f32.mrb[214].mxu0 }
0x3241   :  { %v11248_v43 = vpop.f32.mrb[215].mxu0 }
0x324e   :  { %v7670_v44 = vpop.f32.mrb[216].mxu0 }
0x324f   :  { %v11259_v46 = vpop.f32.mrb[217].mxu0 }
0x3250   :  { %v7673_v47 = vpop.f32.mrb[218].mxu0 }
0x3251   :  { %v7677_v48 = vpack.c.bf16 %v7673_v47, %v7670_v44  ;;  %v11260_v49 = vpop.f32.mrb[219].mxu0 }
0x3252   :  { %v12137_v49 = vld [vmem:[%s15105_s7 + $0x9] sm:$0x1] }
0x3253   :  { %11262 = vmatpush3.bf16.msra.mxu1 %v7677_v48 }
0x3254   :  { %11267 = vmatprep.subr.bf16.mxu1 %v12193_v8 }
0x3256   :  { %11264 = vmatmul.mubr.msk.bf16.vlgmr.msra.gmra.mrb[216].mxu1 %vm3937_vm5, %v12117_v50  ;;  %v12138_v50 = vld [vmem:[%s15104_s6 + $0x140] sm:$0xff]  }
0x3257   :  { %11268 = vmatpush3.bf16.msra.mxu1 %v12118_v51  ;;  %11275 = vmatprep.mubr.msk.bf16.mxu1 %vm12194_vm1, %v12193_v8  ;;  %v12139_v51 = vld [vmem:[%s15104_s6 + $0x148] sm:$0xff]  }
0x3258   :  { %11269 = vmatprep.subr.bf16.mxu1 %v12193_v8 }
0x325b   :  { %11270 = vmatpush3.bf16.msra.mxu1 %v12119_v52  ;;  %v12140_v52 = vld [vmem:[%s15104_s6 + $0x150] sm:$0xff]  }
0x325c   :  { %11271 = vmatprep.subr.bf16.mxu1 %v12193_v8 }
0x325f   :  { %11272 = vmatpush3.bf16.msra.mxu1 %v12120_v53  ;;  %v12141_v53 = vld [vmem:[%s15104_s6 + $0x158] sm:$0xff]  }
0x3260   :  { %11273 = vmatprep.subr.bf16.mxu1 %v12193_v8 }
0x3263   :  { %11274 = vmatpush3.bf16.msra.mxu1 %v12121_v54 }
0x3264   :  { %11297 = vmatprep.subr.bf16.mxu1 %v12193_v8 }
0x3266   :  { %11276 = vmatmul.mubr.msk.bf16.vlgmr.msra.gmra.mrb[220].mxu1 %vm3813_vm4, %v14685_v33 }
0x3267   :  { %11299 = vmatprep.mubr.msk.bf16.mxu1 %vm12194_vm1, %v12193_v8 }
0x3329   :  { %v7712_v34 = vpop.f32.mrb[216].mxu1 }
0x332a   :  { %v7718_v55 = vadd.f32 %v7712_v34, %v7635_v39  ;;  %v11265_v58 = vpop.f32.mrb[217].mxu1 }
0x332b   :  { %v7715_v56 = vpop.f32.mrb[218].mxu1 }
0x332c   :  { %v11266_v4 = vpop.f32.mrb[219].mxu1 }
0x3339   :  { %v7753_v59 = vpop.f32.mrb[220].mxu1 }
0x333a   :  { %v11277_v60 = vpop.f32.mrb[221].mxu1 }
0x333b   :  { %v7756_v61 = vpop.f32.mrb[222].mxu1 }
0x333c   :  { %v7760_v62 = vpack.c.bf16 %v7756_v61, %v7753_v59  ;;  %v11278_v63 = vpop.f32.mrb[223].mxu1 }
0x333d   :  { %v12142_v63 = vld [vmem:[%s15105_s7 + $0xa] sm:$0x1] }
0x333e   :  { %11280 = vmatpush3.bf16.msra.mxu0 %v7760_v62 }
0x333f   :  { %11285 = vmatprep.subr.bf16.mxu0 %v12193_v8 }
0x3341   :  { %11282 = vmatmul.mubr.msk.bf16.vlgmr.msra.gmra.mrb[220].mxu0 %vm3937_vm5, %v12122_v0  ;;  %v12143_v0 = vld [vmem:[%s15104_s6 + $0x160] sm:$0xff]  }
0x3342   :  { %11286 = vmatpush3.bf16.msra.mxu0 %v12123_v1  ;;  %11293 = vmatprep.mubr.msk.bf16.mxu0 %vm12194_vm1, %v12193_v8  ;;  %v12144_v1 = vld [vmem:[%s15104_s6 + $0x168] sm:$0xff]  }
0x3343   :  { %11287 = vmatprep.subr.bf16.mxu0 %v12193_v8 }
0x3346   :  { %11288 = vmatpush3.bf16.msra.mxu0 %v12124_v35  ;;  %v12145_v35 = vld [vmem:[%s15104_s6 + $0x170] sm:$0xff]  }
0x3347   :  { %11289 = vmatprep.subr.bf16.mxu0 %v12193_v8 }
0x334a   :  { %11290 = vmatpush3.bf16.msra.mxu0 %v12125_v2  ;;  %v12146_v2 = vld [vmem:[%s15104_s6 + $0x178] sm:$0xff]  }
0x334b   :  { %11291 = vmatprep.subr.bf16.mxu0 %v12193_v8 }
0x334e   :  { %11292 = vmatpush3.bf16.msra.mxu0 %v12126_v3 }
0x334f   :  { %11315 = vmatprep.subr.bf16.mxu0 %v12193_v8 }
0x3351   :  { %11294 = vmatmul.mubr.msk.bf16.vlgmr.msra.gmra.mrb[224].mxu0 %vm3813_vm4, %v14685_v33 }
0x3352   :  { %11317 = vmatprep.mubr.msk.bf16.mxu0 %vm12194_vm1, %v12193_v8 }
0x3414   :  { %v7795_v5 = vpop.f32.mrb[220].mxu0 }
0x3415   :  { %v7801_v6 = vadd.f32 %v7795_v5, %v7718_v55  ;;  %v11283_v7 = vpop.f32.mrb[221].mxu0 }
0x3416   :  { %v7798_v9 = vpop.f32.mrb[222].mxu0 }
0x3417   :  { %v11284_v57 = vpop.f32.mrb[223].mxu0 }
0x3424   :  { %v7836_v10 = vpop.f32.mrb[224].mxu0 }
0x3425   :  { %v11295_v11 = vpop.f32.mrb[225].mxu0 }
0x3426   :  { %v7839_v12 = vpop.f32.mrb[226].mxu0 }
0x3427   :  { %v7843_v13 = vpack.c.bf16 %v7839_v12, %v7836_v10  ;;  %v11296_v14 = vpop.f32.mrb[227].mxu0 }
0x3428   :  { %v12147_v14 = vld [vmem:[%s15105_s7 + $0xb] sm:$0x1] }
0x3429   :  { %11298 = vmatpush3.bf16.msra.mxu1 %v7843_v13 }
0x342a   :  { %11303 = vmatprep.subr.bf16.mxu1 %v12193_v8 }
0x342c   :  { %11300 = vmatmul.mubr.msk.bf16.vlgmr.msra.gmra.mrb[224].mxu1 %vm3937_vm5, %v12127_v15  ;;  %v12148_v15 = vld [vmem:[%s15104_s6 + $0x180] sm:$0xff]  }
0x342d   :  { %11304 = vmatpush3.bf16.msra.mxu1 %v12128_v17  ;;  %11311 = vmatprep.mubr.msk.bf16.mxu1 %vm12194_vm1, %v12193_v8  ;;  %v12149_v17 = vld [vmem:[%s15104_s6 + $0x188] sm:$0xff]  }
0x342e   :  { %11305 = vmatprep.subr.bf16.mxu1 %v12193_v8 }
0x3431   :  { %11306 = vmatpush3.bf16.msra.mxu1 %v12129_v18  ;;  %v12150_v18 = vld [vmem:[%s15104_s6 + $0x190] sm:$0xff]  }
0x3432   :  { %11307 = vmatprep.subr.bf16.mxu1 %v12193_v8 }
0x3435   :  { %11308 = vmatpush3.bf16.msra.mxu1 %v12130_v19  ;;  %v12151_v19 = vld [vmem:[%s15104_s6 + $0x198] sm:$0xff]  }
0x3436   :  { %11309 = vmatprep.subr.bf16.mxu1 %v12193_v8 }
0x3439   :  { %11310 = vmatpush3.bf16.msra.mxu1 %v12131_v20 }
0x343a   :  { %11333 = vmatprep.subr.bf16.mxu1 %v12193_v8 }
0x343c   :  { %11312 = vmatmul.mubr.msk.bf16.vlgmr.msra.gmra.mrb[228].mxu1 %vm3813_vm4, %v14685_v33 }
0x343d   :  { %11335 = vmatprep.mubr.msk.bf16.mxu1 %vm12194_vm1, %v12193_v8 }
0x34ff   :  { %v7878_v21 = vpop.f32.mrb[224].mxu1 }
0x3500   :  { %v7884_v22 = vadd.f32 %v7878_v21, %v7801_v6  ;;  %v11301_v23 = vpop.f32.mrb[225].mxu1 }
0x3501   :  { %v7881_v24 = vpop.f32.mrb[226].mxu1 }
0x3502   :  { %v11302_v25 = vpop.f32.mrb[227].mxu1 }
0x350f   :  { %v7919_v40 = vpop.f32.mrb[228].mxu1 }
0x3510   :  { %v11313_v26 = vpop.f32.mrb[229].mxu1 }
0x3511   :  { %v7922_v27 = vpop.f32.mrb[230].mxu1 }
0x3512   :  { %v7926_v28 = vpack.c.bf16 %v7922_v27, %v7919_v40  ;;  %v11314_v29 = vpop.f32.mrb[231].mxu1 }
0x3513   :  { %v12152_v29 = vld [vmem:[%s15105_s7 + $0xc] sm:$0x1] }
0x3514   :  { %11316 = vmatpush3.bf16.msra.mxu0 %v7926_v28 }
0x3515   :  { %11321 = vmatprep.subr.bf16.mxu0 %v12193_v8 }
0x3517   :  { %11318 = vmatmul.mubr.msk.bf16.vlgmr.msra.gmra.mrb[228].mxu0 %vm3937_vm5, %v12132_v30  ;;  %v12153_v30 = vld [vmem:[%s15104_s6 + $0x1a0] sm:$0xff]  }
0x3518   :  { %11322 = vmatpush3.bf16.msra.mxu0 %v12133_v32  ;;  %11329 = vmatprep.mubr.msk.bf16.mxu0 %vm12194_vm1, %v12193_v8  ;;  %v12154_v32 = vld [vmem:[%s15104_s6 + $0x1a8] sm:$0xff]  }
0x3519   :  { %11323 = vmatprep.subr.bf16.mxu0 %v12193_v8 }
0x351c   :  { %11324 = vmatpush3.bf16.msra.mxu0 %v12134_v31  ;;  %v12155_v31 = vld [vmem:[%s15104_s6 + $0x1b0] sm:$0xff]  }
0x351d   :  { %11325 = vmatprep.subr.bf16.mxu0 %v12193_v8 }
0x3520   :  { %11326 = vmatpush3.bf16.msra.mxu0 %v12135_v45  ;;  %v12156_v45 = vld [vmem:[%s15104_s6 + $0x1b8] sm:$0xff]  }
0x3521   :  { %11327 = vmatprep.subr.bf16.mxu0 %v12193_v8 }
0x3524   :  { %11328 = vmatpush3.bf16.msra.mxu0 %v12136_v37 }
0x3525   :  { %11351 = vmatprep.subr.bf16.mxu0 %v12193_v8 }
0x3527   :  { %11330 = vmatmul.mubr.msk.bf16.vlgmr.msra.gmra.mrb[232].mxu0 %vm3813_vm4, %v14685_v33 }
0x3528   :  { %11353 = vmatprep.mubr.msk.bf16.mxu0 %vm12194_vm1, %v12193_v8 }
0x35ea   :  { %v7961_v36 = vpop.f32.mrb[228].mxu0 }
0x35eb   :  { %v7967_v38 = vadd.f32 %v7961_v36, %v7884_v22  ;;  %v11319_v39 = vpop.f32.mrb[229].mxu0 }
0x35ec   :  { %v7964_v41 = vpop.f32.mrb[230].mxu0 }
0x35ed   :  { %v11320_v42 = vpop.f32.mrb[231].mxu0 }
0x35fa   :  { %v8002_v43 = vpop.f32.mrb[232].mxu0 }
0x35fb   :  { %v11331_v44 = vpop.f32.mrb[233].mxu0 }
0x35fc   :  { %v8005_v46 = vpop.f32.mrb[234].mxu0 }
0x35fd   :  { %v8009_v47 = vpack.c.bf16 %v8005_v46, %v8002_v43  ;;  %v11332_v48 = vpop.f32.mrb[235].mxu0 }
0x35fe   :  { %v12157_v48 = vld [vmem:[%s15105_s7 + $0xd] sm:$0x1] }
0x35ff   :  { %11334 = vmatpush3.bf16.msra.mxu1 %v8009_v47 }
0x3600   :  { %11339 = vmatprep.subr.bf16.mxu1 %v12193_v8 }
0x3602   :  { %11336 = vmatmul.mubr.msk.bf16.vlgmr.msra.gmra.mrb[232].mxu1 %vm3937_vm5, %v12137_v49  ;;  %v12158_v49 = vld [vmem:[%s15104_s6 + $0x1c0] sm:$0xff]  }
0x3603   :  { %11340 = vmatpush3.bf16.msra.mxu1 %v12138_v50  ;;  %11347 = vmatprep.mubr.msk.bf16.mxu1 %vm12194_vm1, %v12193_v8  ;;  %v12159_v50 = vld [vmem:[%s15104_s6 + $0x1c8] sm:$0xff]  }
0x3604   :  { %11341 = vmatprep.subr.bf16.mxu1 %v12193_v8 }
0x3607   :  { %11342 = vmatpush3.bf16.msra.mxu1 %v12139_v51  ;;  %v12160_v51 = vld [vmem:[%s15104_s6 + $0x1d0] sm:$0xff]  }
0x3608   :  { %11343 = vmatprep.subr.bf16.mxu1 %v12193_v8 }
0x360b   :  { %11344 = vmatpush3.bf16.msra.mxu1 %v12140_v52  ;;  %v12161_v52 = vld [vmem:[%s15104_s6 + $0x1d8] sm:$0xff]  }
0x360c   :  { %11345 = vmatprep.subr.bf16.mxu1 %v12193_v8 }
0x360f   :  { %11346 = vmatpush3.bf16.msra.mxu1 %v12141_v53 }
0x3610   :  { %11369 = vmatprep.subr.bf16.mxu1 %v12193_v8 }
0x3612   :  { %11348 = vmatmul.mubr.msk.bf16.vlgmr.msra.gmra.mrb[236].mxu1 %vm3813_vm4, %v14685_v33 }
0x3613   :  { %11371 = vmatprep.mubr.msk.bf16.mxu1 %vm12194_vm1, %v12193_v8 }
0x36d5   :  { %v8044_v54 = vpop.f32.mrb[232].mxu1 }
0x36d6   :  { %v8050_v34 = vadd.f32 %v8044_v54, %v7967_v38  ;;  %v11337_v55 = vpop.f32.mrb[233].mxu1 }
0x36d7   :  { %v8047_v58 = vpop.f32.mrb[234].mxu1 }
0x36d8   :  { %v11338_v56 = vpop.f32.mrb[235].mxu1 }
0x36e5   :  { %v8085_v4 = vpop.f32.mrb[236].mxu1 }
0x36e6   :  { %v11349_v59 = vpop.f32.mrb[237].mxu1 }
0x36e7   :  { %v8088_v60 = vpop.f32.mrb[238].mxu1 }
0x36e8   :  { %v8092_v61 = vpack.c.bf16 %v8088_v60, %v8085_v4  ;;  %v11350_v62 = vpop.f32.mrb[239].mxu1 }
0x36e9   :  { %v12162_v62 = vld [vmem:[%s15105_s7 + $0xe] sm:$0x1] }
0x36ea   :  { %11352 = vmatpush3.bf16.msra.mxu0 %v8092_v61 }
0x36eb   :  { %11357 = vmatprep.subr.bf16.mxu0 %v12193_v8 }
0x36ed   :  { %11354 = vmatmul.mubr.msk.bf16.vlgmr.msra.gmra.mrb[236].mxu0 %vm3937_vm5, %v12142_v63  ;;  %v12163_v63 = vld [vmem:[%s15104_s6 + $0x1e0] sm:$0xff]  }
0x36ee   :  { %11358 = vmatpush3.bf16.msra.mxu0 %v12143_v0  ;;  %11365 = vmatprep.mubr.msk.bf16.mxu0 %vm12194_vm1, %v12193_v8  ;;  %v12164_v0 = vld [vmem:[%s15104_s6 + $0x1e8] sm:$0xff]  }
0x36ef   :  { %11359 = vmatprep.subr.bf16.mxu0 %v12193_v8 }
0x36f2   :  { %11360 = vmatpush3.bf16.msra.mxu0 %v12144_v1  ;;  %v12165_v1 = vld [vmem:[%s15104_s6 + $0x1f0] sm:$0xff]  }
0x36f3   :  { %11361 = vmatprep.subr.bf16.mxu0 %v12193_v8 }
0x36f6   :  { %11362 = vmatpush3.bf16.msra.mxu0 %v12145_v35  ;;  %v12166_v35 = vld [vmem:[%s15104_s6 + $0x1f8] sm:$0xff]  }
0x36f7   :  { %11363 = vmatprep.subr.bf16.mxu0 %v12193_v8 }
0x36fa   :  { %11364 = vmatpush3.bf16.msra.mxu0 %v12146_v2 }
0x36fb   :  { %11387 = vmatprep.subr.bf16.mxu0 %v12193_v8 }
0x36fd   :  { %11366 = vmatmul.mubr.msk.bf16.vlgmr.msra.gmra.mrb[240].mxu0 %vm3813_vm4, %v14685_v33 }
0x36fe   :  { %11389 = vmatprep.mubr.msk.bf16.mxu0 %vm12194_vm1, %v12193_v8 }
0x37c0   :  { %v8127_v3 = vpop.f32.mrb[236].mxu0 }
0x37c1   :  { %v8133_v5 = vadd.f32 %v8127_v3, %v8050_v34  ;;  %v11355_v6 = vpop.f32.mrb[237].mxu0 }
0x37c2   :  { %v8130_v7 = vpop.f32.mrb[238].mxu0 }
0x37c3   :  { %v11356_v9 = vpop.f32.mrb[239].mxu0 }
0x37d0   :  { %v8168_v57 = vpop.f32.mrb[240].mxu0 }
0x37d1   :  { %v11367_v10 = vpop.f32.mrb[241].mxu0 }
0x37d2   :  { %v8171_v11 = vpop.f32.mrb[242].mxu0 }
0x37d3   :  { %v8175_v12 = vpack.c.bf16 %v8171_v11, %v8168_v57  ;;  %v11368_v13 = vpop.f32.mrb[243].mxu0 }
0x37d5   :  { %11370 = vmatpush3.bf16.msra.mxu1 %v8175_v12 }
0x37d6   :  { %11375 = vmatprep.subr.bf16.mxu1 %v12193_v8 }
0x37d8   :  { %11372 = vmatmul.mubr.msk.bf16.vlgmr.msra.gmra.mrb[240].mxu1 %vm3937_vm5, %v12147_v14 }
0x37d9   :  { %11376 = vmatpush3.bf16.msra.mxu1 %v12148_v15  ;;  %11383 = vmatprep.mubr.msk.bf16.mxu1 %vm12194_vm1, %v12193_v8 }
0x37da   :  { %11377 = vmatprep.subr.bf16.mxu1 %v12193_v8 }
0x37dd   :  { %11378 = vmatpush3.bf16.msra.mxu1 %v12149_v17 }
0x37de   :  { %11379 = vmatprep.subr.bf16.mxu1 %v12193_v8 }
0x37e1   :  { %11380 = vmatpush3.bf16.msra.mxu1 %v12150_v18 }
0x37e2   :  { %11381 = vmatprep.subr.bf16.mxu1 %v12193_v8 }
0x37e5   :  { %11382 = vmatpush3.bf16.msra.mxu1 %v12151_v19  ;;  %v9686_v19 = vld [vmem:[%s15107_s9 + $0x1] sm:$0x1]  ;;  %s12195_s9 = smov [#allocation4]  }
0x37e6   :  { %11405 = vmatprep.subr.bf16.mxu1 %v12193_v8  ;;  %s8581_s23 = sshll.u32 %s12195_s9, 4  ;;  %s8582_s23 = int_to_ptr.vmem [resolvable:$true] %s8581_s23 }
0x37e7   :  { %s12168_s24 = scalar_lea.vmem %s8582_s23, 16  ;;  %s12172_s3 = scalar_lea.vmem %s8582_s23, 32 }
0x37e8   :  { %11384 = vmatmul.mubr.msk.bf16.vlgmr.msra.gmra.mrb[244].mxu1 %vm3813_vm4, %v14685_v33  ;;  %p12169_p0 = scmp.ne.s32.totalorder %s8582_s23, %s12168_s24  ;;  %p12173_p1 = scmp.lt.s32.totalorder %s8582_s23, %s8582_s23 }
0x37e9   :  { %11407 = vmatprep.mubr.msk.bf16.mxu1 %vm12194_vm1, %v12193_v8  ;;  %p12174_p2 = scmp.lt.s32.totalorder %s12172_s3, %s12168_s24 }
0x37eb   :  { %p12175_p3 = por %p12174_p2, %p12173_p1 }
0x37ed   :  { %p12176_p4 = pnand %p12175_p3, %p12169_p0 }
0x38ab   :  { %v8210_v20 = vpop.f32.mrb[240].mxu1 }
0x38ac   :  { %v8216_v21 = vadd.f32 %v8210_v20, %v8133_v5  ;;  %v11373_v22 = vpop.f32.mrb[241].mxu1 }
0x38ad   :  { %v8213_v23 = vpop.f32.mrb[242].mxu1 }
0x38ae   :  { %v11374_v24 = vpop.f32.mrb[243].mxu1 }
0x38bb   :  { %v8251_v25 = vpop.f32.mrb[244].mxu1 }
0x38bc   :  { %v11385_v40 = vpop.f32.mrb[245].mxu1 }
0x38bd   :  { %v8254_v26 = vpop.f32.mrb[246].mxu1 }
0x38be   :  { %v8258_v27 = vpack.c.bf16 %v8254_v26, %v8251_v25  ;;  %v11386_v28 = vpop.f32.mrb[247].mxu1 }
0x38c0   :  { %11388 = vmatpush3.bf16.msra.mxu0 %v8258_v27 }
0x38c1   :  { %11393 = vmatprep.subr.bf16.mxu0 %v12193_v8 }
0x38c3   :  { %11390 = vmatmul.mubr.msk.bf16.vlgmr.msra.gmra.mrb[244].mxu0 %vm3937_vm5, %v12152_v29 }
0x38c4   :  { %11394 = vmatpush3.bf16.msra.mxu0 %v12153_v30  ;;  %11401 = vmatprep.mubr.msk.bf16.mxu0 %vm12194_vm1, %v12193_v8  ;;  %v8566_v30 = vld [vmem:[#allocation3] sm:$0x1] }
0x38c5   :  { %11395 = vmatprep.subr.bf16.mxu0 %v12193_v8 }
0x38c8   :  { %11396 = vmatpush3.bf16.msra.mxu0 %v12154_v32 }
0x38c9   :  { %11397 = vmatprep.subr.bf16.mxu0 %v12193_v8 }
0x38cc   :  { %11398 = vmatpush3.bf16.msra.mxu0 %v12155_v31 }
0x38cd   :  { %11399 = vmatprep.subr.bf16.mxu0 %v12193_v8 }
0x38d0   :  { %11400 = vmatpush3.bf16.msra.mxu0 %v12156_v45 }
0x38d1   :  { %11423 = vmatprep.subr.bf16.mxu0 %v12193_v8 }
0x38d3   :  { %11402 = vmatmul.mubr.msk.bf16.vlgmr.msra.gmra.mrb[248].mxu0 %vm3813_vm4, %v14685_v33 }
0x38d4   :  { %11425 = vmatprep.mubr.msk.bf16.mxu0 %vm12194_vm1, %v12193_v8 }
0x3996   :  { %v8293_v37 = vpop.f32.mrb[244].mxu0 }
0x3997   :  { %v8299_v36 = vadd.f32 %v8293_v37, %v8216_v21  ;;  %v11391_v38 = vpop.f32.mrb[245].mxu0 }
0x3998   :  { %v8296_v39 = vpop.f32.mrb[246].mxu0 }
0x3999   :  { %v11392_v41 = vpop.f32.mrb[247].mxu0 }
0x39a6   :  { %v8334_v42 = vpop.f32.mrb[248].mxu0 }
0x39a7   :  { %v11403_v43 = vpop.f32.mrb[249].mxu0 }
0x39a8   :  { %v8337_v44 = vpop.f32.mrb[250].mxu0 }
0x39a9   :  { %v8341_v46 = vpack.c.bf16 %v8337_v44, %v8334_v42  ;;  %v11404_v47 = vpop.f32.mrb[251].mxu0 }
0x39ab   :  { %11406 = vmatpush3.bf16.msra.mxu1 %v8341_v46 }
0x39ac   :  { %11411 = vmatprep.subr.bf16.mxu1 %v12193_v8 }
0x39ae   :  { %11408 = vmatmul.mubr.msk.bf16.vlgmr.msra.gmra.mrb[248].mxu1 %vm3937_vm5, %v12157_v48 }
0x39af   :  { %11412 = vmatpush3.bf16.msra.mxu1 %v12158_v49  ;;  %11419 = vmatprep.mubr.msk.bf16.mxu1 %vm12194_vm1, %v12193_v8 }
0x39b0   :  { %11413 = vmatprep.subr.bf16.mxu1 %v12193_v8 }
0x39b3   :  { %11414 = vmatpush3.bf16.msra.mxu1 %v12159_v50 }
0x39b4   :  { %11415 = vmatprep.subr.bf16.mxu1 %v12193_v8 }
0x39b7   :  { %11416 = vmatpush3.bf16.msra.mxu1 %v12160_v51 }
0x39b8   :  { %11417 = vmatprep.subr.bf16.mxu1 %v12193_v8 }
0x39bb   :  { %11418 = vmatpush3.bf16.msra.mxu1 %v12161_v52 }
0x39bc   :  { %11441 = vmatprep.subr.bf16.mxu1 %v12193_v8 }
0x39be   :  { %11420 = vmatmul.mubr.msk.bf16.vlgmr.msra.gmra.mrb[252].mxu1 %vm3813_vm4, %v14685_v33 }
0x39bf   :  { %11443 = vmatprep.mubr.msk.bf16.mxu1 %vm12194_vm1, %v12193_v8 }
0x3a81   :  { %v8376_v53 = vpop.f32.mrb[248].mxu1 }
0x3a82   :  { %v8382_v54 = vadd.f32 %v8376_v53, %v8299_v36  ;;  %v11409_v34 = vpop.f32.mrb[249].mxu1 }
0x3a83   :  { %v8379_v55 = vpop.f32.mrb[250].mxu1 }
0x3a84   :  { %v11410_v58 = vpop.f32.mrb[251].mxu1 }
0x3a91   :  { %v8417_v56 = vpop.f32.mrb[252].mxu1 }
0x3a92   :  { %v11421_v4 = vpop.f32.mrb[253].mxu1 }
0x3a93   :  { %v8420_v59 = vpop.f32.mrb[254].mxu1 }
0x3a94   :  { %v8424_v60 = vpack.c.bf16 %v8420_v59, %v8417_v56  ;;  %v11422_v61 = vpop.f32.mrb[255].mxu1 }
0x3a96   :  { %11424 = vmatpush3.bf16.msra.mxu0 %v8424_v60 }
0x3a97   :  { %11429 = vmatprep.subr.bf16.mxu0 %v12193_v8 }
0x3a99   :  { %11426 = vmatmul.mubr.msk.bf16.vlgmr.msra.gmra.mrb[252].mxu0 %vm3937_vm5, %v12162_v62 }
0x3a9a   :  { %11430 = vmatpush3.bf16.msra.mxu0 %v12163_v63  ;;  %11437 = vmatprep.mubr.msk.bf16.mxu0 %vm12194_vm1, %v12193_v8 }
0x3a9b   :  { %11431 = vmatprep.subr.bf16.mxu0 %v12193_v8 }
0x3a9e   :  { %11432 = vmatpush3.bf16.msra.mxu0 %v12164_v0 }
0x3a9f   :  { %11433 = vmatprep.subr.bf16.mxu0 %v12193_v8 }
0x3aa2   :  { %11434 = vmatpush3.bf16.msra.mxu0 %v12165_v1 }
0x3aa3   :  { %11435 = vmatprep.subr.bf16.mxu0 %v12193_v8  ;;  %v12167_v8 = vld [vmem:[%s15105_s7 + $0xf] sm:$0x1]  ;;  %s11448_s7 = spop %11447 }
0x3aa6   :  { %11436 = vmatpush3.bf16.msra.mxu0 %v12166_v35 }
0x3aa9   :  { %11438 = vmatmul.mubr.msk.bf16.vlgmr.msra.gmra.mrb[0].mxu0 %vm3813_vm4, %v14685_v33 }
0x3b6c   :  { %v8459_v2 = vpop.f32.mrb[252].mxu0 }
0x3b6d   :  { %v8465_v3 = vadd.f32 %v8459_v2, %v8382_v54  ;;  %v11427_v5 = vpop.f32.mrb[253].mxu0 }
0x3b6e   :  { %v8462_v6 = vpop.f32.mrb[254].mxu0 }
0x3b6f   :  { %v11428_v7 = vpop.f32.mrb[255].mxu0 }
0x3b7c   :  { %v8500_v9 = vpop.f32.mrb[0].mxu0 }
0x3b7d   :  { %v11439_v57 = vpop.f32.mrb[1].mxu0 }
0x3b7e   :  { %v8503_v10 = vpop.f32.mrb[2].mxu0 }
0x3b7f   :  { %v8507_v11 = vpack.c.bf16 %v8503_v10, %v8500_v9  ;;  %v11440_v12 = vpop.f32.mrb[3].mxu0 }
0x3b81   :  { %11442 = vmatpush3.bf16.msra.mxu1 %v8507_v11 }
0x3b84   :  { %11444 = vmatmul.mubr.msk.bf16.vlgmr.msra.gmra.mrb[0].mxu1 %vm3937_vm5, %v12167_v8 }
0x3c57   :  { %v8542_v13 = vpop.f32.mrb[0].mxu1 }
0x3c58   :  { %v8548_v14 = vadd.f32 %v8542_v13, %v8465_v3  ;;  %v11445_v33 = vpop.f32.mrb[1].mxu1 }
0x3c59   :  { %v8545_v15 = vpop.f32.mrb[2].mxu1 }
0x3c5a   :  { %v8549_v17 = vadd.f32 %v8548_v14, %v13795_v16  ;;  %v11446_v18 = vpop.f32.mrb[3].mxu1  ;;  %v5743_v16 = vstv %s11448_s7 }
0x3c5c   :  { %v8550_v20 = vmax.f32 %v8549_v17, 0.0 }
0x3c5e   :  { %v8553_v21 = vmul.f32 %v9686_v19, %v8550_v20 }
0x3c60   :  { %v8554_v22 = vsel %vm5732_vm6, %v8553_v21, 0.0 }
0x3c61   :  { %8555 = vadd.xlane.f32.xlu1 %v8554_v22 }
0x3cee   :  { %v8556_v23 = vpop.xlane.xlu1 %8555 }
0x3cef   :  { %v8557_v24 = vrot.slane %v8556_v23, 4 }
0x3cf1   :  { %v8558_v25 = vadd.f32 %v8557_v24, %v8556_v23 }
0x3cf3   :  { %v8559_v40 = vrot.slane %v8558_v25, 2 }
0x3cf5   :  { %v8560_v26 = vadd.f32 %v8559_v40, %v8558_v25 }
0x3cf7   :  { %v8561_v27 = vrot.slane %v8560_v26, 1 }
0x3cf9   :  { %v8562_v28 = vadd.f32 %v8561_v27, %v8560_v26 }
0x3cfb   :  { %11449 = vpush %v8562_v28 }
0x3d2c   :  { %s11450_s22 = spop %11449 }
0x3d2d   :  { %v8564_v29 = vstv %s11450_s22 }
0x3d2e   :  { %v8565_v32 = vadd.f32 %v8564_v29, %v5743_v16 }
0x3d30   :  { %v8567_v31 = vadd.f32 %v8566_v30, %v8565_v32 }
0x3d32   :  { %v8568_v45 = vsub.f32 0.0, %v8567_v31 }
0x3d34   :  { %v8569_v37 = vmul.f32 1.442695, %v8568_v45 }
0x3d36   :  { %11811 = vpow2.f32 %v8569_v37 }
0x3d40   :  { %v11812_v36 = vpop.eup %11811 }
0x3d41   :  { %v8571_v38 = vadd.f32 1.0, %v11812_v36 }
0x3d43   :  { %11813 = vrcp.f32 %v8571_v38 }
0x3d4d   :  { %v11814_v39 = vpop.eup %11813 }
0x3d4e   :  { %8574 = vst.msk [vmem:[#allocation4] sm:$0x1] %vm8573_vm7, %v11814_v39 }
0x3d4f   :  { %12179 = shalt.err (!%p12176_p4)
}
0x3d50   :  { %s12180_s10 = scalar_lea.hbm %s15108_s11, 16 }
0x3d51   :  { %p12181_p5 = scmp.ne.s32.totalorder %s15108_s11, %s12180_s10  ;;  %p12184_p6 = scmp.lt.u32.totalorder %s12180_s10, %s15108_s11 }
0x3d53   :  { %p12186_p7 = pnand %p12184_p6, %p12181_p5 }
0x3d55   :  { %12189 = shalt.err (!%p12186_p7)
}
0x3d56   :  { %8584 = dma.vmem_to_hbm [thread:$0]  %s8582_s23, 16, %s15108_s11, [#allocation5]  }
0x3d57   :  { %12190 = dma.done.wait [#allocation5], 16  }
0x3d58   :  { %12191 = vsyncadd [#allocation5], 4294967280 }
0x3d59   :  { %8588 = vsyncpa [#allocation5], 1 }

</bundles_post_ra>
